<compile_context>
chip_gen: v7x
topology: tpu7x:2x2x1
jax: 0.10.0
libtpu: 0.0.40
codegen_flags: <defaults>
</compile_context>

<pallas_src>
import functools

import jax
import jax.numpy as jnp
from jax.experimental import pallas as pl
from jax.experimental.pallas import tpu as pltpu

NEG_SLOPE = 0.2
BN_EPS = 1e-5


def _leaky(x):
    # equivalent to leaky_relu for 0 < slope < 1: one VPU mul + max
    return jnp.maximum(x, NEG_SLOPE * x)


# ---------------------------------------------------------------------------
# Fused ResBlock kernel
#   inputs : x_pad (1, Hp, Wp, Cin) bf16   -- NHWC, padded (and even/odd de-interleaved
#                                             along H and W when stride == 2)
#            w1f (9*Cin, Cout) bf16, b1 (1, Cout) f32     (BN1 scale folded into w1f)
#            w2f (9*Cout, Cout) bf16, b2 (1, Cout) f32    (BN2 scale folded into w2f)
#            [wsf (Cin, Cout) bf16, bs (1, Cout) f32]     (projection shortcut)
#   output : (1, TH*Wo, Cout) f32          -- NHWC tile (lane dim = Cout); wrapper does
#                                             one XLA permute to NCHW
#   scratch: y1p (TH+2, Wo+2, Cout) bf16   -- zero-bordered conv1 output tile
#            [p1 ((TH+2)*Wo, 9*Cin) bf16]  -- conv1 im2col slab (only when Cin  < 128)
#            [p2 (TH*Wo, 9*Cout) bf16]     -- conv2 im2col slab (only when Cout < 128)
# ---------------------------------------------------------------------------
def _resblock_kernel(xp_ref, w1_ref, b1_ref, w2_ref, b2_ref, *rest,
                     row_offs, col_offs, sc_row_off, sc_col_off,
                     has_proj, im2col1, im2col2):
    rest = list(rest)
    if has_proj:
        ws_ref, bs_ref = rest.pop(0), rest.pop(0)
    else:
        ws_ref = bs_ref = None
    o_ref = rest.pop(0)
    y1p_ref = rest.pop(0)
    p1_ref = rest.pop(0) if im2col1 else None
    p2_ref = rest.pop(0) if im2col2 else None

    f32, bf16 = jnp.float32, jnp.bfloat16
    Cin = xp_ref.shape[3]
    Cout = w2_ref.shape[1]
    TH2, Wo2, _ = y1p_ref.shape          # (TH+2, Wo+2, Cout)
    TH, Wo = TH2 - 2, Wo2 - 2
    M1, M2 = TH2 * Wo, TH * Wo

    t = pl.program_id(1)
    T = pl.num_programs(1)
    rbase = t * TH                       # row-tile base; stride handled via static offsets

    # ---- contiguous tap extractors (both strides; stride-2 strided access was folded
    #      into a wrapper-side de-interleave so these are always plain slices) ----
    def x_tap(kk):                       # (M1, Cin) bf16
        return xp_ref[0, pl.ds(rbase + row_offs[kk], TH2),
                      pl.ds(col_offs[kk], Wo), :].reshape(M1, Cin)

    def x_sc():                          # (M2, Cin) bf16 -- shortcut samples of x
        return xp_ref[0, pl.ds(rbase + sc_row_off, TH),
                      pl.ds(sc_col_off, Wo), :].reshape(M2, Cin)

    def y_tap(kk):                       # (M2, Cout) bf16 -- conv2 taps from staged y1
        kh, kw = kk // 3, kk % 3
        return y1p_ref[pl.ds(kh, TH), pl.ds(kw, Wo), :].reshape(M2, Cout)

    # ---- 3x3 conv: im2col (one K=9C matmul) for small C, else 9 direct accumulated
    #      matmuls on shifted windows (no slab store traffic; K=C>=128 feeds the MXU) ----
    def conv3x3(tap, w_ref, C, slab_ref):
        if slab_ref is not None:
            for kk in range(9):
                slab_ref[:, kk * C:(kk + 1) * C] = tap(kk)
            return jnp.dot(slab_ref[...], w_ref[...], preferred_element_type=f32)
        acc = jnp.dot(tap(0), w_ref[0:C, :], preferred_element_type=f32)
        for kk in range(1, 9):
            acc = acc + jnp.dot(tap(kk), w_ref[kk * C:(kk + 1) * C, :],
                                preferred_element_type=f32)
        return acc

    # ---- conv1 + BN1 shift + LeakyReLU ----
    y1 = _leaky(conv3x3(x_tap, w1_ref, Cin, p1_ref) + b1_ref[...])   # (M1, Cout) f32

    # ---- stage y1 into the zero-bordered VMEM tile; zero ONLY the halo columns
    #      (interior + halo rows are fully rewritten every step) ----
    zcol = jnp.zeros((TH2, 1, Cout), bf16)
    y1p_ref[:, pl.ds(0, 1), :] = zcol
    y1p_ref[:, pl.ds(Wo + 1, 1), :] = zcol
    y1p_ref[:, pl.ds(1, Wo), :] = y1.reshape(TH2, Wo, Cout).astype(bf16)

    # halo rows outside the image are conv2 zero-padding, not conv1 output
    @pl.when(t == 0)
    def _():
        y1p_ref[0, :, :] = jnp.zeros((Wo2, Cout), bf16)

    @pl.when(t == T - 1)
    def _():
        y1p_ref[TH2 - 1, :, :] = jnp.zeros((Wo2, Cout), bf16)

    # ---- conv2 + BN2 shift ----
    out = conv3x3(y_tap, w2_ref, Cout, p2_ref) + b2_ref[...]         # (M2, Cout) f32

    # ---- shortcut (fused) + add + LeakyReLU ----
    if has_proj:
        sc = jnp.dot(x_sc(), ws_ref[...], preferred_element_type=f32) + bs_ref[...]
    else:
        sc = x_sc().astype(f32)

    # NHWC store (lane dim = Cout): no in-kernel transpose.
    o_ref[0] = _leaky(out + sc).astype(o_ref.dtype)


# ---------------------------------------------------------------------------
# Wrapper helpers
# ---------------------------------------------------------------------------
def _pick_row_tile(Ho, Wo, Hp, Wp, Cin, Cout, has_proj, im2col1, im2col2,
                   budget=40 << 20):
    """Largest row tile (divisor of Ho) whose VMEM footprint fits the budget."""
    def footprint(th):
        m1, m2 = (th + 2) * Wo, th * Wo
        b = 2 * Hp * Wp * Cin * 2                                   # x block x2 buffers
        b += 2 * 2 * (9 * Cin * Cout + 9 * Cout * Cout
                      + (Cin * Cout if has_proj else 0))            # weights x2 buffers
        b += 2 * m2 * Cout * 4                                      # out block x2 buffers
        b += (th + 2) * (Wo + 2) * Cout * 2                         # y1 staging scratch
        if im2col1:
            b += m1 * 9 * Cin * 2
        if im2col2:
            b += m2 * 9 * Cout * 2
        b += (m1 + 2 * m2) * Cout * 4                               # f32 matmul results
        return b

    cands = [d for d in range(Ho, 0, -1)
             if Ho % d == 0 and ((d * Wo) % 8 == 0 or d == Ho)]
    for th in cands:
        if footprint(th) <= budget:
            return th, footprint(th)
    return cands[-1], footprint(cands[-1])


def resblock_pallas(x_nchw, params, *, stride=1, out_dtype=jnp.float32):
    N, Cin, H, W = x_nchw.shape
    Cout = params["w1"].shape[0]
    has_proj = "ws" in params
    if stride not in (1, 2):
        raise ValueError("only stride 1 or 2 supported")
    if not has_proj and stride != 1:
        # PyTorch's identity shortcut would shape-mismatch at the add for stride>1.
        raise ValueError("identity shortcut requires stride == 1")

    Ho = (H - 1) // stride + 1
    Wo = (W - 1) // stride + 1

    # ---- fold BN scale into conv weights; keep only the per-channel shift ----
    def fold(w_oihw, bn):
        gamma, beta, mean, var = bn
        scale = gamma / jnp.sqrt(var + BN_EPS)
        shift = (beta - mean * scale).astype(jnp.float32).reshape(1, Cout)
        w = jnp.transpose(w_oihw, (2, 3, 1, 0)).astype(jnp.float32) * scale
        return w, shift

    w1, b1 = fold(params["w1"], params["bn1"])          # (3,3,Cin,Cout)
    w2, b2 = fold(params["w2"], params["bn2"])          # (3,3,Cout,Cout)
    w1f = w1.reshape(9 * Cin, Cout).astype(jnp.bfloat16)
    w2f = w2.reshape(9 * Cout, Cout).astype(jnp.bfloat16)

    # NHWC + bf16 + zero pad: 1 col each side, (stride+1) rows each side so every
    # row tile (incl. conv2 halo rows) slices with in-bounds indices.
    P = stride + 1
    x = jnp.transpose(x_nchw, (0, 2, 3, 1)).astype(jnp.bfloat16)
    x_pad = jnp.pad(x, ((0, 0), (P, P), (1, 1), (0, 0)))
    Hp, Wp = x_pad.shape[1], x_pad.shape[2]

    if stride == 1:
        row_offs = tuple(kk // 3 for kk in range(9))
        col_offs = tuple(kk % 3 for kk in range(9))
        sc_row_off, sc_col_off = P, 1
    else:
        # De-interleave (pixel-unshuffle) rows/cols into even-then-odd order so all
        # stride-2 taps become contiguous slices inside the kernel.
        He, We = (Hp + 1) // 2, (Wp + 1) // 2
        hperm = jnp.array(list(range(0, Hp, 2)) + list(range(1, Hp, 2)))
        wperm = jnp.array(list(range(0, Wp, 2)) + list(range(1, Wp, 2)))
        x_pad = jnp.take(jnp.take(x_pad, hperm, axis=1), wperm, axis=2)

        def roff(k):   # padded offset k (parity k%2) -> de-interleaved start offset
            return k // 2 if k % 2 == 0 else He + (k - 1) // 2

        def coff(k):
            return k // 2 if k % 2 == 0 else We + (k - 1) // 2

        row_offs = tuple(roff(kk // 3) for kk in range(9))
        col_offs = tuple(coff(kk % 3) for kk in range(9))
        sc_row_off, sc_col_off = roff(P), coff(1)       # shortcut samples x[2i, 2j]

    im2col1 = Cin < 128                                 # conv1 path selector
    im2col2 = Cout < 128                                # conv2 path selector

    TH, fp = _pick_row_tile(Ho, Wo, Hp, Wp, Cin, Cout, has_proj, im2col1, im2col2)
    T = Ho // TH
    TH2 = TH + 2
    M1, M2 = TH2 * Wo, TH * Wo

    in_specs = [
        pl.BlockSpec((1, Hp, Wp, Cin), lambda n, t: (n, 0, 0, 0)),  # one DMA per image
        pl.BlockSpec((9 * Cin, Cout), lambda n, t: (0, 0)),
        pl.BlockSpec((1, Cout), lambda n, t: (0, 0)),
        pl.BlockSpec((9 * Cout, Cout), lambda n, t: (0, 0)),
        pl.BlockSpec((1, Cout), lambda n, t: (0, 0)),
    ]
    args = [x_pad, w1f, b1, w2f, b2]
    if has_proj:
        ws, bs = fold(params["ws"], params["bns"])      # ws: (1,1,Cin,Cout)
        wsf = ws.reshape(Cin, Cout).astype(jnp.bfloat16)
        in_specs += [pl.BlockSpec((Cin, Cout), lambda n, t: (0, 0)),
                     pl.BlockSpec((1, Cout), lambda n, t: (0, 0))]
        args += [wsf, bs]

    scratch = [pltpu.VMEM((TH2, Wo + 2, Cout), jnp.bfloat16)]       # zero-bordered y1
    if im2col1:
        scratch.append(pltpu.VMEM((M1, 9 * Cin), jnp.bfloat16))     # conv1 im2col slab
    if im2col2:
        scratch.append(pltpu.VMEM((M2, 9 * Cout), jnp.bfloat16))    # conv2 im2col slab

    vmem_limit = int(min(64 << 20, max(32 << 20, 2 * fp + (4 << 20))))

    kernel = functools.partial(
        _resblock_kernel,
        row_offs=row_offs, col_offs=col_offs,
        sc_row_off=sc_row_off, sc_col_off=sc_col_off,
        has_proj=has_proj, im2col1=im2col1, im2col2=im2col2)

    out_nhwc = pl.pallas_call(
        kernel,
        out_shape=jax.ShapeDtypeStruct((N, Ho * Wo, Cout), out_dtype),
        grid=(N, T),
        in_specs=in_specs,
        out_specs=pl.BlockSpec((1, TH * Wo, Cout), lambda n, t: (n, t, 0)),
        scratch_shapes=scratch,
        compiler_params=pltpu.CompilerParams(
            dimension_semantics=("parallel", "parallel"),
            vmem_limit_bytes=vmem_limit),
    )(*args)

    # single XLA permute back to NCHW (kernel already produced lane-dense NHWC)
    return jnp.transpose(out_nhwc.reshape(N, Ho, Wo, Cout), (0, 3, 1, 2))


# ---------------------------------------------------------------------------
# Parameter setup (deterministic, synthetic)
# ---------------------------------------------------------------------------
def _init_bn(key, c):
    k1, k2, k3, k4 = jax.random.split(key, 4)
    gamma = 1.0 + 0.1 * jax.random.normal(k1, (c,), jnp.float32)
    beta = 0.1 * jax.random.normal(k2, (c,), jnp.float32)
    mean = 0.1 * jax.random.normal(k3, (c,), jnp.float32)
    var = jnp.abs(jax.random.normal(k4, (c,), jnp.float32)) + 0.5
    return (gamma, beta, mean, var)


def init_resblock_params(key, in_channels, out_channels):
    ks = jax.random.split(key, 6)
    params = {
        "w1": 0.1 * jax.random.normal(ks[0], (out_channels, in_channels, 3, 3), jnp.float32),
        "bn1": _init_bn(ks[1], out_channels),
        "w2": 0.1 * jax.random.normal(ks[2], (out_channels, out_channels, 3, 3), jnp.float32),
        "bn2": _init_bn(ks[3], out_channels),
    }
    if in_channels != out_channels:
        params["ws"] = 0.1 * jax.random.normal(ks[4], (out_channels, in_channels, 1, 1), jnp.float32)
        params["bns"] = _init_bn(ks[5], out_channels)
    return params


# ---------------------------------------------------------------------------
# Pure-JAX reference (mirrors the PyTorch forward, BN in eval mode)
# ---------------------------------------------------------------------------
def resblock_reference(x, params, *, stride=1):
    def conv(x, w, s, p):
        return jax.lax.conv_general_dilated(
            x, w, (s, s), [(p, p), (p, p)],
            dimension_numbers=("NCHW", "OIHW", "NCHW"))

    def bn(x, bn_params):
        gamma, beta, mean, var = bn_params
        sc = gamma / jnp.sqrt(var + BN_EPS)
        return x * sc[None, :, None, None] + (beta - mean * sc)[None, :, None, None]

    out = conv(x, params["w1"], stride, 1)
    out = _leaky(bn(out, params["bn1"]))
    out = conv(out, params["w2"], 1, 1)
    out = bn(out, params["bn2"])
    if "ws" in params:
        sc = bn(conv(x, params["ws"], stride, 0), params["bns"])
    else:
        sc = x
    return _leaky(out + sc)


def _check(out, ref, name):
    err = float(jnp.max(jnp.abs(out - ref)))
    scale = float(jnp.max(jnp.abs(ref))) + 1e-6
    # bf16 activations/weights with f32 accumulation (K up to 9*C) -> loosened tolerance
    if err > 1e-1 and err > 3e-2 * scale:
        raise SystemExit(f"{name}: mismatch vs reference (max abs err={err}, rel={err / scale})")


if __name__ == "__main__":
    key = jax.random.PRNGKey(0)
    k_x, k_p1, k_p2, k_p3, k_p4 = jax.random.split(key, 5)

    # 1) projection shortcut, stride 1 (small-C im2col path)
    N, Cin, Cout, H, W = 2, 4, 8, 16, 16
    x = jax.random.normal(k_x, (N, Cin, H, W), jnp.float32)
    p = init_resblock_params(k_p1, Cin, Cout)
    out = jax.block_until_ready(resblock_pallas(x, p, stride=1))
    ref = resblock_reference(x, p, stride=1)
    assert out.shape == ref.shape == (N, Cout, H, W)
    _check(out, ref, "proj-stride1")

    # 2) identity shortcut, stride 1
    x2 = jax.random.normal(k_x, (N, Cout, H, W), jnp.float32)
    p2 = init_resblock_params(k_p2, Cout, Cout)
    out2 = jax.block_until_ready(resblock_pallas(x2, p2, stride=1))
    _check(out2, resblock_reference(x2, p2, stride=1), "identity-stride1")

    # 3) projection shortcut, stride 2 (downsampling block; de-interleaved taps)
    p3 = init_resblock_params(k_p3, Cin, Cout)
    out3 = jax.block_until_ready(resblock_pallas(x, p3, stride=2))
    ref3 = resblock_reference(x, p3, stride=2)
    assert out3.shape == ref3.shape == (N, Cout, H // 2, W // 2)
    _check(out3, ref3, "proj-stride2")

    # 4) channels >= 128 -> direct accumulated-matmul conv path (no im2col slabs)
    x4 = jax.random.normal(k_x, (N, 128, 8, 8), jnp.float32)
    p4 = init_resblock_params(k_p4, 128, 128)
    out4 = jax.block_until_ready(resblock_pallas(x4, p4, stride=1))
    _check(out4, resblock_reference(x4, p4, stride=1), "identity-stride1-c128")

    print("KERNEL_OK")
</pallas_src>

<mosaic_0001>
module attributes {stable_mosaic.version = 11 : i64} {
  func.func @_resblock_kernel(%arg0: i32, %arg1: i32, %arg2: memref<1x20x18x4xbf16, #tpu.memory_space<vmem>>, %arg3: memref<36x8xbf16, #tpu.memory_space<vmem>>, %arg4: memref<1x8xf32, #tpu.memory_space<vmem>>, %arg5: memref<72x8xbf16, #tpu.memory_space<vmem>>, %arg6: memref<1x8xf32, #tpu.memory_space<vmem>>, %arg7: memref<4x8xbf16, #tpu.memory_space<vmem>>, %arg8: memref<1x8xf32, #tpu.memory_space<vmem>>, %arg9: memref<1x256x8xf32, #tpu.memory_space<vmem>>, %arg10: memref<18x18x8xbf16, #tpu.memory_space<vmem>>, %arg11: memref<288x36xbf16, #tpu.memory_space<vmem>>, %arg12: memref<256x72xbf16, #tpu.memory_space<vmem>>) attributes {dimension_semantics = [#tpu.dimension_semantics<parallel>, #tpu.dimension_semantics<parallel>], iteration_bounds = array<i64: 2, 1>, scalar_prefetch = 0 : i64, scratch_operands = 3 : i64, tpu.core_type = #tpu.core_type<tc>, window_params = [{transform_indices = @transform_0, window_bounds = array<i64: 1, 20, 18, 4>}, {pipeline_mode = #tpu.pipeline_mode<synchronous>, transform_indices = @transform_1, window_bounds = array<i64: 36, 8>}, {pipeline_mode = #tpu.pipeline_mode<synchronous>, transform_indices = @transform_2, window_bounds = array<i64: 1, 8>}, {pipeline_mode = #tpu.pipeline_mode<synchronous>, transform_indices = @transform_3, window_bounds = array<i64: 72, 8>}, {pipeline_mode = #tpu.pipeline_mode<synchronous>, transform_indices = @transform_4, window_bounds = array<i64: 1, 8>}, {pipeline_mode = #tpu.pipeline_mode<synchronous>, transform_indices = @transform_5, window_bounds = array<i64: 4, 8>}, {pipeline_mode = #tpu.pipeline_mode<synchronous>, transform_indices = @transform_6, window_bounds = array<i64: 1, 8>}, {transform_indices = @transform_7, window_bounds = array<i64: 1, 256, 8>}]} {
    %c16_i32 = arith.constant 16 : i32
    %0 = arith.muli %arg1, %c16_i32 : i32
    %c0_i32 = arith.constant 0 : i32
    %1 = arith.addi %0, %c0_i32 : i32
    %c0 = arith.constant 0 : index
    %2 = arith.index_cast %1 : i32 to index
    %c0_0 = arith.constant 0 : index
    %c0_1 = arith.constant 0 : index
    %3 = vector.load %arg2[%c0, %2, %c0_0, %c0_1] : memref<1x20x18x4xbf16, #tpu.memory_space<vmem>>, vector<1x18x16x4xbf16>
    %4 = vector.shape_cast %3 : vector<1x18x16x4xbf16> to vector<18x16x4xbf16>
    %5 = vector.shape_cast %4 : vector<18x16x4xbf16> to vector<288x4xbf16>
    %c0_2 = arith.constant 0 : index
    %c0_3 = arith.constant 0 : index
    %6 = vector.load %arg11[%c0_2, %c0_3] : memref<288x36xbf16, #tpu.memory_space<vmem>>, vector<288x4xbf16>
    tpu.vector_store %arg11[%c0_2, %c0_3], %5 {strides = array<i32>} : memref<288x36xbf16, #tpu.memory_space<vmem>>, vector<288x4xbf16>,
    %c0_i32_4 = arith.constant 0 : i32
    %7 = arith.addi %0, %c0_i32_4 : i32
    %c0_5 = arith.constant 0 : index
    %8 = arith.index_cast %7 : i32 to index
    %c1 = arith.constant 1 : index
    %c0_6 = arith.constant 0 : index
    %9 = vector.load %arg2[%c0_5, %8, %c1, %c0_6] : memref<1x20x18x4xbf16, #tpu.memory_space<vmem>>, vector<1x18x16x4xbf16>
    %10 = vector.shape_cast %9 : vector<1x18x16x4xbf16> to vector<18x16x4xbf16>
    %11 = vector.shape_cast %10 : vector<18x16x4xbf16> to vector<288x4xbf16>
    %c0_7 = arith.constant 0 : index
    %c4 = arith.constant 4 : index
    %12 = vector.load %arg11[%c0_7, %c4] : memref<288x36xbf16, #tpu.memory_space<vmem>>, vector<288x4xbf16>
    tpu.vector_store %arg11[%c0_7, %c4], %11 {strides = array<i32>} : memref<288x36xbf16, #tpu.memory_space<vmem>>, vector<288x4xbf16>,
    %c0_i32_8 = arith.constant 0 : i32
    %13 = arith.addi %0, %c0_i32_8 : i32
    %c0_9 = arith.constant 0 : index
    %14 = arith.index_cast %13 : i32 to index
    %c2 = arith.constant 2 : index
    %c0_10 = arith.constant 0 : index
    %15 = vector.load %arg2[%c0_9, %14, %c2, %c0_10] : memref<1x20x18x4xbf16, #tpu.memory_space<vmem>>, vector<1x18x16x4xbf16>
    %16 = vector.shape_cast %15 : vector<1x18x16x4xbf16> to vector<18x16x4xbf16>
    %17 = vector.shape_cast %16 : vector<18x16x4xbf16> to vector<288x4xbf16>
    %c0_11 = arith.constant 0 : index
    %c8 = arith.constant 8 : index
    %18 = vector.load %arg11[%c0_11, %c8] : memref<288x36xbf16, #tpu.memory_space<vmem>>, vector<288x4xbf16>
    tpu.vector_store %arg11[%c0_11, %c8], %17 {strides = array<i32>} : memref<288x36xbf16, #tpu.memory_space<vmem>>, vector<288x4xbf16>,
    %c1_i32 = arith.constant 1 : i32
    %19 = arith.addi %0, %c1_i32 : i32
    %c0_12 = arith.constant 0 : index
    %20 = arith.index_cast %19 : i32 to index
    %c0_13 = arith.constant 0 : index
    %c0_14 = arith.constant 0 : index
    %21 = vector.load %arg2[%c0_12, %20, %c0_13, %c0_14] : memref<1x20x18x4xbf16, #tpu.memory_space<vmem>>, vector<1x18x16x4xbf16>
    %22 = vector.shape_cast %21 : vector<1x18x16x4xbf16> to vector<18x16x4xbf16>
    %23 = vector.shape_cast %22 : vector<18x16x4xbf16> to vector<288x4xbf16>
    %c0_15 = arith.constant 0 : index
    %c12 = arith.constant 12 : index
    %24 = vector.load %arg11[%c0_15, %c12] : memref<288x36xbf16, #tpu.memory_space<vmem>>, vector<288x4xbf16>
    tpu.vector_store %arg11[%c0_15, %c12], %23 {strides = array<i32>} : memref<288x36xbf16, #tpu.memory_space<vmem>>, vector<288x4xbf16>,
    %c1_i32_16 = arith.constant 1 : i32
    %25 = arith.addi %0, %c1_i32_16 : i32
    %c0_17 = arith.constant 0 : index
    %26 = arith.index_cast %25 : i32 to index
    %c1_18 = arith.constant 1 : index
    %c0_19 = arith.constant 0 : index
    %27 = vector.load %arg2[%c0_17, %26, %c1_18, %c0_19] : memref<1x20x18x4xbf16, #tpu.memory_space<vmem>>, vector<1x18x16x4xbf16>
    %28 = vector.shape_cast %27 : vector<1x18x16x4xbf16> to vector<18x16x4xbf16>
    %29 = vector.shape_cast %28 : vector<18x16x4xbf16> to vector<288x4xbf16>
    %c0_20 = arith.constant 0 : index
    %c16 = arith.constant 16 : index
    %30 = vector.load %arg11[%c0_20, %c16] : memref<288x36xbf16, #tpu.memory_space<vmem>>, vector<288x4xbf16>
    tpu.vector_store %arg11[%c0_20, %c16], %29 {strides = array<i32>} : memref<288x36xbf16, #tpu.memory_space<vmem>>, vector<288x4xbf16>,
    %c1_i32_21 = arith.constant 1 : i32
    %31 = arith.addi %0, %c1_i32_21 : i32
    %c0_22 = arith.constant 0 : index
    %32 = arith.index_cast %31 : i32 to index
    %c2_23 = arith.constant 2 : index
    %c0_24 = arith.constant 0 : index
    %33 = vector.load %arg2[%c0_22, %32, %c2_23, %c0_24] : memref<1x20x18x4xbf16, #tpu.memory_space<vmem>>, vector<1x18x16x4xbf16>
    %34 = vector.shape_cast %33 : vector<1x18x16x4xbf16> to vector<18x16x4xbf16>
    %35 = vector.shape_cast %34 : vector<18x16x4xbf16> to vector<288x4xbf16>
    %c0_25 = arith.constant 0 : index
    %c20 = arith.constant 20 : index
    %36 = vector.load %arg11[%c0_25, %c20] : memref<288x36xbf16, #tpu.memory_space<vmem>>, vector<288x4xbf16>
    tpu.vector_store %arg11[%c0_25, %c20], %35 {strides = array<i32>} : memref<288x36xbf16, #tpu.memory_space<vmem>>, vector<288x4xbf16>,
    %c2_i32 = arith.constant 2 : i32
    %37 = arith.addi %0, %c2_i32 : i32
    %c0_26 = arith.constant 0 : index
    %38 = arith.index_cast %37 : i32 to index
    %c0_27 = arith.constant 0 : index
    %c0_28 = arith.constant 0 : index
    %39 = vector.load %arg2[%c0_26, %38, %c0_27, %c0_28] : memref<1x20x18x4xbf16, #tpu.memory_space<vmem>>, vector<1x18x16x4xbf16>
    %40 = vector.shape_cast %39 : vector<1x18x16x4xbf16> to vector<18x16x4xbf16>
    %41 = vector.shape_cast %40 : vector<18x16x4xbf16> to vector<288x4xbf16>
    %c0_29 = arith.constant 0 : index
    %c24 = arith.constant 24 : index
    %42 = vector.load %arg11[%c0_29, %c24] : memref<288x36xbf16, #tpu.memory_space<vmem>>, vector<288x4xbf16>
    tpu.vector_store %arg11[%c0_29, %c24], %41 {strides = array<i32>} : memref<288x36xbf16, #tpu.memory_space<vmem>>, vector<288x4xbf16>,
    %c2_i32_30 = arith.constant 2 : i32
    %43 = arith.addi %0, %c2_i32_30 : i32
    %c0_31 = arith.constant 0 : index
    %44 = arith.index_cast %43 : i32 to index
    %c1_32 = arith.constant 1 : index
    %c0_33 = arith.constant 0 : index
    %45 = vector.load %arg2[%c0_31, %44, %c1_32, %c0_33] : memref<1x20x18x4xbf16, #tpu.memory_space<vmem>>, vector<1x18x16x4xbf16>
    %46 = vector.shape_cast %45 : vector<1x18x16x4xbf16> to vector<18x16x4xbf16>
    %47 = vector.shape_cast %46 : vector<18x16x4xbf16> to vector<288x4xbf16>
    %c0_34 = arith.constant 0 : index
    %c28 = arith.constant 28 : index
    %48 = vector.load %arg11[%c0_34, %c28] : memref<288x36xbf16, #tpu.memory_space<vmem>>, vector<288x4xbf16>
    tpu.vector_store %arg11[%c0_34, %c28], %47 {strides = array<i32>} : memref<288x36xbf16, #tpu.memory_space<vmem>>, vector<288x4xbf16>,
    %c2_i32_35 = arith.constant 2 : i32
    %49 = arith.addi %0, %c2_i32_35 : i32
    %c0_36 = arith.constant 0 : index
    %50 = arith.index_cast %49 : i32 to index
    %c2_37 = arith.constant 2 : index
    %c0_38 = arith.constant 0 : index
    %51 = vector.load %arg2[%c0_36, %50, %c2_37, %c0_38] : memref<1x20x18x4xbf16, #tpu.memory_space<vmem>>, vector<1x18x16x4xbf16>
    %52 = vector.shape_cast %51 : vector<1x18x16x4xbf16> to vector<18x16x4xbf16>
    %53 = vector.shape_cast %52 : vector<18x16x4xbf16> to vector<288x4xbf16>
    %c0_39 = arith.constant 0 : index
    %c32 = arith.constant 32 : index
    %54 = vector.load %arg11[%c0_39, %c32] : memref<288x36xbf16, #tpu.memory_space<vmem>>, vector<288x4xbf16>
    tpu.vector_store %arg11[%c0_39, %c32], %53 {strides = array<i32>} : memref<288x36xbf16, #tpu.memory_space<vmem>>, vector<288x4xbf16>,
    %c0_40 = arith.constant 0 : index
    %c0_41 = arith.constant 0 : index
    %55 = vector.load %arg11[%c0_40, %c0_41] : memref<288x36xbf16, #tpu.memory_space<vmem>>, vector<288x36xbf16>
    %c0_42 = arith.constant 0 : index
    %c0_43 = arith.constant 0 : index
    %56 = vector.load %arg3[%c0_42, %c0_43] : memref<36x8xbf16, #tpu.memory_space<vmem>>, vector<36x8xbf16>
    %cst = arith.constant dense<0.000000e+00> : vector<288x8xf32>
    %57 = tpu.matmul %55, %56, %cst {dimension_numbers = #tpu.dot_dimension_numbers<[1], [0], [0], [1], [0, 0, 1, 1], [], []>} : vector<288x36xbf16>, vector<36x8xbf16>, vector<288x8xf32> -> vector<288x8xf32>
    %c0_44 = arith.constant 0 : index
    %c0_45 = arith.constant 0 : index
    %58 = vector.load %arg4[%c0_44, %c0_45] : memref<1x8xf32, #tpu.memory_space<vmem>>, vector<1x8xf32>
    %59 = vector.broadcast %58 : vector<1x8xf32> to vector<288x8xf32>
    %60 = arith.addf %57, %59 : vector<288x8xf32>
    %cst_46 = arith.constant 2.000000e-01 : f32
    %61 = vector.broadcast %cst_46 : f32 to vector<288x8xf32>
    %62 = arith.mulf %61, %60 : vector<288x8xf32>
    %63 = arith.maximumf %60, %62 : vector<288x8xf32>
    %cst_47 = arith.constant 0.000000e+00 : bf16
    %64 = vector.broadcast %cst_47 : bf16 to vector<18x1x8xbf16>
    %c0_48 = arith.constant 0 : index
    %c0_49 = arith.constant 0 : index
    %c0_50 = arith.constant 0 : index
    %65 = vector.load %arg10[%c0_48, %c0_49, %c0_50] : memref<18x18x8xbf16, #tpu.memory_space<vmem>>, vector<18x1x8xbf16>
    tpu.vector_store %arg10[%c0_48, %c0_49, %c0_50], %64 {strides = array<i32>} : memref<18x18x8xbf16, #tpu.memory_space<vmem>>, vector<18x1x8xbf16>,
    %c0_51 = arith.constant 0 : index
    %c17 = arith.constant 17 : index
    %c0_52 = arith.constant 0 : index
    %66 = vector.load %arg10[%c0_51, %c17, %c0_52] : memref<18x18x8xbf16, #tpu.memory_space<vmem>>, vector<18x1x8xbf16>
    tpu.vector_store %arg10[%c0_51, %c17, %c0_52], %64 {strides = array<i32>} : memref<18x18x8xbf16, #tpu.memory_space<vmem>>, vector<18x1x8xbf16>,
    %67 = vector.shape_cast %63 : vector<288x8xf32> to vector<18x16x8xf32>
    %68 = arith.truncf %67 : vector<18x16x8xf32> to vector<18x16x8xbf16>
    %c0_53 = arith.constant 0 : index
    %c1_54 = arith.constant 1 : index
    %c0_55 = arith.constant 0 : index
    %69 = vector.load %arg10[%c0_53, %c1_54, %c0_55] : memref<18x18x8xbf16, #tpu.memory_space<vmem>>, vector<18x16x8xbf16>
    tpu.vector_store %arg10[%c0_53, %c1_54, %c0_55], %68 {strides = array<i32>} : memref<18x18x8xbf16, #tpu.memory_space<vmem>>, vector<18x16x8xbf16>,
    %c0_i32_56 = arith.constant 0 : i32
    %70 = arith.cmpi eq, %arg1, %c0_i32_56 : i32
    %71 = arith.extui %70 : i1 to i32
    %c0_i32_57 = arith.constant 0 : i32
    %72 = arith.cmpi ne, %71, %c0_i32_57 : i32
    scf.if %72 {
      %cst_121 = arith.constant 0.000000e+00 : bf16
      %126 = vector.broadcast %cst_121 : bf16 to vector<18x8xbf16>
      %c0_122 = arith.constant 0 : index
      %c0_123 = arith.constant 0 : index
      %c0_124 = arith.constant 0 : index
      %127 = vector.load %arg10[%c0_122, %c0_123, %c0_124] : memref<18x18x8xbf16, #tpu.memory_space<vmem>>, vector<1x18x8xbf16>
      %128 = vector.shape_cast %127 : vector<1x18x8xbf16> to vector<18x8xbf16>
      %129 = vector.shape_cast %126 : vector<18x8xbf16> to vector<1x18x8xbf16>
      tpu.vector_store %arg10[%c0_122, %c0_123, %c0_124], %129 {strides = array<i32>} : memref<18x18x8xbf16, #tpu.memory_space<vmem>>, vector<1x18x8xbf16>,
    } else {
    }
    %c0_i32_58 = arith.constant 0 : i32
    %73 = arith.cmpi eq, %arg1, %c0_i32_58 : i32
    %74 = arith.extui %73 : i1 to i32
    %c0_i32_59 = arith.constant 0 : i32
    %75 = arith.cmpi ne, %74, %c0_i32_59 : i32
    scf.if %75 {
      %cst_121 = arith.constant 0.000000e+00 : bf16
      %126 = vector.broadcast %cst_121 : bf16 to vector<18x8xbf16>
      %c17_122 = arith.constant 17 : index
      %c0_123 = arith.constant 0 : index
      %c0_124 = arith.constant 0 : index
      %127 = vector.load %arg10[%c17_122, %c0_123, %c0_124] : memref<18x18x8xbf16, #tpu.memory_space<vmem>>, vector<1x18x8xbf16>
      %128 = vector.shape_cast %127 : vector<1x18x8xbf16> to vector<18x8xbf16>
      %129 = vector.shape_cast %126 : vector<18x8xbf16> to vector<1x18x8xbf16>
      tpu.vector_store %arg10[%c17_122, %c0_123, %c0_124], %129 {strides = array<i32>} : memref<18x18x8xbf16, #tpu.memory_space<vmem>>, vector<1x18x8xbf16>,
    } else {
    }
    %c0_60 = arith.constant 0 : index
    %c0_61 = arith.constant 0 : index
    %c0_62 = arith.constant 0 : index
    %76 = vector.load %arg10[%c0_60, %c0_61, %c0_62] : memref<18x18x8xbf16, #tpu.memory_space<vmem>>, vector<16x16x8xbf16>
    %77 = vector.shape_cast %76 : vector<16x16x8xbf16> to vector<256x8xbf16>
    %c0_63 = arith.constant 0 : index
    %c0_64 = arith.constant 0 : index
    %78 = vector.load %arg12[%c0_63, %c0_64] : memref<256x72xbf16, #tpu.memory_space<vmem>>, vector<256x8xbf16>
    tpu.vector_store %arg12[%c0_63, %c0_64], %77 {strides = array<i32>} : memref<256x72xbf16, #tpu.memory_space<vmem>>, vector<256x8xbf16>,
    %c0_65 = arith.constant 0 : index
    %c1_66 = arith.constant 1 : index
    %c0_67 = arith.constant 0 : index
    %79 = vector.load %arg10[%c0_65, %c1_66, %c0_67] : memref<18x18x8xbf16, #tpu.memory_space<vmem>>, vector<16x16x8xbf16>
    %80 = vector.shape_cast %79 : vector<16x16x8xbf16> to vector<256x8xbf16>
    %c0_68 = arith.constant 0 : index
    %c8_69 = arith.constant 8 : index
    %81 = vector.load %arg12[%c0_68, %c8_69] : memref<256x72xbf16, #tpu.memory_space<vmem>>, vector<256x8xbf16>
    tpu.vector_store %arg12[%c0_68, %c8_69], %80 {strides = array<i32>} : memref<256x72xbf16, #tpu.memory_space<vmem>>, vector<256x8xbf16>,
    %c0_70 = arith.constant 0 : index
    %c2_71 = arith.constant 2 : index
    %c0_72 = arith.constant 0 : index
    %82 = vector.load %arg10[%c0_70, %c2_71, %c0_72] : memref<18x18x8xbf16, #tpu.memory_space<vmem>>, vector<16x16x8xbf16>
    %83 = vector.shape_cast %82 : vector<16x16x8xbf16> to vector<256x8xbf16>
    %c0_73 = arith.constant 0 : index
    %c16_74 = arith.constant 16 : index
    %84 = vector.load %arg12[%c0_73, %c16_74] : memref<256x72xbf16, #tpu.memory_space<vmem>>, vector<256x8xbf16>
    tpu.vector_store %arg12[%c0_73, %c16_74], %83 {strides = array<i32>} : memref<256x72xbf16, #tpu.memory_space<vmem>>, vector<256x8xbf16>,
    %c1_75 = arith.constant 1 : index
    %c0_76 = arith.constant 0 : index
    %c0_77 = arith.constant 0 : index
    %85 = vector.load %arg10[%c1_75, %c0_76, %c0_77] : memref<18x18x8xbf16, #tpu.memory_space<vmem>>, vector<16x16x8xbf16>
    %86 = vector.shape_cast %85 : vector<16x16x8xbf16> to vector<256x8xbf16>
    %c0_78 = arith.constant 0 : index
    %c24_79 = arith.constant 24 : index
    %87 = vector.load %arg12[%c0_78, %c24_79] : memref<256x72xbf16, #tpu.memory_space<vmem>>, vector<256x8xbf16>
    tpu.vector_store %arg12[%c0_78, %c24_79], %86 {strides = array<i32>} : memref<256x72xbf16, #tpu.memory_space<vmem>>, vector<256x8xbf16>,
    %c1_80 = arith.constant 1 : index
    %c1_81 = arith.constant 1 : index
    %c0_82 = arith.constant 0 : index
    %88 = vector.load %arg10[%c1_80, %c1_81, %c0_82] : memref<18x18x8xbf16, #tpu.memory_space<vmem>>, vector<16x16x8xbf16>
    %89 = vector.shape_cast %88 : vector<16x16x8xbf16> to vector<256x8xbf16>
    %c0_83 = arith.constant 0 : index
    %c32_84 = arith.constant 32 : index
    %90 = vector.load %arg12[%c0_83, %c32_84] : memref<256x72xbf16, #tpu.memory_space<vmem>>, vector<256x8xbf16>
    tpu.vector_store %arg12[%c0_83, %c32_84], %89 {strides = array<i32>} : memref<256x72xbf16, #tpu.memory_space<vmem>>, vector<256x8xbf16>,
    %c1_85 = arith.constant 1 : index
    %c2_86 = arith.constant 2 : index
    %c0_87 = arith.constant 0 : index
    %91 = vector.load %arg10[%c1_85, %c2_86, %c0_87] : memref<18x18x8xbf16, #tpu.memory_space<vmem>>, vector<16x16x8xbf16>
    %92 = vector.shape_cast %91 : vector<16x16x8xbf16> to vector<256x8xbf16>
    %c0_88 = arith.constant 0 : index
    %c40 = arith.constant 40 : index
    %93 = vector.load %arg12[%c0_88, %c40] : memref<256x72xbf16, #tpu.memory_space<vmem>>, vector<256x8xbf16>
    tpu.vector_store %arg12[%c0_88, %c40], %92 {strides = array<i32>} : memref<256x72xbf16, #tpu.memory_space<vmem>>, vector<256x8xbf16>,
    %c2_89 = arith.constant 2 : index
    %c0_90 = arith.constant 0 : index
    %c0_91 = arith.constant 0 : index
    %94 = vector.load %arg10[%c2_89, %c0_90, %c0_91] : memref<18x18x8xbf16, #tpu.memory_space<vmem>>, vector<16x16x8xbf16>
    %95 = vector.shape_cast %94 : vector<16x16x8xbf16> to vector<256x8xbf16>
    %c0_92 = arith.constant 0 : index
    %c48 = arith.constant 48 : index
    %96 = vector.load %arg12[%c0_92, %c48] : memref<256x72xbf16, #tpu.memory_space<vmem>>, vector<256x8xbf16>
    tpu.vector_store %arg12[%c0_92, %c48], %95 {strides = array<i32>} : memref<256x72xbf16, #tpu.memory_space<vmem>>, vector<256x8xbf16>,
    %c2_93 = arith.constant 2 : index
    %c1_94 = arith.constant 1 : index
    %c0_95 = arith.constant 0 : index
    %97 = vector.load %arg10[%c2_93, %c1_94, %c0_95] : memref<18x18x8xbf16, #tpu.memory_space<vmem>>, vector<16x16x8xbf16>
    %98 = vector.shape_cast %97 : vector<16x16x8xbf16> to vector<256x8xbf16>
    %c0_96 = arith.constant 0 : index
    %c56 = arith.constant 56 : index
    %99 = vector.load %arg12[%c0_96, %c56] : memref<256x72xbf16, #tpu.memory_space<vmem>>, vector<256x8xbf16>
    tpu.vector_store %arg12[%c0_96, %c56], %98 {strides = array<i32>} : memref<256x72xbf16, #tpu.memory_space<vmem>>, vector<256x8xbf16>,
    %c2_97 = arith.constant 2 : index
    %c2_98 = arith.constant 2 : index
    %c0_99 = arith.constant 0 : index
    %100 = vector.load %arg10[%c2_97, %c2_98, %c0_99] : memref<18x18x8xbf16, #tpu.memory_space<vmem>>, vector<16x16x8xbf16>
    %101 = vector.shape_cast %100 : vector<16x16x8xbf16> to vector<256x8xbf16>
    %c0_100 = arith.constant 0 : index
    %c64 = arith.constant 64 : index
    %102 = vector.load %arg12[%c0_100, %c64] : memref<256x72xbf16, #tpu.memory_space<vmem>>, vector<256x8xbf16>
    tpu.vector_store %arg12[%c0_100, %c64], %101 {strides = array<i32>} : memref<256x72xbf16, #tpu.memory_space<vmem>>, vector<256x8xbf16>,
    %c0_101 = arith.constant 0 : index
    %c0_102 = arith.constant 0 : index
    %103 = vector.load %arg12[%c0_101, %c0_102] : memref<256x72xbf16, #tpu.memory_space<vmem>>, vector<256x72xbf16>
    %c0_103 = arith.constant 0 : index
    %c0_104 = arith.constant 0 : index
    %104 = vector.load %arg5[%c0_103, %c0_104] : memref<72x8xbf16, #tpu.memory_space<vmem>>, vector<72x8xbf16>
    %cst_105 = arith.constant dense<0.000000e+00> : vector<256x8xf32>
    %105 = tpu.matmul %103, %104, %cst_105 {dimension_numbers = #tpu.dot_dimension_numbers<[1], [0], [0], [1], [0, 0, 1, 1], [], []>} : vector<256x72xbf16>, vector<72x8xbf16>, vector<256x8xf32> -> vector<256x8xf32>
    %c0_106 = arith.constant 0 : index
    %c0_107 = arith.constant 0 : index
    %106 = vector.load %arg6[%c0_106, %c0_107] : memref<1x8xf32, #tpu.memory_space<vmem>>, vector<1x8xf32>
    %107 = vector.broadcast %106 : vector<1x8xf32> to vector<256x8xf32>
    %108 = arith.addf %105, %107 : vector<256x8xf32>
    %c2_i32_108 = arith.constant 2 : i32
    %109 = arith.addi %0, %c2_i32_108 : i32
    %c0_109 = arith.constant 0 : index
    %110 = arith.index_cast %109 : i32 to index
    %c1_110 = arith.constant 1 : index
    %c0_111 = arith.constant 0 : index
    %111 = vector.load %arg2[%c0_109, %110, %c1_110, %c0_111] : memref<1x20x18x4xbf16, #tpu.memory_space<vmem>>, vector<1x16x16x4xbf16>
    %112 = vector.shape_cast %111 : vector<1x16x16x4xbf16> to vector<16x16x4xbf16>
    %113 = vector.shape_cast %112 : vector<16x16x4xbf16> to vector<256x4xbf16>
    %c0_112 = arith.constant 0 : index
    %c0_113 = arith.constant 0 : index
    %114 = vector.load %arg7[%c0_112, %c0_113] : memref<4x8xbf16, #tpu.memory_space<vmem>>, vector<4x8xbf16>
    %cst_114 = arith.constant dense<0.000000e+00> : vector<256x8xf32>
    %115 = tpu.matmul %113, %114, %cst_114 {dimension_numbers = #tpu.dot_dimension_numbers<[1], [0], [0], [1], [0, 0, 1, 1], [], []>} : vector<256x4xbf16>, vector<4x8xbf16>, vector<256x8xf32> -> vector<256x8xf32>
    %c0_115 = arith.constant 0 : index
    %c0_116 = arith.constant 0 : index
    %116 = vector.load %arg8[%c0_115, %c0_116] : memref<1x8xf32, #tpu.memory_space<vmem>>, vector<1x8xf32>
    %117 = vector.broadcast %116 : vector<1x8xf32> to vector<256x8xf32>
    %118 = arith.addf %115, %117 : vector<256x8xf32>
    %119 = arith.addf %108, %118 : vector<256x8xf32>
    %cst_117 = arith.constant 2.000000e-01 : f32
    %120 = vector.broadcast %cst_117 : f32 to vector<256x8xf32>
    %121 = arith.mulf %120, %119 : vector<256x8xf32>
    %122 = arith.maximumf %119, %121 : vector<256x8xf32>
    %c0_118 = arith.constant 0 : index
    %c0_119 = arith.constant 0 : index
    %c0_120 = arith.constant 0 : index
    %123 = vector.load %arg9[%c0_118, %c0_119, %c0_120] : memref<1x256x8xf32, #tpu.memory_space<vmem>>, vector<1x256x8xf32>
    %124 = vector.shape_cast %123 : vector<1x256x8xf32> to vector<256x8xf32>
    %125 = vector.shape_cast %122 : vector<256x8xf32> to vector<1x256x8xf32>
    tpu.vector_store %arg9[%c0_118, %c0_119, %c0_120], %125 {strides = array<i32>} : memref<1x256x8xf32, #tpu.memory_space<vmem>>, vector<1x256x8xf32>,
    return
  }
  func.func @transform_0(%arg0: i32, %arg1: i32) -> (i32, i32, i32, i32) {
    %c0_i32 = arith.constant 0 : i32
    %c0_i32_0 = arith.constant 0 : i32
    %c0_i32_1 = arith.constant 0 : i32
    %c0_i32_2 = arith.constant 0 : i32
    return %arg0, %c0_i32, %c0_i32_0, %c0_i32_1 : i32, i32, i32, i32
  }
  func.func @transform_1(%arg0: i32, %arg1: i32) -> (i32, i32) {
    %c0_i32 = arith.constant 0 : i32
    %c0_i32_0 = arith.constant 0 : i32
    %c0_i32_1 = arith.constant 0 : i32
    return %c0_i32, %c0_i32_0 : i32, i32
  }
  func.func @transform_2(%arg0: i32, %arg1: i32) -> (i32, i32) {
    %c0_i32 = arith.constant 0 : i32
    %c0_i32_0 = arith.constant 0 : i32
    %c0_i32_1 = arith.constant 0 : i32
    return %c0_i32, %c0_i32_0 : i32, i32
  }
  func.func @transform_3(%arg0: i32, %arg1: i32) -> (i32, i32) {
    %c0_i32 = arith.constant 0 : i32
    %c0_i32_0 = arith.constant 0 : i32
    %c0_i32_1 = arith.constant 0 : i32
    return %c0_i32, %c0_i32_0 : i32, i32
  }
  func.func @transform_4(%arg0: i32, %arg1: i32) -> (i32, i32) {
    %c0_i32 = arith.constant 0 : i32
    %c0_i32_0 = arith.constant 0 : i32
    %c0_i32_1 = arith.constant 0 : i32
    return %c0_i32, %c0_i32_0 : i32, i32
  }
  func.func @transform_5(%arg0: i32, %arg1: i32) -> (i32, i32) {
    %c0_i32 = arith.constant 0 : i32
    %c0_i32_0 = arith.constant 0 : i32
    %c0_i32_1 = arith.constant 0 : i32
    return %c0_i32, %c0_i32_0 : i32, i32
  }
  func.func @transform_6(%arg0: i32, %arg1: i32) -> (i32, i32) {
    %c0_i32 = arith.constant 0 : i32
    %c0_i32_0 = arith.constant 0 : i32
    %c0_i32_1 = arith.constant 0 : i32
    return %c0_i32, %c0_i32_0 : i32, i32
  }
  func.func @transform_7(%arg0: i32, %arg1: i32) -> (i32, i32, i32) {
    %c0_i32 = arith.constant 0 : i32
    %c0_i32_0 = arith.constant 0 : i32
    return %arg0, %arg1, %c0_i32 : i32, i32, i32
  }
}

</mosaic_0001>

<bundles_post_ra>
// kernel: tpu_custom_call.1
= control target key start
LH: loop header
LB: loop body
LE: loop exit
PB: predicated region body
PF: predicated region fallthrough
CT: control target
= control target key end

     0   :  { %s10590_s24 = smov 0   ;;  %s10592_s25 = smov 0   ;;  %s13794_s0 = inlined_call_operand.vmem [shape: bf16[2,20,18,4], index: 0, kind: input, shape index: {}]   ;;  %s13795_s1 = inlined_call_operand.vmem [shape: bf16[36,8], index: 1, kind: input, shape index: {}]   ;;  %s13796_s2 = inlined_call_operand.vmem [shape: f32[1,8], index: 2, kind: input, shape index: {}]   ;;  %s13797_s3 = inlined_call_operand.vmem [shape: bf16[72,8], index: 3, kind: input, shape index: {}]   ;;  %s13798_s4 = inlined_call_operand.vmem [shape: f32[1,8], index: 4, kind: input, shape index: {}]   ;;  %s13799_s5 = inlined_call_operand.vmem [shape: bf16[4,8], index: 5, kind: input, shape index: {}]   ;;  %s13800_s6 = inlined_call_operand.vmem [shape: f32[1,8], index: 6, kind: input, shape index: {}]   ;;  %s13801_s7 = inlined_call_operand.vmem [shape: f32[2,256,8], index: 7, kind: output, shape index: {}]  }
   0x1   :  { %s10594_s26 = smov 0  }
   0x2 LB: > { %s29_s27 = sadd.s32 1, %s10531_s25  ;;  %p9176_p0 = scmp.ge.s32.totalorder %s10535_s26, 1  ;;  %s10535_s26 = sphi %s10594_s26, %s17_s26   ;;  %s10531_s25 = sphi %s10592_s25, %s13902_s25   ;;  %s10527_s24 = sphi %s10590_s24, %s13901_s24  }
   0x3   : > { %p31_p1 = scmp.ge.s32.totalorder %s29_s27, 2  ;;  %p251_p2 = scmp.lt.s32.totalorder %s10535_s26, 3 }
   0x5   : > { %s13904_s27 = smov (%p31_p1, %s29_s27), 0  ;;  %p252_p3 = pnand %p9176_p0, %p251_p2 }
   0x7   : > { %255 = sbr.rel (%p252_p3) target bundleno = 1217 (0x4c1), region = 48 }
   0xe   : > { %p287_p4 = scmp.lt.s32.totalorder %s10527_s24, 1  ;;  %vm1194_vm0 = vcmask 1042432   ;;  %vm1195_vm1 = vcmask 1046532   ;;  %vm524_vm3 = vsmask.f32 3328  ;;  %s10537_s9 = smov 12  }
   0xf   : > { %vm10611_vm2 = vmor %vm1194_vm0, %vm1195_vm1  ;;  %vm525_vm4 = vsmask.f32 7440  ;;  %s10538_s10 = smov 20   ;;  %s10539_s11 = smov 8   ;;  %vm13802_vm6 = vcmask 31744   ;;  %vm1067_vm7 = vcmask 64544  }
  0x10   : > { %s13906_s24 = smov (!%p287_p4, %s10527_s24), 1  ;;  %vm10649_vm5 = vmor %vm524_vm3, %vm525_vm4  ;;  %s10540_s12 = smov 4   ;;  %vm13805_vm8 = vcmask 97344   ;;  %vm13806_vm9 = vcmask 130144   ;;  %vm13807_vm10 = vcmask 162944   ;;  %vm2608_vm11 = vcmask 195744  }
  0x11   : > { %s10363_s28 = smul.u32 240, %s13906_s24  ;;  %s10541_s13 = smov 16   ;;  %vm2811_vm12 = vcmask 228544   ;;  %vm3424_vm13 = vcmask 261344   ;;  %vm3785_vm14 = vcmask 294144   ;;  %vm13803_vm15 = vcmask 1041408  }
  0x12   : > { %s10542_s14 = smov 24   ;;  %s10543_s15 = smov 28   ;;  %vm13804_vm0 = vcmask 293888   ;;  %vm13819_vm1 = vcmask 57344   ;;  %vm4158_vm3 = vsmask.f32 256 }
  0x13   : > { %s10618_s8 = scalar_lea.vmem %s13794_s0, %s10363_s28  ;;  %s10544_s16 = smov 32   ;;  %vm11780_vm4 = vmand %vm13819_vm1, %vm4158_vm3 }
  0x14   : > { %v10401_v1 = vld [vmem:[%s10618_s8 + $0xc] sm:$0xff]   ;;  %v10402_v2 = vld [vmem:[%s10618_s8 + $0x18] sm:$0xff]   ;;  %v9380_v5 = vld [vmem:[%s10618_s8 + $0x14] sm:$0x1]  ;;  %s10546_s29 = smov 40   ;;  %s10547_s30 = smov 48  }
  0x15   : > { %1580 = vrot.lane.b32.xlu0 %v10401_v1, %s10537_s9  ;;  %v9378_v3 = vld [vmem:[%s10618_s8 + $0xc] sm:$0xe]  ;;  %v9379_v4 = vld [vmem:[%s10618_s8 + $0x10] sm:$0xf]  ;;  %1582 = vrot.lane.b32.xlu1 %v10402_v2, %s10537_s9  ;;  %v2379_v8 = vrot.slane %v9380_v5, 5 }
  0x16   : > { %v9432_v6 = vrot.slane %v9378_v3, 9  ;;  %v2376_v7 = vrot.slane %v9379_v4, 5  ;;  %v1086_v9 = vld [vmem:[%s10618_s8] sm:$0xe]  ;;  %v1087_v10 = vld [vmem:[%s10618_s8 + $0x4] sm:$0xf] }
  0x17   : > { %v1088_v11 = vld [vmem:[%s10618_s8 + $0x8] sm:$0x1]  ;;  %v9216_v12 = vrot.slane %v1086_v9, 9  ;;  %v1199_v15 = vrot.slane %v1087_v10, 5  ;;  %v470_v17 = vld [vmem:[%s10618_s8] sm:$0xf] }
  0x18   : > { %v2377_v13 = vsel %vm10611_vm2, %v9432_v6, %v2376_v7  ;;  %v2378_v14 = vrot.slane %v2376_v7, 4  ;;  %v1202_v16 = vrot.slane %v1088_v11, 5  ;;  %v471_v18 = vld [vmem:[%s10618_s8 + $0x4] sm:$0xf]  ;;  %v472_v19 = vld [vmem:[%s10618_s8 + $0x8] sm:$0x1] }
  0x19   : > { %v528_v20 = vshrl.u32 %v470_v17, 16  ;;  %v531_v21 = vshll.u32 %v470_v17, 16  ;;  %v1200_v23 = vsel %vm10611_vm2, %v9216_v12, %v1199_v15  ;;  %v1201_v24 = vrot.slane %v1199_v15, 4  ;;  %v1089_v26 = vld [vmem:[%s10618_s8 + $0xc] sm:$0xe] }
  0x1a   : > { %v2380_v22 = vsel %vm10611_vm2, %v2378_v14, %v2379_v8  ;;  %v537_v25 = vshll.u32 %v471_v18, 16  ;;  %v1090_v27 = vld [vmem:[%s10618_s8 + $0x10] sm:$0xf]  ;;  %v541_v31 = vshrl.u32 %v471_v18, 16  ;;  %v1091_v32 = vld [vmem:[%s10618_s8 + $0x14] sm:$0x1] }
  0x1b   : > { %v9450_v28 = vcombine.low %v2377_v13, %v2380_v22  ;;  %v530_v29 = vrot.slane %v528_v20, 4  ;;  %v533_v30 = vrot.slane %v531_v21, 5  ;;  %v1203_v33 = vsel %vm10611_vm2, %v1201_v24, %v1202_v16  ;;  %v473_v37 = vld [vmem:[%s10618_s8 + $0xc] sm:$0xf]  ;;  %v474_v42 = vld [vmem:[%s10618_s8 + $0x10] sm:$0xf] }
  0x1c   : > { %v539_v34 = vrot.slane %v537_v25, 5  ;;  %v547_v35 = vshll.u32 %v472_v19, 16  ;;  %v9217_v36 = vrot.slane %v1089_v26, 9  ;;  %v9234_v38 = vcombine.low %v1200_v23, %v1203_v33  ;;  %v475_v46 = vld [vmem:[%s10618_s8 + $0x14] sm:$0x1] }
  0x1d   : > { %2554 = vrot.lane.b32.xlu0 %v9450_v28, %s10538_s10  ;;  %v534_v39 = vor.u32 %v533_v30, %v530_v29  ;;  %v543_v40 = vrot.slane %v541_v31, 4  ;;  %v1206_v41 = vrot.slane %v1090_v27, 5  ;;  %v1209_v45 = vrot.slane %v1091_v32, 5  ;;  %v9381_v53 = vld [vmem:[%s10618_s8 + $0x18] sm:$0xe] }
  0x1e   : > { %v549_v44 = vrot.slane %v547_v35, 5  ;;  %v552_v47 = vshrl.u32 %v473_v37, 16  ;;  %v555_v48 = vshll.u32 %v473_v37, 16  ;;  %1377 = vrot.lane.b32.xlu1 %v9234_v38, %s10539_s11  ;;  %v561_v56 = vshll.u32 %v474_v42, 16  ;;  %v9382_v58 = vld [vmem:[%s10618_s8 + $0x1c] sm:$0xf] }
  0x1f   : > { %v535_v49 = vrot.slane %v534_v39, 4  ;;  %v544_v50 = vor.u32 %v543_v40, %v539_v34  ;;  %v1207_v51 = vsel %vm10611_vm2, %v9217_v36, %v1206_v41  ;;  %v1208_v52 = vrot.slane %v1206_v41, 4  ;;  %v9383_v63 = vld [vmem:[%s10618_s8 + $0x20] sm:$0x1]  ;;  %v9306_v5 = vld [vmem:[%s10618_s8 + $0xc] sm:$0xf] }
  0x20   : > { %v554_v54 = vrot.slane %v552_v47, 4  ;;  %v557_v55 = vrot.slane %v555_v48, 5  ;;  %v565_v57 = vshrl.u32 %v474_v42, 16  ;;  %v571_v62 = vshll.u32 %v475_v46, 16  ;;  %v9307_v6 = vld [vmem:[%s10618_s8 + $0x10] sm:$0xf] }
  0x21   : > { %v540_v59 = vsel %vm10649_vm5, %v535_v49, %v539_v34  ;;  %v545_v60 = vrot.slane %v544_v50, 4  ;;  %v1210_v61 = vsel %vm10611_vm2, %v1208_v52, %v1209_v45  ;;  %v563_v3 = vrot.slane %v561_v56, 5  ;;  %v9308_v11 = vld [vmem:[%s10618_s8 + $0x14] sm:$0x1]  ;;  %v9309_v16 = vld [vmem:[%s10618_s8 + $0x18] sm:$0xf] }
  0x22   : > { %v9235_v1 = vcombine.low %v1207_v51, %v1210_v61  ;;  %v558_v2 = vor.u32 %v557_v55, %v554_v54  ;;  %v567_v4 = vrot.slane %v565_v57, 4  ;;  %v573_v8 = vrot.slane %v571_v62, 5  ;;  %v9310_v29 = vld [vmem:[%s10618_s8 + $0x1c] sm:$0xf]  ;;  %v9311_v34 = vld [vmem:[%s10618_s8 + $0x20] sm:$0x1] }
  0x23   : > { %v550_v7 = vsel %vm10649_vm5, %v545_v60, %v549_v44  ;;  %v9433_v9 = vrot.slane %v9381_v53, 9  ;;  %v2383_v10 = vrot.slane %v9382_v58, 5  ;;  %v2386_v15 = vrot.slane %v9383_v63, 5  ;;  %v9522_v35 = vld [vmem:[%s10618_s8 + $0x18] sm:$0xf] }
  0x24   : > { %v9198_v12 = vcombine.low %v540_v59, %v550_v7  ;;  %1379 = vrot.lane.b32.xlu1 %v9235_v1, %s10539_s11  ;;  %v559_v13 = vrot.slane %v558_v2, 4  ;;  %v568_v14 = vor.u32 %v567_v4, %v563_v3  ;;  %v1708_v19 = vshrl.u32 %v9306_v5, 16  ;;  %v9523_v48 = vld [vmem:[%s10618_s8 + $0x1c] sm:$0xf]  ;;  %v9524_v54 = vld [vmem:[%s10618_s8 + $0x20] sm:$0x1] }
  0x25   : > { %v2384_v17 = vsel %vm10611_vm2, %v9433_v9, %v2383_v10  ;;  %v2385_v18 = vrot.slane %v2383_v10, 4  ;;  %v1711_v20 = vshll.u32 %v9306_v5, 16  ;;  %v1717_v23 = vshll.u32 %v9307_v6, 16  ;;  %v9525_v59 = vld [vmem:[%s10618_s8 + $0x24] sm:$0xf] }
  0x26   : > { %1013 = vrot.lane.b32.xlu0 %v9198_v12, %s10540_s12  ;;  %v564_v21 = vsel %vm10649_vm5, %v559_v13, %v563_v3  ;;  %v569_v22 = vrot.slane %v568_v14, 4  ;;  %v1721_v24 = vshrl.u32 %v9307_v6, 16  ;;  %v1710_v26 = vrot.slane %v1708_v19, 4  ;;  %v9526_v5 = vld [vmem:[%s10618_s8 + $0x28] sm:$0xf] }
  0x27   : > { %v2387_v25 = vsel %vm10611_vm2, %v2385_v18, %v2386_v15  ;;  %v1713_v27 = vrot.slane %v1711_v20, 5  ;;  %v1727_v28 = vshll.u32 %v9308_v11, 16  ;;  %v1719_v32 = vrot.slane %v1717_v23, 5  ;;  %v9527_v9 = vld [vmem:[%s10618_s8 + $0x2c] sm:$0x1]  ;;  %v10403_v11 = vld [vmem:[%s10618_s8 + $0x18] sm:$0xff]  }
  0x28   : > { %v574_v30 = vsel %vm10649_vm5, %v569_v22, %v573_v8  ;;  %v9451_v31 = vcombine.low %v2384_v17, %v2387_v25  ;;  %v1723_v33 = vrot.slane %v1721_v24, 4  ;;  %v1732_v39 = vshrl.u32 %v9309_v16, 16 }
  0x29   : > { %v9199_v36 = vcombine.low %v564_v21, %v574_v30  ;;  %v1714_v37 = vor.u32 %v1713_v27, %v1710_v26  ;;  %v1729_v38 = vrot.slane %v1727_v28, 5  ;;  %v1735_v41 = vshll.u32 %v9309_v16, 16  ;;  %v9594_v16 = vld [vmem:[%s10618_s8 + $0x18] sm:$0xe]  ;;  %v9595_v21 = vld [vmem:[%s10618_s8 + $0x1c] sm:$0xf] }
  0x2a   : > { %2556 = vrot.lane.b32.xlu1 %v9451_v31, %s10538_s10  ;;  %v1724_v40 = vor.u32 %v1723_v33, %v1719_v32  ;;  %v1741_v42 = vshll.u32 %v9310_v29, 16  ;;  %v1745_v44 = vshrl.u32 %v9310_v29, 16  ;;  %v1734_v46 = vrot.slane %v1732_v39, 4  ;;  %v9596_v26 = vld [vmem:[%s10618_s8 + $0x20] sm:$0x1]  ;;  %v10404_v28 = vld [vmem:[%s10618_s8 + $0x24] sm:$0xff]  }
  0x2b   : > { %1015 = vrot.lane.b32.xlu0 %v9199_v36, %s10540_s12  ;;  %v1715_v45 = vrot.slane %v1714_v37, 4  ;;  %v1751_v47 = vshll.u32 %v9311_v34, 16  ;;  %v2885_v49 = vshrl.u32 %v9522_v35, 16  ;;  %v1737_v51 = vrot.slane %v1735_v41, 5  ;;  %v476_v27 = vld [vmem:[%s10618_s8 + $0x18] sm:$0xf] }
  0x2c   : > { %v1725_v50 = vrot.slane %v1724_v40, 4  ;;  %v1743_v52 = vrot.slane %v1741_v42, 5  ;;  %v1747_v53 = vrot.slane %v1745_v44, 4  ;;  %v2888_v58 = vshll.u32 %v9522_v35, 16  ;;  %v477_v37 = vld [vmem:[%s10618_s8 + $0x1c] sm:$0xf] }
  0x2d   : > { %v1720_v55 = vsel %vm10649_vm5, %v1715_v45, %v1719_v32  ;;  %v1753_v56 = vrot.slane %v1751_v47, 5  ;;  %v2887_v57 = vrot.slane %v2885_v49, 4  ;;  %v1738_v61 = vor.u32 %v1737_v51, %v1734_v46  ;;  %v9597_v44 = vld [vmem:[%s10618_s8 + $0x24] sm:$0xe]  ;;  %v9598_v49 = vld [vmem:[%s10618_s8 + $0x28] sm:$0xf] }
  0x2e   : > { %v1730_v60 = vsel %vm10649_vm5, %v1725_v50, %v1729_v38  ;;  %v1748_v62 = vor.u32 %v1747_v53, %v1743_v52  ;;  %v2894_v63 = vshll.u32 %v9523_v48, 16  ;;  %v2890_v2 = vrot.slane %v2888_v58, 5  ;;  %v478_v38 = vld [vmem:[%s10618_s8 + $0x20] sm:$0x1]  ;;  %v9599_v50 = vld [vmem:[%s10618_s8 + $0x2c] sm:$0x1] }
  0x2f   : > { %v9360_v1 = vcombine.low %v1720_v55, %v1730_v60  ;;  %v2898_v3 = vshrl.u32 %v9523_v48, 16  ;;  %v2904_v4 = vshll.u32 %v9524_v54, 16  ;;  %v1739_v6 = vrot.slane %v1738_v61, 4 }
  0x30   : > { %v1749_v7 = vrot.slane %v1748_v62, 4  ;;  %v2896_v8 = vrot.slane %v2894_v63, 5  ;;  %v2909_v10 = vshrl.u32 %v9525_v59, 16  ;;  %v2891_v12 = vor.u32 %v2890_v2, %v2887_v57  ;;  %v479_v63 = vld [vmem:[%s10618_s8 + $0x24] sm:$0xf] }
  0x31   : > { %2193 = vrot.lane.b32.xlu0 %v9360_v1, %s10541_s13  ;;  %v2900_v13 = vrot.slane %v2898_v3, 4  ;;  %v2906_v14 = vrot.slane %v2904_v4, 5  ;;  %v2912_v15 = vshll.u32 %v9525_v59, 16  ;;  %v1744_v17 = vsel %vm10649_vm5, %v1739_v6, %v1743_v52 }
  0x32   : > { %v1754_v18 = vsel %vm10649_vm5, %v1749_v7, %v1753_v56  ;;  %v2911_v19 = vrot.slane %v2909_v10, 4  ;;  %v2918_v20 = vshll.u32 %v9526_v5, 16  ;;  %v2892_v23 = vrot.slane %v2891_v12, 4  ;;  %v481_v10 = vld [vmem:[%s10618_s8 + $0x2c] sm:$0x1] }
  0x33   : > { %v9361_v22 = vcombine.low %v1744_v17, %v1754_v18  ;;  %v2901_v24 = vor.u32 %v2900_v13, %v2896_v8  ;;  %v2914_v25 = vrot.slane %v2912_v15, 5  ;;  %v2922_v30 = vshrl.u32 %v9526_v5, 16  ;;  %v480_v5 = vld [vmem:[%s10618_s8 + $0x28] sm:$0xf]  ;;  %v1092_v15 = vld [vmem:[%s10618_s8 + $0x18] sm:$0xe] }
  0x34   : > { %v2920_v29 = vrot.slane %v2918_v20, 5  ;;  %v2928_v31 = vshll.u32 %v9527_v9, 16  ;;  %v9648_v32 = vrot.slane %v9594_v16, 9  ;;  %v2897_v33 = vsel %vm10649_vm5, %v2892_v23, %v2896_v8  ;;  %v1093_v16 = vld [vmem:[%s10618_s8 + $0x1c] sm:$0xf] }
  0x35   : > { %2195 = vrot.lane.b32.xlu1 %v9361_v22, %s10541_s13  ;;  %2757 = vrot.lane.b32.xlu0 %v10403_v11, %s10542_s14  ;;  %v2902_v34 = vrot.slane %v2901_v24, 4  ;;  %v2915_v35 = vor.u32 %v2914_v25, %v2911_v19  ;;  %v3553_v36 = vrot.slane %v9595_v21, 5  ;;  %v2924_v39 = vrot.slane %v2922_v30, 4  ;;  %v1094_v21 = vld [vmem:[%s10618_s8 + $0x20] sm:$0x1] }
  0x36   : > { %v2930_v40 = vrot.slane %v2928_v31, 5  ;;  %v3556_v41 = vrot.slane %v9596_v26, 5  ;;  %v576_v42 = vshrl.u32 %v476_v27, 16  ;;  %v579_v54 = vshll.u32 %v476_v27, 16  ;;  %v1095_v26 = vld [vmem:[%s10618_s8 + $0x24] sm:$0xe] }
  0x37   : > { %v2907_v45 = vsel %vm10649_vm5, %v2902_v34, %v2906_v14  ;;  %v2916_v46 = vrot.slane %v2915_v35, 4  ;;  %v3554_v47 = vsel %vm10611_vm2, %v9648_v32, %v3553_v36  ;;  %v3555_v48 = vrot.slane %v3553_v36, 4  ;;  %v1096_v31 = vld [vmem:[%s10618_s8 + $0x28] sm:$0xf]  ;;  %v1097_v32 = vld [vmem:[%s10618_s8 + $0x2c] sm:$0x1] }
  0x38   : > { %v9576_v51 = vcombine.low %v2897_v33, %v2907_v45  ;;  %v2925_v52 = vor.u32 %v2924_v39, %v2920_v29  ;;  %v578_v53 = vrot.slane %v576_v42, 4  ;;  %v585_v57 = vshll.u32 %v477_v37, 16  ;;  %v9313_v42 = vld [vmem:[%s10618_s8 + $0x28] sm:$0xf] }
  0x39   : > { %2759 = vrot.lane.b32.xlu1 %v10404_v28, %s10542_s14  ;;  %v2921_v55 = vsel %vm10649_vm5, %v2916_v46, %v2920_v29  ;;  %v3557_v56 = vsel %vm10611_vm2, %v3555_v48, %v3556_v41  ;;  %v589_v58 = vshrl.u32 %v477_v37, 16  ;;  %v581_v61 = vrot.slane %v579_v54, 5  ;;  %v9312_v37 = vld [vmem:[%s10618_s8 + $0x24] sm:$0xf] }
  0x3a   : > { %3370 = vrot.lane.b32.xlu0 %v9576_v51, %s10543_s15  ;;  %v2926_v59 = vrot.slane %v2925_v52, 4  ;;  %v9666_v60 = vcombine.low %v3554_v47, %v3557_v56  ;;  %v595_v62 = vshll.u32 %v478_v38, 16  ;;  %v587_v1 = vrot.slane %v585_v57, 5  ;;  %v10421_v48 = vld [vmem:[%s13795_s1] sm:$0xff]  }
  0x3b   : > { %v591_v2 = vrot.slane %v589_v58, 4  ;;  %v9649_v3 = vrot.slane %v9597_v44, 9  ;;  %v3560_v4 = vrot.slane %v9598_v49, 5  ;;  %v582_v7 = vor.u32 %v581_v61, %v578_v53  ;;  %10135 = vmatprep.subr.bf16.mxu0 %v10421_v48 }
  0x3c   : > { %v2931_v6 = vsel %vm10649_vm5, %v2926_v59, %v2930_v40  ;;  %v597_v8 = vrot.slane %v595_v62, 5  ;;  %v3563_v9 = vrot.slane %v9599_v50, 5  ;;  %v600_v18 = vshrl.u32 %v479_v63, 16  ;;  %v9314_v59 = vld [vmem:[%s10618_s8 + $0x2c] sm:$0x1]  ;;  %10136 = vmatpush3.bf16.msra.mxu0 %v10421_v48 }
  0x3d   : > { %v9577_v11 = vcombine.low %v2921_v55, %v2931_v6  ;;  %v592_v12 = vor.u32 %v591_v2, %v587_v1  ;;  %v3561_v13 = vsel %vm10611_vm2, %v9649_v3, %v3560_v4  ;;  %v3562_v14 = vrot.slane %v3560_v4, 4  ;;  %v9315_v62 = vld [vmem:[%s10618_s8 + $0x30] sm:$0xf]  ;;  %v9316_v4 = vld [vmem:[%s10618_s8 + $0x34] sm:$0xf]  ;;  %v10423_v6 = vld [vmem:[%s13795_s1 + $0x8] sm:$0xff]  }
  0x3e   : > { %3731 = vrot.lane.b32.xlu0 %v9666_v60, %s10544_s16  ;;  %v583_v17 = vrot.slane %v582_v7, 4  ;;  %v603_v19 = vshll.u32 %v479_v63, 16  ;;  %v609_v20 = vshll.u32 %v480_v5, 16  ;;  %v613_v24 = vshrl.u32 %v480_v5, 16  ;;  %v9317_v5 = vld [vmem:[%s10618_s8 + $0x38] sm:$0x1]  ;;  %10137 = vmatprep.subr.bf16.mxu0 %v10423_v6 }
  0x3f   : > { %3372 = vrot.lane.b32.xlu1 %v9577_v11, %s10543_s15  ;;  %v593_v22 = vrot.slane %v592_v12, 4  ;;  %v3564_v23 = vsel %vm10611_vm2, %v3562_v14, %v3563_v9  ;;  %v619_v25 = vshll.u32 %v481_v10, 16  ;;  %v602_v29 = vrot.slane %v600_v18, 4  ;;  %v10405_v9 = vld [vmem:[%s10618_s8 + $0x24] sm:$0xff]  }
  0x40   : > { %v588_v27 = vsel %vm10649_vm5, %v583_v17, %v587_v1  ;;  %v9667_v28 = vcombine.low %v3561_v13, %v3564_v23  ;;  %v605_v30 = vrot.slane %v603_v19, 5  ;;  %v611_v34 = vrot.slane %v609_v20, 5  ;;  %v9384_v12 = vld [vmem:[%s10618_s8 + $0x24] sm:$0xe]  ;;  %v9385_v17 = vld [vmem:[%s10618_s8 + $0x28] sm:$0xf]  ;;  %10138 = vmatpush3.bf16.msra.mxu0 %v10423_v6 }
  0x41   : > { %v598_v33 = vsel %vm10649_vm5, %v593_v22, %v597_v8  ;;  %v615_v35 = vrot.slane %v613_v24, 4  ;;  %v621_v36 = vrot.slane %v619_v25, 5  ;;  %v9218_v40 = vrot.slane %v1092_v15, 9  ;;  %v9386_v22 = vld [vmem:[%s10618_s8 + $0x2c] sm:$0x1] }
  0x42   : > { %v9200_v38 = vcombine.low %v588_v27, %v598_v33  ;;  %3733 = vrot.lane.b32.xlu0 %v9667_v28, %s10544_s16  ;;  %v606_v39 = vor.u32 %v605_v30, %v602_v29  ;;  %v1213_v41 = vrot.slane %v1093_v16, 5  ;;  %v1216_v45 = vrot.slane %v1094_v21, 5  ;;  %v9387_v27 = vld [vmem:[%s10618_s8 + $0x30] sm:$0xe]  ;;  %v9533_v6 = vld [vmem:[%s10618_s8 + $0x44] sm:$0x1] }
  0x43   : > { %v616_v44 = vor.u32 %v615_v35, %v611_v34  ;;  %v9219_v46 = vrot.slane %v1095_v26, 9  ;;  %v1220_v47 = vrot.slane %v1096_v31, 5  ;;  %v1223_v52 = vrot.slane %v1097_v32, 5  ;;  %v9388_v32 = vld [vmem:[%s10618_s8 + $0x34] sm:$0xf] }
  0x44   : > { %1017 = vrot.lane.b32.xlu1 %v9200_v38, %s10540_s12  ;;  %v607_v49 = vrot.slane %v606_v39, 4  ;;  %v1214_v50 = vsel %vm10611_vm2, %v9218_v40, %v1213_v41  ;;  %v1215_v51 = vrot.slane %v1213_v41, 4  ;;  %v1756_v56 = vshrl.u32 %v9312_v37, 16  ;;  %v9528_v38 = vld [vmem:[%s10618_s8 + $0x30] sm:$0xf] }
  0x45   : > { %v617_v53 = vrot.slane %v616_v44, 4  ;;  %v1221_v54 = vsel %vm10611_vm2, %v9219_v46, %v1220_v47  ;;  %v1222_v55 = vrot.slane %v1220_v47, 4  ;;  %v1759_v60 = vshll.u32 %v9312_v37, 16  ;;  %v9389_v37 = vld [vmem:[%s10618_s8 + $0x38] sm:$0x1]  ;;  %v10406_v39 = vld [vmem:[%s10618_s8 + $0x30] sm:$0xff]  }
  0x46   : > { %v612_v57 = vsel %vm10649_vm5, %v607_v49, %v611_v34  ;;  %v1217_v58 = vsel %vm10611_vm2, %v1215_v51, %v1216_v45  ;;  %v1765_v61 = vshll.u32 %v9313_v42, 16  ;;  %v1758_v3 = vrot.slane %v1756_v56, 4 }
  0x47   : > { %v622_v63 = vsel %vm10649_vm5, %v617_v53, %v621_v36  ;;  %v9236_v1 = vcombine.low %v1214_v50, %v1217_v58  ;;  %v1224_v2 = vsel %vm10611_vm2, %v1222_v55, %v1223_v52  ;;  %v1761_v10 = vrot.slane %v1759_v60, 5  ;;  %v9529_v52 = vld [vmem:[%s10618_s8 + $0x34] sm:$0xf] }
  0x48   : > { %v9201_v7 = vcombine.low %v612_v57, %v622_v63  ;;  %v9237_v8 = vcombine.low %v1221_v54, %v1224_v2  ;;  %v1767_v11 = vrot.slane %v1765_v61, 5  ;;  %v1769_v13 = vshrl.u32 %v9313_v42, 16  ;;  %v9530_v57 = vld [vmem:[%s10618_s8 + $0x38] sm:$0x1] }
  0x49   : > { %1381 = vrot.lane.b32.xlu0 %v9236_v1, %s10539_s11  ;;  %v1775_v14 = vshll.u32 %v9314_v59, 16  ;;  %v1780_v15 = vshrl.u32 %v9315_v62, 16  ;;  %v1783_v16 = vshll.u32 %v9315_v62, 16  ;;  %v1762_v18 = vor.u32 %v1761_v10, %v1758_v3  ;;  %v9531_v59 = vld [vmem:[%s10618_s8 + $0x3c] sm:$0xf] }
  0x4a   : > { %1019 = vrot.lane.b32.xlu1 %v9201_v7, %s10540_s12  ;;  %v1789_v19 = vshll.u32 %v9316_v4, 16  ;;  %v1793_v20 = vshrl.u32 %v9316_v4, 16  ;;  %v1799_v21 = vshll.u32 %v9317_v5, 16  ;;  %v1771_v23 = vrot.slane %v1769_v13, 4  ;;  %v9532_v1 = vld [vmem:[%s10618_s8 + $0x40] sm:$0xf] }
  0x4b   : > { %v1777_v24 = vrot.slane %v1775_v14, 5  ;;  %v1782_v25 = vrot.slane %v1780_v15, 4  ;;  %v1785_v26 = vrot.slane %v1783_v16, 5  ;;  %v1763_v28 = vrot.slane %v1762_v18, 4  ;;  %v9600_v7 = vld [vmem:[%s10618_s8 + $0x30] sm:$0xe] }
  0x4c   : > { %v1791_v29 = vrot.slane %v1789_v19, 5  ;;  %v1795_v30 = vrot.slane %v1793_v20, 4  ;;  %v1801_v31 = vrot.slane %v1799_v21, 5  ;;  %v1772_v33 = vor.u32 %v1771_v23, %v1767_v11  ;;  %v9602_v13 = vld [vmem:[%s10618_s8 + $0x38] sm:$0x1] }
  0x4d   : > { %1584 = vrot.lane.b32.xlu0 %v10405_v9, %s10537_s9  ;;  %v1786_v34 = vor.u32 %v1785_v26, %v1782_v25  ;;  %v9434_v35 = vrot.slane %v9384_v12, 9  ;;  %v2390_v36 = vrot.slane %v9385_v17, 5  ;;  %v1768_v40 = vsel %vm10649_vm5, %v1763_v28, %v1767_v11  ;;  %v9601_v12 = vld [vmem:[%s10618_s8 + $0x34] sm:$0xf]  ;;  %v482_v18 = vld [vmem:[%s10618_s8 + $0x30] sm:$0xf] }
  0x4e   : > { %1383 = vrot.lane.b32.xlu1 %v9237_v8, %s10539_s11  ;;  %v1796_v41 = vor.u32 %v1795_v30, %v1791_v29  ;;  %v2393_v42 = vrot.slane %v9386_v22, 5  ;;  %v9435_v44 = vrot.slane %v9387_v27, 9  ;;  %v1773_v45 = vrot.slane %v1772_v33, 4  ;;  %v10407_v27 = vld [vmem:[%s10618_s8 + $0x30] sm:$0xff]  }
  0x4f   : > { %v1787_v46 = vrot.slane %v1786_v34, 4  ;;  %v2391_v47 = vsel %vm10611_vm2, %v9434_v35, %v2390_v36  ;;  %v2392_v48 = vrot.slane %v2390_v36, 4  ;;  %v2397_v50 = vrot.slane %v9388_v32, 5  ;;  %v483_v36 = vld [vmem:[%s10618_s8 + $0x34] sm:$0xf] }
  0x50   : > { %v1797_v49 = vrot.slane %v1796_v41, 4  ;;  %v2400_v51 = vrot.slane %v9389_v37, 5  ;;  %v2933_v53 = vshrl.u32 %v9528_v38, 16  ;;  %v1778_v54 = vsel %vm10649_vm5, %v1773_v45, %v1777_v24  ;;  %v10408_v37 = vld [vmem:[%s10618_s8 + $0x3c] sm:$0xff]  }
  0x51   : > { %v1792_v55 = vsel %vm10649_vm5, %v1787_v46, %v1791_v29  ;;  %v2394_v56 = vsel %vm10611_vm2, %v2392_v48, %v2393_v42  ;;  %v2936_v58 = vshll.u32 %v9528_v38, 16  ;;  %v9362_v60 = vcombine.low %v1768_v40, %v1778_v54  ;;  %v484_v46 = vld [vmem:[%s10618_s8 + $0x38] sm:$0x1] }
  0x52   : > { %1586 = vrot.lane.b32.xlu1 %v10406_v39, %s10537_s9  ;;  %v1802_v61 = vsel %vm10649_vm5, %v1797_v49, %v1801_v31  ;;  %v9452_v62 = vcombine.low %v2391_v47, %v2394_v56  ;;  %v2398_v63 = vsel %vm10611_vm2, %v9435_v44, %v2397_v50  ;;  %v2399_v3 = vrot.slane %v2397_v50, 4 }
  0x53   : > { %v9363_v2 = vcombine.low %v1792_v55, %v1802_v61  ;;  %v2935_v4 = vrot.slane %v2933_v53, 4  ;;  %v2938_v5 = vrot.slane %v2936_v58, 5  ;;  %2197 = vrot.lane.b32.xlu0 %v9362_v60, %s10541_s13  ;;  %v2942_v8 = vshll.u32 %v9529_v52, 16  ;;  %v9604_v53 = vld [vmem:[%s10618_s8 + $0x40] sm:$0xf] }
  0x54   : > { %v2946_v9 = vshrl.u32 %v9529_v52, 16  ;;  %v2952_v10 = vshll.u32 %v9530_v57, 16  ;;  %v2957_v11 = vshrl.u32 %v9531_v59, 16  ;;  %v2401_v14 = vsel %vm10611_vm2, %v2399_v3, %v2400_v51  ;;  %v9603_v52 = vld [vmem:[%s10618_s8 + $0x3c] sm:$0xe] }
  0x55   : > { %v2939_v15 = vor.u32 %v2938_v5, %v2935_v4  ;;  %v2960_v16 = vshll.u32 %v9531_v59, 16  ;;  %v2966_v17 = vshll.u32 %v9532_v1, 16  ;;  %v9453_v19 = vcombine.low %v2398_v63, %v2401_v14  ;;  %v9605_v58 = vld [vmem:[%s10618_s8 + $0x44] sm:$0x1]  ;;  %v485_v59 = vld [vmem:[%s10618_s8 + $0x3c] sm:$0xf] }
  0x56   : > { %2199 = vrot.lane.b32.xlu1 %v9363_v2, %s10541_s13  ;;  %v2944_v20 = vrot.slane %v2942_v8, 5  ;;  %v2948_v21 = vrot.slane %v2946_v9, 4  ;;  %v2954_v22 = vrot.slane %v2952_v10, 5  ;;  %v2959_v24 = vrot.slane %v2957_v11, 4  ;;  %v1098_v11 = vld [vmem:[%s10618_s8 + $0x30] sm:$0xe] }
  0x57   : > { %v2940_v23 = vrot.slane %v2939_v15, 4  ;;  %v2962_v25 = vrot.slane %v2960_v16, 5  ;;  %v2968_v26 = vrot.slane %v2966_v17, 5  ;;  %2558 = vrot.lane.b32.xlu0 %v9452_v62, %s10538_s10  ;;  %v2970_v29 = vshrl.u32 %v9532_v1, 16  ;;  %v486_v1 = vld [vmem:[%s10618_s8 + $0x40] sm:$0xf] }
  0x58   : > { %v2949_v28 = vor.u32 %v2948_v21, %v2944_v20  ;;  %v2976_v30 = vshll.u32 %v9533_v6, 16  ;;  %v9650_v31 = vrot.slane %v9600_v7, 9  ;;  %v3567_v34 = vrot.slane %v9601_v12, 5  ;;  %v487_v6 = vld [vmem:[%s10618_s8 + $0x44] sm:$0x1] }
  0x59   : > { %v2945_v32 = vsel %vm10649_vm5, %v2940_v23, %v2944_v20  ;;  %v2963_v33 = vor.u32 %v2962_v25, %v2959_v24  ;;  %v3570_v35 = vrot.slane %v9602_v13, 5  ;;  %v2972_v39 = vrot.slane %v2970_v29, 4  ;;  %v1099_v16 = vld [vmem:[%s10618_s8 + $0x34] sm:$0xf]  ;;  %v1100_v17 = vld [vmem:[%s10618_s8 + $0x38] sm:$0x1] }
  0x5a   : > { %2560 = vrot.lane.b32.xlu1 %v9453_v19, %s10538_s10  ;;  %v2950_v38 = vrot.slane %v2949_v28, 4  ;;  %v2978_v40 = vrot.slane %v2976_v30, 5  ;;  %v624_v41 = vshrl.u32 %v482_v18, 16  ;;  %v3568_v44 = vsel %vm10611_vm2, %v9650_v31, %v3567_v34  ;;  %v1102_v23 = vld [vmem:[%s10618_s8 + $0x40] sm:$0xf] }
  0x5b   : > { %v2964_v42 = vrot.slane %v2963_v33, 4  ;;  %v3569_v45 = vrot.slane %v3567_v34, 4  ;;  %v627_v47 = vshll.u32 %v482_v18, 16  ;;  %2761 = vrot.lane.b32.xlu0 %v10407_v27, %s10542_s14  ;;  %v2973_v49 = vor.u32 %v2972_v39, %v2968_v26 }
  0x5c   : > { %v2955_v48 = vsel %vm10649_vm5, %v2950_v38, %v2954_v22  ;;  %v626_v50 = vrot.slane %v624_v41, 4  ;;  %v633_v51 = vshll.u32 %v483_v36, 16  ;;  %v637_v63 = vshrl.u32 %v483_v36, 16  ;;  %v1101_v22 = vld [vmem:[%s10618_s8 + $0x3c] sm:$0xe] }
  0x5d   : > { %v9578_v54 = vcombine.low %v2945_v32, %v2955_v48  ;;  %v2969_v55 = vsel %vm10649_vm5, %v2964_v42, %v2968_v26  ;;  %v3571_v56 = vsel %vm10611_vm2, %v3569_v45, %v3570_v35  ;;  %v629_v57 = vrot.slane %v627_v47, 5  ;;  %v1103_v36 = vld [vmem:[%s10618_s8 + $0x44] sm:$0x1]  ;;  %v9318_v41 = vld [vmem:[%s10618_s8 + $0x3c] sm:$0xf] }
  0x5e   : > { %2763 = vrot.lane.b32.xlu1 %v10408_v37, %s10542_s14  ;;  %v2974_v60 = vrot.slane %v2973_v49, 4  ;;  %v9668_v61 = vcombine.low %v3568_v44, %v3571_v56  ;;  %v635_v62 = vrot.slane %v633_v51, 5  ;;  %v643_v3 = vshll.u32 %v484_v46, 16  ;;  %v9319_v47 = vld [vmem:[%s10618_s8 + $0x40] sm:$0xf] }
  0x5f   : > { %v630_v2 = vor.u32 %v629_v57, %v626_v50  ;;  %v9651_v4 = vrot.slane %v9603_v52, 9  ;;  %v3574_v5 = vrot.slane %v9604_v53, 5  ;;  %3374 = vrot.lane.b32.xlu0 %v9578_v54, %s10543_s15  ;;  %v639_v8 = vrot.slane %v637_v63, 4 }
  0x60   : > { %v2979_v7 = vsel %vm10649_vm5, %v2974_v60, %v2978_v40  ;;  %v3577_v9 = vrot.slane %v9605_v58, 5  ;;  %v648_v10 = vshrl.u32 %v485_v59, 16  ;;  %v645_v14 = vrot.slane %v643_v3, 5  ;;  %v9320_v58 = vld [vmem:[%s10618_s8 + $0x44] sm:$0x1] }
  0x61   : > { %v9579_v12 = vcombine.low %v2969_v55, %v2979_v7  ;;  %v631_v13 = vrot.slane %v630_v2, 4  ;;  %v3575_v15 = vsel %vm10611_vm2, %v9651_v4, %v3574_v5  ;;  %v640_v18 = vor.u32 %v639_v8, %v635_v62  ;;  %v9322_v3 = vld [vmem:[%s10618_s8 + $0x4c] sm:$0xf]  ;;  %v9323_v4 = vld [vmem:[%s10618_s8 + $0x50] sm:$0x1]  ;;  %v10409_v7 = vld [vmem:[%s10618_s8 + $0x3c] sm:$0xff]  }
  0x62   : > { %v3576_v19 = vrot.slane %v3574_v5, 4  ;;  %v650_v20 = vrot.slane %v648_v10, 4  ;;  %v651_v21 = vshll.u32 %v485_v59, 16  ;;  %v657_v25 = vshll.u32 %v486_v1, 16  ;;  %v9390_v10 = vld [vmem:[%s10618_s8 + $0x3c] sm:$0xe] }
  0x63   : > { %3376 = vrot.lane.b32.xlu1 %v9579_v12, %s10543_s15  ;;  %v636_v24 = vsel %vm10649_vm5, %v631_v13, %v635_v62  ;;  %v661_v26 = vshrl.u32 %v486_v1, 16  ;;  %v667_v27 = vshll.u32 %v487_v6, 16  ;;  %3735 = vrot.lane.b32.xlu0 %v9668_v61, %s10544_s16  ;;  %v641_v28 = vrot.slane %v640_v18, 4  ;;  %v9321_v61 = vld [vmem:[%s10618_s8 + $0x48] sm:$0xf] }
  0x64   : > { %v3578_v29 = vsel %vm10611_vm2, %v3576_v19, %v3577_v9  ;;  %v653_v30 = vrot.slane %v651_v21, 5  ;;  %v9220_v31 = vrot.slane %v1098_v11, 9  ;;  %v659_v33 = vrot.slane %v657_v25, 5  ;;  %v9393_v25 = vld [vmem:[%s10618_s8 + $0x48] sm:$0xe] }
  0x65   : > { %v9669_v32 = vcombine.low %v3575_v15, %v3578_v29  ;;  %v663_v34 = vrot.slane %v661_v26, 4  ;;  %v669_v35 = vrot.slane %v667_v27, 5  ;;  %v646_v37 = vsel %vm10649_vm5, %v641_v28, %v645_v14  ;;  %v9391_v15 = vld [vmem:[%s10618_s8 + $0x40] sm:$0xf] }
  0x66   : > { %v654_v38 = vor.u32 %v653_v30, %v650_v20  ;;  %v1227_v39 = vrot.slane %v1099_v16, 5  ;;  %v1230_v40 = vrot.slane %v1100_v17, 5  ;;  %v9202_v42 = vcombine.low %v636_v24, %v646_v37  ;;  %v9392_v20 = vld [vmem:[%s10618_s8 + $0x44] sm:$0x1]  ;;  %v9394_v30 = vld [vmem:[%s10618_s8 + $0x4c] sm:$0xf] }
  0x67   : > { %v664_v44 = vor.u32 %v663_v34, %v659_v33  ;;  %v9221_v45 = vrot.slane %v1101_v22, 9  ;;  %v1234_v46 = vrot.slane %v1102_v23, 5  ;;  %3737 = vrot.lane.b32.xlu0 %v9669_v32, %s10544_s16  ;;  %v1237_v51 = vrot.slane %v1103_v36, 5  ;;  %v9534_v36 = vld [vmem:[%s10618_s8 + $0x48] sm:$0xf] }
  0x68   : > { %v655_v48 = vrot.slane %v654_v38, 4  ;;  %v1228_v49 = vsel %vm10611_vm2, %v9220_v31, %v1227_v39  ;;  %v1229_v50 = vrot.slane %v1227_v39, 4  ;;  %1021 = vrot.lane.b32.xlu1 %v9202_v42, %s10540_s12  ;;  %v1804_v55 = vshrl.u32 %v9318_v41, 16  ;;  %v10410_v37 = vld [vmem:[%s10618_s8 + $0x48] sm:$0xff]  }
  0x69   : > { %v665_v52 = vrot.slane %v664_v44, 4  ;;  %v1235_v53 = vsel %vm10611_vm2, %v9221_v45, %v1234_v46  ;;  %v1236_v54 = vrot.slane %v1234_v46, 4  ;;  %v1807_v59 = vshll.u32 %v9318_v41, 16 }
  0x6a   : > { %v660_v56 = vsel %vm10649_vm5, %v655_v48, %v659_v33  ;;  %v1231_v57 = vsel %vm10611_vm2, %v1229_v50, %v1230_v40  ;;  %v1813_v60 = vshll.u32 %v9319_v47, 16  ;;  %v1806_v2 = vrot.slane %v1804_v55, 4  ;;  %v9536_v48 = vld [vmem:[%s10618_s8 + $0x50] sm:$0x1] }
  0x6b   : > { %v670_v62 = vsel %vm10649_vm5, %v665_v52, %v669_v35  ;;  %v9238_v63 = vcombine.low %v1228_v49, %v1231_v57  ;;  %v1238_v1 = vsel %vm10611_vm2, %v1236_v54, %v1237_v51  ;;  %v1809_v8 = vrot.slane %v1807_v59, 5  ;;  %v9395_v35 = vld [vmem:[%s10618_s8 + $0x50] sm:$0x1] }
  0x6c   : > { %v9203_v5 = vcombine.low %v660_v56, %v670_v62  ;;  %v9239_v6 = vcombine.low %v1235_v53, %v1238_v1  ;;  %v1815_v9 = vrot.slane %v1813_v60, 5  ;;  %v1817_v11 = vshrl.u32 %v9319_v47, 16  ;;  %v9535_v47 = vld [vmem:[%s10618_s8 + $0x4c] sm:$0xf]  ;;  %v9537_v53 = vld [vmem:[%s10618_s8 + $0x54] sm:$0xf] }
  0x6d   : > { %1385 = vrot.lane.b32.xlu0 %v9238_v63, %s10539_s11  ;;  %v1823_v12 = vshll.u32 %v9320_v58, 16  ;;  %v1828_v13 = vshrl.u32 %v9321_v61, 16  ;;  %v1831_v14 = vshll.u32 %v9321_v61, 16  ;;  %v1810_v16 = vor.u32 %v1809_v8, %v1806_v2  ;;  %v9538_v58 = vld [vmem:[%s10618_s8 + $0x58] sm:$0xf] }
  0x6e   : > { %1023 = vrot.lane.b32.xlu1 %v9203_v5, %s10540_s12  ;;  %v1837_v17 = vshll.u32 %v9322_v3, 16  ;;  %v1841_v18 = vshrl.u32 %v9322_v3, 16  ;;  %v1847_v19 = vshll.u32 %v9323_v4, 16  ;;  %v1819_v21 = vrot.slane %v1817_v11, 4 }
  0x6f   : > { %v1825_v22 = vrot.slane %v1823_v12, 5  ;;  %v1830_v23 = vrot.slane %v1828_v13, 4  ;;  %v1833_v24 = vrot.slane %v1831_v14, 5  ;;  %v1811_v26 = vrot.slane %v1810_v16, 4  ;;  %v9606_v13 = vld [vmem:[%s10618_s8 + $0x48] sm:$0xe] }
  0x70   : > { %v1839_v27 = vrot.slane %v1837_v17, 5  ;;  %v1843_v28 = vrot.slane %v1841_v18, 4  ;;  %v1849_v29 = vrot.slane %v1847_v19, 5  ;;  %v1820_v31 = vor.u32 %v1819_v21, %v1815_v9  ;;  %v9607_v14 = vld [vmem:[%s10618_s8 + $0x4c] sm:$0xf] }
  0x71   : > { %1588 = vrot.lane.b32.xlu0 %v10409_v7, %s10537_s9  ;;  %v1834_v32 = vor.u32 %v1833_v24, %v1830_v23  ;;  %v9436_v33 = vrot.slane %v9390_v10, 9  ;;  %v2404_v34 = vrot.slane %v9391_v15, 5  ;;  %v1816_v38 = vsel %vm10649_vm5, %v1811_v26, %v1815_v9  ;;  %v9539_v7 = vld [vmem:[%s10618_s8 + $0x5c] sm:$0x1]  ;;  %v9608_v19 = vld [vmem:[%s10618_s8 + $0x50] sm:$0x1] }
  0x72   : > { %1387 = vrot.lane.b32.xlu1 %v9239_v6, %s10539_s11  ;;  %v1844_v39 = vor.u32 %v1843_v28, %v1839_v27  ;;  %v2407_v40 = vrot.slane %v9392_v20, 5  ;;  %v9437_v41 = vrot.slane %v9393_v25, 9  ;;  %v1821_v42 = vrot.slane %v1820_v31, 4  ;;  %v488_v24 = vld [vmem:[%s10618_s8 + $0x48] sm:$0xf] }
  0x73   : > { %v1835_v44 = vrot.slane %v1834_v32, 4  ;;  %v2405_v45 = vsel %vm10611_vm2, %v9436_v33, %v2404_v34  ;;  %v2406_v46 = vrot.slane %v2404_v34, 4  ;;  %v2411_v50 = vrot.slane %v9394_v30, 5  ;;  %v10411_v25 = vld [vmem:[%s10618_s8 + $0x48] sm:$0xff]   ;;  %v10412_v30 = vld [vmem:[%s10618_s8 + $0x54] sm:$0xff]  }
  0x74   : > { %v1845_v49 = vrot.slane %v1844_v39, 4  ;;  %v2414_v51 = vrot.slane %v9395_v35, 5  ;;  %v2981_v52 = vshrl.u32 %v9534_v36, 16  ;;  %v1826_v54 = vsel %vm10649_vm5, %v1821_v42, %v1825_v22  ;;  %v489_v35 = vld [vmem:[%s10618_s8 + $0x4c] sm:$0xf] }
  0x75   : > { %v1840_v55 = vsel %vm10649_vm5, %v1835_v44, %v1839_v27  ;;  %v2408_v56 = vsel %vm10611_vm2, %v2406_v46, %v2407_v40  ;;  %v2984_v57 = vshll.u32 %v9534_v36, 16  ;;  %v9364_v59 = vcombine.low %v1816_v38, %v1826_v54  ;;  %v490_v39 = vld [vmem:[%s10618_s8 + $0x50] sm:$0x1]  ;;  %v9610_v42 = vld [vmem:[%s10618_s8 + $0x58] sm:$0xf] }
  0x76   : > { %1590 = vrot.lane.b32.xlu1 %v10410_v37, %s10537_s9  ;;  %v1850_v60 = vsel %vm10649_vm5, %v1845_v49, %v1849_v29  ;;  %v9454_v61 = vcombine.low %v2405_v45, %v2408_v56  ;;  %v2412_v62 = vsel %vm10611_vm2, %v9437_v41, %v2411_v50  ;;  %v2413_v1 = vrot.slane %v2411_v50, 4  ;;  %v9609_v41 = vld [vmem:[%s10618_s8 + $0x54] sm:$0xe] }
  0x77   : > { %v9365_v63 = vcombine.low %v1840_v55, %v1850_v60  ;;  %v2983_v2 = vrot.slane %v2981_v52, 4  ;;  %v2986_v3 = vrot.slane %v2984_v57, 5  ;;  %2201 = vrot.lane.b32.xlu0 %v9364_v59, %s10541_s13  ;;  %v2990_v4 = vshll.u32 %v9535_v47, 16 }
  0x78   : > { %v2994_v5 = vshrl.u32 %v9535_v47, 16  ;;  %v3000_v6 = vshll.u32 %v9536_v48, 16  ;;  %v3005_v8 = vshrl.u32 %v9537_v53, 16  ;;  %v2415_v9 = vsel %vm10611_vm2, %v2413_v1, %v2414_v51  ;;  %v9611_v48 = vld [vmem:[%s10618_s8 + $0x5c] sm:$0x1] }
  0x79   : > { %v2987_v10 = vor.u32 %v2986_v3, %v2983_v2  ;;  %v3008_v11 = vshll.u32 %v9537_v53, 16  ;;  %v3014_v12 = vshll.u32 %v9538_v58, 16  ;;  %v9455_v15 = vcombine.low %v2412_v62, %v2415_v9  ;;  %v491_v53 = vld [vmem:[%s10618_s8 + $0x54] sm:$0xf]  ;;  %v492_v62 = vld [vmem:[%s10618_s8 + $0x58] sm:$0xf] }
  0x7a   : > { %2203 = vrot.lane.b32.xlu1 %v9365_v63, %s10541_s13  ;;  %v2992_v16 = vrot.slane %v2990_v4, 5  ;;  %v2996_v17 = vrot.slane %v2994_v5, 4  ;;  %v3002_v18 = vrot.slane %v3000_v6, 5  ;;  %v3007_v21 = vrot.slane %v3005_v8, 4  ;;  %v493_v4 = vld [vmem:[%s10618_s8 + $0x5c] sm:$0x1] }
  0x7b   : > { %v2988_v20 = vrot.slane %v2987_v10, 4  ;;  %v3010_v22 = vrot.slane %v3008_v11, 5  ;;  %v3016_v23 = vrot.slane %v3014_v12, 5  ;;  %2562 = vrot.lane.b32.xlu0 %v9454_v61, %s10538_s10  ;;  %v3018_v27 = vshrl.u32 %v9538_v58, 16  ;;  %v1104_v9 = vld [vmem:[%s10618_s8 + $0x48] sm:$0xe] }
  0x7c   : > { %v2997_v26 = vor.u32 %v2996_v17, %v2992_v16  ;;  %v3024_v28 = vshll.u32 %v9539_v7, 16  ;;  %v9652_v29 = vrot.slane %v9606_v13, 9  ;;  %v3581_v33 = vrot.slane %v9607_v14, 5  ;;  %v1105_v14 = vld [vmem:[%s10618_s8 + $0x4c] sm:$0xf] }
  0x7d   : > { %v2993_v31 = vsel %vm10649_vm5, %v2988_v20, %v2992_v16  ;;  %v3011_v32 = vor.u32 %v3010_v22, %v3007_v21  ;;  %v3584_v34 = vrot.slane %v9608_v19, 5  ;;  %v3020_v37 = vrot.slane %v3018_v27, 4  ;;  %v1107_v20 = vld [vmem:[%s10618_s8 + $0x54] sm:$0xe]  ;;  %v1108_v21 = vld [vmem:[%s10618_s8 + $0x58] sm:$0xf] }
  0x7e   : > { %2564 = vrot.lane.b32.xlu1 %v9455_v15, %s10538_s10  ;;  %v2998_v36 = vrot.slane %v2997_v26, 4  ;;  %v3026_v38 = vrot.slane %v3024_v28, 5  ;;  %v672_v40 = vshrl.u32 %v488_v24, 16  ;;  %v3582_v45 = vsel %vm10611_vm2, %v9652_v29, %v3581_v33  ;;  %v1106_v15 = vld [vmem:[%s10618_s8 + $0x50] sm:$0x1] }
  0x7f   : > { %v3012_v44 = vrot.slane %v3011_v32, 4  ;;  %v3583_v46 = vrot.slane %v3581_v33, 4  ;;  %v675_v47 = vshll.u32 %v488_v24, 16  ;;  %2765 = vrot.lane.b32.xlu0 %v10411_v25, %s10542_s14  ;;  %v3021_v50 = vor.u32 %v3020_v37, %v3016_v23  ;;  %v1109_v26 = vld [vmem:[%s10618_s8 + $0x5c] sm:$0x1] }
  0x80   : > { %v3003_v49 = vsel %vm10649_vm5, %v2998_v36, %v3002_v18  ;;  %v674_v51 = vrot.slane %v672_v40, 4  ;;  %v681_v52 = vshll.u32 %v489_v35, 16  ;;  %v685_v61 = vshrl.u32 %v489_v35, 16 }
  0x81   : > { %v9580_v54 = vcombine.low %v2993_v31, %v3003_v49  ;;  %v3017_v55 = vsel %vm10649_vm5, %v3012_v44, %v3016_v23  ;;  %v3585_v56 = vsel %vm10611_vm2, %v3583_v46, %v3584_v34  ;;  %v677_v57 = vrot.slane %v675_v47, 5 }
  0x82   : > { %2767 = vrot.lane.b32.xlu1 %v10412_v30, %s10542_s14  ;;  %v3022_v58 = vrot.slane %v3021_v50, 4  ;;  %v9670_v59 = vcombine.low %v3582_v45, %v3585_v56  ;;  %v683_v60 = vrot.slane %v681_v52, 5  ;;  %v691_v1 = vshll.u32 %v490_v39, 16  ;;  %v9324_v39 = vld [vmem:[%s10618_s8 + $0x54] sm:$0xf] }
  0x83   : > { %v678_v63 = vor.u32 %v677_v57, %v674_v51  ;;  %v9653_v2 = vrot.slane %v9609_v41, 9  ;;  %v3588_v3 = vrot.slane %v9610_v42, 5  ;;  %3378 = vrot.lane.b32.xlu0 %v9580_v54, %s10543_s15  ;;  %v687_v6 = vrot.slane %v685_v61, 4  ;;  %v9325_v45 = vld [vmem:[%s10618_s8 + $0x58] sm:$0xf] }
  0x84   : > { %v3027_v5 = vsel %vm10649_vm5, %v3022_v58, %v3026_v38  ;;  %v3591_v7 = vrot.slane %v9611_v48, 5  ;;  %v696_v8 = vshrl.u32 %v491_v53, 16  ;;  %v693_v12 = vrot.slane %v691_v1, 5  ;;  %v9326_v50 = vld [vmem:[%s10618_s8 + $0x5c] sm:$0x1] }
  0x85   : > { %v9581_v10 = vcombine.low %v3017_v55, %v3027_v5  ;;  %v679_v11 = vrot.slane %v678_v63, 4  ;;  %v3589_v13 = vsel %vm10611_vm2, %v9653_v2, %v3588_v3  ;;  %v688_v16 = vor.u32 %v687_v6, %v683_v60  ;;  %v9327_v56 = vld [vmem:[%s10618_s8 + $0x60] sm:$0xf]  ;;  %v9328_v2 = vld [vmem:[%s10618_s8 + $0x64] sm:$0xf] }
  0x86   : > { %v3590_v17 = vrot.slane %v3588_v3, 4  ;;  %v698_v18 = vrot.slane %v696_v8, 4  ;;  %v699_v19 = vshll.u32 %v491_v53, 16  ;;  %v705_v23 = vshll.u32 %v492_v62, 16  ;;  %v9329_v3 = vld [vmem:[%s10618_s8 + $0x68] sm:$0x1] }
  0x87   : > { %3380 = vrot.lane.b32.xlu1 %v9581_v10, %s10543_s15  ;;  %v684_v22 = vsel %vm10649_vm5, %v679_v11, %v683_v60  ;;  %v709_v24 = vshrl.u32 %v492_v62, 16  ;;  %v715_v25 = vshll.u32 %v493_v4, 16  ;;  %3739 = vrot.lane.b32.xlu0 %v9670_v59, %s10544_s16  ;;  %v689_v27 = vrot.slane %v688_v16, 4  ;;  %v10965_v51 = vpop.permute.xlu0 %1580  ;;  %v10981_v4 = vpop.permute.xlu1 %1582  ;;  %v9396_v10 = vld [vmem:[%s10618_s8 + $0x54] sm:$0xe] }
  0x88   : > { %v3592_v28 = vsel %vm10611_vm2, %v3590_v17, %v3591_v7  ;;  %v701_v29 = vrot.slane %v699_v19, 5  ;;  %v9222_v30 = vrot.slane %v1104_v9, 9  ;;  %v707_v32 = vrot.slane %v705_v23, 5  ;;  %v10413_v7 = vld [vmem:[%s10618_s8 + $0x54] sm:$0xff]  }
  0x89   : > { %v9671_v31 = vcombine.low %v3589_v13, %v3592_v28  ;;  %v711_v33 = vrot.slane %v709_v24, 4  ;;  %v717_v34 = vrot.slane %v715_v25, 5  ;;  %v694_v35 = vsel %vm10649_vm5, %v689_v27, %v693_v12 }
  0x8a   : > { %v702_v36 = vor.u32 %v701_v29, %v698_v18  ;;  %v1241_v37 = vrot.slane %v1105_v14, 5  ;;  %v1244_v38 = vrot.slane %v1106_v15, 5  ;;  %v9204_v40 = vcombine.low %v684_v22, %v694_v35  ;;  %v9397_v15 = vld [vmem:[%s10618_s8 + $0x58] sm:$0xf] }
  0x8b   : > { %v712_v41 = vor.u32 %v711_v33, %v707_v32  ;;  %v9223_v42 = vrot.slane %v1107_v20, 9  ;;  %v1248_v44 = vrot.slane %v1108_v21, 5  ;;  %3741 = vrot.lane.b32.xlu0 %v9671_v31, %s10544_s16  ;;  %v1251_v49 = vrot.slane %v1109_v26, 5  ;;  %v9398_v20 = vld [vmem:[%s10618_s8 + $0x5c] sm:$0x1] }
  0x8c   : > { %v703_v46 = vrot.slane %v702_v36, 4  ;;  %v1242_v47 = vsel %vm10611_vm2, %v9222_v30, %v1241_v37  ;;  %v1243_v48 = vrot.slane %v1241_v37, 4  ;;  %1025 = vrot.lane.b32.xlu1 %v9204_v40, %s10540_s12  ;;  %v1852_v55 = vshrl.u32 %v9324_v39, 16  ;;  %v9399_v26 = vld [vmem:[%s10618_s8 + $0x60] sm:$0xe] }
  0x8d   : > { %v713_v52 = vrot.slane %v712_v41, 4  ;;  %v1249_v53 = vsel %vm10611_vm2, %v9223_v42, %v1248_v44  ;;  %v1250_v54 = vrot.slane %v1248_v44, 4  ;;  %v1855_v59 = vshll.u32 %v9324_v39, 16  ;;  %v9400_v31 = vld [vmem:[%s10618_s8 + $0x64] sm:$0xf] }
  0x8e   : > { %v708_v57 = vsel %vm10649_vm5, %v703_v46, %v707_v32  ;;  %v1245_v58 = vsel %vm10611_vm2, %v1243_v48, %v1244_v38  ;;  %v1861_v60 = vshll.u32 %v9325_v45, 16  ;;  %v1854_v1 = vrot.slane %v1852_v55, 4  ;;  %v9401_v36 = vld [vmem:[%s10618_s8 + $0x68] sm:$0x1]  ;;  %v9540_v38 = vld [vmem:[%s10618_s8 + $0x60] sm:$0xf] }
  0x8f   : > { %v718_v61 = vsel %vm10649_vm5, %v713_v52, %v717_v34  ;;  %v9240_v62 = vcombine.low %v1242_v47, %v1245_v58  ;;  %v1252_v63 = vsel %vm10611_vm2, %v1250_v54, %v1251_v49  ;;  %v1857_v8 = vrot.slane %v1855_v59, 5  ;;  %v10989_v21 = vpop.permute.xlu0 %2554  ;;  %v10414_v39 = vld [vmem:[%s10618_s8 + $0x60] sm:$0xff]   ;;  %v9543_v52 = vld [vmem:[%s10618_s8 + $0x6c] sm:$0xf] }
  0x90   : > { %v9205_v5 = vcombine.low %v708_v57, %v718_v61  ;;  %v9241_v6 = vcombine.low %v1249_v53, %v1252_v63  ;;  %v1863_v9 = vrot.slane %v1861_v60, 5  ;;  %v1865_v11 = vshrl.u32 %v9325_v45, 16  ;;  %v10995_v37 = vpop.permute.xlu1 %1377  ;;  %v9541_v49 = vld [vmem:[%s10618_s8 + $0x64] sm:$0xf] }
  0x91   : > { %1389 = vrot.lane.b32.xlu0 %v9240_v62, %s10539_s11  ;;  %v1871_v12 = vshll.u32 %v9326_v50, 16  ;;  %v1876_v13 = vshrl.u32 %v9327_v56, 16  ;;  %v1879_v14 = vshll.u32 %v9327_v56, 16  ;;  %v1858_v16 = vor.u32 %v1857_v8, %v1854_v1  ;;  %v9542_v50 = vld [vmem:[%s10618_s8 + $0x68] sm:$0x1] }
  0x92   : > { %1027 = vrot.lane.b32.xlu1 %v9205_v5, %s10540_s12  ;;  %v1885_v17 = vshll.u32 %v9328_v2, 16  ;;  %v1889_v18 = vshrl.u32 %v9328_v2, 16  ;;  %v1895_v19 = vshll.u32 %v9329_v3, 16  ;;  %v1867_v22 = vrot.slane %v1865_v11, 4  ;;  %v9544_v3 = vld [vmem:[%s10618_s8 + $0x70] sm:$0xf] }
  0x93   : > { %v1873_v23 = vrot.slane %v1871_v12, 5  ;;  %v1878_v24 = vrot.slane %v1876_v13, 4  ;;  %v1881_v25 = vrot.slane %v1879_v14, 5  ;;  %v1859_v27 = vrot.slane %v1858_v16, 4  ;;  %v10418_v11 = vld [vmem:[%s10618_s8 + $0xc] sm:$0xff]   ;;  %v10422_v12 = vld [vmem:[%s10618_s8 + $0x18] sm:$0xff]  }
  0x94   : > { %v1887_v28 = vrot.slane %v1885_v17, 5  ;;  %v1891_v29 = vrot.slane %v1889_v18, 4  ;;  %v1897_v30 = vrot.slane %v1895_v19, 5  ;;  %v1868_v32 = vor.u32 %v1867_v22, %v1863_v9  ;;  %v10424_v13 = vld [vmem:[%s10618_s8 + $0x24] sm:$0xff]   ;;  %v10430_v14 = vld [vmem:[%s10618_s8 + $0x30] sm:$0xff]   ;;  %453 = vst.msk [vmem:[#allocation3 + $0x8] sm:$0xff] %vm13802_vm6, %v10418_v11 }
  0x95   : > { %1592 = vrot.lane.b32.xlu0 %v10413_v7, %s10537_s9  ;;  %v1882_v33 = vor.u32 %v1881_v25, %v1878_v24  ;;  %v9438_v34 = vrot.slane %v9396_v10, 9  ;;  %v2418_v35 = vrot.slane %v9397_v15, 5  ;;  %v1864_v40 = vsel %vm10649_vm5, %v1859_v27, %v1863_v9  ;;  %v10417_v9 = vld [vmem:[%s10618_s8] sm:$0xff]   ;;  %v9545_v19 = vld [vmem:[%s10618_s8 + $0x74] sm:$0x1]  ;;  %454 = vst.msk [vmem:[#allocation3 + $0x10] sm:$0xff] %vm13802_vm6, %v10422_v12 }
  0x96   : > { %1391 = vrot.lane.b32.xlu1 %v9241_v6, %s10539_s11  ;;  %v1892_v41 = vor.u32 %v1891_v29, %v1887_v28  ;;  %v2421_v42 = vrot.slane %v9398_v20, 5  ;;  %v9439_v44 = vrot.slane %v9399_v26, 9  ;;  %v1869_v45 = vrot.slane %v1868_v32, 4  ;;  %v11022_v10 = vpop.permute.xlu1 %1379  ;;  %v10431_v15 = vld [vmem:[%s10618_s8 + $0x3c] sm:$0xff]   ;;  %v10437_v29 = vld [vmem:[%s10618_s8 + $0x54] sm:$0xff]   ;;  %452 = vst.msk [vmem:[#allocation3] sm:$0xff] %vm13802_vm6, %v10417_v9 }
  0x97   : > { %v1883_v46 = vrot.slane %v1882_v33, 4  ;;  %v2419_v47 = vsel %vm10611_vm2, %v9438_v34, %v2418_v35  ;;  %v2420_v48 = vrot.slane %v2418_v35, 4  ;;  %v2425_v54 = vrot.slane %v9400_v31, 5  ;;  %v11034_v26 = vld [vmem:[%s10618_s8 + $0x60] sm:$0xe]  ;;  %455 = vst.msk [vmem:[#allocation3 + $0x18] sm:$0xff] %vm13802_vm6, %v10424_v13 }
  0x98   : > { %v1893_v53 = vrot.slane %v1892_v41, 4  ;;  %v2428_v55 = vrot.slane %v9401_v36, 5  ;;  %v3029_v56 = vshrl.u32 %v9540_v38, 16  ;;  %v11007_v57 = vpop.permute.xlu0 %1013  ;;  %v1874_v58 = vsel %vm10649_vm5, %v1869_v45, %v1873_v23  ;;  %v9613_v34 = vld [vmem:[%s10618_s8 + $0x64] sm:$0xf]  ;;  %456 = vst.msk [vmem:[#allocation3 + $0x20] sm:$0xff] %vm13802_vm6, %v10430_v14 }
  0x99   : > { %v1888_v59 = vsel %vm10649_vm5, %v1883_v46, %v1887_v28  ;;  %v2422_v60 = vsel %vm10611_vm2, %v2420_v48, %v2421_v42  ;;  %v3032_v61 = vshll.u32 %v9540_v38, 16  ;;  %v9366_v62 = vcombine.low %v1864_v40, %v1874_v58  ;;  %v10436_v28 = vld [vmem:[%s10618_s8 + $0x48] sm:$0xff]   ;;  %v10415_v41 = vld [vmem:[%s10618_s8 + $0x60] sm:$0xff]   ;;  %457 = vst.msk [vmem:[#allocation3 + $0x28] sm:$0xff] %vm13802_vm6, %v10431_v15  ;;  %459 = vst.msk [vmem:[#allocation3 + $0x38] sm:$0xff] %vm13802_vm6, %v10437_v29 }
  0x9a   : > { %1594 = vrot.lane.b32.xlu1 %v10414_v39, %s10537_s9  ;;  %v1898_v63 = vsel %vm10649_vm5, %v1893_v53, %v1897_v30  ;;  %v9456_v1 = vcombine.low %v2419_v47, %v2422_v60  ;;  %v2426_v2 = vsel %vm10611_vm2, %v9439_v44, %v2425_v54  ;;  %v2427_v6 = vrot.slane %v2425_v54, 4  ;;  %v9614_v40 = vld [vmem:[%s10618_s8 + $0x68] sm:$0x1]  ;;  %v494_v46 = vld [vmem:[%s10618_s8 + $0x60] sm:$0xf]  ;;  %v10416_v47 = vld [vmem:[%s10618_s8 + $0x6c] sm:$0xff]  }
  0x9b   : > { %v9367_v5 = vcombine.low %v1888_v59, %v1898_v63  ;;  %v3031_v7 = vrot.slane %v3029_v56, 4  ;;  %v3034_v8 = vrot.slane %v3032_v61, 5  ;;  %2205 = vrot.lane.b32.xlu0 %v9366_v62, %s10541_s13  ;;  %v3038_v16 = vshll.u32 %v9541_v49, 16  ;;  %458 = vst.msk [vmem:[#allocation3 + $0x30] sm:$0xff] %vm13802_vm6, %v10436_v28  ;;  %v496_v58 = vld [vmem:[%s10618_s8 + $0x68] sm:$0x1] }
  0x9c   : > { %v3042_v17 = vshrl.u32 %v9541_v49, 16  ;;  %v3048_v18 = vshll.u32 %v9542_v50, 16  ;;  %v3053_v20 = vshrl.u32 %v9543_v52, 16  ;;  %v2429_v22 = vsel %vm10611_vm2, %v2427_v6, %v2428_v55  ;;  %v495_v50 = vld [vmem:[%s10618_s8 + $0x64] sm:$0xf]  ;;  %1068 = vst.msk [vmem:[#allocation3] sm:$0xff] %vm1067_vm7, %v11007_v57 }
  0x9d   : > { %v3035_v23 = vor.u32 %v3034_v8, %v3031_v7  ;;  %v3056_v24 = vshll.u32 %v9543_v52, 16  ;;  %v3062_v25 = vshll.u32 %v9544_v3, 16  ;;  %v1016_v27 = vpop.permute.xlu0 %1015  ;;  %v9457_v30 = vcombine.low %v2426_v2, %v2429_v22  ;;  %v11052_v52 = vpop.permute.xlu1 %2556  ;;  %v9615_v59 = vld [vmem:[%s10618_s8 + $0x6c] sm:$0xe]  ;;  %1432 = vst.msk [vmem:[#allocation3] sm:$0xff] %vm13805_vm8, %v10995_v37 }
  0x9e   : > { %2207 = vrot.lane.b32.xlu1 %v9367_v5, %s10541_s13  ;;  %v3040_v31 = vrot.slane %v3038_v16, 5  ;;  %v3044_v32 = vrot.slane %v3042_v17, 4  ;;  %v3050_v33 = vrot.slane %v3048_v18, 5  ;;  %v3055_v36 = vrot.slane %v3053_v20, 4  ;;  %1069 = vst.msk [vmem:[#allocation3 + $0x8] sm:$0xff] %vm1067_vm7, %v1016_v27 }
  0x9f   : > { %v3036_v35 = vrot.slane %v3035_v23, 4  ;;  %v3058_v38 = vrot.slane %v3056_v24, 5  ;;  %v11040_v39 = vrot.slane %v3062_v25, 5  ;;  %2566 = vrot.lane.b32.xlu0 %v9456_v1, %s10538_s10  ;;  %v3066_v44 = vshrl.u32 %v9544_v3, 16  ;;  %1433 = vst.msk [vmem:[#allocation3 + $0x8] sm:$0xff] %vm13805_vm8, %v11022_v10 }
  0xa0   : > { %v3045_v42 = vor.u32 %v3044_v32, %v3040_v31  ;;  %v3072_v45 = vshll.u32 %v9545_v19, 16  ;;  %v9654_v56 = vrot.slane %v11034_v26, 9  ;;  %v3595_v61 = vrot.slane %v9613_v34, 5  ;;  %v9616_v1 = vld [vmem:[%s10618_s8 + $0x70] sm:$0xf]  ;;  %1635 = vst.msk [vmem:[#allocation3] sm:$0xff] %vm13806_vm9, %v10965_v51 }
  0xa1   : > { %v3041_v48 = vsel %vm10649_vm5, %v3036_v35, %v3040_v31  ;;  %v3059_v49 = vor.u32 %v3058_v38, %v3055_v36  ;;  %v3068_v54 = vrot.slane %v3066_v44, 4  ;;  %v3598_v62 = vrot.slane %v9614_v40, 5  ;;  %v9617_v37 = vld [vmem:[%s10618_s8 + $0x74] sm:$0x1]  ;;  %v497_v11 = vld [vmem:[%s10618_s8 + $0x6c] sm:$0xf] }
  0xa2   : > { %2568 = vrot.lane.b32.xlu1 %v9457_v30, %s10538_s10  ;;  %v3046_v53 = vrot.slane %v3045_v42, 4  ;;  %v3074_v55 = vrot.slane %v3072_v45, 5  ;;  %v720_v63 = vshrl.u32 %v494_v46, 16  ;;  %v723_v5 = vshll.u32 %v494_v46, 16  ;;  %v498_v27 = vld [vmem:[%s10618_s8 + $0x70] sm:$0xf] }
  0xa3   : > { %v3060_v60 = vrot.slane %v3059_v49, 4  ;;  %v11072_v57 = vpop.permute.xlu0 %2193  ;;  %2769 = vrot.lane.b32.xlu0 %v10415_v41, %s10542_s14  ;;  %v3069_v3 = vor.u32 %v3068_v54, %v11040_v39  ;;  %v729_v6 = vshll.u32 %v495_v50, 16  ;;  %v3596_v9 = vsel %vm10611_vm2, %v9654_v56, %v3595_v61  ;;  %v499_v32 = vld [vmem:[%s10618_s8 + $0x74] sm:$0x1]  ;;  %v1110_v42 = vld [vmem:[%s10618_s8 + $0x60] sm:$0xe] }
  0xa4   : > { %v3051_v2 = vsel %vm10649_vm5, %v3046_v53, %v3050_v33  ;;  %v3597_v10 = vrot.slane %v3595_v61, 4  ;;  %v722_v13 = vrot.slane %v720_v63, 4  ;;  %v725_v14 = vrot.slane %v723_v5, 5  ;;  %v1111_v49 = vld [vmem:[%s10618_s8 + $0x64] sm:$0xf]  ;;  %1636 = vst.msk [vmem:[#allocation3 + $0x8] sm:$0xff] %vm13806_vm9, %v10981_v4 }
  0xa5   : > { %v9582_v7 = vcombine.low %v3041_v48, %v3051_v2  ;;  %v3065_v8 = vsel %vm10649_vm5, %v3060_v60, %v11040_v39  ;;  %v3070_v12 = vrot.slane %v3069_v3, 4  ;;  %v731_v15 = vrot.slane %v729_v6, 5  ;;  %v1115_v5 = vld [vmem:[%s10618_s8 + $0x74] sm:$0x1]  ;;  %2248 = vst.msk [vmem:[#allocation3] sm:$0xff] %vm13807_vm10, %v11072_v57 }
  0xa6   : > { %2771 = vrot.lane.b32.xlu1 %v10416_v47, %s10542_s14  ;;  %v3599_v16 = vsel %vm10611_vm2, %v3597_v10, %v3598_v62  ;;  %v733_v17 = vshrl.u32 %v495_v50, 16  ;;  %v739_v18 = vshll.u32 %v496_v58, 16  ;;  %v9655_v19 = vrot.slane %v9615_v59, 9  ;;  %v1112_v50 = vld [vmem:[%s10618_s8 + $0x68] sm:$0x1]  ;;  %2609 = vst.msk [vmem:[#allocation3] sm:$0xff] %vm2608_vm11, %v10989_v21 }
  0xa7   : > { %v2196_v20 = vpop.permute.xlu1 %2195  ;;  %v11088_v22 = vpop.permute.xlu0 %2757  ;;  %3382 = vrot.lane.b32.xlu0 %v9582_v7, %s10543_s15  ;;  %v3075_v23 = vsel %vm10649_vm5, %v3070_v12, %v3074_v55  ;;  %v9672_v24 = vcombine.low %v3596_v9, %v3599_v16  ;;  %v726_v25 = vor.u32 %v725_v14, %v722_v13  ;;  %v3602_v26 = vrot.slane %v9616_v1, 5  ;;  %v1113_v59 = vld [vmem:[%s10618_s8 + $0x6c] sm:$0xe]  ;;  %v1114_v62 = vld [vmem:[%s10618_s8 + $0x70] sm:$0xf]  ;;  %v10442_v14 = vld [vmem:[%s10618_s8 + $0x60] sm:$0xff]  }
  0xa8   : > { %v9583_v28 = vcombine.low %v3065_v8, %v3075_v23  ;;  %v735_v29 = vrot.slane %v733_v17, 4  ;;  %v741_v30 = vrot.slane %v739_v18, 5  ;;  %v3605_v31 = vrot.slane %v9617_v37, 5  ;;  %2249 = vst.msk [vmem:[#allocation3 + $0x8] sm:$0xff] %vm13807_vm10, %v2196_v20  ;;  %v9330_v13 = vld [vmem:[%s10618_s8 + $0x6c] sm:$0xf] }
  0xa9   : > { %v727_v33 = vrot.slane %v726_v25, 4  ;;  %v3603_v34 = vsel %vm10611_vm2, %v9655_v19, %v3602_v26  ;;  %v3604_v35 = vrot.slane %v3602_v26, 4  ;;  %v744_v36 = vshrl.u32 %v497_v11, 16  ;;  %v9331_v16 = vld [vmem:[%s10618_s8 + $0x70] sm:$0xf]  ;;  %2610 = vst.msk [vmem:[#allocation3 + $0x8] sm:$0xff] %vm2608_vm11, %v11052_v52 }
  0xaa   : > { %3384 = vrot.lane.b32.xlu1 %v9583_v28, %s10543_s15  ;;  %v736_v38 = vor.u32 %v735_v29, %v731_v15  ;;  %v747_v39 = vshll.u32 %v497_v11, 16  ;;  %v753_v40 = vshll.u32 %v498_v27, 16  ;;  %v757_v41 = vshrl.u32 %v498_v27, 16  ;;  %v9332_v23 = vld [vmem:[%s10618_s8 + $0x74] sm:$0x1]  ;;  %460 = vst.msk [vmem:[#allocation3 + $0x40] sm:$0xff] %vm13802_vm6, %v10442_v14 }
  0xab   : > { %v2760_v44 = vpop.permute.xlu1 %2759  ;;  %3743 = vrot.lane.b32.xlu0 %v9672_v24, %s10544_s16  ;;  %v732_v45 = vsel %vm10649_vm5, %v727_v33, %v731_v15  ;;  %v3606_v46 = vsel %vm10611_vm2, %v3604_v35, %v3605_v31  ;;  %v746_v47 = vrot.slane %v744_v36, 4  ;;  %v763_v48 = vshll.u32 %v499_v32, 16  ;;  %2812 = vst.msk [vmem:[#allocation3] sm:$0xff] %vm2811_vm12, %v11088_v22  ;;  %v10419_v26 = vld [vmem:[%s10618_s8 + $0x6c] sm:$0xff]   ;;  %v9333_v27 = vld [vmem:[%s10618_s8 + $0x78] sm:$0xf] }
  0xac   : > { %v3371_v53 = vpop.permute.xlu0 %3370  ;;  %v737_v54 = vrot.slane %v736_v38, 4  ;;  %v9673_v55 = vcombine.low %v3603_v34, %v3606_v46  ;;  %v749_v56 = vrot.slane %v747_v39, 5  ;;  %v755_v58 = vrot.slane %v753_v40, 5  ;;  %2813 = vst.msk [vmem:[#allocation3 + $0x8] sm:$0xff] %vm2811_vm12, %v2760_v44  ;;  %v9334_v31 = vld [vmem:[%s10618_s8 + $0x7c] sm:$0xf] }
  0xad   : > { %v759_v60 = vrot.slane %v757_v41, 4  ;;  %v765_v61 = vrot.slane %v763_v48, 5  ;;  %v9224_v2 = vrot.slane %v1110_v42, 9  ;;  %v1255_v3 = vrot.slane %v1111_v49, 5  ;;  %3425 = vst.msk [vmem:[#allocation3] sm:$0xff] %vm3424_vm13, %v3371_v53  ;;  %v10443_v40 = vld [vmem:[%s10618_s8 + $0x6c] sm:$0xff]  }
  0xae   : > { %v742_v63 = vsel %vm10649_vm5, %v737_v54, %v741_v30  ;;  %v750_v1 = vor.u32 %v749_v56, %v746_v47  ;;  %v1258_v7 = vrot.slane %v1112_v50, 5  ;;  %v9225_v51 = vrot.slane %v1113_v59, 9  ;;  %v9335_v22 = vld [vmem:[%s10618_s8 + $0x80] sm:$0x1]  ;;  %v9402_v39 = vld [vmem:[%s10618_s8 + $0x6c] sm:$0xe] }
  0xaf   : > { %v9206_v6 = vcombine.low %v732_v45, %v742_v63  ;;  %3745 = vrot.lane.b32.xlu0 %v9673_v55, %s10544_s16  ;;  %v760_v37 = vor.u32 %v759_v60, %v755_v58  ;;  %v1256_v9 = vsel %vm10611_vm2, %v9224_v2, %v1255_v3  ;;  %v1257_v10 = vrot.slane %v1255_v3, 4  ;;  %v9403_v46 = vld [vmem:[%s10618_s8 + $0x70] sm:$0xf]  ;;  %v9404_v47 = vld [vmem:[%s10618_s8 + $0x74] sm:$0x1]  ;;  %461 = vst.msk [vmem:[#allocation3 + $0x48] sm:$0xff] %vm13802_vm6, %v10443_v40 }
  0xb0   : > { %v11119_v8 = vpop.permute.xlu0 %3731  ;;  %v751_v4 = vrot.slane %v750_v1, 4  ;;  %v1262_v11 = vrot.slane %v1114_v62, 5  ;;  %v1265_v15 = vrot.slane %v1115_v5, 5  ;;  %v1900_v21 = vshrl.u32 %v9330_v13, 16  ;;  %v9405_v54 = vld [vmem:[%s10618_s8 + $0x78] sm:$0xe] }
  0xb1   : > { %v3373_v12 = vpop.permute.xlu1 %3372  ;;  %1029 = vrot.lane.b32.xlu1 %v9206_v6, %s10540_s12  ;;  %v761_v57 = vrot.slane %v760_v37, 4  ;;  %v1259_v18 = vsel %vm10611_vm2, %v1257_v10, %v1258_v7  ;;  %v1903_v29 = vshll.u32 %v9330_v13, 16  ;;  %v1909_v30 = vshll.u32 %v9331_v16, 16  ;;  %v9406_v60 = vld [vmem:[%s10618_s8 + $0x7c] sm:$0xf]  ;;  %3786 = vst.msk [vmem:[#allocation3] sm:$0xff] %vm3785_vm14, %v11119_v8 }
  0xb2   : > { %v756_v17 = vsel %vm10649_vm5, %v751_v4, %v755_v58  ;;  %v1263_v19 = vsel %vm10611_vm2, %v9225_v51, %v1262_v11  ;;  %v1264_v20 = vrot.slane %v1262_v11, 4  ;;  %v9242_v25 = vcombine.low %v1256_v9, %v1259_v18  ;;  %3426 = vst.msk [vmem:[#allocation3 + $0x8] sm:$0xff] %vm3424_vm13, %v3373_v12  ;;  %v10420_v1 = vld [vmem:[%s10618_s8 + $0x78] sm:$0xff]   ;;  %v9407_v37 = vld [vmem:[%s10618_s8 + $0x80] sm:$0x1] }
  0xb3   : > { %v766_v24 = vsel %vm10649_vm5, %v761_v57, %v765_v61  ;;  %v1902_v34 = vrot.slane %v1900_v21, 4  ;;  %v1913_v35 = vshrl.u32 %v9331_v16, 16  ;;  %v1919_v36 = vshll.u32 %v9332_v23, 16  ;;  %v10427_v51 = vld [vmem:[%s13795_s1 + $0x10] ss:$0 sps:$4 sm:$0x33]  }
  0xb4   : > { %v9207_v52 = vcombine.low %v756_v17, %v766_v24  ;;  %v1266_v28 = vsel %vm10611_vm2, %v1264_v20, %v1265_v15  ;;  %v3734_v32 = vpop.permute.xlu0 %3733  ;;  %1393 = vrot.lane.b32.xlu0 %v9242_v25, %s10539_s11  ;;  %v1905_v41 = vrot.slane %v1903_v29, 5  ;;  %v1911_v42 = vrot.slane %v1909_v30, 5  ;;  %v9548_v21 = vld [vmem:[%s10618_s8 + $0x80] sm:$0x1]  ;;  %10359 = vmatprep.subr.msk.bf16.mxu0 %vm13803_vm15, %v10427_v51 }
  0xb5   : > { %v9243_v33 = vcombine.low %v1263_v19, %v1266_v28  ;;  %v1924_v44 = vshrl.u32 %v9333_v27, 16  ;;  %v1927_v45 = vshll.u32 %v9333_v27, 16  ;;  %v1915_v48 = vrot.slane %v1913_v35, 4  ;;  %3787 = vst.msk [vmem:[#allocation3 + $0x8] sm:$0xff] %vm3785_vm14, %v3734_v32  ;;  %v9546_v19 = vld [vmem:[%s10618_s8 + $0x78] sm:$0xf] }
  0xb6   : > { %v1018_v38 = vpop.permute.xlu1 %1017  ;;  %1031 = vrot.lane.b32.xlu1 %v9207_v52, %s10540_s12  ;;  %v1921_v49 = vrot.slane %v1919_v36, 5  ;;  %v1933_v50 = vshll.u32 %v9334_v31, 16  ;;  %v1937_v53 = vshrl.u32 %v9334_v31, 16  ;;  %v1906_v55 = vor.u32 %v1905_v41, %v1902_v34  ;;  %v9549_v31 = vld [vmem:[%s10618_s8 + $0x84] sm:$0xf] }
  0xb7   : > { %1070 = vst.msk [vmem:[#allocation3 + $0x10] sm:$0xff] %vm1067_vm7, %v1018_v38  ;;  %v1926_v56 = vrot.slane %v1924_v44, 4  ;;  %v1929_v58 = vrot.slane %v1927_v45, 5  ;;  %v1943_v59 = vshll.u32 %v9335_v22, 16  ;;  %v1916_v61 = vor.u32 %v1915_v48, %v1911_v42  ;;  %v9550_v22 = vld [vmem:[%s10618_s8 + $0x88] sm:$0xf] }
  0xb8   : > { %1596 = vrot.lane.b32.xlu0 %v10419_v26, %s10537_s9  ;;  %v1935_v62 = vrot.slane %v1933_v50, 5  ;;  %v1939_v63 = vrot.slane %v1937_v53, 4  ;;  %v1907_v2 = vrot.slane %v1906_v55, 4  ;;  %v9440_v6 = vrot.slane %v9402_v39, 9  ;;  %v9547_v26 = vld [vmem:[%s10618_s8 + $0x7c] sm:$0xf] }
  0xb9   : > { %v1930_v3 = vor.u32 %v1929_v58, %v1926_v56  ;;  %v1945_v5 = vrot.slane %v1943_v59, 5  ;;  %v1917_v4 = vrot.slane %v1916_v61, 4  ;;  %v2432_v10 = vrot.slane %v9403_v46, 5  ;;  %v9551_v35 = vld [vmem:[%s10618_s8 + $0x8c] sm:$0x1]  ;;  %v3804_v38 = vld [vmem:[#allocation3] sm:$0xff] }
  0xba   : > { %1395 = vrot.lane.b32.xlu1 %v9243_v33, %s10539_s11  ;;  %v1940_v9 = vor.u32 %v1939_v63, %v1935_v62  ;;  %v2435_v11 = vrot.slane %v9404_v47, 5  ;;  %v1912_v8 = vsel %vm10649_vm5, %v1907_v2, %v1911_v42  ;;  %v9441_v14 = vrot.slane %v9405_v54, 9  ;;  %10141 = vmatprep.mubr.msk.bf16.mxu0 %vm13804_vm0, %v3804_v38  ;;  %v9618_v48 = vld [vmem:[%s10618_s8 + $0x78] sm:$0xe]  ;;  %v9619_v56 = vld [vmem:[%s10618_s8 + $0x7c] sm:$0xf] }
  0xbb   : > { %v1382_v7 = vpop.permute.xlu0 %1381  ;;  %v1931_v13 = vrot.slane %v1930_v3, 4  ;;  %v2439_v57 = vrot.slane %v9406_v60, 5  ;;  %v1922_v15 = vsel %vm10649_vm5, %v1917_v4, %v1921_v49  ;;  %v2433_v17 = vsel %vm10611_vm2, %v9440_v6, %v2432_v10  ;;  %v10425_v58 = vld [vmem:[%s10618_s8 + $0x78] sm:$0xff]  }
  0xbc   : > { %v1020_v12 = vpop.permute.xlu1 %1019  ;;  %1434 = vst.msk [vmem:[#allocation3 + $0x10] sm:$0xff] %vm13805_vm8, %v1382_v7  ;;  %v1941_v16 = vrot.slane %v1940_v9, 4  ;;  %v2434_v18 = vrot.slane %v2432_v10, 4  ;;  %v9368_v20 = vcombine.low %v1912_v8, %v1922_v15  ;;  %v2442_v29 = vrot.slane %v9407_v37, 5  ;;  %v3805_v42 = vld [vmem:[#allocation3 + $0x8] sm:$0xff] }
  0xbd   : > { %1071 = vst.msk [vmem:[#allocation3 + $0x18] sm:$0xff] %vm1067_vm7, %v1020_v12  ;;  %v1936_v23 = vsel %vm10649_vm5, %v1931_v13, %v1935_v62  ;;  %v2440_v24 = vsel %vm10611_vm2, %v9441_v14, %v2439_v57  ;;  %v2441_v25 = vrot.slane %v2439_v57, 4  ;;  %v3906_v34 = vsel %vm13803_vm15, %v10427_v51, 0  ;;  %v10426_v37 = vld [vmem:[%s10618_s8 + $0x84] sm:$0xff]   ;;  %v500_v10 = vld [vmem:[%s10618_s8 + $0x78] sm:$0xf] }
  0xbe   : > { %1598 = vrot.lane.b32.xlu1 %v10420_v1, %s10537_s9  ;;  %v1946_v52 = vsel %vm10649_vm5, %v1941_v16, %v1945_v5  ;;  %v2436_v28 = vsel %vm10611_vm2, %v2434_v18, %v2435_v11  ;;  %2209 = vrot.lane.b32.xlu0 %v9368_v20, %s10541_s13  ;;  %v3077_v39 = vshrl.u32 %v9546_v19, 16  ;;  %v3080_v40 = vshll.u32 %v9546_v19, 16  ;;  %v9620_v5 = vld [vmem:[%s10618_s8 + $0x80] sm:$0x1]  ;;  %v501_v14 = vld [vmem:[%s10618_s8 + $0x7c] sm:$0xf] }
  0xbf   : > { %v1585_v27 = vpop.permute.xlu0 %1584  ;;  %v9369_v32 = vcombine.low %v1936_v23, %v1946_v52  ;;  %v9458_v33 = vcombine.low %v2433_v17, %v2436_v28  ;;  %v2443_v36 = vsel %vm10611_vm2, %v2441_v25, %v2442_v29  ;;  %10140 = vmatpush3.bf16.msra.mxu0 %v3906_v34  ;;  %v3086_v41 = vshll.u32 %v9547_v26, 16  ;;  %v502_v19 = vld [vmem:[%s10618_s8 + $0x80] sm:$0x1]  ;;  %v9621_v20 = vld [vmem:[%s10618_s8 + $0x84] sm:$0xe] }
  0xc0   : > { %v1384_v30 = vpop.permute.xlu1 %1383  ;;  %1637 = vst.msk [vmem:[#allocation3 + $0x10] sm:$0xff] %vm13806_vm9, %v1585_v27  ;;  %v9459_v44 = vcombine.low %v2440_v24, %v2443_v36  ;;  %v3090_v45 = vshrl.u32 %v9547_v26, 16  ;;  %v3096_v46 = vshll.u32 %v9548_v21, 16  ;;  %v3101_v47 = vshrl.u32 %v9549_v31, 16  ;;  %v9622_v23 = vld [vmem:[%s10618_s8 + $0x88] sm:$0xf] }
  0xc1   : > { %1435 = vst.msk [vmem:[#allocation3 + $0x18] sm:$0xff] %vm13805_vm8, %v1384_v30  ;;  %v3079_v49 = vrot.slane %v3077_v39, 4  ;;  %v3082_v50 = vrot.slane %v3080_v40, 5  ;;  %v3088_v53 = vrot.slane %v3086_v41, 5  ;;  %v3104_v54 = vshll.u32 %v9549_v31, 16 }
  0xc2   : > { %2211 = vrot.lane.b32.xlu1 %v9369_v32, %s10541_s13  ;;  %2570 = vrot.lane.b32.xlu0 %v9458_v33, %s10538_s10  ;;  %v3092_v59 = vrot.slane %v3090_v45, 4  ;;  %v3098_v60 = vrot.slane %v3096_v46, 5  ;;  %v3103_v61 = vrot.slane %v3101_v47, 4  ;;  %v3110_v62 = vshll.u32 %v9550_v22, 16  ;;  %v9623_v34 = vld [vmem:[%s10618_s8 + $0x8c] sm:$0x1] }
  0xc3   : > { %10142 = vmatmul.mubr.msk.bf16.vlgmr.msra.gmra.mrb[0].mxu0 %vm13804_vm0, %v3805_v42  ;;  %v3083_v63 = vor.u32 %v3082_v50, %v3079_v49  ;;  %v3106_v1 = vrot.slane %v3104_v54, 5  ;;  %v3114_v2 = vshrl.u32 %v9550_v22, 16  ;;  %v3120_v3 = vshll.u32 %v9551_v35, 16  ;;  %v503_v41 = vld [vmem:[%s10618_s8 + $0x84] sm:$0xf] }
  0xc4   : > { %v1587_v55 = vpop.permute.xlu1 %1586  ;;  %v3093_v7 = vor.u32 %v3092_v59, %v3088_v53  ;;  %v3112_v51 = vrot.slane %v3110_v62, 5  ;;  %v9656_v4 = vrot.slane %v9618_v48, 9  ;;  %v3609_v9 = vrot.slane %v9619_v56, 5  ;;  %v504_v47 = vld [vmem:[%s10618_s8 + $0x88] sm:$0xf] }
  0xc5   : > { %1638 = vst.msk [vmem:[#allocation3 + $0x18] sm:$0xff] %vm13806_vm9, %v1587_v55  ;;  %v2198_v6 = vpop.permute.xlu0 %2197  ;;  %v3084_v11 = vrot.slane %v3083_v63, 4  ;;  %v3107_v12 = vor.u32 %v3106_v1, %v3103_v61  ;;  %v3116_v8 = vrot.slane %v3114_v2, 4  ;;  %v3122_v13 = vrot.slane %v3120_v3, 5  ;;  %v505_v55 = vld [vmem:[%s10618_s8 + $0x8c] sm:$0x1] }
  0xc6   : > { %2572 = vrot.lane.b32.xlu1 %v9459_v44, %s10538_s10  ;;  %2250 = vst.msk [vmem:[#allocation3 + $0x10] sm:$0xff] %vm13807_vm10, %v2198_v6  ;;  %2773 = vrot.lane.b32.xlu0 %v10425_v58, %s10542_s14  ;;  %v3094_v15 = vrot.slane %v3093_v7, 4  ;;  %v3610_v16 = vsel %vm10611_vm2, %v9656_v4, %v3609_v9  ;;  %v3611_v17 = vrot.slane %v3609_v9, 4  ;;  %v3612_v18 = vrot.slane %v9620_v5, 5  ;;  %v1116_v61 = vld [vmem:[%s10618_s8 + $0x78] sm:$0xe] }
  0xc7   : > { %v3089_v24 = vsel %vm10649_vm5, %v3084_v11, %v3088_v53  ;;  %v3108_v25 = vrot.slane %v3107_v12, 4  ;;  %v3117_v26 = vor.u32 %v3116_v8, %v3112_v51  ;;  %v768_v21 = vshrl.u32 %v500_v10, 16  ;;  %v1117_v5 = vld [vmem:[%s10618_s8 + $0x7c] sm:$0xf]  ;;  %v1118_v4 = vld [vmem:[%s10618_s8 + $0x80] sm:$0x1] }
  0xc8   : > { %v2200_v57 = vpop.permute.xlu1 %2199  ;;  %v3099_v52 = vsel %vm10649_vm5, %v3094_v15, %v3098_v60  ;;  %v3613_v28 = vsel %vm10611_vm2, %v3611_v17, %v3612_v18  ;;  %v771_v29 = vshll.u32 %v500_v10, 16  ;;  %v777_v30 = vshll.u32 %v501_v14, 16  ;;  %v1121_v18 = vld [vmem:[%s10618_s8 + $0x8c] sm:$0x1] }
  0xc9   : > { %2251 = vst.msk [vmem:[#allocation3 + $0x18] sm:$0xff] %vm13807_vm10, %v2200_v57  ;;  %v2559_v27 = vpop.permute.xlu0 %2558  ;;  %v9584_v31 = vcombine.low %v3089_v24, %v3099_v52  ;;  %v3113_v22 = vsel %vm10649_vm5, %v3108_v25, %v3112_v51  ;;  %v3118_v32 = vrot.slane %v3117_v26, 4  ;;  %v9674_v33 = vcombine.low %v3610_v16, %v3613_v28  ;;  %v9336_v26 = vld [vmem:[%s10618_s8 + $0x84] sm:$0xf] }
  0xca   : > { %2775 = vrot.lane.b32.xlu1 %v10426_v37, %s10542_s14  ;;  %2611 = vst.msk [vmem:[#allocation3 + $0x10] sm:$0xff] %vm2608_vm11, %v2559_v27  ;;  %v770_v36 = vrot.slane %v768_v21, 4  ;;  %v773_v38 = vrot.slane %v771_v29, 5  ;;  %v779_v39 = vrot.slane %v777_v30, 5  ;;  %v781_v40 = vshrl.u32 %v501_v14, 16 }
  0xcb   : > { %3386 = vrot.lane.b32.xlu0 %v9584_v31, %s10543_s15  ;;  %v3123_v42 = vsel %vm10649_vm5, %v3118_v32, %v3122_v13  ;;  %v787_v44 = vshll.u32 %v502_v19, 16  ;;  %v9657_v45 = vrot.slane %v9621_v20, 9  ;;  %v3616_v46 = vrot.slane %v9622_v23, 5  ;;  %v1119_v13 = vld [vmem:[%s10618_s8 + $0x84] sm:$0xe] }
  0xcc   : > { %v2561_v35 = vpop.permute.xlu1 %2560  ;;  %v9585_v49 = vcombine.low %v3113_v22, %v3123_v42  ;;  %v774_v50 = vor.u32 %v773_v38, %v770_v36  ;;  %v783_v53 = vrot.slane %v781_v40, 4  ;;  %v3619_v54 = vrot.slane %v9623_v34, 5  ;;  %v1120_v14 = vld [vmem:[%s10618_s8 + $0x88] sm:$0xf]  ;;  %v10448_v34 = vld [vmem:[%s10618_s8 + $0x78] sm:$0xff]  }
  0xcd   : > { %2612 = vst.msk [vmem:[#allocation3 + $0x18] sm:$0xff] %vm2608_vm11, %v2561_v35  ;;  %v2762_v48 = vpop.permute.xlu0 %2761  ;;  %v789_v56 = vrot.slane %v787_v44, 5  ;;  %v3617_v58 = vsel %vm10611_vm2, %v9657_v45, %v3616_v46  ;;  %v3618_v59 = vrot.slane %v3616_v46, 4  ;;  %v792_v60 = vshrl.u32 %v503_v41, 16  ;;  %v9337_v29 = vld [vmem:[%s10618_s8 + $0x88] sm:$0xf] }
  0xce   : > { %2814 = vst.msk [vmem:[#allocation3 + $0x10] sm:$0xff] %vm2811_vm12, %v2762_v48  ;;  %3388 = vrot.lane.b32.xlu1 %v9585_v49, %s10543_s15  ;;  %v775_v63 = vrot.slane %v774_v50, 4  ;;  %v784_v1 = vor.u32 %v783_v53, %v779_v39  ;;  %v795_v2 = vshll.u32 %v503_v41, 16  ;;  %v801_v3 = vshll.u32 %v504_v47, 16  ;;  %v9338_v42 = vld [vmem:[%s10618_s8 + $0x8c] sm:$0x1] }
  0xcf   : > { %3747 = vrot.lane.b32.xlu0 %v9674_v33, %s10544_s16  ;;  %v3620_v6 = vsel %vm10611_vm2, %v3618_v59, %v3619_v54  ;;  %v794_v37 = vrot.slane %v792_v60, 4  ;;  %v805_v7 = vshrl.u32 %v504_v47, 16  ;;  %v811_v51 = vshll.u32 %v505_v55, 16  ;;  %v9339_v46 = vld [vmem:[%s10618_s8 + $0x90] sm:$0xf]  ;;  %462 = vst.msk [vmem:[#allocation3 + $0x50] sm:$0xff] %vm13802_vm6, %v10448_v34 }
  0xd0   : > { %v2764_v62 = vpop.permute.xlu1 %2763  ;;  %v780_v10 = vsel %vm10649_vm5, %v775_v63, %v779_v39  ;;  %v785_v11 = vrot.slane %v784_v1, 4  ;;  %v9675_v12 = vcombine.low %v3617_v58, %v3620_v6  ;;  %v797_v8 = vrot.slane %v795_v2, 5  ;;  %v10428_v50 = vld [vmem:[%s10618_s8 + $0x84] sm:$0xff]   ;;  %v9340_v54 = vld [vmem:[%s10618_s8 + $0x94] sm:$0xf] }
  0xd1   : > { %2815 = vst.msk [vmem:[#allocation3 + $0x18] sm:$0xff] %vm2811_vm12, %v2764_v62  ;;  %v3375_v9 = vpop.permute.xlu0 %3374  ;;  %v803_v57 = vrot.slane %v801_v3, 5  ;;  %v807_v15 = vrot.slane %v805_v7, 4  ;;  %v813_v16 = vrot.slane %v811_v51, 5  ;;  %v9226_v17 = vrot.slane %v1116_v61, 9  ;;  %v10449_v58 = vld [vmem:[%s10618_s8 + $0x84] sm:$0xff]  }
  0xd2   : > { %3427 = vst.msk [vmem:[#allocation3 + $0x10] sm:$0xff] %vm3424_vm13, %v3375_v9  ;;  %v790_v19 = vsel %vm10649_vm5, %v785_v11, %v789_v56  ;;  %v798_v20 = vor.u32 %v797_v8, %v794_v37  ;;  %v1269_v23 = vrot.slane %v1117_v5, 5  ;;  %v1272_v24 = vrot.slane %v1118_v4, 5  ;;  %v9341_v55 = vld [vmem:[%s10618_s8 + $0x98] sm:$0x1] }
  0xd3   : > { %v9208_v21 = vcombine.low %v780_v10, %v790_v19  ;;  %3749 = vrot.lane.b32.xlu0 %v9675_v12, %s10544_s16  ;;  %v808_v27 = vor.u32 %v807_v15, %v803_v57  ;;  %v9227_v52 = vrot.slane %v1119_v13, 9  ;;  %v1276_v28 = vrot.slane %v1120_v14, 5  ;;  %v9408_v1 = vld [vmem:[%s10618_s8 + $0x84] sm:$0xe]  ;;  %v9409_v2 = vld [vmem:[%s10618_s8 + $0x88] sm:$0xf] }
  0xd4   : > { %v799_v31 = vrot.slane %v798_v20, 4  ;;  %v1270_v22 = vsel %vm10611_vm2, %v9226_v17, %v1269_v23  ;;  %v1271_v32 = vrot.slane %v1269_v23, 4  ;;  %v1279_v33 = vrot.slane %v1121_v18, 5  ;;  %v9410_v7 = vld [vmem:[%s10618_s8 + $0x8c] sm:$0x1]  ;;  %463 = vst.msk [vmem:[#allocation3 + $0x58] sm:$0xff] %vm13802_vm6, %v10449_v58 }
  0xd5   : > { %v3377_v25 = vpop.permute.xlu1 %3376  ;;  %v3736_v30 = vpop.permute.xlu0 %3735  ;;  %1033 = vrot.lane.b32.xlu1 %v9208_v21, %s10540_s12  ;;  %v809_v35 = vrot.slane %v808_v27, 4  ;;  %v1277_v36 = vsel %vm10611_vm2, %v9227_v52, %v1276_v28  ;;  %v1278_v38 = vrot.slane %v1276_v28, 4  ;;  %v1948_v39 = vshrl.u32 %v9336_v26, 16  ;;  %v9411_v51 = vld [vmem:[%s10618_s8 + $0x90] sm:$0xe] }
  0xd6   : > { %3428 = vst.msk [vmem:[#allocation3 + $0x18] sm:$0xff] %vm3424_vm13, %v3377_v25  ;;  %v804_v40 = vsel %vm10649_vm5, %v799_v31, %v803_v57  ;;  %v1273_v41 = vsel %vm10611_vm2, %v1271_v32, %v1272_v24  ;;  %v1951_v44 = vshll.u32 %v9336_v26, 16  ;;  %v1957_v45 = vshll.u32 %v9337_v29, 16  ;;  %v9412_v57 = vld [vmem:[%s10618_s8 + $0x94] sm:$0xf] }
  0xd7   : > { %3788 = vst.msk [vmem:[#allocation3 + $0x10] sm:$0xff] %vm3785_vm14, %v3736_v30  ;;  %v814_v47 = vsel %vm10649_vm5, %v809_v35, %v813_v16  ;;  %v9244_v48 = vcombine.low %v1270_v22, %v1273_v41  ;;  %v1280_v49 = vsel %vm10611_vm2, %v1278_v38, %v1279_v33  ;;  %v1950_v53 = vrot.slane %v1948_v39, 4  ;;  %v11299_v15 = vld [vmem:[%s10618_s8 + $0x98] sm:$0x1]  ;;  %v9552_v17 = vld [vmem:[%s10618_s8 + $0x90] sm:$0xf] }
  0xd8   : > { %v9209_v59 = vcombine.low %v804_v40, %v814_v47  ;;  %v9245_v60 = vcombine.low %v1277_v36, %v1280_v49  ;;  %v1953_v61 = vrot.slane %v1951_v44, 5  ;;  %v11286_v62 = vrot.slane %v1957_v45, 5  ;;  %v10429_v28 = vld [vmem:[%s10618_s8 + $0x90] sm:$0xff]   ;;  %v9554_v49 = vld [vmem:[%s10618_s8 + $0x98] sm:$0x1] }
  0xd9   : > { %v3738_v56 = vpop.permute.xlu0 %3737  ;;  %1397 = vrot.lane.b32.xlu0 %v9244_v48, %s10539_s11  ;;  %v1961_v3 = vshrl.u32 %v9337_v29, 16  ;;  %v1967_v5 = vshll.u32 %v9338_v42, 16  ;;  %v1972_v6 = vshrl.u32 %v9339_v46, 16  ;;  %v1975_v37 = vshll.u32 %v9339_v46, 16  ;;  %v9553_v41 = vld [vmem:[%s10618_s8 + $0x94] sm:$0xf] }
  0xda   : > { %v1022_v63 = vpop.permute.xlu1 %1021  ;;  %3789 = vst.msk [vmem:[#allocation3 + $0x18] sm:$0xff] %vm3785_vm14, %v3738_v56  ;;  %1035 = vrot.lane.b32.xlu1 %v9209_v59, %s10540_s12  ;;  %v1954_v4 = vor.u32 %v1953_v61, %v1950_v53  ;;  %v1981_v9 = vshll.u32 %v9340_v54, 16  ;;  %v1985_v10 = vshrl.u32 %v9340_v54, 16  ;;  %v1991_v11 = vshll.u32 %v9341_v55, 16  ;;  %v9555_v53 = vld [vmem:[%s10618_s8 + $0x9c] sm:$0xf] }
  0xdb   : > { %1072 = vst.msk [vmem:[#allocation3 + $0x20] sm:$0xff] %vm1067_vm7, %v1022_v63  ;;  %v1963_v12 = vrot.slane %v1961_v3, 4  ;;  %v1969_v8 = vrot.slane %v1967_v5, 5  ;;  %v1974_v13 = vrot.slane %v1972_v6, 4  ;;  %v1977_v14 = vrot.slane %v1975_v37, 5 }
  0xdc   : > { %v1955_v18 = vrot.slane %v1954_v4, 4  ;;  %v1983_v19 = vrot.slane %v1981_v9, 5  ;;  %v1987_v20 = vrot.slane %v1985_v10, 4  ;;  %v1993_v23 = vrot.slane %v1991_v11, 5  ;;  %v9556_v59 = vld [vmem:[%s10618_s8 + $0xa0] sm:$0xf] }
  0xdd   : > { %1600 = vrot.lane.b32.xlu0 %v10428_v50, %s10537_s9  ;;  %v1964_v25 = vor.u32 %v1963_v12, %v11286_v62  ;;  %v1978_v26 = vor.u32 %v1977_v14, %v1974_v13  ;;  %v9442_v21 = vrot.slane %v9408_v1, 9  ;;  %v2446_v27 = vrot.slane %v9409_v2, 5  ;;  %v9557_v1 = vld [vmem:[%s10618_s8 + $0xa4] sm:$0x1]  ;;  %v9624_v37 = vld [vmem:[%s10618_s8 + $0x90] sm:$0xe] }
  0xde   : > { %v3806_v16 = vld [vmem:[#allocation3 + $0x10] sm:$0xff]  ;;  %1399 = vrot.lane.b32.xlu1 %v9245_v60, %s10539_s11  ;;  %v1960_v29 = vsel %vm10649_vm5, %v1955_v18, %v11286_v62  ;;  %v1988_v30 = vor.u32 %v1987_v20, %v1983_v19  ;;  %v2449_v31 = vrot.slane %v9410_v7, 5  ;;  %v9443_v22 = vrot.slane %v9411_v51, 9  ;;  %v9625_v11 = vld [vmem:[%s10618_s8 + $0x94] sm:$0xf] }
  0xdf   : > { %v1386_v24 = vpop.permute.xlu0 %1385  ;;  %10145 = vmatprep.mubr.msk.bf16.mxu0 %vm13804_vm0, %v3806_v16  ;;  %v1965_v32 = vrot.slane %v1964_v25, 4  ;;  %v1979_v33 = vrot.slane %v1978_v26, 4  ;;  %v2447_v34 = vsel %vm10611_vm2, %v9442_v21, %v2446_v27  ;;  %v2448_v35 = vrot.slane %v2446_v27, 4  ;;  %v9626_v12 = vld [vmem:[%s10618_s8 + $0x98] sm:$0x1]  ;;  %v10432_v13 = vld [vmem:[%s10618_s8 + $0x90] sm:$0xff]  }
  0xe0   : > { %v1024_v52 = vpop.permute.xlu1 %1023  ;;  %1436 = vst.msk [vmem:[#allocation3 + $0x20] sm:$0xff] %vm13805_vm8, %v1386_v24  ;;  %v1989_v38 = vrot.slane %v1988_v30, 4  ;;  %v2453_v39 = vrot.slane %v9412_v57, 5  ;;  %v2456_v40 = vrot.slane %v11299_v15, 5  ;;  %v3125_v42 = vshrl.u32 %v9552_v17, 16  ;;  %v10433_v25 = vld [vmem:[%s10618_s8 + $0x9c] sm:$0xff]  }
  0xe1   : > { %1073 = vst.msk [vmem:[#allocation3 + $0x28] sm:$0xff] %vm1067_vm7, %v1024_v52  ;;  %v3807_v36 = vld [vmem:[#allocation3 + $0x18] sm:$0xff]  ;;  %v1970_v45 = vsel %vm10649_vm5, %v1965_v32, %v1969_v8  ;;  %v1984_v46 = vsel %vm10649_vm5, %v1979_v33, %v1983_v19  ;;  %v2450_v47 = vsel %vm10611_vm2, %v2448_v35, %v2449_v31  ;;  %v3128_v50 = vshll.u32 %v9552_v17, 16  ;;  %v508_v35 = vld [vmem:[%s10618_s8 + $0x98] sm:$0x1] }
  0xe2   : > { %10146 = vmatmul.mubr.msk.bf16.gmra.mrb[4].mxu0 %vm13804_vm0, %v3807_v36  ;;  %1602 = vrot.lane.b32.xlu1 %v10429_v28, %s10537_s9  ;;  %v9370_v54 = vcombine.low %v1960_v29, %v1970_v45  ;;  %v1994_v55 = vsel %vm10649_vm5, %v1989_v38, %v1993_v23  ;;  %v9460_v56 = vcombine.low %v2447_v34, %v2450_v47  ;;  %v2455_v61 = vrot.slane %v2453_v39, 4  ;;  %v506_v16 = vld [vmem:[%s10618_s8 + $0x90] sm:$0xf]  ;;  %v507_v23 = vld [vmem:[%s10618_s8 + $0x94] sm:$0xf] }
  0xe3   : > { %v1589_v44 = vpop.permute.xlu0 %1588  ;;  %v2454_v58 = vsel %vm10611_vm2, %v9443_v22, %v2453_v39  ;;  %v9371_v60 = vcombine.low %v1984_v46, %v1994_v55  ;;  %v3127_v62 = vrot.slane %v3125_v42, 4  ;;  %v3130_v63 = vrot.slane %v3128_v50, 5  ;;  %v9628_v50 = vld [vmem:[%s10618_s8 + $0xa0] sm:$0xf] }
  0xe4   : > { %v1388_v48 = vpop.permute.xlu1 %1387  ;;  %1639 = vst.msk [vmem:[#allocation3 + $0x20] sm:$0xff] %vm13806_vm9, %v1589_v44  ;;  %2213 = vrot.lane.b32.xlu0 %v9370_v54, %s10541_s13  ;;  %v3134_v2 = vshll.u32 %v9553_v41, 16  ;;  %v3138_v3 = vshrl.u32 %v9553_v41, 16  ;;  %v3144_v5 = vshll.u32 %v9554_v49, 16  ;;  %v3149_v6 = vshrl.u32 %v9555_v53, 16  ;;  %v10452_v44 = vld [vmem:[%s10618_s8 + $0x90] sm:$0xff]  }
  0xe5   : > { %1437 = vst.msk [vmem:[#allocation3 + $0x28] sm:$0xff] %vm13805_vm8, %v1388_v48  ;;  %v2457_v7 = vsel %vm10611_vm2, %v2455_v61, %v2456_v40  ;;  %v3131_v51 = vor.u32 %v3130_v63, %v3127_v62  ;;  %v3152_v4 = vshll.u32 %v9555_v53, 16  ;;  %v3158_v9 = vshll.u32 %v9556_v59, 16  ;;  %v9627_v49 = vld [vmem:[%s10618_s8 + $0x9c] sm:$0xe] }
  0xe6   : > { %2215 = vrot.lane.b32.xlu1 %v9371_v60, %s10541_s13  ;;  %v9461_v8 = vcombine.low %v2454_v58, %v2457_v7  ;;  %v3136_v14 = vrot.slane %v3134_v2, 5  ;;  %v3140_v57 = vrot.slane %v3138_v3, 4  ;;  %v3146_v15 = vrot.slane %v3144_v5, 5  ;;  %v9629_v58 = vld [vmem:[%s10618_s8 + $0xa4] sm:$0x1]  ;;  %464 = vst.msk [vmem:[#allocation3 + $0x60] sm:$0xff] %vm13802_vm6, %v10452_v44 }
  0xe7   : > { %v3132_v17 = vrot.slane %v3131_v51, 4  ;;  %v3151_v18 = vrot.slane %v3149_v6, 4  ;;  %v3154_v19 = vrot.slane %v3152_v4, 5  ;;  %v11344_v20 = vrot.slane %v3158_v9, 5 }
  0xe8   : > { %v1591_v10 = vpop.permute.xlu1 %1590  ;;  %2574 = vrot.lane.b32.xlu0 %v9460_v56, %s10538_s10  ;;  %v3141_v26 = vor.u32 %v3140_v57, %v3136_v14  ;;  %v3162_v21 = vshrl.u32 %v9556_v59, 16  ;;  %v3168_v27 = vshll.u32 %v9557_v1, 16  ;;  %v9658_v52 = vrot.slane %v9624_v37, 9  ;;  %v509_v59 = vld [vmem:[%s10618_s8 + $0x9c] sm:$0xf] }
  0xe9   : > { %1640 = vst.msk [vmem:[#allocation3 + $0x28] sm:$0xff] %vm13806_vm9, %v1591_v10  ;;  %v2202_v24 = vpop.permute.xlu0 %2201  ;;  %v3137_v28 = vsel %vm10649_vm5, %v3132_v17, %v3136_v14  ;;  %v3155_v29 = vor.u32 %v3154_v19, %v3151_v18  ;;  %v3623_v30 = vrot.slane %v9625_v11, 5  ;;  %v3626_v31 = vrot.slane %v9626_v12, 5  ;;  %v510_v37 = vld [vmem:[%s10618_s8 + $0xa0] sm:$0xf] }
  0xea   : > { %2252 = vst.msk [vmem:[#allocation3 + $0x20] sm:$0xff] %vm13807_vm10, %v2202_v24  ;;  %2576 = vrot.lane.b32.xlu1 %v9461_v8, %s10538_s10  ;;  %v3142_v32 = vrot.slane %v3141_v26, 4  ;;  %v3164_v33 = vrot.slane %v3162_v21, 4  ;;  %v3170_v34 = vrot.slane %v3168_v27, 5  ;;  %v816_v36 = vshrl.u32 %v506_v16, 16  ;;  %v10453_v12 = vld [vmem:[%s10618_s8 + $0x9c] sm:$0xff]  }
  0xeb   : > { %v3156_v38 = vrot.slane %v3155_v29, 4  ;;  %v3624_v39 = vsel %vm10611_vm2, %v9658_v52, %v3623_v30  ;;  %v3625_v40 = vrot.slane %v3623_v30, 4  ;;  %v819_v41 = vshll.u32 %v506_v16, 16  ;;  %v511_v10 = vld [vmem:[%s10618_s8 + $0xa4] sm:$0x1]  ;;  %465 = vst.msk [vmem:[#allocation3 + $0x68] sm:$0xff] %vm13802_vm6, %v10453_v12 }
  0xec   : > { %v2204_v22 = vpop.permute.xlu1 %2203  ;;  %2777 = vrot.lane.b32.xlu0 %v10432_v13, %s10542_s14  ;;  %v3147_v45 = vsel %vm10649_vm5, %v3142_v32, %v3146_v15  ;;  %v3165_v46 = vor.u32 %v3164_v33, %v11344_v20  ;;  %v818_v47 = vrot.slane %v816_v36, 4  ;;  %v825_v48 = vshll.u32 %v507_v23, 16  ;;  %v1122_v15 = vld [vmem:[%s10618_s8 + $0x90] sm:$0xe]  ;;  %v1123_v16 = vld [vmem:[%s10618_s8 + $0x94] sm:$0xf] }
  0xed   : > { %2253 = vst.msk [vmem:[#allocation3 + $0x28] sm:$0xff] %vm13807_vm10, %v2204_v22  ;;  %v2563_v42 = vpop.permute.xlu0 %2562  ;;  %v9586_v53 = vcombine.low %v3137_v28, %v3147_v45  ;;  %v3161_v54 = vsel %vm10649_vm5, %v3156_v38, %v11344_v20  ;;  %v3627_v55 = vsel %vm10611_vm2, %v3625_v40, %v3626_v31  ;;  %v821_v56 = vrot.slane %v819_v41, 5  ;;  %v1124_v24 = vld [vmem:[%s10618_s8 + $0x98] sm:$0x1]  ;;  %v1125_v52 = vld [vmem:[%s10618_s8 + $0x9c] sm:$0xe] }
  0xee   : > { %2613 = vst.msk [vmem:[#allocation3 + $0x20] sm:$0xff] %vm2608_vm11, %v2563_v42  ;;  %2779 = vrot.lane.b32.xlu1 %v10433_v25, %s10542_s14  ;;  %v3166_v61 = vrot.slane %v3165_v46, 4  ;;  %v9676_v62 = vcombine.low %v3624_v39, %v3627_v55  ;;  %v827_v63 = vrot.slane %v825_v48, 5  ;;  %v829_v1 = vshrl.u32 %v507_v23, 16  ;;  %v1126_v32 = vld [vmem:[%s10618_s8 + $0xa0] sm:$0xf] }
  0xef   : > { %v822_v2 = vor.u32 %v821_v56, %v818_v47  ;;  %v835_v3 = vshll.u32 %v508_v35, 16  ;;  %v9659_v5 = vrot.slane %v9627_v49, 9  ;;  %v3630_v6 = vrot.slane %v9628_v50, 5  ;;  %v1127_v38 = vld [vmem:[%s10618_s8 + $0xa4] sm:$0x1] }
  0xf0   : > { %v2565_v60 = vpop.permute.xlu1 %2564  ;;  %3390 = vrot.lane.b32.xlu0 %v9586_v53, %s10543_s15  ;;  %v3171_v51 = vsel %vm10649_vm5, %v3166_v61, %v3170_v34  ;;  %v831_v4 = vrot.slane %v829_v1, 4  ;;  %v3633_v9 = vrot.slane %v9629_v58, 5  ;;  %v840_v11 = vshrl.u32 %v509_v59, 16  ;;  %v9342_v45 = vld [vmem:[%s10618_s8 + $0x9c] sm:$0xf] }
  0xf1   : > { %2614 = vst.msk [vmem:[#allocation3 + $0x28] sm:$0xff] %vm2608_vm11, %v2565_v60  ;;  %v2766_v7 = vpop.permute.xlu0 %2765  ;;  %v9587_v8 = vcombine.low %v3161_v54, %v3171_v51  ;;  %v823_v13 = vrot.slane %v822_v2, 4  ;;  %v837_v14 = vrot.slane %v835_v3, 5  ;;  %v3631_v57 = vsel %vm10611_vm2, %v9659_v5, %v3630_v6  ;;  %v9343_v50 = vld [vmem:[%s10618_s8 + $0xa0] sm:$0xf] }
  0xf2   : > { %2816 = vst.msk [vmem:[#allocation3 + $0x20] sm:$0xff] %vm2811_vm12, %v2766_v7  ;;  %v832_v18 = vor.u32 %v831_v4, %v827_v63  ;;  %v3632_v19 = vrot.slane %v3630_v6, 4  ;;  %v842_v20 = vrot.slane %v840_v11, 4  ;;  %v843_v23 = vshll.u32 %v509_v59, 16  ;;  %v9344_v2 = vld [vmem:[%s10618_s8 + $0xa4] sm:$0x1] }
  0xf3   : > { %3392 = vrot.lane.b32.xlu1 %v9587_v8, %s10543_s15  ;;  %v828_v25 = vsel %vm10649_vm5, %v823_v13, %v827_v63  ;;  %v849_v26 = vshll.u32 %v510_v37, 16  ;;  %v853_v21 = vshrl.u32 %v510_v37, 16  ;;  %v859_v27 = vshll.u32 %v511_v10, 16  ;;  %v9345_v6 = vld [vmem:[%s10618_s8 + $0xa8] sm:$0xf]  ;;  %v10434_v4 = vld [vmem:[%s10618_s8 + $0x9c] sm:$0xff]  }
  0xf4   : > { %v2768_v17 = vpop.permute.xlu1 %2767  ;;  %3751 = vrot.lane.b32.xlu0 %v9676_v62, %s10544_s16  ;;  %v833_v29 = vrot.slane %v832_v18, 4  ;;  %v3634_v30 = vsel %vm10611_vm2, %v3632_v19, %v3633_v9  ;;  %v845_v31 = vrot.slane %v843_v23, 5  ;;  %v9228_v22 = vrot.slane %v1122_v15, 9  ;;  %v9346_v10 = vld [vmem:[%s10618_s8 + $0xac] sm:$0xf] }
  0xf5   : > { %2817 = vst.msk [vmem:[#allocation3 + $0x28] sm:$0xff] %vm2811_vm12, %v2768_v17  ;;  %v3379_v28 = vpop.permute.xlu0 %3378  ;;  %v9677_v33 = vcombine.low %v3631_v57, %v3634_v30  ;;  %v851_v34 = vrot.slane %v849_v26, 5  ;;  %v855_v35 = vrot.slane %v853_v21, 4  ;;  %v861_v36 = vrot.slane %v859_v27, 5  ;;  %v9347_v11 = vld [vmem:[%s10618_s8 + $0xb0] sm:$0x1] }
  0xf6   : > { %3429 = vst.msk [vmem:[#allocation3 + $0x20] sm:$0xff] %vm3424_vm13, %v3379_v28  ;;  %v838_v39 = vsel %vm10649_vm5, %v833_v29, %v837_v14  ;;  %v846_v40 = vor.u32 %v845_v31, %v842_v20  ;;  %v1283_v41 = vrot.slane %v1123_v16, 5  ;;  %v1286_v42 = vrot.slane %v1124_v24, 5  ;;  %v9414_v16 = vld [vmem:[%s10618_s8 + $0x9c] sm:$0xe] }
  0xf7   : > { %v9210_v46 = vcombine.low %v828_v25, %v838_v39  ;;  %v856_v47 = vor.u32 %v855_v35, %v851_v34  ;;  %v9229_v48 = vrot.slane %v1125_v52, 9  ;;  %v1290_v49 = vrot.slane %v1126_v32, 5  ;;  %v9415_v17 = vld [vmem:[%s10618_s8 + $0xa0] sm:$0xf]  ;;  %v9416_v24 = vld [vmem:[%s10618_s8 + $0xa4] sm:$0x1] }
  0xf8   : > { %3753 = vrot.lane.b32.xlu0 %v9677_v33, %s10544_s16  ;;  %v847_v54 = vrot.slane %v846_v40, 4  ;;  %v1284_v55 = vsel %vm10611_vm2, %v9228_v22, %v1283_v41  ;;  %v1285_v56 = vrot.slane %v1283_v41, 4  ;;  %v1293_v58 = vrot.slane %v1127_v38, 5  ;;  %v9417_v25 = vld [vmem:[%s10618_s8 + $0xa8] sm:$0xe] }
  0xf9   : > { %v3381_v44 = vpop.permute.xlu1 %3380  ;;  %v3740_v53 = vpop.permute.xlu0 %3739  ;;  %1037 = vrot.lane.b32.xlu1 %v9210_v46, %s10540_s12  ;;  %v857_v59 = vrot.slane %v856_v47, 4  ;;  %v1291_v60 = vsel %vm10611_vm2, %v9229_v48, %v1290_v49  ;;  %v1292_v61 = vrot.slane %v1290_v49, 4  ;;  %v1996_v62 = vshrl.u32 %v9342_v45, 16  ;;  %v9418_v22 = vld [vmem:[%s10618_s8 + $0xac] sm:$0xf] }
  0xfa   : > { %3430 = vst.msk [vmem:[#allocation3 + $0x28] sm:$0xff] %vm3424_vm13, %v3381_v44  ;;  %v852_v63 = vsel %vm10649_vm5, %v847_v54, %v851_v34  ;;  %v1287_v1 = vsel %vm10611_vm2, %v1285_v56, %v1286_v42  ;;  %v1999_v3 = vshll.u32 %v9342_v45, 16  ;;  %v2005_v5 = vshll.u32 %v9343_v50, 16  ;;  %v9419_v44 = vld [vmem:[%s10618_s8 + $0xb0] sm:$0x1]  ;;  %v10435_v47 = vld [vmem:[%s10618_s8 + $0xa8] sm:$0xff]  }
  0xfb   : > { %3790 = vst.msk [vmem:[#allocation3 + $0x20] sm:$0xff] %vm3785_vm14, %v3740_v53  ;;  %v862_v37 = vsel %vm10649_vm5, %v857_v59, %v861_v36  ;;  %v9246_v7 = vcombine.low %v1284_v55, %v1287_v1  ;;  %v1294_v51 = vsel %vm10611_vm2, %v1292_v61, %v1293_v58  ;;  %v1998_v9 = vrot.slane %v1996_v62, 4  ;;  %v9558_v46 = vld [vmem:[%s10618_s8 + $0xa8] sm:$0xf]  ;;  %v9559_v59 = vld [vmem:[%s10618_s8 + $0xac] sm:$0xf] }
  0xfc   : > { %v9211_v8 = vcombine.low %v852_v63, %v862_v37  ;;  %v9247_v13 = vcombine.low %v1291_v60, %v1294_v51  ;;  %v2001_v14 = vrot.slane %v1999_v3, 5  ;;  %v11424_v57 = vrot.slane %v2005_v5, 5  ;;  %v9560_v60 = vld [vmem:[%s10618_s8 + $0xb0] sm:$0x1]  ;;  %v9561_v3 = vld [vmem:[%s10618_s8 + $0xb4] sm:$0xf] }
  0xfd   : > { %v3742_v12 = vpop.permute.xlu0 %3741  ;;  %1401 = vrot.lane.b32.xlu0 %v9246_v7, %s10539_s11  ;;  %v2009_v18 = vshrl.u32 %v9343_v50, 16  ;;  %v2015_v19 = vshll.u32 %v9344_v2, 16  ;;  %v2020_v20 = vshrl.u32 %v9345_v6, 16  ;;  %v2023_v23 = vshll.u32 %v9345_v6, 16 }
  0xfe   : > { %v1026_v15 = vpop.permute.xlu1 %1025  ;;  %3791 = vst.msk [vmem:[#allocation3 + $0x28] sm:$0xff] %vm3785_vm14, %v3742_v12  ;;  %1039 = vrot.lane.b32.xlu1 %v9211_v8, %s10540_s12  ;;  %v2002_v26 = vor.u32 %v2001_v14, %v1998_v9  ;;  %v2029_v21 = vshll.u32 %v9346_v10, 16  ;;  %v2033_v27 = vshrl.u32 %v9346_v10, 16  ;;  %v2039_v52 = vshll.u32 %v9347_v11, 16  ;;  %v9562_v8 = vld [vmem:[%s10618_s8 + $0xb8] sm:$0xf] }
  0xff   : > { %1074 = vst.msk [vmem:[#allocation3 + $0x30] sm:$0xff] %vm1067_vm7, %v1026_v15  ;;  %v2011_v28 = vrot.slane %v2009_v18, 4  ;;  %v2017_v29 = vrot.slane %v2015_v19, 5  ;;  %v2022_v30 = vrot.slane %v2020_v20, 4  ;;  %v2025_v31 = vrot.slane %v2023_v23, 5 }
 0x100   : > { %v2003_v33 = vrot.slane %v2002_v26, 4  ;;  %v2031_v34 = vrot.slane %v2029_v21, 5  ;;  %v2035_v35 = vrot.slane %v2033_v27, 4  ;;  %v2041_v36 = vrot.slane %v2039_v52, 5 }
 0x101   : > { %1604 = vrot.lane.b32.xlu0 %v10434_v4, %s10537_s9  ;;  %v2012_v39 = vor.u32 %v2011_v28, %v11424_v57  ;;  %v2026_v40 = vor.u32 %v2025_v31, %v2022_v30  ;;  %v9444_v41 = vrot.slane %v9414_v16, 9  ;;  %v2460_v42 = vrot.slane %v9415_v17, 5  ;;  %v9563_v16 = vld [vmem:[%s10618_s8 + $0xbc] sm:$0x1]  ;;  %v9630_v17 = vld [vmem:[%s10618_s8 + $0xa8] sm:$0xe] }
 0x102   : > { %v3808_v32 = vld [vmem:[#allocation3 + $0x20] sm:$0xff]  ;;  %1403 = vrot.lane.b32.xlu1 %v9247_v13, %s10539_s11  ;;  %v2008_v48 = vsel %vm10649_vm5, %v2003_v33, %v11424_v57  ;;  %v2036_v49 = vor.u32 %v2035_v35, %v2031_v34  ;;  %v2463_v50 = vrot.slane %v9416_v24, 5  ;;  %v9445_v53 = vrot.slane %v9417_v25, 9  ;;  %v9631_v24 = vld [vmem:[%s10618_s8 + $0xac] sm:$0xf] }
 0x103   : > { %v1390_v38 = vpop.permute.xlu0 %1389  ;;  %10149 = vmatprep.mubr.msk.bf16.mxu0 %vm13804_vm0, %v3808_v32  ;;  %v2013_v54 = vrot.slane %v2012_v39, 4  ;;  %v2027_v55 = vrot.slane %v2026_v40, 4  ;;  %v2461_v56 = vsel %vm10611_vm2, %v9444_v41, %v2460_v42  ;;  %v2462_v58 = vrot.slane %v2460_v42, 4  ;;  %v9632_v25 = vld [vmem:[%s10618_s8 + $0xb0] sm:$0x1]  ;;  %v10438_v40 = vld [vmem:[%s10618_s8 + $0xa8] sm:$0xff]  }
 0x104   : > { %v1028_v45 = vpop.permute.xlu1 %1027  ;;  %1438 = vst.msk [vmem:[#allocation3 + $0x30] sm:$0xff] %vm13805_vm8, %v1390_v38  ;;  %v2037_v62 = vrot.slane %v2036_v49, 4  ;;  %v2467_v63 = vrot.slane %v9418_v22, 5  ;;  %v2470_v1 = vrot.slane %v9419_v44, 5  ;;  %v3173_v2 = vshrl.u32 %v9558_v46, 16 }
 0x105   : > { %1075 = vst.msk [vmem:[#allocation3 + $0x38] sm:$0xff] %vm1067_vm7, %v1028_v45  ;;  %v3809_v61 = vld [vmem:[#allocation3 + $0x28] sm:$0xff]  ;;  %v2018_v6 = vsel %vm10649_vm5, %v2013_v54, %v2017_v29  ;;  %v2032_v37 = vsel %vm10649_vm5, %v2027_v55, %v2031_v34  ;;  %v2464_v7 = vsel %vm10611_vm2, %v2462_v58, %v2463_v50  ;;  %v3176_v4 = vshll.u32 %v9558_v46, 16  ;;  %v512_v29 = vld [vmem:[%s10618_s8 + $0xa8] sm:$0xf] }
 0x106   : > { %10150 = vmatmul.mubr.msk.bf16.gmra.mrb[8].mxu0 %vm13804_vm0, %v3809_v61  ;;  %1606 = vrot.lane.b32.xlu1 %v10435_v47, %s10537_s9  ;;  %v9372_v9 = vcombine.low %v2008_v48, %v2018_v6  ;;  %v2042_v10 = vsel %vm10649_vm5, %v2037_v62, %v2041_v36  ;;  %v9462_v11 = vcombine.low %v2461_v56, %v2464_v7  ;;  %v2469_v14 = vrot.slane %v2467_v63, 4  ;;  %v513_v38 = vld [vmem:[%s10618_s8 + $0xac] sm:$0xf]  ;;  %v514_v62 = vld [vmem:[%s10618_s8 + $0xb0] sm:$0x1] }
 0x107   : > { %v1593_v5 = vpop.permute.xlu0 %1592  ;;  %v2468_v12 = vsel %vm10611_vm2, %v9445_v53, %v2467_v63  ;;  %v9373_v13 = vcombine.low %v2032_v37, %v2042_v10  ;;  %v3175_v57 = vrot.slane %v3173_v2, 4  ;;  %v3178_v15 = vrot.slane %v3176_v4, 5  ;;  %v10439_v53 = vld [vmem:[%s10618_s8 + $0xb4] sm:$0xff]   ;;  %v10454_v2 = vld [vmem:[%s10618_s8 + $0xa8] sm:$0xff]  }
 0x108   : > { %v1392_v51 = vpop.permute.xlu1 %1391  ;;  %1641 = vst.msk [vmem:[#allocation3 + $0x30] sm:$0xff] %vm13806_vm9, %v1593_v5  ;;  %2217 = vrot.lane.b32.xlu0 %v9372_v9, %s10541_s13  ;;  %v3182_v18 = vshll.u32 %v9559_v59, 16  ;;  %v3186_v19 = vshrl.u32 %v9559_v59, 16  ;;  %v3192_v20 = vshll.u32 %v9560_v60, 16  ;;  %v3197_v23 = vshrl.u32 %v9561_v3, 16 }
 0x109   : > { %1439 = vst.msk [vmem:[#allocation3 + $0x38] sm:$0xff] %vm13805_vm8, %v1392_v51  ;;  %v2471_v26 = vsel %vm10611_vm2, %v2469_v14, %v2470_v1  ;;  %v3179_v21 = vor.u32 %v3178_v15, %v3175_v57  ;;  %v3200_v27 = vshll.u32 %v9561_v3, 16  ;;  %v3206_v52 = vshll.u32 %v9562_v8, 16  ;;  %v9633_v7 = vld [vmem:[%s10618_s8 + $0xb4] sm:$0xe] }
 0x10a   : > { %2219 = vrot.lane.b32.xlu1 %v9373_v13, %s10541_s13  ;;  %v9463_v30 = vcombine.low %v2468_v12, %v2471_v26  ;;  %v3184_v31 = vrot.slane %v3182_v18, 5  ;;  %v3188_v22 = vrot.slane %v3186_v19, 4  ;;  %v3194_v32 = vrot.slane %v3192_v20, 5  ;;  %v9634_v51 = vld [vmem:[%s10618_s8 + $0xb8] sm:$0xf]  ;;  %466 = vst.msk [vmem:[#allocation3 + $0x70] sm:$0xff] %vm13802_vm6, %v10454_v2 }
 0x10b   : > { %v3180_v33 = vrot.slane %v3179_v21, 4  ;;  %v3199_v34 = vrot.slane %v3197_v23, 4  ;;  %v3202_v35 = vrot.slane %v3200_v27, 5  ;;  %v11477_v36 = vrot.slane %v3206_v52, 5  ;;  %v9635_v12 = vld [vmem:[%s10618_s8 + $0xbc] sm:$0x1] }
 0x10c   : > { %v1595_v28 = vpop.permute.xlu1 %1594  ;;  %2578 = vrot.lane.b32.xlu0 %v9462_v11, %s10538_s10  ;;  %v3189_v41 = vor.u32 %v3188_v22, %v3184_v31  ;;  %v3210_v42 = vshrl.u32 %v9562_v8, 16  ;;  %v3216_v44 = vshll.u32 %v9563_v16, 16  ;;  %v9660_v45 = vrot.slane %v9630_v17, 9  ;;  %v515_v8 = vld [vmem:[%s10618_s8 + $0xb4] sm:$0xf] }
 0x10d   : > { %1642 = vst.msk [vmem:[#allocation3 + $0x38] sm:$0xff] %vm13806_vm9, %v1595_v28  ;;  %v2206_v39 = vpop.permute.xlu0 %2205  ;;  %v3185_v46 = vsel %vm10649_vm5, %v3180_v33, %v3184_v31  ;;  %v3203_v47 = vor.u32 %v3202_v35, %v3199_v34  ;;  %v3637_v48 = vrot.slane %v9631_v24, 5  ;;  %v3640_v49 = vrot.slane %v9632_v25, 5  ;;  %v516_v23 = vld [vmem:[%s10618_s8 + $0xb8] sm:$0xf] }
 0x10e   : > { %2254 = vst.msk [vmem:[#allocation3 + $0x30] sm:$0xff] %vm13807_vm10, %v2206_v39  ;;  %2580 = vrot.lane.b32.xlu1 %v9463_v30, %s10538_s10  ;;  %v3190_v54 = vrot.slane %v3189_v41, 4  ;;  %v3212_v55 = vrot.slane %v3210_v42, 4  ;;  %v3218_v56 = vrot.slane %v3216_v44, 5  ;;  %v864_v58 = vshrl.u32 %v512_v29, 16  ;;  %v10455_v28 = vld [vmem:[%s10618_s8 + $0xb4] sm:$0xff]  }
 0x10f   : > { %v3204_v59 = vrot.slane %v3203_v47, 4  ;;  %v11490_v60 = vsel %vm10611_vm2, %v9660_v45, %v3637_v48  ;;  %v3639_v61 = vrot.slane %v3637_v48, 4  ;;  %v867_v63 = vshll.u32 %v512_v29, 16  ;;  %v517_v27 = vld [vmem:[%s10618_s8 + $0xbc] sm:$0x1]  ;;  %467 = vst.msk [vmem:[#allocation3 + $0x78] sm:$0xff] %vm13802_vm6, %v10455_v28 }
 0x110   : > { %v2208_v50 = vpop.permute.xlu1 %2207  ;;  %2781 = vrot.lane.b32.xlu0 %v10438_v40, %s10542_s14  ;;  %v3195_v3 = vsel %vm10649_vm5, %v3190_v54, %v3194_v32  ;;  %v3213_v5 = vor.u32 %v3212_v55, %v11477_v36  ;;  %v866_v6 = vrot.slane %v864_v58, 4  ;;  %v873_v37 = vshll.u32 %v513_v38, 16  ;;  %v1128_v32 = vld [vmem:[%s10618_s8 + $0xa8] sm:$0xe]  ;;  %v1129_v33 = vld [vmem:[%s10618_s8 + $0xac] sm:$0xf] }
 0x111   : > { %2255 = vst.msk [vmem:[#allocation3 + $0x38] sm:$0xff] %vm13807_vm10, %v2208_v50  ;;  %v2567_v1 = vpop.permute.xlu0 %2566  ;;  %v9588_v4 = vcombine.low %v3185_v46, %v3195_v3  ;;  %v3209_v9 = vsel %vm10649_vm5, %v3204_v59, %v11477_v36  ;;  %v3641_v10 = vsel %vm10611_vm2, %v3639_v61, %v3640_v49  ;;  %v869_v11 = vrot.slane %v867_v63, 5  ;;  %v1130_v40 = vld [vmem:[%s10618_s8 + $0xb0] sm:$0x1]  ;;  %v1131_v46 = vld [vmem:[%s10618_s8 + $0xb4] sm:$0xe] }
 0x112   : > { %2615 = vst.msk [vmem:[#allocation3 + $0x30] sm:$0xff] %vm2608_vm11, %v2567_v1  ;;  %2783 = vrot.lane.b32.xlu1 %v10439_v53, %s10542_s14  ;;  %v3214_v14 = vrot.slane %v3213_v5, 4  ;;  %v9678_v57 = vcombine.low %v11490_v60, %v3641_v10  ;;  %v875_v15 = vrot.slane %v873_v37, 5  ;;  %v877_v16 = vshrl.u32 %v513_v38, 16  ;;  %v1132_v54 = vld [vmem:[%s10618_s8 + $0xb8] sm:$0xf] }
 0x113   : > { %v870_v17 = vor.u32 %v869_v11, %v866_v6  ;;  %v883_v18 = vshll.u32 %v514_v62, 16  ;;  %v9661_v19 = vrot.slane %v9633_v7, 9  ;;  %v3644_v20 = vrot.slane %v9634_v51, 5  ;;  %v1133_v60 = vld [vmem:[%s10618_s8 + $0xbc] sm:$0x1] }
 0x114   : > { %v2569_v13 = vpop.permute.xlu1 %2568  ;;  %3394 = vrot.lane.b32.xlu0 %v9588_v4, %s10543_s15  ;;  %v3219_v25 = vsel %vm10649_vm5, %v3214_v14, %v3218_v56  ;;  %v879_v26 = vrot.slane %v877_v16, 4  ;;  %v3647_v21 = vrot.slane %v9635_v12, 5  ;;  %v888_v52 = vshrl.u32 %v515_v8, 16  ;;  %v9348_v3 = vld [vmem:[%s10618_s8 + $0xb4] sm:$0xf] }
 0x115   : > { %2616 = vst.msk [vmem:[#allocation3 + $0x38] sm:$0xff] %vm2608_vm11, %v2569_v13  ;;  %v2770_v24 = vpop.permute.xlu0 %2769  ;;  %v9589_v29 = vcombine.low %v3209_v9, %v3219_v25  ;;  %v871_v30 = vrot.slane %v870_v17, 4  ;;  %v885_v31 = vrot.slane %v883_v18, 5  ;;  %v3645_v22 = vsel %vm10611_vm2, %v9661_v19, %v3644_v20  ;;  %v9349_v51 = vld [vmem:[%s10618_s8 + $0xb8] sm:$0xf] }
 0x116   : > { %2818 = vst.msk [vmem:[#allocation3 + $0x30] sm:$0xff] %vm2811_vm12, %v2770_v24  ;;  %v880_v35 = vor.u32 %v879_v26, %v875_v15  ;;  %v3646_v36 = vrot.slane %v3644_v20, 4  ;;  %v890_v38 = vrot.slane %v888_v52, 4  ;;  %v891_v39 = vshll.u32 %v515_v8, 16  ;;  %v9351_v20 = vld [vmem:[%s10618_s8 + $0xc0] sm:$0xf] }
 0x117   : > { %3396 = vrot.lane.b32.xlu1 %v9589_v29, %s10543_s15  ;;  %v876_v41 = vsel %vm10649_vm5, %v871_v30, %v875_v15  ;;  %v897_v42 = vshll.u32 %v516_v23, 16  ;;  %v901_v44 = vshrl.u32 %v516_v23, 16  ;;  %v907_v45 = vshll.u32 %v517_v27, 16  ;;  %v9352_v23 = vld [vmem:[%s10618_s8 + $0xc4] sm:$0xf] }
 0x118   : > { %v2772_v34 = vpop.permute.xlu1 %2771  ;;  %3755 = vrot.lane.b32.xlu0 %v9678_v57, %s10544_s16  ;;  %v881_v48 = vrot.slane %v880_v35, 4  ;;  %v3648_v49 = vsel %vm10611_vm2, %v3646_v36, %v3647_v21  ;;  %v893_v50 = vrot.slane %v891_v39, 5  ;;  %v9230_v53 = vrot.slane %v1128_v32, 9  ;;  %v9350_v57 = vld [vmem:[%s10618_s8 + $0xbc] sm:$0x1]  ;;  %v10440_v21 = vld [vmem:[%s10618_s8 + $0xb4] sm:$0xff]  }
 0x119   : > { %2819 = vst.msk [vmem:[#allocation3 + $0x38] sm:$0xff] %vm2811_vm12, %v2772_v34  ;;  %v3383_v47 = vpop.permute.xlu0 %3382  ;;  %v9679_v55 = vcombine.low %v3645_v22, %v3648_v49  ;;  %v899_v56 = vrot.slane %v897_v42, 5  ;;  %v903_v58 = vrot.slane %v901_v44, 4  ;;  %v909_v59 = vrot.slane %v907_v45, 5  ;;  %v9353_v52 = vld [vmem:[%s10618_s8 + $0xc8] sm:$0x1] }
 0x11a   : > { %3431 = vst.msk [vmem:[#allocation3 + $0x30] sm:$0xff] %vm3424_vm13, %v3383_v47  ;;  %v886_v61 = vsel %vm10649_vm5, %v881_v48, %v885_v31  ;;  %v894_v62 = vor.u32 %v893_v50, %v890_v38  ;;  %v1297_v63 = vrot.slane %v1129_v33, 5  ;;  %v1300_v1 = vrot.slane %v1130_v40, 5  ;;  %v9420_v32 = vld [vmem:[%s10618_s8 + $0xb4] sm:$0xe] }
 0x11b   : > { %v9212_v5 = vcombine.low %v876_v41, %v886_v61  ;;  %v904_v6 = vor.u32 %v903_v58, %v899_v56  ;;  %v9231_v37 = vrot.slane %v1131_v46, 9  ;;  %v1304_v7 = vrot.slane %v1132_v54, 5  ;;  %v9421_v33 = vld [vmem:[%s10618_s8 + $0xb8] sm:$0xf]  ;;  %v9422_v40 = vld [vmem:[%s10618_s8 + $0xbc] sm:$0x1] }
 0x11c   : > { %v3385_v2 = vpop.permute.xlu1 %3384  ;;  %3757 = vrot.lane.b32.xlu0 %v9679_v55, %s10544_s16  ;;  %v895_v9 = vrot.slane %v894_v62, 4  ;;  %v1298_v10 = vsel %vm10611_vm2, %v9230_v53, %v1297_v63  ;;  %v1299_v11 = vrot.slane %v1297_v63, 4  ;;  %v1307_v12 = vrot.slane %v1133_v60, 5  ;;  %v9423_v46 = vld [vmem:[%s10618_s8 + $0xc0] sm:$0xe] }
 0x11d   : > { %3432 = vst.msk [vmem:[#allocation3 + $0x38] sm:$0xff] %vm3424_vm13, %v3385_v2  ;;  %v3744_v4 = vpop.permute.xlu0 %3743  ;;  %1041 = vrot.lane.b32.xlu1 %v9212_v5, %s10540_s12  ;;  %v905_v8 = vrot.slane %v904_v6, 4  ;;  %v1305_v13 = vsel %vm10611_vm2, %v9231_v37, %v1304_v7  ;;  %v1306_v14 = vrot.slane %v1304_v7, 4  ;;  %v2044_v15 = vshrl.u32 %v9348_v3, 16  ;;  %v10441_v5 = vld [vmem:[%s10618_s8 + $0xc0] sm:$0xff]  }
 0x11e   : > { %3792 = vst.msk [vmem:[#allocation3 + $0x30] sm:$0xff] %vm3785_vm14, %v3744_v4  ;;  %v900_v16 = vsel %vm10649_vm5, %v895_v9, %v899_v56  ;;  %v1301_v17 = vsel %vm10611_vm2, %v1299_v11, %v1300_v1  ;;  %v2047_v18 = vshll.u32 %v9348_v3, 16  ;;  %v2053_v19 = vshll.u32 %v9349_v51, 16  ;;  %v9425_v1 = vld [vmem:[%s10618_s8 + $0xc8] sm:$0x1] }
 0x11f   : > { %v910_v24 = vsel %vm10649_vm5, %v905_v8, %v909_v59  ;;  %v9248_v25 = vcombine.low %v1298_v10, %v1301_v17  ;;  %v1308_v26 = vsel %vm10611_vm2, %v1306_v14, %v1307_v12  ;;  %v2046_v27 = vrot.slane %v2044_v15, 4  ;;  %v9424_v59 = vld [vmem:[%s10618_s8 + $0xc4] sm:$0xf]  ;;  %v9564_v3 = vld [vmem:[%s10618_s8 + $0xc0] sm:$0xf] }
 0x120   : > { %v9213_v29 = vcombine.low %v900_v16, %v910_v24  ;;  %v9249_v30 = vcombine.low %v1305_v13, %v1308_v26  ;;  %v2049_v31 = vrot.slane %v2047_v18, 5  ;;  %v11561_v22 = vrot.slane %v2053_v19, 5  ;;  %v9565_v8 = vld [vmem:[%s10618_s8 + $0xc4] sm:$0xf]  ;;  %v9567_v24 = vld [vmem:[%s10618_s8 + $0xcc] sm:$0xf] }
 0x121   : > { %v3746_v28 = vpop.permute.xlu0 %3745  ;;  %1405 = vrot.lane.b32.xlu0 %v9248_v25, %s10539_s11  ;;  %v2057_v34 = vshrl.u32 %v9349_v51, 16  ;;  %v2063_v35 = vshll.u32 %v9350_v57, 16  ;;  %v2068_v36 = vshrl.u32 %v9351_v20, 16  ;;  %v2071_v38 = vshll.u32 %v9351_v20, 16  ;;  %v9566_v20 = vld [vmem:[%s10618_s8 + $0xc8] sm:$0x1] }
 0x122   : > { %3793 = vst.msk [vmem:[#allocation3 + $0x38] sm:$0xff] %vm3785_vm14, %v3746_v28  ;;  %1043 = vrot.lane.b32.xlu1 %v9213_v29, %s10540_s12  ;;  %v2050_v41 = vor.u32 %v2049_v31, %v2046_v27  ;;  %v2077_v42 = vshll.u32 %v9352_v23, 16  ;;  %v2081_v44 = vshrl.u32 %v9352_v23, 16  ;;  %v2087_v45 = vshll.u32 %v9353_v52, 16  ;;  %v9568_v29 = vld [vmem:[%s10618_s8 + $0xd0] sm:$0xf] }
 0x123   : > { %v1030_v39 = vpop.permute.xlu1 %1029  ;;  %v2059_v47 = vrot.slane %v2057_v34, 4  ;;  %v2065_v48 = vrot.slane %v2063_v35, 5  ;;  %v2070_v49 = vrot.slane %v2068_v36, 4  ;;  %v2073_v50 = vrot.slane %v2071_v38, 5  ;;  %v9636_v34 = vld [vmem:[%s10618_s8 + $0xc0] sm:$0xe] }
 0x124   : > { %1076 = vst.msk [vmem:[#allocation3 + $0x40] sm:$0xff] %vm1067_vm7, %v1030_v39  ;;  %v2051_v54 = vrot.slane %v2050_v41, 4  ;;  %v2079_v55 = vrot.slane %v2077_v42, 5  ;;  %v2083_v56 = vrot.slane %v2081_v44, 4  ;;  %v2089_v58 = vrot.slane %v2087_v45, 5 }
 0x125   : > { %v3810_v53 = vld [vmem:[#allocation3 + $0x30] sm:$0xff]  ;;  %1608 = vrot.lane.b32.xlu0 %v10440_v21, %s10537_s9  ;;  %v2060_v60 = vor.u32 %v2059_v47, %v11561_v22  ;;  %v2074_v61 = vor.u32 %v2073_v50, %v2070_v49  ;;  %v9446_v62 = vrot.slane %v9420_v32, 9  ;;  %v2474_v63 = vrot.slane %v9421_v33, 5  ;;  %v9569_v33 = vld [vmem:[%s10618_s8 + $0xd4] sm:$0x1] }
 0x126   : > { %10153 = vmatprep.mubr.msk.bf16.mxu0 %vm13804_vm0, %v3810_v53  ;;  %v1394_v2 = vpop.permute.xlu0 %1393  ;;  %1407 = vrot.lane.b32.xlu1 %v9249_v30, %s10539_s11  ;;  %v2056_v6 = vsel %vm10649_vm5, %v2051_v54, %v11561_v22  ;;  %v2084_v37 = vor.u32 %v2083_v56, %v2079_v55  ;;  %v2477_v7 = vrot.slane %v9422_v40, 5  ;;  %v9447_v51 = vrot.slane %v9423_v46, 9  ;;  %v9637_v40 = vld [vmem:[%s10618_s8 + $0xc4] sm:$0xf]  ;;  %v9638_v41 = vld [vmem:[%s10618_s8 + $0xc8] sm:$0x1] }
 0x127   : > { %1440 = vst.msk [vmem:[#allocation3 + $0x40] sm:$0xff] %vm13805_vm8, %v1394_v2  ;;  %v2061_v9 = vrot.slane %v2060_v60, 4  ;;  %v2075_v10 = vrot.slane %v2074_v61, 4  ;;  %v2475_v11 = vsel %vm10611_vm2, %v9446_v62, %v2474_v63  ;;  %v2476_v12 = vrot.slane %v2474_v63, 4  ;;  %v518_v47 = vld [vmem:[%s10618_s8 + $0xc0] sm:$0xf] }
 0x128   : > { %v1032_v4 = vpop.permute.xlu1 %1031  ;;  %v2085_v14 = vrot.slane %v2084_v37, 4  ;;  %v2481_v57 = vrot.slane %v9424_v59, 5  ;;  %v2484_v15 = vrot.slane %v9425_v1, 5  ;;  %v3221_v16 = vshrl.u32 %v9564_v3, 16  ;;  %v10444_v60 = vld [vmem:[%s10618_s8 + $0xc0] sm:$0xff]  }
 0x129   : > { %1077 = vst.msk [vmem:[#allocation3 + $0x48] sm:$0xff] %vm1067_vm7, %v1032_v4  ;;  %v3811_v13 = vld [vmem:[#allocation3 + $0x38] sm:$0xff]  ;;  %v2066_v17 = vsel %vm10649_vm5, %v2061_v9, %v2065_v48  ;;  %v2080_v18 = vsel %vm10649_vm5, %v2075_v10, %v2079_v55  ;;  %v2478_v19 = vsel %vm10611_vm2, %v2476_v12, %v2477_v7  ;;  %v3224_v23 = vshll.u32 %v9564_v3, 16  ;;  %v519_v7 = vld [vmem:[%s10618_s8 + $0xc4] sm:$0xf] }
 0x12a   : > { %10154 = vmatmul.mubr.msk.bf16.gmra.mrb[12].mxu0 %vm13804_vm0, %v3811_v13  ;;  %v1597_v25 = vpop.permute.xlu0 %1596  ;;  %1610 = vrot.lane.b32.xlu1 %v10441_v5, %s10537_s9  ;;  %v9374_v26 = vcombine.low %v2056_v6, %v2066_v17  ;;  %v2090_v21 = vsel %vm10649_vm5, %v2085_v14, %v2089_v58  ;;  %v9464_v27 = vcombine.low %v2475_v11, %v2478_v19  ;;  %v2483_v31 = vrot.slane %v2481_v57, 4 }
 0x12b   : > { %v2482_v52 = vsel %vm10611_vm2, %v9447_v51, %v2481_v57  ;;  %1643 = vst.msk [vmem:[#allocation3 + $0x40] sm:$0xff] %vm13806_vm9, %v1597_v25  ;;  %v9375_v30 = vcombine.low %v2080_v18, %v2090_v21  ;;  %v3223_v22 = vrot.slane %v3221_v16, 4  ;;  %v3226_v32 = vrot.slane %v3224_v23, 5  ;;  %v10445_v51 = vld [vmem:[%s10618_s8 + $0xcc] sm:$0xff]   ;;  %v520_v57 = vld [vmem:[%s10618_s8 + $0xc8] sm:$0x1] }
 0x12c   : > { %v1396_v28 = vpop.permute.xlu1 %1395  ;;  %2221 = vrot.lane.b32.xlu0 %v9374_v26, %s10541_s13  ;;  %v3230_v35 = vshll.u32 %v9565_v8, 16  ;;  %v3234_v36 = vshrl.u32 %v9565_v8, 16  ;;  %v3240_v38 = vshll.u32 %v9566_v20, 16  ;;  %v3245_v39 = vshrl.u32 %v9567_v24, 16  ;;  %v10456_v16 = vld [vmem:[%s10618_s8 + $0xc0] sm:$0xff]  }
 0x12d   : > { %1441 = vst.msk [vmem:[#allocation3 + $0x48] sm:$0xff] %vm13805_vm8, %v1396_v28  ;;  %v2485_v42 = vsel %vm10611_vm2, %v2483_v31, %v2484_v15  ;;  %v3227_v44 = vor.u32 %v3226_v32, %v3223_v22  ;;  %v3248_v45 = vshll.u32 %v9567_v24, 16  ;;  %v3254_v46 = vshll.u32 %v9568_v29, 16  ;;  %v9639_v23 = vld [vmem:[%s10618_s8 + $0xcc] sm:$0xe] }
 0x12e   : > { %2223 = vrot.lane.b32.xlu1 %v9375_v30, %s10541_s13  ;;  %v9465_v48 = vcombine.low %v2482_v52, %v2485_v42  ;;  %v3232_v49 = vrot.slane %v3230_v35, 5  ;;  %v3236_v50 = vrot.slane %v3234_v36, 4  ;;  %v3242_v53 = vrot.slane %v3240_v38, 5  ;;  %v9640_v24 = vld [vmem:[%s10618_s8 + $0xd0] sm:$0xf]  ;;  %468 = vst.msk [vmem:[#allocation3 + $0x80] sm:$0xff] %vm13802_vm6, %v10456_v16 }
 0x12f   : > { %v3228_v55 = vrot.slane %v3227_v44, 4  ;;  %v3247_v56 = vrot.slane %v3245_v39, 4  ;;  %v3250_v58 = vrot.slane %v3248_v45, 5  ;;  %v11613_v59 = vrot.slane %v3254_v46, 5  ;;  %v9641_v28 = vld [vmem:[%s10618_s8 + $0xd4] sm:$0x1] }
 0x130   : > { %v1599_v54 = vpop.permute.xlu1 %1598  ;;  %2582 = vrot.lane.b32.xlu0 %v9464_v27, %s10538_s10  ;;  %v3237_v61 = vor.u32 %v3236_v50, %v3232_v49  ;;  %v3258_v62 = vshrl.u32 %v9568_v29, 16  ;;  %v3264_v63 = vshll.u32 %v9569_v33, 16  ;;  %v9662_v1 = vrot.slane %v9636_v34, 9  ;;  %v2210_v2 = vpop.permute.xlu0 %2209  ;;  %v521_v29 = vld [vmem:[%s10618_s8 + $0xcc] sm:$0xf] }
 0x131   : > { %1644 = vst.msk [vmem:[#allocation3 + $0x48] sm:$0xff] %vm13806_vm9, %v1599_v54  ;;  %v3233_v3 = vsel %vm10649_vm5, %v3228_v55, %v3232_v49  ;;  %v3251_v5 = vor.u32 %v3250_v58, %v3247_v56  ;;  %v3651_v6 = vrot.slane %v9637_v40, 5  ;;  %v3654_v37 = vrot.slane %v9638_v41, 5  ;;  %v522_v33 = vld [vmem:[%s10618_s8 + $0xd0] sm:$0xf] }
 0x132   : > { %2256 = vst.msk [vmem:[#allocation3 + $0x40] sm:$0xff] %vm13807_vm10, %v2210_v2  ;;  %2584 = vrot.lane.b32.xlu1 %v9465_v48, %s10538_s10  ;;  %v3238_v4 = vrot.slane %v3237_v61, 4  ;;  %v3260_v9 = vrot.slane %v3258_v62, 4  ;;  %v3266_v10 = vrot.slane %v3264_v63, 5  ;;  %v912_v11 = vshrl.u32 %v518_v47, 16  ;;  %v10457_v48 = vld [vmem:[%s10618_s8 + $0xcc] sm:$0xff]  }
 0x133   : > { %v3252_v8 = vrot.slane %v3251_v5, 4  ;;  %v11626_v13 = vsel %vm10611_vm2, %v9662_v1, %v3651_v6  ;;  %v3653_v14 = vrot.slane %v3651_v6, 4  ;;  %v915_v15 = vshll.u32 %v518_v47, 16  ;;  %v523_v40 = vld [vmem:[%s10618_s8 + $0xd4] sm:$0x1]  ;;  %469 = vst.msk [vmem:[#allocation3 + $0x88] sm:$0xff] %vm13802_vm6, %v10457_v48 }
 0x134   : > { %v2212_v12 = vpop.permute.xlu1 %2211  ;;  %2785 = vrot.lane.b32.xlu0 %v10444_v60, %s10542_s14  ;;  %v3243_v17 = vsel %vm10649_vm5, %v3238_v4, %v3242_v53  ;;  %v3261_v18 = vor.u32 %v3260_v9, %v11613_v59  ;;  %v914_v19 = vrot.slane %v912_v11, 4  ;;  %v921_v20 = vshll.u32 %v519_v7, 16  ;;  %v2571_v25 = vpop.permute.xlu0 %2570  ;;  %v1134_v46 = vld [vmem:[%s10618_s8 + $0xc0] sm:$0xe]  ;;  %v1135_v55 = vld [vmem:[%s10618_s8 + $0xc4] sm:$0xf] }
 0x135   : > { %2257 = vst.msk [vmem:[#allocation3 + $0x48] sm:$0xff] %vm13807_vm10, %v2212_v12  ;;  %v9590_v26 = vcombine.low %v3233_v3, %v3243_v17  ;;  %v3257_v21 = vsel %vm10649_vm5, %v3252_v8, %v11613_v59  ;;  %v3655_v27 = vsel %vm10611_vm2, %v3653_v14, %v3654_v37  ;;  %v917_v52 = vrot.slane %v915_v15, 5  ;;  %v1136_v56 = vld [vmem:[%s10618_s8 + $0xc8] sm:$0x1]  ;;  %v1137_v62 = vld [vmem:[%s10618_s8 + $0xcc] sm:$0xe] }
 0x136   : > { %2617 = vst.msk [vmem:[#allocation3 + $0x40] sm:$0xff] %vm2608_vm11, %v2571_v25  ;;  %2787 = vrot.lane.b32.xlu1 %v10445_v51, %s10542_s14  ;;  %v3262_v30 = vrot.slane %v3261_v18, 4  ;;  %v9680_v31 = vcombine.low %v11626_v13, %v3655_v27  ;;  %v923_v22 = vrot.slane %v921_v20, 5  ;;  %v925_v32 = vshrl.u32 %v519_v7, 16  ;;  %v1138_v63 = vld [vmem:[%s10618_s8 + $0xd0] sm:$0xf] }
 0x137   : > { %v918_v35 = vor.u32 %v917_v52, %v914_v19  ;;  %v931_v36 = vshll.u32 %v520_v57, 16  ;;  %v9663_v38 = vrot.slane %v9639_v23, 9  ;;  %v3658_v39 = vrot.slane %v9640_v24, 5  ;;  %v1139_v37 = vld [vmem:[%s10618_s8 + $0xd4] sm:$0x1] }
 0x138   : > { %v2573_v34 = vpop.permute.xlu1 %2572  ;;  %3398 = vrot.lane.b32.xlu0 %v9590_v26, %s10543_s15  ;;  %v3267_v41 = vsel %vm10649_vm5, %v3262_v30, %v3266_v10  ;;  %v927_v42 = vrot.slane %v925_v32, 4  ;;  %v3661_v44 = vrot.slane %v9641_v28, 5  ;;  %v936_v45 = vshrl.u32 %v521_v29, 16  ;;  %v2774_v47 = vpop.permute.xlu0 %2773  ;;  %v9354_v10 = vld [vmem:[%s10618_s8 + $0xcc] sm:$0xf] }
 0x139   : > { %2618 = vst.msk [vmem:[#allocation3 + $0x48] sm:$0xff] %vm2608_vm11, %v2573_v34  ;;  %v9591_v49 = vcombine.low %v3257_v21, %v3267_v41  ;;  %v919_v50 = vrot.slane %v918_v35, 4  ;;  %v933_v53 = vrot.slane %v931_v36, 5  ;;  %v3659_v54 = vsel %vm10611_vm2, %v9663_v38, %v3658_v39  ;;  %v9355_v24 = vld [vmem:[%s10618_s8 + $0xd0] sm:$0xf] }
 0x13a   : > { %2820 = vst.msk [vmem:[#allocation3 + $0x40] sm:$0xff] %vm2811_vm12, %v2774_v47  ;;  %v928_v58 = vor.u32 %v927_v42, %v923_v22  ;;  %v3660_v59 = vrot.slane %v3658_v39, 4  ;;  %v938_v60 = vrot.slane %v936_v45, 4  ;;  %v939_v61 = vshll.u32 %v521_v29, 16  ;;  %v9356_v28 = vld [vmem:[%s10618_s8 + $0xd4] sm:$0x1] }
 0x13b   : > { %3400 = vrot.lane.b32.xlu1 %v9591_v49, %s10543_s15  ;;  %v924_v2 = vsel %vm10649_vm5, %v919_v50, %v923_v22  ;;  %v945_v3 = vshll.u32 %v522_v33, 16  ;;  %v949_v5 = vshrl.u32 %v522_v33, 16  ;;  %v955_v6 = vshll.u32 %v523_v40, 16  ;;  %v9357_v38 = vld [vmem:[%s10618_s8 + $0xd8] sm:$0xf]  ;;  %v10446_v42 = vld [vmem:[%s10618_s8 + $0xcc] sm:$0xff]  }
 0x13c   : > { %v2776_v1 = vpop.permute.xlu1 %2775  ;;  %3759 = vrot.lane.b32.xlu0 %v9680_v31, %s10544_s16  ;;  %v929_v7 = vrot.slane %v928_v58, 4  ;;  %v3662_v51 = vsel %vm10611_vm2, %v3660_v59, %v3661_v44  ;;  %v941_v4 = vrot.slane %v939_v61, 5  ;;  %v9232_v9 = vrot.slane %v1134_v46, 9  ;;  %v9358_v45 = vld [vmem:[%s10618_s8 + $0xdc] sm:$0xf] }
 0x13d   : > { %2821 = vst.msk [vmem:[#allocation3 + $0x48] sm:$0xff] %vm2811_vm12, %v2776_v1  ;;  %v9681_v11 = vcombine.low %v3659_v54, %v3662_v51  ;;  %v947_v12 = vrot.slane %v945_v3, 5  ;;  %v951_v8 = vrot.slane %v949_v5, 4  ;;  %v957_v13 = vrot.slane %v955_v6, 5  ;;  %v3387_v14 = vpop.permute.xlu0 %3386  ;;  %v9359_v46 = vld [vmem:[%s10618_s8 + $0xe0] sm:$0x1] }
 0x13e   : > { %v934_v57 = vsel %vm10649_vm5, %v929_v7, %v933_v53  ;;  %v942_v15 = vor.u32 %v941_v4, %v938_v60  ;;  %v1311_v16 = vrot.slane %v1135_v55, 5  ;;  %v1314_v17 = vrot.slane %v1136_v56, 5  ;;  %3433 = vst.msk [vmem:[#allocation3 + $0x40] sm:$0xff] %vm3424_vm13, %v3387_v14  ;;  %v9426_v53 = vld [vmem:[%s10618_s8 + $0xcc] sm:$0xe] }
 0x13f   : > { %v9214_v18 = vcombine.low %v924_v2, %v934_v57  ;;  %v952_v19 = vor.u32 %v951_v8, %v947_v12  ;;  %v9233_v20 = vrot.slane %v1137_v62, 9  ;;  %v1318_v23 = vrot.slane %v1138_v63, 5  ;;  %v9427_v54 = vld [vmem:[%s10618_s8 + $0xd0] sm:$0xf]  ;;  %v9428_v60 = vld [vmem:[%s10618_s8 + $0xd4] sm:$0x1] }
 0x140   : > { %3761 = vrot.lane.b32.xlu0 %v9681_v11, %s10544_s16  ;;  %v943_v25 = vrot.slane %v942_v15, 4  ;;  %v1312_v26 = vsel %vm10611_vm2, %v9232_v9, %v1311_v16  ;;  %v1313_v21 = vrot.slane %v1311_v16, 4  ;;  %v1321_v27 = vrot.slane %v1139_v37, 5  ;;  %v3389_v52 = vpop.permute.xlu1 %3388  ;;  %v9429_v61 = vld [vmem:[%s10618_s8 + $0xd8] sm:$0xe] }
 0x141   : > { %1045 = vrot.lane.b32.xlu1 %v9214_v18, %s10540_s12  ;;  %v953_v29 = vrot.slane %v952_v19, 4  ;;  %v1319_v30 = vsel %vm10611_vm2, %v9233_v20, %v1318_v23  ;;  %v1320_v31 = vrot.slane %v1318_v23, 4  ;;  %3434 = vst.msk [vmem:[#allocation3 + $0x48] sm:$0xff] %vm3424_vm13, %v3389_v52  ;;  %v2092_v22 = vshrl.u32 %v9354_v10, 16  ;;  %v3748_v32 = vpop.permute.xlu0 %3747  ;;  %v9430_v4 = vld [vmem:[%s10618_s8 + $0xdc] sm:$0xf] }
 0x142   : > { %v948_v33 = vsel %vm10649_vm5, %v943_v25, %v947_v12  ;;  %v1315_v34 = vsel %vm10611_vm2, %v1313_v21, %v1314_v17  ;;  %v2095_v35 = vshll.u32 %v9354_v10, 16  ;;  %v2101_v36 = vshll.u32 %v9355_v24, 16  ;;  %3794 = vst.msk [vmem:[#allocation3 + $0x40] sm:$0xff] %vm3785_vm14, %v3748_v32  ;;  %v9431_v8 = vld [vmem:[%s10618_s8 + $0xe0] sm:$0x1]  ;;  %v10447_v18 = vld [vmem:[%s10618_s8 + $0xd8] sm:$0xff]  }
 0x143   : > { %v958_v39 = vsel %vm10649_vm5, %v953_v29, %v957_v13  ;;  %v9250_v40 = vcombine.low %v1312_v26, %v1315_v34  ;;  %v1322_v41 = vsel %vm10611_vm2, %v1320_v31, %v1321_v27  ;;  %v2094_v44 = vrot.slane %v2092_v22, 4  ;;  %v9570_v17 = vld [vmem:[%s10618_s8 + $0xd8] sm:$0xf]  ;;  %v9571_v22 = vld [vmem:[%s10618_s8 + $0xdc] sm:$0xf] }
 0x144   : > { %v9215_v47 = vcombine.low %v948_v33, %v958_v39  ;;  %v9251_v48 = vcombine.low %v1319_v30, %v1322_v41  ;;  %v2097_v49 = vrot.slane %v2095_v35, 5  ;;  %v11698_v50 = vrot.slane %v2101_v36, 5  ;;  %v9572_v36 = vld [vmem:[%s10618_s8 + $0xe0] sm:$0x1]  ;;  %v9573_v39 = vld [vmem:[%s10618_s8 + $0xe4] sm:$0xf] }
 0x145   : > { %1409 = vrot.lane.b32.xlu0 %v9250_v40, %s10539_s11  ;;  %v2105_v55 = vshrl.u32 %v9355_v24, 16  ;;  %v2111_v56 = vshll.u32 %v9356_v28, 16  ;;  %v2116_v58 = vshrl.u32 %v9357_v38, 16  ;;  %v2119_v59 = vshll.u32 %v9357_v38, 16  ;;  %v3750_v62 = vpop.permute.xlu0 %3749 }
 0x146   : > { %1047 = vrot.lane.b32.xlu1 %v9215_v47, %s10540_s12  ;;  %v2098_v63 = vor.u32 %v2097_v49, %v2094_v44  ;;  %v2125_v1 = vshll.u32 %v9358_v45, 16  ;;  %v2129_v2 = vshrl.u32 %v9358_v45, 16  ;;  %v2135_v3 = vshll.u32 %v9359_v46, 16  ;;  %3795 = vst.msk [vmem:[#allocation3 + $0x48] sm:$0xff] %vm3785_vm14, %v3750_v62  ;;  %v9574_v46 = vld [vmem:[%s10618_s8 + $0xe8] sm:$0xf] }
 0x147   : > { %v2107_v5 = vrot.slane %v2105_v55, 4  ;;  %v2113_v6 = vrot.slane %v2111_v56, 5  ;;  %v2118_v37 = vrot.slane %v2116_v58, 4  ;;  %v2121_v7 = vrot.slane %v2119_v59, 5  ;;  %v1034_v51 = vpop.permute.xlu1 %1033  ;;  %v9575_v59 = vld [vmem:[%s10618_s8 + $0xec] sm:$0x1] }
 0x148   : > { %v2099_v9 = vrot.slane %v2098_v63, 4  ;;  %v2127_v10 = vrot.slane %v2125_v1, 5  ;;  %v2131_v11 = vrot.slane %v2129_v2, 4  ;;  %v2137_v12 = vrot.slane %v2135_v3, 5  ;;  %1078 = vst.msk [vmem:[#allocation3 + $0x50] sm:$0xff] %vm1067_vm7, %v1034_v51 }
 0x149   : > { %1612 = vrot.lane.b32.xlu0 %v10446_v42, %s10537_s9  ;;  %v2108_v13 = vor.u32 %v2107_v5, %v11698_v50  ;;  %v2122_v14 = vor.u32 %v2121_v7, %v2118_v37  ;;  %v9448_v57 = vrot.slane %v9426_v53, 9  ;;  %v2488_v15 = vrot.slane %v9427_v54, 5  ;;  %v3812_v16 = vld [vmem:[#allocation3 + $0x40] sm:$0xff]  ;;  %v9644_v51 = vld [vmem:[%s10618_s8 + $0xe0] sm:$0x1] }
 0x14a   : > { %1411 = vrot.lane.b32.xlu1 %v9251_v48, %s10539_s11  ;;  %v2104_v19 = vsel %vm10649_vm5, %v2099_v9, %v11698_v50  ;;  %v2132_v20 = vor.u32 %v2131_v11, %v2127_v10  ;;  %v2491_v23 = vrot.slane %v9428_v60, 5  ;;  %v9449_v24 = vrot.slane %v9429_v61, 9  ;;  %10157 = vmatprep.mubr.msk.bf16.mxu0 %vm13804_vm0, %v3812_v16  ;;  %v9642_v2 = vld [vmem:[%s10618_s8 + $0xd8] sm:$0xe]  ;;  %v9643_v3 = vld [vmem:[%s10618_s8 + $0xdc] sm:$0xf] }
 0x14b   : > { %v2109_v25 = vrot.slane %v2108_v13, 4  ;;  %v2123_v26 = vrot.slane %v2122_v14, 4  ;;  %v2489_v21 = vsel %vm10611_vm2, %v9448_v57, %v2488_v15  ;;  %v2490_v27 = vrot.slane %v2488_v15, 4  ;;  %v1398_v52 = vpop.permute.xlu0 %1397 }
 0x14c   : > { %v2133_v28 = vrot.slane %v2132_v20, 4  ;;  %v2495_v29 = vrot.slane %v9430_v4, 5  ;;  %v2498_v30 = vrot.slane %v9431_v8, 5  ;;  %v1036_v31 = vpop.permute.xlu1 %1035  ;;  %1442 = vst.msk [vmem:[#allocation3 + $0x50] sm:$0xff] %vm13805_vm8, %v1398_v52  ;;  %v3269_v32 = vshrl.u32 %v9570_v17, 16  ;;  %v10450_v8 = vld [vmem:[%s10618_s8 + $0xd8] sm:$0xff]  }
 0x14d   : > { %v2114_v33 = vsel %vm10649_vm5, %v2109_v25, %v2113_v6  ;;  %v2128_v34 = vsel %vm10649_vm5, %v2123_v26, %v2127_v10  ;;  %v2492_v35 = vsel %vm10611_vm2, %v2490_v27, %v2491_v23  ;;  %1079 = vst.msk [vmem:[#allocation3 + $0x58] sm:$0xff] %vm1067_vm7, %v1036_v31  ;;  %v3272_v38 = vshll.u32 %v9570_v17, 16  ;;  %v3813_v40 = vld [vmem:[#allocation3 + $0x48] sm:$0xff]  ;;  %v9646_v17 = vld [vmem:[%s10618_s8 + $0xe8] sm:$0xf] }
 0x14e   : > { %1614 = vrot.lane.b32.xlu1 %v10447_v18, %s10537_s9  ;;  %v9376_v41 = vcombine.low %v2104_v19, %v2114_v33  ;;  %v2138_v42 = vsel %vm10649_vm5, %v2133_v28, %v2137_v12  ;;  %v9466_v44 = vcombine.low %v2489_v21, %v2492_v35  ;;  %v2496_v45 = vsel %vm10611_vm2, %v9449_v24, %v2495_v29  ;;  %v9645_v12 = vld [vmem:[%s10618_s8 + $0xe4] sm:$0xe]  ;;  %v9647_v24 = vld [vmem:[%s10618_s8 + $0xec] sm:$0x1]  ;;  %s10548_s9 = smov 64  }
 0x14f   : > { %v9377_v47 = vcombine.low %v2128_v34, %v2138_v42  ;;  %v2497_v48 = vrot.slane %v2495_v29, 4  ;;  %v3271_v49 = vrot.slane %v3269_v32, 4  ;;  %v3274_v50 = vrot.slane %v3272_v38, 5  ;;  %v1601_v53 = vpop.permute.xlu0 %1600  ;;  %10158 = vmatmul.mubr.msk.bf16.gmra.mrb[16].mxu0 %vm13804_vm0, %v3813_v40  ;;  %v10451_v25 = vld [vmem:[%s10618_s8 + $0xe4] sm:$0xff]   ;;  %v4160_v38 = vld [vmem:[#allocation2] sm:$0x1] }
 0x150   : > { %2225 = vrot.lane.b32.xlu0 %v9376_v41, %s10541_s13  ;;  %v1400_v54 = vpop.permute.xlu1 %1399  ;;  %v3278_v55 = vshll.u32 %v9571_v22, 16  ;;  %v3282_v56 = vshrl.u32 %v9571_v22, 16  ;;  %v3288_v58 = vshll.u32 %v9572_v36, 16  ;;  %v3293_v60 = vshrl.u32 %v9573_v39, 16  ;;  %1645 = vst.msk [vmem:[#allocation3 + $0x50] sm:$0xff] %vm13806_vm9, %v1601_v53 }
 0x151   : > { %v2499_v61 = vsel %vm10611_vm2, %v2497_v48, %v2498_v30  ;;  %1443 = vst.msk [vmem:[#allocation3 + $0x58] sm:$0xff] %vm13805_vm8, %v1400_v54  ;;  %v3275_v62 = vor.u32 %v3274_v50, %v3271_v49  ;;  %v3296_v63 = vshll.u32 %v9573_v39, 16  ;;  %v3302_v1 = vshll.u32 %v9574_v46, 16  ;;  %v4163_v36 = vld [vmem:[#allocation2 + $0xc] sm:$0x1] }
 0x152   : > { %2227 = vrot.lane.b32.xlu1 %v9377_v47, %s10541_s13  ;;  %v9467_v5 = vcombine.low %v2496_v45, %v2499_v61  ;;  %v3280_v6 = vrot.slane %v3278_v55, 5  ;;  %v3284_v37 = vrot.slane %v3282_v56, 4  ;;  %v3290_v7 = vrot.slane %v3288_v58, 5  ;;  %v4219_v41 = vld [vmem:[#allocation2 + $0x14] sm:$0x1] }
 0x153   : > { %v3276_v4 = vrot.slane %v3275_v62, 4  ;;  %v3295_v9 = vrot.slane %v3293_v60, 4  ;;  %v3298_v10 = vrot.slane %v3296_v63, 5  ;;  %v11749_v11 = vrot.slane %v3302_v1, 5  ;;  %v4216_v42 = vld [vmem:[#allocation2 + $0x8] sm:$0x1] }
 0x154   : > { %2586 = vrot.lane.b32.xlu0 %v9466_v44, %s10538_s10  ;;  %v3285_v13 = vor.u32 %v3284_v37, %v3280_v6  ;;  %v3306_v14 = vshrl.u32 %v9574_v46, 16  ;;  %v3312_v57 = vshll.u32 %v9575_v59, 16  ;;  %v1603_v15 = vpop.permute.xlu1 %1602  ;;  %v9664_v16 = vrot.slane %v9642_v2, 9  ;;  %v4169_v44 = vld [vmem:[#allocation2 + $0x24] sm:$0x1] }
 0x155   : > { %v3281_v18 = vsel %vm10649_vm5, %v3276_v4, %v3280_v6  ;;  %v3299_v19 = vor.u32 %v3298_v10, %v3295_v9  ;;  %1646 = vst.msk [vmem:[#allocation3 + $0x58] sm:$0xff] %vm13806_vm9, %v1603_v15  ;;  %v3665_v20 = vrot.slane %v9643_v3, 5  ;;  %v3668_v23 = vrot.slane %v9644_v51, 5  ;;  %v4166_v49 = vld [vmem:[#allocation2 + $0x18] sm:$0x1] }
 0x156   : > { %2588 = vrot.lane.b32.xlu1 %v9467_v5, %s10538_s10  ;;  %v3286_v26 = vrot.slane %v3285_v13, 4  ;;  %v3308_v21 = vrot.slane %v3306_v14, 4  ;;  %v3314_v27 = vrot.slane %v3312_v57, 5  ;;  %v9665_v52 = vrot.slane %v9645_v12, 9  ;;  %v2214_v28 = vpop.permute.xlu0 %2213  ;;  %v4225_v55 = vld [vmem:[#allocation2 + $0x2c] sm:$0x1] }
 0x157   : > { %v3300_v29 = vrot.slane %v3299_v19, 4  ;;  %v3666_v30 = vsel %vm10611_vm2, %v9664_v16, %v3665_v20  ;;  %v3667_v31 = vrot.slane %v3665_v20, 4  ;;  %v3672_v22 = vrot.slane %v9646_v17, 5  ;;  %2258 = vst.msk [vmem:[#allocation3 + $0x50] sm:$0xff] %vm13807_vm10, %v2214_v28  ;;  %v4222_v56 = vld [vmem:[#allocation2 + $0x20] sm:$0x1] }
 0x158   : > { %2789 = vrot.lane.b32.xlu0 %v10450_v8, %s10542_s14  ;;  %v3291_v32 = vsel %vm10649_vm5, %v3286_v26, %v3290_v7  ;;  %v3309_v33 = vor.u32 %v3308_v21, %v11749_v11  ;;  %v3675_v34 = vrot.slane %v9647_v24, 5  ;;  %v2216_v35 = vpop.permute.xlu1 %2215  ;;  %vm4214_vm6 = vsmask.f32 7938  ;;  %v4175_v9 = vld [vmem:[#allocation2 + $0x3c] sm:$0x1]  ;;  %s10549_s10 = smov 56  }
 0x159   : > { %v9592_v39 = vcombine.low %v3281_v18, %v3291_v32  ;;  %v3669_v40 = vsel %vm10611_vm2, %v3667_v31, %v3668_v23  ;;  %2259 = vst.msk [vmem:[#allocation3 + $0x58] sm:$0xff] %vm13807_vm10, %v2216_v35  ;;  %v3305_v45 = vsel %vm10649_vm5, %v3300_v29, %v11749_v11  ;;  %v3674_v47 = vrot.slane %v3672_v22, 4  ;;  %vm11796_vm15 = vmand %vm13819_vm1, %vm4214_vm6  ;;  %v4172_v14 = vld [vmem:[#allocation2 + $0x30] sm:$0x1]  ;;  %v4231_v15 = vld [vmem:[#allocation2 + $0x44] sm:$0x1] }
 0x15a   : > { %2791 = vrot.lane.b32.xlu1 %v10451_v25, %s10542_s14  ;;  %v3310_v46 = vrot.slane %v3309_v33, 4  ;;  %v2575_v48 = vpop.permute.xlu0 %2574  ;;  %v9682_v50 = vcombine.low %v3666_v30, %v3669_v40  ;;  %v3673_v53 = vsel %vm10611_vm2, %v9665_v52, %v3672_v22  ;;  %v4164_v61 = vsel %vm11780_vm4, 0, %v4163_v36  ;;  %v4228_v17 = vld [vmem:[#allocation2 + $0x38] sm:$0x1]  ;;  %v4181_v22 = vld [vmem:[#allocation2 + $0x54] sm:$0x1] }
 0x15b   : > { %2619 = vst.msk [vmem:[#allocation3 + $0x50] sm:$0xff] %vm2608_vm11, %v2575_v48  ;;  %v3676_v59 = vsel %vm10611_vm2, %v3674_v47, %v3675_v34  ;;  %v4161_v62 = vsel %vm11780_vm4, 0, %v4160_v38  ;;  %4165 = vst [vmem:[#allocation2 + $0xc] sm:$0x1] %v4164_v61  ;;  %v4170_v2 = vsel %vm11780_vm4, 0, %v4169_v44  ;;  %v4167_v3 = vsel %vm11780_vm4, 0, %v4166_v49 }
 0x15c   : > { %3402 = vrot.lane.b32.xlu0 %v9592_v39, %s10543_s15  ;;  %v3315_v58 = vsel %vm10649_vm5, %v3310_v46, %v3314_v27  ;;  %v2577_v60 = vpop.permute.xlu1 %2576  ;;  %4162 = vst [vmem:[#allocation2] sm:$0x1] %v4161_v62  ;;  %v4220_v6 = vsel %vm11796_vm15, 0, %v4219_v41  ;;  %v4217_v37 = vsel %vm11796_vm15, 0, %v4216_v42  ;;  %4171 = vst [vmem:[#allocation2 + $0x24] sm:$0x1] %v4170_v2  ;;  %v9683_v4 = vcombine.low %v3673_v53, %v3676_v59 }
 0x15d   : > { %v9593_v63 = vcombine.low %v3305_v45, %v3315_v58  ;;  %2620 = vst.msk [vmem:[#allocation3 + $0x58] sm:$0xff] %vm2608_vm11, %v2577_v60  ;;  %4168 = vst [vmem:[#allocation2 + $0x18] sm:$0x1] %v4167_v3  ;;  %v4226_v7 = vsel %vm11796_vm15, 0, %v4225_v55  ;;  %v4223_v51 = vsel %vm11796_vm15, 0, %v4222_v56  ;;  %v4176_v11 = vsel %vm11780_vm4, 0, %v4175_v9 }
 0x15e   : > { %v2778_v5 = vpop.permute.xlu0 %2777  ;;  %4221 = vst [vmem:[#allocation2 + $0x14] sm:$0x1] %v4220_v6  ;;  %4218 = vst [vmem:[#allocation2 + $0x8] sm:$0x1] %v4217_v37  ;;  %v4173_v57 = vsel %vm11780_vm4, 0, %v4172_v14  ;;  %v4232_v16 = vsel %vm11796_vm15, 0, %v4231_v15 }
 0x15f   : > { %3404 = vrot.lane.b32.xlu1 %v9593_v63, %s10543_s15  ;;  %2822 = vst.msk [vmem:[#allocation3 + $0x50] sm:$0xff] %vm2811_vm12, %v2778_v5  ;;  %4227 = vst [vmem:[#allocation2 + $0x2c] sm:$0x1] %v4226_v7  ;;  %v4229_v19 = vsel %vm11796_vm15, 0, %v4228_v17  ;;  %v4182_v32 = vsel %vm11780_vm4, 0, %v4181_v22 }
 0x160   : > { %4224 = vst [vmem:[#allocation2 + $0x20] sm:$0x1] %v4223_v51  ;;  %3763 = vrot.lane.b32.xlu0 %v9682_v50, %s10544_s16  ;;  %v2780_v10 = vpop.permute.xlu1 %2779  ;;  %4177 = vst [vmem:[#allocation2 + $0x3c] sm:$0x1] %v4176_v11  ;;  %v4178_v39 = vld [vmem:[#allocation2 + $0x48] sm:$0x1] }
 0x161   : > { %2823 = vst.msk [vmem:[#allocation3 + $0x58] sm:$0xff] %vm2811_vm12, %v2780_v10  ;;  %4174 = vst [vmem:[#allocation2 + $0x30] sm:$0x1] %v4173_v57  ;;  %v4179_v40 = vsel %vm11780_vm4, 0, %v4178_v39  ;;  %v4237_v41 = vld [vmem:[#allocation2 + $0x5c] sm:$0x1] }
 0x162   : > { %v3391_v12 = vpop.permute.xlu0 %3390  ;;  %4233 = vst [vmem:[#allocation2 + $0x44] sm:$0x1] %v4232_v16  ;;  %4230 = vst [vmem:[#allocation2 + $0x38] sm:$0x1] %v4229_v19  ;;  %v4238_v42 = vsel %vm11796_vm15, 0, %v4237_v41 }
 0x163   : > { %3765 = vrot.lane.b32.xlu1 %v9683_v4, %s10544_s16  ;;  %3435 = vst.msk [vmem:[#allocation3 + $0x50] sm:$0xff] %vm3424_vm13, %v3391_v12  ;;  %4183 = vst [vmem:[#allocation2 + $0x54] sm:$0x1] %v4182_v32  ;;  %v4234_v44 = vld [vmem:[#allocation2 + $0x50] sm:$0x1] }
 0x164   : > { %4180 = vst [vmem:[#allocation2 + $0x48] sm:$0x1] %v4179_v40  ;;  %4239 = vst [vmem:[#allocation2 + $0x5c] sm:$0x1] %v4238_v42  ;;  %v4235_v46 = vsel %vm11796_vm15, 0, %v4234_v44 }
 0x165   : > { %v3393_v8 = vpop.permute.xlu1 %3392  ;;  %4236 = vst [vmem:[#allocation2 + $0x50] sm:$0x1] %v4235_v46  ;;  %v11860_v50 = vld [vmem:[%s13796_s2] ss:$0 sm:$0xff]  ;;  %v4747_v42 = vld [vmem:[#allocation2 + $0x8] sm:$0x1] }
 0x166   : > { %3436 = vst.msk [vmem:[#allocation3 + $0x58] sm:$0xff] %vm3424_vm13, %v3393_v8  ;;  %v3752_v13 = vpop.permute.xlu0 %3751 }
 0x167   : > { %3796 = vst.msk [vmem:[#allocation3 + $0x50] sm:$0xff] %vm3785_vm14, %v3752_v13 }
 0x16a   : > { %v3754_v18 = vpop.permute.xlu0 %3753 }
 0x16b   : > { %v1038_v20 = vpop.permute.xlu1 %1037  ;;  %3797 = vst.msk [vmem:[#allocation3 + $0x58] sm:$0xff] %vm3785_vm14, %v3754_v18 }
 0x16c   : > { %1080 = vst.msk [vmem:[#allocation3 + $0x60] sm:$0xff] %vm1067_vm7, %v1038_v20 }
 0x16e   : > { %v3814_v23 = vld [vmem:[#allocation3 + $0x50] sm:$0xff] }
 0x16f   : > { %v1402_v24 = vpop.permute.xlu0 %1401  ;;  %10161 = vmatprep.mubr.msk.bf16.mxu0 %vm13804_vm0, %v3814_v23 }
 0x170   : > { %v1040_v25 = vpop.permute.xlu1 %1039  ;;  %1444 = vst.msk [vmem:[#allocation3 + $0x60] sm:$0xff] %vm13805_vm8, %v1402_v24 }
 0x171   : > { %1081 = vst.msk [vmem:[#allocation3 + $0x68] sm:$0xff] %vm1067_vm7, %v1040_v25  ;;  %v4750_v25 = vld [vmem:[#allocation2 + $0xc] sm:$0xf] }
 0x172   : > { %v3815_v26 = vld [vmem:[#allocation3 + $0x58] sm:$0xff] }
 0x173   : > { %v1605_v21 = vpop.permute.xlu0 %1604  ;;  %10162 = vmatmul.mubr.msk.bf16.gmra.mrb[20].mxu0 %vm13804_vm0, %v3815_v26 }
 0x174   : > { %v1404_v27 = vpop.permute.xlu1 %1403  ;;  %1647 = vst.msk [vmem:[#allocation3 + $0x60] sm:$0xff] %vm13806_vm9, %v1605_v21 }
 0x175   : > { %1445 = vst.msk [vmem:[#allocation3 + $0x68] sm:$0xff] %vm13805_vm8, %v1404_v27 }
 0x178   : > { %v1607_v52 = vpop.permute.xlu1 %1606 }
 0x179   : > { %1648 = vst.msk [vmem:[#allocation3 + $0x68] sm:$0xff] %vm13806_vm9, %v1607_v52 }
 0x17a   : > { %v2218_v28 = vpop.permute.xlu0 %2217 }
 0x17b   : > { %2260 = vst.msk [vmem:[#allocation3 + $0x60] sm:$0xff] %vm13807_vm10, %v2218_v28 }
 0x17c   : > { %v2220_v29 = vpop.permute.xlu1 %2219 }
 0x17d   : > { %2261 = vst.msk [vmem:[#allocation3 + $0x68] sm:$0xff] %vm13807_vm10, %v2220_v29  ;;  %v4742_v29 = vld [vmem:[#allocation2] sm:$0xf] }
 0x17e   : > { %v2579_v30 = vpop.permute.xlu0 %2578 }
 0x17f   : > { %2621 = vst.msk [vmem:[#allocation3 + $0x60] sm:$0xff] %vm2608_vm11, %v2579_v30 }
 0x180   : > { %v2581_v31 = vpop.permute.xlu1 %2580 }
 0x181   : > { %2622 = vst.msk [vmem:[#allocation3 + $0x68] sm:$0xff] %vm2608_vm11, %v2581_v31 }
 0x182   : > { %v2782_v33 = vpop.permute.xlu0 %2781 }
 0x183   : > { %2824 = vst.msk [vmem:[#allocation3 + $0x60] sm:$0xff] %vm2811_vm12, %v2782_v33  ;;  %v4754_v33 = vld [vmem:[#allocation2 + $0x14] sm:$0x1] }
 0x184   : > { %v2784_v34 = vpop.permute.xlu1 %2783 }
 0x185   : > { %2825 = vst.msk [vmem:[#allocation3 + $0x68] sm:$0xff] %vm2811_vm12, %v2784_v34 }
 0x186   : > { %v3395_v35 = vpop.permute.xlu0 %3394 }
 0x187   : > { %3437 = vst.msk [vmem:[#allocation3 + $0x60] sm:$0xff] %vm3424_vm13, %v3395_v35 }
 0x189   : > { %v3397_v36 = vpop.permute.xlu1 %3396 }
 0x18a   : > { %3438 = vst.msk [vmem:[#allocation3 + $0x68] sm:$0xff] %vm3424_vm13, %v3397_v36  ;;  %v3756_v38 = vpop.permute.xlu0 %3755 }
 0x18b   : > { %3798 = vst.msk [vmem:[#allocation3 + $0x60] sm:$0xff] %vm3785_vm14, %v3756_v38 }
 0x18e   : > { %v3758_v45 = vpop.permute.xlu0 %3757 }
 0x18f   : > { %v1042_v47 = vpop.permute.xlu1 %1041  ;;  %3799 = vst.msk [vmem:[#allocation3 + $0x68] sm:$0xff] %vm3785_vm14, %v3758_v45 }
 0x190   : > { %1082 = vst.msk [vmem:[#allocation3 + $0x70] sm:$0xff] %vm1067_vm7, %v1042_v47 }
 0x192   : > { %v3816_v48 = vld [vmem:[#allocation3 + $0x60] sm:$0xff] }
 0x193   : > { %v1406_v49 = vpop.permute.xlu0 %1405  ;;  %10165 = vmatprep.mubr.msk.bf16.mxu0 %vm13804_vm0, %v3816_v48 }
 0x194   : > { %v1044_v53 = vpop.permute.xlu1 %1043  ;;  %1446 = vst.msk [vmem:[#allocation3 + $0x70] sm:$0xff] %vm13805_vm8, %v1406_v49 }
 0x195   : > { %1083 = vst.msk [vmem:[#allocation3 + $0x78] sm:$0xff] %vm1067_vm7, %v1044_v53 }
 0x196   : > { %v10143_v55 = vpop.f32.mrb[0].mxu0  ;;  %v3817_v56 = vld [vmem:[#allocation3 + $0x68] sm:$0xff] }
 0x197   : > { %v3951_v58 = vadd.f32 %v10143_v55, %v11860_v50  ;;  %v3942_v59 = vpop.f32.mrb[1].mxu0  ;;  %v1609_v60 = vpop.permute.xlu0 %1608  ;;  %10166 = vmatmul.mubr.msk.bf16.gmra.mrb[24].mxu0 %vm13804_vm0, %v3817_v56  ;;  %vm4740_vm0 = vcmask 60416   ;;  %v13808_v55 = vmov 0  }
 0x198   : > { %v3943_v61 = vadd.f32 %v11860_v50, %v3942_v59  ;;  %v10144_v62 = vpop.f32.mrb[2].mxu0  ;;  %v1408_v63 = vpop.permute.xlu1 %1407  ;;  %1649 = vst.msk [vmem:[#allocation3 + $0x70] sm:$0xff] %vm13806_vm9, %v1609_v60  ;;  %v4187_v59 = vld [vmem:[#allocation2 + $0x6c] sm:$0x1] }
 0x199   : > { %v4087_v2 = vmul.f32 0.2, %v3951_v58  ;;  %v3954_v3 = vadd.f32 %v10144_v62, %v11860_v50  ;;  %v3945_v5 = vpop.f32.mrb[3].mxu0  ;;  %1447 = vst.msk [vmem:[#allocation3 + $0x78] sm:$0xff] %vm13805_vm8, %v1408_v63  ;;  %vm4378_vm8 = vsmask.f32 4368 }
 0x19a   : > { %v4085_v6 = vmul.f32 0.2, %v3943_v61  ;;  %v3946_v37 = vadd.f32 %v11860_v50, %v3945_v5 }
 0x19b   : > { %v4123_v7 = vmax.f32 %v3951_v58, %v4087_v2  ;;  %v4088_v51 = vmul.f32 0.2, %v3954_v3 }
 0x19c   : > { %v4121_v4 = vmax.f32 %v3943_v61, %v4085_v6  ;;  %v4086_v9 = vmul.f32 0.2, %v3946_v37  ;;  %v1611_v10 = vpop.permute.xlu1 %1610  ;;  %v4188_v61 = vsel %vm11780_vm4, 0, %v4187_v59 }
 0x19d   : > { %v10042_v11 = vpack.c.bf16 %v4123_v7, %v4123_v7  ;;  %v4124_v12 = vmax.f32 %v3954_v3, %v4088_v51  ;;  %1650 = vst.msk [vmem:[#allocation3 + $0x78] sm:$0xff] %vm13806_vm9, %v1611_v10  ;;  %vm11876_vm9 = vmand %vm4740_vm0, %vm4214_vm6  ;;  %vm5009_vm6 = vcmask 64512  }
 0x19e   : > { %v10040_v8 = vpack.c.bf16 %v4121_v4, %v4121_v4  ;;  %v4122_v13 = vmax.f32 %v3946_v37, %v4086_v9  ;;  %v2222_v14 = vpop.permute.xlu0 %2221  ;;  %4189 = vst [vmem:[#allocation2 + $0x6c] sm:$0x1] %v4188_v61 }
 0x19f   : > { %v4398_v57 = vshrl.u32 %v10042_v11, 16  ;;  %v10043_v15 = vpack.c.bf16 %v4124_v12, %v4124_v12  ;;  %2262 = vst.msk [vmem:[#allocation3 + $0x70] sm:$0xff] %vm13807_vm10, %v2222_v14  ;;  %v4401_v20 = vshll.u32 %v10042_v11, 16 }
 0x1a0   : > { %v4381_v16 = vshrl.u32 %v10040_v8, 16  ;;  %v10041_v17 = vpack.c.bf16 %v4122_v13, %v4122_v13  ;;  %v2224_v18 = vpop.permute.xlu1 %2223  ;;  %v4384_v21 = vshll.u32 %v10040_v8, 16 }
 0x1a1   : > { %v4400_v19 = vrot.slane %v4398_v57, 7  ;;  %v4406_v23 = vshrl.u32 %v10043_v15, 16  ;;  %2263 = vst.msk [vmem:[#allocation3 + $0x78] sm:$0xff] %vm13807_vm10, %v2224_v18  ;;  %v4409_v31 = vshll.u32 %v10043_v15, 16  ;;  %vm11883_vm10 = vmor %vm4158_vm3, %vm4378_vm8  ;;  %vm13832_vm8 = vcmask 293888  }
 0x1a2   : > { %v4383_v26 = vrot.slane %v4381_v16, 7  ;;  %v4389_v27 = vshrl.u32 %v10041_v17, 16  ;;  %v2583_v52 = vpop.permute.xlu0 %2582  ;;  %v4392_v35 = vshll.u32 %v10041_v17, 16  ;;  %vm13833_vm3 = vcmask 97344  }
 0x1a3   : > { %v4403_v28 = vor.u32 %v4401_v20, %v4400_v19  ;;  %v4408_v30 = vrot.slane %v4406_v23, 7  ;;  %2623 = vst.msk [vmem:[#allocation3 + $0x70] sm:$0xff] %vm2608_vm11, %v2583_v52  ;;  %v4404_v38 = vrot.slane %v4400_v19, 4 }
 0x1a4   : > { %v4386_v22 = vor.u32 %v4384_v21, %v4383_v26  ;;  %v4391_v34 = vrot.slane %v4389_v27, 7  ;;  %v2585_v36 = vpop.permute.xlu1 %2584  ;;  %v4387_v44 = vrot.slane %v4383_v26, 4 }
 0x1a5   : > { %v4751_v39 = vsel %vm11876_vm9, %v4403_v28, %v4750_v25  ;;  %v4411_v40 = vor.u32 %v4409_v31, %v4408_v30  ;;  %v4413_v41 = vrot.slane %v4408_v30, 4  ;;  %2624 = vst.msk [vmem:[#allocation3 + $0x78] sm:$0xff] %vm2608_vm11, %v2585_v36 }
 0x1a6   : > { %4752 = vst [vmem:[#allocation2 + $0xc] sm:$0xf] %v4751_v39  ;;  %v4743_v45 = vsel %vm11876_vm9, %v4386_v22, %v4742_v29  ;;  %v4394_v46 = vor.u32 %v4392_v35, %v4391_v34  ;;  %v4396_v47 = vrot.slane %v4391_v34, 4  ;;  %v2786_v48 = vpop.permute.xlu0 %2785 }
 0x1a7   : > { %4744 = vst [vmem:[#allocation2] sm:$0xf] %v4743_v45  ;;  %v4412_v49 = vsel %vm11883_vm10, %v4404_v38, %v4411_v40  ;;  %v4755_v53 = vsel %vm11780_vm4, %v4413_v41, %v4754_v33  ;;  %2826 = vst.msk [vmem:[#allocation3 + $0x70] sm:$0xff] %vm2811_vm12, %v2786_v48 }
 0x1a8   : > { %4873 = vst.msk [vmem:[#allocation2] sm:$0xf] %vm4740_vm0, %v13808_v55  ;;  %4753 = vst.msk [vmem:[#allocation2 + $0x10] sm:$0xf] %vm4740_vm0, %v4412_v49  ;;  %v4395_v56 = vsel %vm11883_vm10, %v4387_v44, %v4394_v46  ;;  %v4748_v58 = vsel %vm11780_vm4, %v4396_v47, %v4747_v42  ;;  %v2788_v60 = vpop.permute.xlu1 %2787 }
 0x1a9   : > { %4756 = vst [vmem:[#allocation2 + $0x14] sm:$0x1] %v4755_v53  ;;  %4746 = vst.msk [vmem:[#allocation2 + $0x4] sm:$0xf] %vm4740_vm0, %v4395_v56 }
 0x1aa   : > { %4749 = vst [vmem:[#allocation2 + $0x8] sm:$0x1] %v4748_v58  ;;  %2827 = vst.msk [vmem:[#allocation3 + $0x78] sm:$0xff] %vm2811_vm12, %v2788_v60  ;;  %v3399_v62 = vpop.permute.xlu0 %3398 }
 0x1ab   : > { %4874 = vst.msk [vmem:[#allocation2 + $0x4] sm:$0xf] %vm4740_vm0, %v13808_v55 }
 0x1ac   : > { %4876 = vst.msk [vmem:[#allocation2 + $0x8] sm:$0x1] %vm13819_vm1, %v13808_v55  ;;  %vm8039_vm1 = vcmask 588800  }
 0x1ad   : > { %3439 = vst.msk [vmem:[#allocation3 + $0x70] sm:$0xff] %vm3424_vm13, %v3399_v62  ;;  %v6615_v63 = vld [vmem:[#allocation2 + $0xc] sm:$0xe]  ;;  %v3401_v3 = vpop.permute.xlu1 %3400 }
 0x1ae   : > { %v5574_v2 = vld [vmem:[#allocation2 + $0xc] sm:$0xe]  ;;  %v9838_v5 = vrot.slane %v6615_v63, 9  ;;  %3440 = vst.msk [vmem:[#allocation3 + $0x78] sm:$0xff] %vm3424_vm13, %v3401_v3  ;;  %v3760_v37 = vpop.permute.xlu0 %3759 }
 0x1af   : > { %v5029_v6 = vld [vmem:[#allocation2 + $0xc] sm:$0xf]  ;;  %v6616_v51 = vld [vmem:[#allocation2 + $0x10] sm:$0xf]  ;;  %v9775_v4 = vrot.slane %v5574_v2, 9  ;;  %3800 = vst.msk [vmem:[#allocation3 + $0x70] sm:$0xff] %vm3785_vm14, %v3760_v37 }
 0x1b0   : > { %v10458_v7 = vld [vmem:[#allocation2 + $0xc] sm:$0xff]   ;;  %v6617_v9 = vld [vmem:[#allocation2 + $0x14] sm:$0x1]  ;;  %v6713_v10 = vrot.slane %v6616_v51, 5  ;;  %v5099_v12 = vshrl.u32 %v5029_v6, 16  ;;  %v5102_v57 = vshll.u32 %v5029_v6, 16 }
 0x1b1   : > { %v5575_v11 = vld [vmem:[#allocation2 + $0x10] sm:$0xf]  ;;  %6005 = vrot.lane.b32.xlu0 %v10458_v7, %s10542_s14  ;;  %v5576_v8 = vld [vmem:[#allocation2 + $0x14] sm:$0x1]  ;;  %v5571_v14 = vld [vmem:[#allocation2] sm:$0xe] }
 0x1b2   : > { %v5676_v13 = vrot.slane %v5575_v11, 5  ;;  %v6714_v15 = vsel %vm10611_vm2, %v9838_v5, %v6713_v10  ;;  %v6715_v16 = vrot.slane %v6713_v10, 4  ;;  %v6716_v17 = vrot.slane %v6617_v9, 5  ;;  %v5572_v18 = vld [vmem:[#allocation2 + $0x4] sm:$0xf]  ;;  %v3762_v20 = vpop.permute.xlu0 %3761  ;;  %v10465_v27 = vld [vmem:[#allocation2 + $0xc] sm:$0xff]  }
 0x1b3   : > { %v5573_v19 = vld [vmem:[#allocation2 + $0x8] sm:$0x1]  ;;  %v5679_v25 = vrot.slane %v5576_v8, 5  ;;  %v9774_v26 = vrot.slane %v5571_v14, 9  ;;  %v5669_v21 = vrot.slane %v5572_v18, 5  ;;  %v1046_v52 = vpop.permute.xlu1 %1045  ;;  %3801 = vst.msk [vmem:[#allocation3 + $0x78] sm:$0xff] %vm3785_vm14, %v3762_v20 }
 0x1b4   : > { %v5678_v23 = vrot.slane %v5676_v13, 4  ;;  %v6717_v29 = vsel %vm10611_vm2, %v6715_v16, %v6716_v17  ;;  %v5677_v30 = vsel %vm10611_vm2, %v9775_v4, %v5676_v13  ;;  %v5672_v31 = vrot.slane %v5573_v19, 5  ;;  %v5030_v22 = vld [vmem:[#allocation2 + $0x10] sm:$0xf]  ;;  %1084 = vst.msk [vmem:[#allocation3 + $0x80] sm:$0xff] %vm1067_vm7, %v1046_v52 }
 0x1b5   : > { %v10147_v28 = vpop.f32.mrb[4].mxu0  ;;  %v5101_v33 = vrot.slane %v5099_v12, 4  ;;  %v9854_v35 = vcombine.low %v6714_v15, %v6717_v29  ;;  %v5104_v39 = vrot.slane %v5102_v57, 5  ;;  %5011 = vst.msk [vmem:[#allocation4 + $0x8] sm:$0xff] %vm5009_vm6, %v10465_v27  ;;  %v5670_v44 = vsel %vm10611_vm2, %v9774_v26, %v5669_v21  ;;  %v6070_v62 = vld [vmem:[#allocation2 + $0xc] sm:$0xf] }
 0x1b6   : > { %v3967_v34 = vadd.f32 %v10147_v28, %v11860_v50  ;;  %v5680_v36 = vsel %vm10611_vm2, %v5678_v23, %v5679_v25  ;;  %v3958_v38 = vpop.f32.mrb[5].mxu0  ;;  %v5671_v45 = vrot.slane %v5669_v21, 4  ;;  %v3818_v46 = vld [vmem:[#allocation3 + $0x70] sm:$0xff]  ;;  %v5108_v53 = vshll.u32 %v5030_v22, 16  ;;  %v11940_v51 = vld [vmem:[#allocation2 + $0x14] sm:$0x1] }
 0x1b7   : > { %v9791_v40 = vcombine.low %v5677_v30, %v5680_v36  ;;  %v3959_v41 = vadd.f32 %v11860_v50, %v3958_v38  ;;  %v10148_v42 = vpop.f32.mrb[6].mxu0  ;;  %6871 = vrot.lane.b32.xlu0 %v9854_v35, %s10546_s29  ;;  %v5112_v56 = vshrl.u32 %v5030_v22, 16  ;;  %v1410_v58 = vpop.permute.xlu0 %1409  ;;  %10169 = vmatprep.mubr.msk.bf16.mxu0 %vm13832_vm8, %v3818_v46  ;;  %v5105_v6 = vor.u32 %v5104_v39, %v5101_v33  ;;  %v4764_v27 = vld [vmem:[#allocation2 + $0x24] sm:$0xf]  ;;  %v4757_v39 = vld [vmem:[#allocation2 + $0x18] sm:$0xf] }
 0x1b8   : > { %v4091_v47 = vmul.f32 0.2, %v3967_v34  ;;  %v3970_v48 = vadd.f32 %v10148_v42, %v11860_v50  ;;  %v3961_v49 = vpop.f32.mrb[7].mxu0  ;;  %v5673_v61 = vsel %vm10611_vm2, %v5671_v45, %v5672_v31  ;;  %v1048_v63 = vpop.permute.xlu1 %1047  ;;  %1448 = vst.msk [vmem:[#allocation3 + $0x80] sm:$0xff] %vm13833_vm3, %v1410_v58  ;;  %v11942_v4 = vrot.slane %v5108_v53, 5 }
 0x1b9   : > { %5829 = vrot.lane.b32.xlu1 %v9791_v40, %s10541_s13  ;;  %v4089_v59 = vmul.f32 0.2, %v3959_v41  ;;  %v3962_v60 = vadd.f32 %v11860_v50, %v3961_v49  ;;  %v9790_v5 = vcombine.low %v5670_v44, %v5673_v61  ;;  %1085 = vst.msk [vmem:[#allocation3 + $0x88] sm:$0xff] %vm1067_vm7, %v1048_v63  ;;  %v11944_v9 = vrot.slane %v5112_v56, 4  ;;  %v4768_v45 = vld [vmem:[#allocation2 + $0x2c] sm:$0x1] }
 0x1ba   : > { %v4127_v2 = vmax.f32 %v3967_v34, %v4091_v47  ;;  %v4092_v3 = vmul.f32 0.2, %v3970_v48  ;;  %v3819_v10 = vld [vmem:[#allocation3 + $0x78] sm:$0xff]  ;;  %v6119_v8 = vshrl.u32 %v6070_v62, 16  ;;  %vm13834_vm7 = vcmask 130144  }
 0x1bb   : > { %v4125_v37 = vmax.f32 %v3959_v41, %v4089_v59  ;;  %v4090_v7 = vmul.f32 0.2, %v3962_v60  ;;  %5827 = vrot.lane.b32.xlu0 %v9790_v5, %s10541_s13  ;;  %v1613_v13 = vpop.permute.xlu0 %1612  ;;  %10170 = vmatmul.mubr.msk.bf16.gmra.mrb[28].mxu0 %vm13832_vm8, %v3819_v10  ;;  %v11949_v18 = vrot.slane %v5105_v6, 4  ;;  %v5118_v19 = vshll.u32 %v11940_v51, 16  ;;  %v6071_v34 = vld [vmem:[#allocation2 + $0x10] sm:$0xf]  ;;  %vm13835_vm8 = vmmov %vm13834_vm7 }
 0x1bc   : > { %v10046_v11 = vpack.c.bf16 %v4127_v2, %v4127_v2  ;;  %v4128_v12 = vmax.f32 %v3970_v48, %v4092_v3  ;;  %v1412_v15 = vpop.permute.xlu1 %1411  ;;  %1651 = vst.msk [vmem:[#allocation3 + $0x80] sm:$0xff] %vm13834_vm7, %v1613_v13  ;;  %v5115_v26 = vor.u32 %v11944_v9, %v11942_v4  ;;  %v6121_v28 = vrot.slane %v6119_v8, 4  ;;  %v4761_v58 = vld [vmem:[#allocation2 + $0x20] sm:$0x1]  ;;  %v5027_v3 = vld [vmem:[#allocation2 + $0x4] sm:$0xf] }
 0x1bd   : > { %v10044_v14 = vpack.c.bf16 %v4125_v37, %v4125_v37  ;;  %v4126_v57 = vmax.f32 %v3962_v60, %v4090_v7  ;;  %1449 = vst.msk [vmem:[#allocation3 + $0x88] sm:$0xff] %vm13833_vm3, %v1412_v15  ;;  %v6122_v29 = vshll.u32 %v6070_v62, 16  ;;  %v6128_v59 = vshll.u32 %v6071_v34, 16  ;;  %v5026_v2 = vld [vmem:[#allocation2] sm:$0xf] }
 0x1be   : > { %v4432_v16 = vshrl.u32 %v10046_v11, 16  ;;  %v10047_v17 = vpack.c.bf16 %v4128_v12, %v4128_v12  ;;  %v4435_v20 = vshll.u32 %v10046_v11, 16  ;;  %vm13836_vm7 = vcmask 162944   ;;  %v6072_v7 = vld [vmem:[#allocation2 + $0x14] sm:$0x1] }
 0x1bf   : > { %v4415_v23 = vshrl.u32 %v10044_v14, 16  ;;  %v10045_v25 = vpack.c.bf16 %v4126_v57, %v4126_v57  ;;  %v4418_v31 = vshll.u32 %v10044_v14, 16  ;;  %v6124_v47 = vrot.slane %v6122_v29, 5  ;;  %v5028_v10 = vld [vmem:[#allocation2 + $0x8] sm:$0x1]  ;;  %vm13837_vm3 = vmmov %vm13836_vm7 }
 0x1c0   : > { %v4434_v21 = vrot.slane %v4432_v16, 7  ;;  %v4440_v52 = vshrl.u32 %v10047_v17, 16  ;;  %v4443_v22 = vshll.u32 %v10047_v17, 16  ;;  %v1615_v35 = vpop.permute.xlu1 %1614  ;;  %v11965_v51 = vrot.slane %v6128_v59, 5  ;;  %v4184_v14 = vld [vmem:[#allocation2 + $0x60] sm:$0x1] }
 0x1c1   : > { %v4417_v30 = vrot.slane %v4415_v23, 7  ;;  %v4423_v33 = vshrl.u32 %v10045_v25, 16  ;;  %v4426_v41 = vshll.u32 %v10045_v25, 16  ;;  %1652 = vst.msk [vmem:[#allocation3 + $0x88] sm:$0xff] %vm13835_vm8, %v1615_v35  ;;  %v6125_v63 = vor.u32 %v6124_v47, %v6121_v28  ;;  %v4243_v23 = vld [vmem:[#allocation2 + $0x74] sm:$0x1] }
 0x1c2   : > { %v4437_v36 = vor.u32 %v4435_v20, %v4434_v21  ;;  %v4438_v38 = vrot.slane %v4434_v21, 4  ;;  %v4442_v40 = vrot.slane %v4440_v52, 7  ;;  %v2226_v48 = vpop.permute.xlu0 %2225  ;;  %v6132_v9 = vshrl.u32 %v6071_v34, 16  ;;  %v4240_v28 = vld [vmem:[#allocation2 + $0x68] sm:$0x1] }
 0x1c3   : > { %v4420_v42 = vor.u32 %v4418_v31, %v4417_v30  ;;  %v4421_v44 = vrot.slane %v4417_v30, 4  ;;  %v4425_v46 = vrot.slane %v4423_v33, 7  ;;  %2264 = vst.msk [vmem:[#allocation3 + $0x80] sm:$0xff] %vm13836_vm7, %v2226_v48  ;;  %v5116_v8 = vrot.slane %v5115_v26, 4 }
 0x1c4   : > { %v4765_v49 = vsel %vm11876_vm9, %v4437_v36, %v4764_v27  ;;  %v4445_v53 = vor.u32 %v4443_v22, %v4442_v40  ;;  %v4447_v56 = vrot.slane %v4442_v40, 4  ;;  %v2228_v5 = vpop.permute.xlu1 %2227  ;;  %v5120_v13 = vrot.slane %v5118_v19, 5 }
 0x1c5   : > { %4766 = vst [vmem:[#allocation2 + $0x24] sm:$0xf] %v4765_v49  ;;  %v4758_v60 = vsel %vm11876_vm9, %v4420_v42, %v4757_v39  ;;  %v4428_v61 = vor.u32 %v4426_v41, %v4425_v46  ;;  %v4430_v62 = vrot.slane %v4425_v46, 4  ;;  %2265 = vst.msk [vmem:[#allocation3 + $0x88] sm:$0xff] %vm13837_vm3, %v2228_v5  ;;  %v6134_v15 = vrot.slane %v6132_v9, 4 }
 0x1c6   : > { %4759 = vst [vmem:[#allocation2 + $0x18] sm:$0xf] %v4758_v60  ;;  %v4446_v6 = vsel %vm11883_vm10, %v4438_v38, %v4445_v53  ;;  %v4769_v37 = vsel %vm11780_vm4, %v4447_v56, %v4768_v45  ;;  %v2587_v57 = vpop.permute.xlu0 %2586  ;;  %v5075_v16 = vshrl.u32 %v5026_v2, 16  ;;  %v5078_v17 = vshll.u32 %v5026_v2, 16 }
 0x1c7   : > { %4767 = vst.msk [vmem:[#allocation2 + $0x28] sm:$0xf] %vm4740_vm0, %v4446_v6  ;;  %4770 = vst [vmem:[#allocation2 + $0x2c] sm:$0x1] %v4769_v37  ;;  %v4429_v11 = vsel %vm11883_vm10, %v4421_v44, %v4428_v61  ;;  %v4762_v12 = vsel %vm11780_vm4, %v4430_v62, %v4761_v58  ;;  %v5084_v20 = vshll.u32 %v5027_v3, 16  ;;  %v6126_v25 = vrot.slane %v6125_v63, 4 }
 0x1c8   : > { %4760 = vst.msk [vmem:[#allocation2 + $0x1c] sm:$0xf] %vm4740_vm0, %v4429_v11  ;;  %4763 = vst [vmem:[#allocation2 + $0x20] sm:$0x1] %v4762_v12  ;;  %v6138_v21 = vshll.u32 %v6072_v7, 16  ;;  %v5088_v27 = vshrl.u32 %v5027_v3, 16  ;;  %v2589_v29 = vpop.permute.xlu1 %2588  ;;  %v6135_v19 = vor.u32 %v6134_v15, %v11965_v51  ;;  %v5121_v48 = vsel %vm10649_vm5, %v5116_v8, %v5120_v13 }
 0x1c9   : > { %2625 = vst.msk [vmem:[#allocation3 + $0x80] sm:$0xff] %vm2608_vm11, %v2587_v57  ;;  %v5094_v52 = vshll.u32 %v5028_v10, 16  ;;  %v5077_v26 = vrot.slane %v5075_v16, 4  ;;  %v5080_v30 = vrot.slane %v5078_v17, 5  ;;  %v5086_v31 = vrot.slane %v5084_v20, 5  ;;  %2626 = vst.msk [vmem:[#allocation3 + $0x88] sm:$0xff] %vm2608_vm11, %v2589_v29 }
 0x1ca   : > { %v5090_v22 = vrot.slane %v5088_v27, 4  ;;  %v4185_v34 = vsel %vm11780_vm4, 0, %v4184_v14  ;;  %v4244_v35 = vsel %vm11796_vm15, 0, %v4243_v23  ;;  %v2790_v36 = vpop.permute.xlu0 %2789  ;;  %v6136_v38 = vrot.slane %v6135_v19, 4 }
 0x1cb   : > { %v5096_v33 = vrot.slane %v5094_v52, 5  ;;  %v5081_v39 = vor.u32 %v5080_v30, %v5077_v26  ;;  %4186 = vst [vmem:[#allocation2 + $0x60] sm:$0x1] %v4185_v34  ;;  %4245 = vst [vmem:[#allocation2 + $0x74] sm:$0x1] %v4244_v35  ;;  %v4241_v40 = vsel %vm11796_vm15, 0, %v4240_v28  ;;  %v5111_v60 = vsel %vm10649_vm5, %v11949_v18, %v11942_v4 }
 0x1cc   : > { %2828 = vst.msk [vmem:[#allocation3 + $0x80] sm:$0xff] %vm2811_vm12, %v2790_v36  ;;  %v5580_v41 = vld [vmem:[#allocation2 + $0x24] sm:$0xe]  ;;  %v5091_v42 = vor.u32 %v5090_v22, %v5086_v31  ;;  %4242 = vst [vmem:[#allocation2 + $0x68] sm:$0x1] %v4241_v40  ;;  %v2792_v44 = vpop.permute.xlu1 %2791  ;;  %v6140_v46 = vrot.slane %v6138_v21, 5  ;;  %v9759_v6 = vcombine.low %v5111_v60, %v5121_v48  ;;  %v6131_v37 = vsel %vm10649_vm5, %v6126_v25, %v11965_v51 }
 0x1cd   : > { %2829 = vst.msk [vmem:[#allocation3 + $0x88] sm:$0xff] %vm2811_vm12, %v2792_v44  ;;  %v5082_v49 = vrot.slane %v5081_v39, 4  ;;  %v6618_v3 = vld [vmem:[#allocation2 + $0x18] sm:$0xe]  ;;  %v9777_v7 = vrot.slane %v5580_v41, 9  ;;  %vm13838_vm11 = vcmask 293888  }
 0x1ce   : > { %v10459_v45 = vld [vmem:[#allocation2 + $0x24] sm:$0xff]   ;;  %v5092_v53 = vrot.slane %v5091_v42, 4  ;;  %v3403_v56 = vpop.permute.xlu0 %3402  ;;  %v6141_v58 = vsel %vm10649_vm5, %v6136_v38, %v6140_v46  ;;  %v5582_v61 = vld [vmem:[#allocation2 + $0x2c] sm:$0x1]  ;;  %v9839_v8 = vrot.slane %v6618_v3, 9  ;;  %vm13839_vm12 = vmmov %vm13838_vm11  ;;  %vm5875_vm8 = vcmask 195712  }
 0x1cf   : > { %v10460_v47 = vld [vmem:[#allocation2 + $0x24] sm:$0xff]   ;;  %7051 = vrot.lane.b32.xlu1 %v10459_v45, %s10547_s30  ;;  %3441 = vst.msk [vmem:[#allocation3 + $0x80] sm:$0xff] %vm3424_vm13, %v3403_v56  ;;  %v5087_v63 = vsel %vm10649_vm5, %v5082_v49, %v5086_v31  ;;  %v5693_v9 = vrot.slane %v5582_v61, 5  ;;  %v6619_v10 = vld [vmem:[#allocation2 + $0x1c] sm:$0xf]  ;;  %v9822_v18 = vcombine.low %v6131_v37, %v6141_v58  ;;  %vm6053_vm7 = vcmask 261312  }
 0x1d0   : > { %v5581_v59 = vld [vmem:[#allocation2 + $0x28] sm:$0xf]  ;;  %6009 = vrot.lane.b32.xlu0 %v10460_v47, %s10542_s14  ;;  %v5097_v2 = vsel %vm10649_vm5, %v5092_v53, %v5096_v33  ;;  %v6620_v11 = vld [vmem:[#allocation2 + $0x20] sm:$0x1]  ;;  %v6720_v13 = vrot.slane %v6619_v10, 5  ;;  %v10475_v57 = vld [vmem:[#allocation2 + $0x18] sm:$0xff]  }
 0x1d1   : > { %v5690_v62 = vrot.slane %v5581_v59, 5  ;;  %v10471_v5 = vld [vmem:[#allocation2 + $0x24] sm:$0xff]   ;;  %v3405_v4 = vpop.permute.xlu1 %3404  ;;  %v10461_v16 = vld [vmem:[#allocation2 + $0x18] sm:$0xff]   ;;  %v9758_v17 = vcombine.low %v5087_v63, %v5097_v2  ;;  %v6723_v20 = vrot.slane %v6620_v11, 5  ;;  %v7664_v25 = vld [vmem:[#allocation2 + $0x2c] sm:$0x1] }
 0x1d2   : > { %v7662_v14 = vld [vmem:[#allocation2 + $0x24] sm:$0xe]  ;;  %5013 = vst.msk [vmem:[#allocation4 + $0x18] sm:$0xff] %vm5009_vm6, %v10471_v5  ;;  %v3764_v15 = vpop.permute.xlu0 %3763  ;;  %v7663_v23 = vld [vmem:[#allocation2 + $0x28] sm:$0xf]  ;;  %v12014_v52 = vsel %vm10611_vm2, %v9839_v8, %v6720_v13  ;;  %v6722_v28 = vrot.slane %v6720_v13, 4 }
 0x1d3   : > { %v5692_v12 = vrot.slane %v5690_v62, 4  ;;  %3442 = vst.msk [vmem:[#allocation3 + $0x88] sm:$0xff] %vm3424_vm13, %v3405_v4  ;;  %5508 = vrot.lane.b32.xlu1 %v9759_v6, %s10539_s11  ;;  %v5691_v51 = vsel %vm10611_vm2, %v9777_v7, %v5690_v62  ;;  %v9903_v21 = vrot.slane %v7662_v14, 9  ;;  %v7764_v29 = vrot.slane %v7663_v23, 5  ;;  %v7117_v19 = vld [vmem:[#allocation2 + $0x24] sm:$0xf] }
 0x1d4   : > { %3802 = vst.msk [vmem:[#allocation3 + $0x80] sm:$0xff] %vm3785_vm14, %v3764_v15  ;;  %6550 = vrot.lane.b32.xlu0 %v9822_v18, %s10544_s16  ;;  %v7118_v26 = vld [vmem:[#allocation2 + $0x28] sm:$0xf]  ;;  %v10462_v30 = vld [vmem:[#allocation2 + $0x18] sm:$0xff]   ;;  %v7767_v22 = vrot.slane %v7664_v25, 5  ;;  %v7187_v34 = vshrl.u32 %v7117_v19, 16  ;;  %v6724_v38 = vsel %vm10611_vm2, %v6722_v28, %v6723_v20 }
 0x1d5   : > { %v5694_v27 = vsel %vm10611_vm2, %v5692_v12, %v5693_v9  ;;  %5012 = vst.msk [vmem:[#allocation4 + $0x10] sm:$0xff] %vm5009_vm6, %v10475_v57  ;;  %v7119_v33 = vld [vmem:[#allocation2 + $0x2c] sm:$0x1]  ;;  %v7190_v35 = vshll.u32 %v7117_v19, 16  ;;  %v3766_v36 = vpop.permute.xlu1 %3765  ;;  %v7765_v39 = vsel %vm10611_vm2, %v9903_v21, %v7764_v29  ;;  %v7766_v40 = vrot.slane %v7764_v29, 4  ;;  %v10466_v14 = vld [vmem:[#allocation2] sm:$0xff]  }
 0x1d6   : > { %v9793_v31 = vcombine.low %v5691_v51, %v5694_v27  ;;  %v7196_v41 = vshll.u32 %v7118_v26, 16  ;;  %v7659_v42 = vld [vmem:[#allocation2 + $0x18] sm:$0xe]  ;;  %v7660_v44 = vld [vmem:[#allocation2 + $0x1c] sm:$0xf]  ;;  %3803 = vst.msk [vmem:[#allocation3 + $0x88] sm:$0xff] %vm3785_vm14, %v3766_v36  ;;  %v9855_v45 = vcombine.low %v12014_v52, %v6724_v38 }
 0x1d7   : > { %6007 = vrot.lane.b32.xlu1 %v10461_v16, %s10542_s14  ;;  %v7189_v46 = vrot.slane %v7187_v34, 4  ;;  %v7192_v47 = vrot.slane %v7190_v35, 5  ;;  %v7200_v48 = vshrl.u32 %v7118_v26, 16  ;;  %v7661_v49 = vld [vmem:[#allocation2 + $0x20] sm:$0x1]  ;;  %v7768_v56 = vsel %vm10611_vm2, %v7766_v40, %v7767_v22  ;;  %5010 = vst.msk [vmem:[#allocation4] sm:$0xff] %vm5009_vm6, %v10466_v14 }
 0x1d8   : > { %7049 = vrot.lane.b32.xlu0 %v10462_v30, %s10547_s30  ;;  %v7198_v58 = vrot.slane %v7196_v41, 5  ;;  %v7206_v59 = vshll.u32 %v7119_v33, 16  ;;  %v9902_v60 = vrot.slane %v7659_v42, 9  ;;  %v9919_v63 = vcombine.low %v7765_v39, %v7768_v56  ;;  %v5035_v10 = vld [vmem:[#allocation2 + $0x24] sm:$0xf] }
 0x1d9   : > { %v10151_v53 = vpop.f32.mrb[8].mxu0  ;;  %v7193_v2 = vor.u32 %v7192_v47, %v7189_v46  ;;  %v7202_v3 = vrot.slane %v7200_v48, 4  ;;  %v7757_v7 = vrot.slane %v7660_v44, 5  ;;  %v7760_v9 = vrot.slane %v7661_v49, 5  ;;  %v5036_v35 = vld [vmem:[#allocation2 + $0x28] sm:$0xf] }
 0x1da   : > { %v3983_v61 = vadd.f32 %v10151_v53, %v11860_v50  ;;  %v3974_v62 = vpop.f32.mrb[9].mxu0  ;;  %v7208_v37 = vrot.slane %v7206_v59, 5  ;;  %v5147_v29 = vshrl.u32 %v5035_v10, 16  ;;  %v5150_v30 = vshll.u32 %v5035_v10, 16  ;;  %v4778_v41 = vld [vmem:[#allocation2 + $0x3c] sm:$0xf] }
 0x1db   : > { %v3975_v5 = vadd.f32 %v11860_v50, %v3974_v62  ;;  %v10152_v6 = vpop.f32.mrb[10].mxu0  ;;  %v3820_v11 = vld [vmem:[#allocation3 + $0x80] sm:$0xff]  ;;  %5833 = vrot.lane.b32.xlu1 %v9793_v31, %s10541_s13  ;;  %v7194_v8 = vrot.slane %v7193_v2, 4  ;;  %v7203_v13 = vor.u32 %v7202_v3, %v7198_v58  ;;  %v7758_v16 = vsel %vm10611_vm2, %v9902_v60, %v7757_v7  ;;  %v4771_v48 = vld [vmem:[#allocation2 + $0x30] sm:$0xf] }
 0x1dc   : > { %v4095_v4 = vmul.f32 0.2, %v3983_v61  ;;  %v3986_v18 = vadd.f32 %v10152_v6, %v11860_v50  ;;  %v3977_v12 = vpop.f32.mrb[11].mxu0  ;;  %10173 = vmatprep.mubr.msk.bf16.mxu0 %vm13838_vm11, %v3820_v11  ;;  %5506 = vrot.lane.b32.xlu0 %v9758_v17, %s10539_s11  ;;  %v7759_v51 = vrot.slane %v7757_v7, 4  ;;  %v5149_v40 = vrot.slane %v5147_v29, 4 }
 0x1dd   : > { %v4093_v57 = vmul.f32 0.2, %v3975_v5  ;;  %v3978_v15 = vadd.f32 %v11860_v50, %v3977_v12  ;;  %v7199_v25 = vsel %vm10649_vm5, %v7194_v8, %v7198_v58  ;;  %v7204_v21 = vrot.slane %v7203_v13, 4  ;;  %v3821_v27 = vld [vmem:[#allocation3 + $0x88] sm:$0xff]  ;;  %v5037_v10 = vld [vmem:[#allocation2 + $0x2c] sm:$0x1] }
 0x1de   : > { %v4131_v20 = vmax.f32 %v3983_v61, %v4095_v4  ;;  %v4096_v23 = vmul.f32 0.2, %v3986_v18  ;;  %v7761_v50 = vsel %vm10611_vm2, %v7759_v51, %v7760_v9  ;;  %10174 = vmatmul.mubr.msk.bf16.gmra.mrb[32].mxu0 %vm13839_vm12, %v3821_v27  ;;  %v5152_v46 = vrot.slane %v5150_v30, 5  ;;  %v4782_v59 = vld [vmem:[#allocation2 + $0x44] sm:$0x1] }
 0x1df   : > { %v4129_v52 = vmax.f32 %v3975_v5, %v4093_v57  ;;  %v4094_v28 = vmul.f32 0.2, %v3978_v15  ;;  %6873 = vrot.lane.b32.xlu1 %v9855_v45, %s10546_s29  ;;  %v7209_v26 = vsel %vm10649_vm5, %v7204_v21, %v7208_v37  ;;  %v9918_v34 = vcombine.low %v7758_v16, %v7761_v50  ;;  %v4775_v5 = vld [vmem:[#allocation2 + $0x38] sm:$0x1]  ;;  %v5577_v13 = vld [vmem:[#allocation2 + $0x18] sm:$0xe] }
 0x1e0   : > { %v10050_v17 = vpack.c.bf16 %v4131_v20, %v4131_v20  ;;  %v4132_v19 = vmax.f32 %v3986_v18, %v4096_v23  ;;  %7917 = vrot.lane.b32.xlu0 %v9919_v63, %s10548_s9  ;;  %v9887_v33 = vcombine.low %v7199_v25, %v7209_v26  ;;  %v5156_v56 = vshll.u32 %v5036_v35, 16  ;;  %v5578_v14 = vld [vmem:[#allocation2 + $0x1c] sm:$0xf]  ;;  %v5579_v20 = vld [vmem:[#allocation2 + $0x20] sm:$0x1] }
 0x1e1   : > { %v10048_v31 = vpack.c.bf16 %v4129_v52, %v4129_v52  ;;  %v4130_v22 = vmax.f32 %v3978_v15, %v4094_v28  ;;  %v5153_v62 = vor.u32 %v5152_v46, %v5149_v40  ;;  %v5160_v8 = vshrl.u32 %v5036_v35, 16  ;;  %v6076_v23 = vld [vmem:[#allocation2 + $0x24] sm:$0xf]  ;;  %v6077_v28 = vld [vmem:[#allocation2 + $0x28] sm:$0xf] }
 0x1e2   : > { %v4466_v36 = vshrl.u32 %v10050_v17, 16  ;;  %v4469_v38 = vshll.u32 %v10050_v17, 16  ;;  %v10051_v39 = vpack.c.bf16 %v4132_v19, %v4132_v19  ;;  %v5158_v6 = vrot.slane %v5156_v56, 5  ;;  %v6078_v50 = vld [vmem:[#allocation2 + $0x2c] sm:$0x1] }
 0x1e3   : > { %v4449_v42 = vshrl.u32 %v10048_v31, 16  ;;  %v4452_v44 = vshll.u32 %v10048_v31, 16  ;;  %v10049_v45 = vpack.c.bf16 %v4130_v22, %v4130_v22  ;;  %7596 = vrot.lane.b32.xlu1 %v9887_v33, %s10549_s10  ;;  %v5154_v11 = vrot.slane %v5153_v62, 4  ;;  %v7114_v30 = vld [vmem:[#allocation2 + $0x18] sm:$0xf] }
 0x1e4   : > { %v4468_v47 = vrot.slane %v4466_v36, 7  ;;  %v4474_v49 = vshrl.u32 %v10051_v39, 16  ;;  %v4477_v53 = vshll.u32 %v10051_v39, 16  ;;  %7915 = vrot.lane.b32.xlu0 %v9918_v34, %s10548_s9  ;;  %v5162_v27 = vrot.slane %v5160_v8, 4  ;;  %v7115_v40 = vld [vmem:[#allocation2 + $0x1c] sm:$0xf] }
 0x1e5   : > { %v4451_v58 = vrot.slane %v4449_v42, 7  ;;  %v4457_v60 = vshrl.u32 %v10049_v45, 16  ;;  %v4460_v61 = vshll.u32 %v10049_v45, 16  ;;  %v5159_v51 = vsel %vm10649_vm5, %v5154_v11, %v5158_v6 }
 0x1e6   : > { %v4471_v63 = vor.u32 %v4469_v38, %v4468_v47  ;;  %v4472_v2 = vrot.slane %v4468_v47, 4  ;;  %v4476_v3 = vrot.slane %v4474_v49, 7  ;;  %v5166_v52 = vshll.u32 %v5037_v10, 16  ;;  %v7116_v49 = vld [vmem:[#allocation2 + $0x20] sm:$0x1] }
 0x1e7   : > { %v4454_v37 = vor.u32 %v4452_v44, %v4451_v58  ;;  %v4455_v7 = vrot.slane %v4451_v58, 4  ;;  %v4459_v9 = vrot.slane %v4457_v60, 7  ;;  %v9776_v19 = vrot.slane %v5577_v13, 9 }
 0x1e8   : > { %v4779_v4 = vsel %vm11876_vm9, %v4471_v63, %v4778_v41  ;;  %v4479_v18 = vor.u32 %v4477_v53, %v4476_v3  ;;  %v4481_v12 = vrot.slane %v4476_v3, 4  ;;  %v5683_v26 = vrot.slane %v5578_v14, 5 }
 0x1e9   : > { %4780 = vst [vmem:[#allocation2 + $0x3c] sm:$0xf] %v4779_v4  ;;  %v4772_v57 = vsel %vm11876_vm9, %v4454_v37, %v4771_v48  ;;  %v4462_v15 = vor.u32 %v4460_v61, %v4459_v9  ;;  %v4464_v16 = vrot.slane %v4459_v9, 4  ;;  %v5163_v31 = vor.u32 %v5162_v27, %v5158_v6  ;;  %v6073_v61 = vld [vmem:[#allocation2 + $0x18] sm:$0xf] }
 0x1ea   : > { %4773 = vst [vmem:[#allocation2 + $0x30] sm:$0xf] %v4772_v57  ;;  %v4480_v25 = vsel %vm11883_vm10, %v4472_v2, %v4479_v18  ;;  %v4783_v21 = vsel %vm11780_vm4, %v4481_v12, %v4782_v59  ;;  %v5168_v22 = vrot.slane %v5166_v52, 5  ;;  %v5686_v33 = vrot.slane %v5579_v20, 5  ;;  %v6074_v9 = vld [vmem:[#allocation2 + $0x1c] sm:$0xf] }
 0x1eb   : > { %4781 = vst.msk [vmem:[#allocation2 + $0x40] sm:$0xf] %vm4740_vm0, %v4480_v25  ;;  %4784 = vst [vmem:[#allocation2 + $0x44] sm:$0x1] %v4783_v21  ;;  %v4463_v29 = vsel %vm11883_vm10, %v4455_v7, %v4462_v15  ;;  %v4776_v17 = vsel %vm11780_vm4, %v4464_v16, %v4775_v5  ;;  %v6167_v34 = vshrl.u32 %v6076_v23, 16  ;;  %v5684_v35 = vsel %vm10611_vm2, %v9776_v19, %v5683_v26 }
 0x1ec   : > { %4774 = vst.msk [vmem:[#allocation2 + $0x34] sm:$0xf] %vm4740_vm0, %v4463_v29  ;;  %4777 = vst [vmem:[#allocation2 + $0x38] sm:$0x1] %v4776_v17  ;;  %v5685_v36 = vrot.slane %v5683_v26, 4  ;;  %v6170_v38 = vshll.u32 %v6076_v23, 16 }
 0x1ed   : > { %v6176_v39 = vshll.u32 %v6077_v28, 16  ;;  %v5164_v41 = vrot.slane %v5163_v31, 4  ;;  %v6169_v42 = vrot.slane %v6167_v34, 4  ;;  %v6180_v44 = vshrl.u32 %v6077_v28, 16  ;;  %v6075_v57 = vld [vmem:[#allocation2 + $0x20] sm:$0x1] }
 0x1ee   : > { %v6186_v45 = vshll.u32 %v6078_v50, 16  ;;  %v5687_v46 = vsel %vm10611_vm2, %v5685_v36, %v5686_v33  ;;  %v6172_v47 = vrot.slane %v6170_v38, 5  ;;  %v7163_v53 = vshrl.u32 %v7114_v30, 16  ;;  %v5032_v23 = vld [vmem:[#allocation2 + $0x18] sm:$0xf] }
 0x1ef   : > { %v6178_v48 = vrot.slane %v6176_v39, 5  ;;  %v5169_v56 = vsel %vm10649_vm5, %v5164_v41, %v5168_v22  ;;  %v9792_v58 = vcombine.low %v5684_v35, %v5687_v46  ;;  %v6182_v59 = vrot.slane %v6180_v44, 4  ;;  %v5033_v19 = vld [vmem:[#allocation2 + $0x1c] sm:$0xf]  ;;  %v5034_v36 = vld [vmem:[#allocation2 + $0x20] sm:$0x1] }
 0x1f0   : > { %v6188_v60 = vrot.slane %v6186_v45, 5  ;;  %v9761_v62 = vcombine.low %v5159_v51, %v5169_v56  ;;  %v6173_v63 = vor.u32 %v6172_v47, %v6169_v42  ;;  %v7165_v2 = vrot.slane %v7163_v53, 4 }
 0x1f1   : > { %v7166_v3 = vshll.u32 %v7114_v30, 16  ;;  %5831 = vrot.lane.b32.xlu0 %v9792_v58, %s10541_s13  ;;  %v6183_v5 = vor.u32 %v6182_v59, %v6178_v48  ;;  %v7172_v6 = vshll.u32 %v7115_v40, 16  ;;  %v7176_v37 = vshrl.u32 %v7115_v40, 16  ;;  %v6079_v39 = vld [vmem:[#allocation2 + $0x30] sm:$0xf] }
 0x1f2   : > { %v7182_v7 = vshll.u32 %v7116_v49, 16  ;;  %5512 = vrot.lane.b32.xlu1 %v9761_v62, %s10539_s11  ;;  %v6174_v10 = vrot.slane %v6173_v63, 4  ;;  %v6143_v18 = vshrl.u32 %v6073_v61, 16  ;;  %v6146_v20 = vshll.u32 %v6073_v61, 16 }
 0x1f3   : > { %v7168_v11 = vrot.slane %v7166_v3, 5  ;;  %v10463_v4 = vld [vmem:[#allocation2 + $0x30] sm:$0xff]   ;;  %v6184_v12 = vrot.slane %v6183_v5, 4  ;;  %v7174_v8 = vrot.slane %v7172_v6, 5  ;;  %v7178_v13 = vrot.slane %v7176_v37, 4 }
 0x1f4   : > { %v7184_v14 = vrot.slane %v7182_v7, 5  ;;  %v6179_v15 = vsel %vm10649_vm5, %v6174_v10, %v6178_v48  ;;  %v6145_v51 = vrot.slane %v6143_v18, 4  ;;  %v6152_v27 = vshll.u32 %v6074_v9, 16  ;;  %v6080_v63 = vld [vmem:[#allocation2 + $0x34] sm:$0xf] }
 0x1f5   : > { %v7169_v16 = vor.u32 %v7168_v11, %v7165_v2  ;;  %v6189_v25 = vsel %vm10649_vm5, %v6184_v12, %v6188_v60  ;;  %v7179_v21 = vor.u32 %v7178_v13, %v7174_v8  ;;  %v6156_v52 = vshrl.u32 %v6074_v9, 16  ;;  %v12088_v3 = vld [vmem:[%s13796_s2] ss:$0 sm:$0xff]  ;;  %v10473_v13 = vld [vmem:[%s13797_s3 + $0x8] sm:$0xff]  }
 0x1f6   : > { %v9824_v28 = vcombine.low %v6179_v15, %v6189_v25  ;;  %6011 = vrot.lane.b32.xlu1 %v10463_v4, %s10542_s14  ;;  %v6148_v29 = vrot.slane %v6146_v20, 5  ;;  %v6162_v17 = vshll.u32 %v6075_v57, 16  ;;  %v6154_v30 = vrot.slane %v6152_v27, 5 }
 0x1f7   : > { %v7170_v50 = vrot.slane %v7169_v16, 4  ;;  %v7180_v26 = vrot.slane %v7179_v21, 4  ;;  %v6158_v31 = vrot.slane %v6156_v52, 4  ;;  %v5123_v22 = vshrl.u32 %v5032_v23, 16 }
 0x1f8   : > { %6554 = vrot.lane.b32.xlu0 %v9824_v28, %s10544_s16  ;;  %v6149_v34 = vor.u32 %v6148_v29, %v6145_v51  ;;  %v6164_v35 = vrot.slane %v6162_v17, 5  ;;  %v5126_v38 = vshll.u32 %v5032_v23, 16  ;;  %v5132_v44 = vshll.u32 %v5033_v19, 16  ;;  %v6081_v28 = vld [vmem:[#allocation2 + $0x38] sm:$0x1] }
 0x1f9   : > { %v7175_v33 = vsel %vm10649_vm5, %v7170_v50, %v7174_v8  ;;  %v7185_v40 = vsel %vm10649_vm5, %v7180_v26, %v7184_v14  ;;  %v6159_v41 = vor.u32 %v6158_v31, %v6154_v30  ;;  %v5125_v42 = vrot.slane %v5123_v22, 4  ;;  %v10472_v8 = vld [vmem:[%s13797_s3] sm:$0xff]   ;;  %v10474_v31 = vld [vmem:[%s13797_s3 + $0x10] sm:$0xff]  }
 0x1fa   : > { %v9886_v45 = vcombine.low %v7175_v33, %v7185_v40  ;;  %v6150_v46 = vrot.slane %v6149_v34, 4  ;;  %v5128_v47 = vrot.slane %v5126_v38, 5  ;;  %v5136_v48 = vshrl.u32 %v5033_v19, 16  ;;  %10177 = vmatprep.subr.bf16.mxu0 %v10472_v8  ;;  %10253 = vmatprep.subr.bf16.mxu1 %v10472_v8 }
 0x1fb   : > { %v6160_v49 = vrot.slane %v6159_v41, 4  ;;  %v5134_v53 = vrot.slane %v5132_v44, 5  ;;  %v5142_v56 = vshll.u32 %v5034_v36, 16  ;;  %v6191_v58 = vshrl.u32 %v6079_v39, 16  ;;  %10178 = vmatpush3.bf16.msra.mxu0 %v10472_v8  ;;  %10258 = vmatpush3.bf16.msra.mxu1 %v10472_v8 }
 0x1fc   : > { %7594 = vrot.lane.b32.xlu0 %v9886_v45, %s10549_s10  ;;  %v6155_v60 = vsel %vm10649_vm5, %v6150_v46, %v6154_v30  ;;  %v5129_v61 = vor.u32 %v5128_v47, %v5125_v42  ;;  %v5138_v62 = vrot.slane %v5136_v48, 4  ;;  %v6194_v2 = vshll.u32 %v6079_v39, 16  ;;  %10179 = vmatprep.subr.bf16.mxu0 %v10473_v13  ;;  %v4193_v46 = vld [vmem:[#allocation2 + $0x84] sm:$0x1]  ;;  %v12119_v47 = vld [vmem:[%s13797_s3 + $0x18] sm:$0xff]  }
 0x1fd   : > { %v10155_v59 = vpop.f32.mrb[12].mxu0  ;;  %v6165_v37 = vsel %vm10649_vm5, %v6160_v49, %v6164_v35  ;;  %v5144_v7 = vrot.slane %v5142_v56, 5  ;;  %v6193_v9 = vrot.slane %v6191_v58, 4  ;;  %v6200_v51 = vshll.u32 %v6080_v63, 16  ;;  %10254 = vmatprep.subr.bf16.mxu1 %v10473_v13  ;;  %v4792_v48 = vld [vmem:[#allocation2 + $0x54] sm:$0xf] }
 0x1fe   : > { %v3999_v5 = vadd.f32 %v12088_v3, %v10155_v59  ;;  %v3990_v6 = vpop.f32.mrb[13].mxu0  ;;  %v9823_v11 = vcombine.low %v6155_v60, %v6165_v37  ;;  %v5130_v18 = vrot.slane %v5129_v61, 4  ;;  %v5139_v12 = vor.u32 %v5138_v62, %v5134_v53  ;;  %v4785_v60 = vld [vmem:[#allocation2 + $0x48] sm:$0xf] }
 0x1ff   : > { %v3991_v10 = vadd.f32 %v12088_v3, %v3990_v6  ;;  %v10156_v4 = vpop.f32.mrb[14].mxu0  ;;  %v6196_v16 = vrot.slane %v6194_v2, 5  ;;  %v12105_v29 = vrot.slane %v6200_v51, 5  ;;  %v6204_v30 = vshrl.u32 %v6080_v63, 16  ;;  %10180 = vmatpush3.bf16.msra.mxu0 %v10473_v13  ;;  %10259 = vmatpush3.bf16.msra.mxu1 %v10473_v13 }
 0x200   : > { %v4099_v14 = vmul.f32 0.2, %v3999_v5  ;;  %v4002_v57 = vadd.f32 %v12088_v3, %v10156_v4  ;;  %v3993_v15 = vpop.f32.mrb[15].mxu0  ;;  %6552 = vrot.lane.b32.xlu1 %v9823_v11, %s10544_s16  ;;  %v5135_v25 = vsel %vm10649_vm5, %v5130_v18, %v5134_v53  ;;  %v5140_v21 = vrot.slane %v5139_v12, 4  ;;  %10181 = vmatprep.subr.bf16.mxu0 %v10474_v31  ;;  %v4190_v18 = vld [vmem:[#allocation2 + $0x78] sm:$0x1] }
 0x201   : > { %v4097_v20 = vmul.f32 0.2, %v3991_v10  ;;  %v3994_v23 = vadd.f32 %v12088_v3, %v3993_v15  ;;  %v6197_v50 = vor.u32 %v6196_v16, %v6193_v9  ;;  %v6206_v39 = vrot.slane %v6204_v30, 4  ;;  %10255 = vmatprep.subr.bf16.mxu1 %v10474_v31  ;;  %v4246_v15 = vld [vmem:[#allocation2 + $0x80] sm:$0x1] }
 0x202   : > { %v4135_v27 = vmax.f32 %v3999_v5, %v4099_v14  ;;  %v4100_v52 = vmul.f32 0.2, %v4002_v57  ;;  %v5145_v26 = vsel %vm10649_vm5, %v5140_v21, %v5144_v7  ;;  %v6210_v40 = vshll.u32 %v6081_v28, 16  ;;  %v4796_v5 = vld [vmem:[#allocation2 + $0x5c] sm:$0x1] }
 0x203   : > { %v4133_v17 = vmax.f32 %v3991_v10, %v4097_v20  ;;  %v4098_v19 = vmul.f32 0.2, %v3994_v23  ;;  %v9760_v34 = vcombine.low %v5135_v25, %v5145_v26  ;;  %v6198_v35 = vrot.slane %v6197_v50, 4  ;;  %10182 = vmatpush3.bf16.msra.mxu0 %v10474_v31  ;;  %10260 = vmatpush3.bf16.msra.mxu1 %v10474_v31  ;;  %v4199_v21 = vld [vmem:[#allocation2 + $0x9c] sm:$0x1] }
 0x204   : > { %v10054_v22 = vpack.c.bf16 %v4135_v27, %v4135_v27  ;;  %v4136_v33 = vmax.f32 %v4002_v57, %v4100_v52  ;;  %v6207_v58 = vor.u32 %v6206_v39, %v12105_v29  ;;  %v6212_v63 = vrot.slane %v6210_v40, 5  ;;  %v4249_v57 = vld [vmem:[#allocation2 + $0x8c] sm:$0x1]  ;;  %10183 = vmatprep.subr.bf16.mxu0 %v12119_v47  ;;  %10256 = vmatprep.subr.bf16.mxu1 %v12119_v47 }
 0x205   : > { %v10052_v36 = vpack.c.bf16 %v4133_v17, %v4133_v17  ;;  %v4134_v38 = vmax.f32 %v3994_v23, %v4098_v19  ;;  %5510 = vrot.lane.b32.xlu1 %v9760_v34, %s10539_s11  ;;  %v6203_v45 = vsel %vm10649_vm5, %v6198_v35, %v12105_v29  ;;  %v4194_v4 = vsel %vm11780_vm4, 0, %v4193_v46  ;;  %v4789_v23 = vld [vmem:[#allocation2 + $0x50] sm:$0x1]  ;;  %v4255_v17 = vld [vmem:[#allocation2 + $0xa4] sm:$0x1] }
 0x206   : > { %v4500_v41 = vshrl.u32 %v10054_v22, 16  ;;  %v4503_v42 = vshll.u32 %v10054_v22, 16  ;;  %v10055_v44 = vpack.c.bf16 %v4136_v33, %v4136_v33  ;;  %v6208_v7 = vrot.slane %v6207_v58, 4  ;;  %4195 = vst [vmem:[#allocation2 + $0x84] sm:$0x1] %v4194_v4 }
 0x207   : > { %v4483_v49 = vshrl.u32 %v10052_v36, 16  ;;  %v4486_v53 = vshll.u32 %v10052_v36, 16  ;;  %v10053_v56 = vpack.c.bf16 %v4134_v38, %v4134_v38  ;;  %v4191_v50 = vsel %vm11780_vm4, 0, %v4190_v18  ;;  %v4196_v29 = vld [vmem:[#allocation2 + $0x90] sm:$0x1]  ;;  %10184 = vmatpush3.bf16.msra.mxu0 %v12119_v47  ;;  %10261 = vmatpush3.bf16.msra.mxu1 %v12119_v47 }
 0x208   : > { %v4502_v59 = vrot.slane %v4500_v41, 7  ;;  %v4508_v61 = vshrl.u32 %v10055_v44, 16  ;;  %v4511_v62 = vshll.u32 %v10055_v44, 16  ;;  %v6213_v14 = vsel %vm10649_vm5, %v6208_v7, %v6212_v63  ;;  %4192 = vst [vmem:[#allocation2 + $0x78] sm:$0x1] %v4191_v50 }
 0x209   : > { %v4485_v2 = vrot.slane %v4483_v49, 7  ;;  %v4491_v6 = vshrl.u32 %v10053_v56, 16  ;;  %v4494_v37 = vshll.u32 %v10053_v56, 16  ;;  %v9825_v25 = vcombine.low %v6203_v45, %v6213_v14  ;;  %v4252_v22 = vld [vmem:[#allocation2 + $0x98] sm:$0x1] }
 0x20a   : > { %v4505_v9 = vor.u32 %v4503_v42, %v4502_v59  ;;  %v4506_v10 = vrot.slane %v4502_v59, 4  ;;  %v4510_v11 = vrot.slane %v4508_v61, 7  ;;  %v4250_v30 = vsel %vm11796_vm15, 0, %v4249_v57  ;;  %v10477_v35 = vld [vmem:[%s13797_s3 + $0x20] ss:$0 sps:$4 sm:$0xff]  }
 0x20b   : > { %v4488_v12 = vor.u32 %v4486_v53, %v4485_v2  ;;  %v4489_v8 = vrot.slane %v4485_v2, 4  ;;  %v4493_v13 = vrot.slane %v4491_v6, 7  ;;  %6556 = vrot.lane.b32.xlu1 %v9825_v25, %s10544_s16  ;;  %v4247_v31 = vsel %vm11796_vm15, 0, %v4246_v15  ;;  %4251 = vst [vmem:[#allocation2 + $0x8c] sm:$0x1] %v4250_v30 }
 0x20c   : > { %v4793_v16 = vsel %vm11876_vm9, %v4505_v9, %v4792_v48  ;;  %v4513_v51 = vor.u32 %v4511_v62, %v4510_v11  ;;  %v4515_v20 = vrot.slane %v4510_v11, 4  ;;  %4248 = vst [vmem:[#allocation2 + $0x80] sm:$0x1] %v4247_v31  ;;  %v4200_v36 = vsel %vm11780_vm4, 0, %v4199_v21  ;;  %v4205_v42 = vld [vmem:[#allocation2 + $0xb4] sm:$0x1] }
 0x20d   : > { %4794 = vst [vmem:[#allocation2 + $0x54] sm:$0xf] %v4793_v16  ;;  %v4786_v27 = vsel %vm11876_vm9, %v4488_v12, %v4785_v60  ;;  %v4496_v52 = vor.u32 %v4494_v37, %v4493_v13  ;;  %v4498_v28 = vrot.slane %v4493_v13, 4  ;;  %v4197_v38 = vsel %vm11780_vm4, 0, %v4196_v29  ;;  %4201 = vst [vmem:[#allocation2 + $0x9c] sm:$0x1] %v4200_v36 }
 0x20e   : > { %4787 = vst [vmem:[#allocation2 + $0x48] sm:$0xf] %v4786_v27  ;;  %v4514_v19 = vsel %vm11883_vm10, %v4506_v10, %v4513_v51  ;;  %v4797_v26 = vsel %vm11780_vm4, %v4515_v20, %v4796_v5  ;;  %v4256_v39 = vsel %vm11796_vm15, 0, %v4255_v17  ;;  %4198 = vst [vmem:[#allocation2 + $0x90] sm:$0x1] %v4197_v38  ;;  %v4253_v40 = vsel %vm11796_vm15, 0, %v4252_v22 }
 0x20f   : > { %4795 = vst.msk [vmem:[#allocation2 + $0x58] sm:$0xf] %vm4740_vm0, %v4514_v19  ;;  %4798 = vst [vmem:[#allocation2 + $0x5c] sm:$0x1] %v4797_v26  ;;  %v4497_v33 = vsel %vm11883_vm10, %v4489_v8, %v4496_v52  ;;  %v4790_v34 = vsel %vm11780_vm4, %v4498_v28, %v4789_v23  ;;  %vm8088_vm13 = vcmask 1043456   ;;  %v4206_v44 = vsel %vm11780_vm4, 0, %v4205_v42 }
 0x210   : > { %4788 = vst.msk [vmem:[#allocation2 + $0x4c] sm:$0xf] %vm4740_vm0, %v4497_v33  ;;  %4791 = vst [vmem:[#allocation2 + $0x50] sm:$0x1] %v4790_v34  ;;  %10360 = vmatprep.subr.msk.bf16.mxu0 %vm8088_vm13, %v10477_v35  ;;  %v8090_v41 = vsel %vm8088_vm13, %v10477_v35, 0  ;;  %10361 = vmatprep.subr.msk.bf16.mxu1 %vm8088_vm13, %v10477_v35  ;;  %vm5554_vm14 = vcmask 130112  }
 0x211   : > { %4257 = vst [vmem:[#allocation2 + $0xa4] sm:$0x1] %v4256_v39  ;;  %4254 = vst [vmem:[#allocation2 + $0x98] sm:$0x1] %v4253_v40  ;;  %10186 = vmatpush3.bf16.msra.mxu0 %v8090_v41  ;;  %10262 = vmatpush3.bf16.msra.mxu1 %v8090_v41  ;;  %v4202_v45 = vld [vmem:[#allocation2 + $0xa8] sm:$0x1] }
 0x212   : > { %4207 = vst [vmem:[#allocation2 + $0xb4] sm:$0x1] %v4206_v44  ;;  %v4203_v46 = vsel %vm11780_vm4, 0, %v4202_v45  ;;  %v4261_v47 = vld [vmem:[#allocation2 + $0xbc] sm:$0x1]  ;;  %vm6598_vm3 = vcmask 326912  }
 0x213   : > { %4204 = vst [vmem:[#allocation2 + $0xa8] sm:$0x1] %v4203_v46  ;;  %v4262_v48 = vsel %vm11796_vm15, 0, %v4261_v47  ;;  %v4258_v49 = vld [vmem:[#allocation2 + $0xb0] sm:$0x1]  ;;  %vm6919_vm11 = vcmask 392512  }
 0x214   : > { %4263 = vst [vmem:[#allocation2 + $0xbc] sm:$0x1] %v4262_v48  ;;  %v4259_v53 = vsel %vm11796_vm15, 0, %v4258_v49  ;;  %v7120_v11 = vld [vmem:[#allocation2 + $0x30] sm:$0xf]  ;;  %vm7097_vm12 = vcmask 458112  }
 0x215   : > { %4260 = vst [vmem:[#allocation2 + $0xb0] sm:$0x1] %v4259_v53  ;;  %v7121_v13 = vld [vmem:[#allocation2 + $0x34] sm:$0xf]  ;;  %v7211_v15 = vshrl.u32 %v7120_v11, 16  ;;  %v7214_v20 = vshll.u32 %v7120_v11, 16 }
 0x216   : > { %v4806_v21 = vld [vmem:[#allocation2 + $0x6c] sm:$0xf]  ;;  %v7220_v52 = vshll.u32 %v7121_v13, 16  ;;  %v4799_v29 = vld [vmem:[#allocation2 + $0x60] sm:$0xf]  ;;  %v7224_v19 = vshrl.u32 %v7121_v13, 16 }
 0x217   : > { %v4810_v22 = vld [vmem:[#allocation2 + $0x74] sm:$0x1]  ;;  %v7213_v33 = vrot.slane %v7211_v15, 4  ;;  %v4803_v38 = vld [vmem:[#allocation2 + $0x68] sm:$0x1]  ;;  %v7216_v39 = vrot.slane %v7214_v20, 5 }
 0x218   : > { %v12176_v45 = vld [vmem:[#allocation2 + $0x28] sm:$0xf]  ;;  %v7122_v46 = vld [vmem:[#allocation2 + $0x38] sm:$0x1]  ;;  %v12222_v20 = vld [vmem:[#allocation2 + $0x44] sm:$0x1] }
 0x219   : > { %v7217_v11 = vor.u32 %v7216_v39, %v7213_v33  ;;  %vm7963_vm13 = vcmask 589312  }
 0x222   : > { %v10159_v56 = vpop.f32.mrb[16].mxu0 }
 0x223   : > { %v4015_v58 = vadd.f32 %v12088_v3, %v10159_v56  ;;  %v4006_v59 = vpop.f32.mrb[17].mxu0 }
 0x224   : > { %v4007_v60 = vadd.f32 %v12088_v3, %v4006_v59  ;;  %v10160_v61 = vpop.f32.mrb[18].mxu0  ;;  %v12184_v59 = vpop.permute.xlu0 %6005 }
 0x225   : > { %v4103_v62 = vmul.f32 0.2, %v4015_v58  ;;  %v4018_v63 = vadd.f32 %v12088_v3, %v10160_v61  ;;  %v4009_v2 = vpop.f32.mrb[19].mxu0  ;;  %v7226_v61 = vrot.slane %v7224_v19, 4 }
 0x226   : > { %v4101_v5 = vmul.f32 0.2, %v4007_v60  ;;  %v4010_v6 = vadd.f32 %v12088_v3, %v4009_v2  ;;  %v12193_v2 = vld [vmem:[#allocation2 + $0x24] sm:$0xe] }
 0x227   : > { %v4139_v37 = vmax.f32 %v4015_v58, %v4103_v62  ;;  %v4104_v7 = vmul.f32 0.2, %v4018_v63 }
 0x228   : > { %v4137_v9 = vmax.f32 %v4007_v60, %v4101_v5  ;;  %v4102_v10 = vmul.f32 0.2, %v4010_v6  ;;  %v12186_v60 = vrot.slane %v7220_v52, 5  ;;  %v13813_v5 = vrot.slane %v12176_v45, 5 }
 0x229   : > { %v10058_v4 = vpack.c.bf16 %v4139_v37, %v4139_v37  ;;  %v4140_v18 = vmax.f32 %v4018_v63, %v4104_v7  ;;  %v12197_v37 = vld [vmem:[#allocation2 + $0x2c] sm:$0x1]  ;;  %v12199_v7 = vld [vmem:[#allocation2 + $0x30] sm:$0xe] }
 0x22a   : > { %v10056_v12 = vpack.c.bf16 %v4137_v9, %v4137_v9  ;;  %v4138_v8 = vmax.f32 %v4010_v6, %v4102_v10  ;;  %v7230_v6 = vshll.u32 %v7122_v46, 16  ;;  %v12201_v9 = vld [vmem:[#allocation2 + $0x34] sm:$0xf]  ;;  %v4211_v10 = vld [vmem:[#allocation2 + $0xcc] sm:$0x1]  ;;  %v7227_v13 = vor.u32 %v7226_v61, %v12186_v60 }
 0x22b   : > { %v4534_v14 = vshrl.u32 %v10058_v4, 16  ;;  %v10059_v57 = vpack.c.bf16 %v4140_v18, %v4140_v18  ;;  %v4537_v25 = vshll.u32 %v10058_v4, 16  ;;  %v12203_v4 = vld [vmem:[#allocation2 + $0x38] sm:$0x1]  ;;  %v12205_v18 = vld [vmem:[#allocation2 + $0x3c] sm:$0xe]  ;;  %v12239_v33 = vpop.permute.xlu1 %5829 }
 0x22c   : > { %v4517_v16 = vshrl.u32 %v10056_v12, 16  ;;  %v10057_v51 = vpack.c.bf16 %v4138_v8, %v4138_v8  ;;  %v4520_v50 = vshll.u32 %v10056_v12, 16  ;;  %v12207_v12 = vpop.permute.xlu0 %6871  ;;  %v4212_v8 = vsel %vm11780_vm4, 0, %v4211_v10 }
 0x22d   : > { %v4536_v23 = vrot.slane %v4534_v14, 7  ;;  %v4542_v27 = vshrl.u32 %v10059_v57, 16  ;;  %v4545_v31 = vshll.u32 %v10059_v57, 16  ;;  %v12212_v14 = vld [vmem:[#allocation2 + $0x40] sm:$0xf]  ;;  %v12217_v15 = vrot.slane %v13813_v5, 4 }
 0x22e   : > { %v4519_v28 = vrot.slane %v4517_v16, 7  ;;  %v4525_v17 = vshrl.u32 %v10057_v51, 16  ;;  %v4528_v36 = vshll.u32 %v10057_v51, 16  ;;  %4213 = vst [vmem:[#allocation2 + $0xcc] sm:$0x1] %v4212_v8  ;;  %v6730_v16 = vrot.slane %v12197_v37, 5 }
 0x22f   : > { %v4539_v26 = vor.u32 %v4537_v25, %v4536_v23  ;;  %v4544_v30 = vrot.slane %v4542_v27, 7  ;;  %v4540_v40 = vrot.slane %v4536_v23, 4  ;;  %v12220_v51 = vrot.slane %v7230_v6, 5  ;;  %v12248_v6 = vld [vmem:[#allocation2 + $0x34] sm:$0xf] }
 0x230   : > { %v4522_v34 = vor.u32 %v4520_v50, %v4519_v28  ;;  %v4527_v35 = vrot.slane %v4525_v17, 7  ;;  %v4523_v47 = vrot.slane %v4519_v28, 4  ;;  %v13812_v25 = vrot.slane %v12201_v9, 5  ;;  %v12231_v17 = vld [vmem:[#allocation2 + $0x34] sm:$0xf] }
 0x231   : > { %v4807_v41 = vsel %vm11876_vm9, %v4539_v26, %v4806_v21  ;;  %v4547_v42 = vor.u32 %v4545_v31, %v4544_v30  ;;  %v4549_v44 = vrot.slane %v4544_v30, 4  ;;  %v12228_v50 = vrot.slane %v7217_v11, 4  ;;  %13840 = vst [vmem:[#allocation5_spill] sm:$0xff] %v12231_v17  ;;  %v12233_v30 = vpop.permute.xlu0 %5827 }
 0x232   : > { %4808 = vst [vmem:[#allocation2 + $0x6c] sm:$0xf] %v4807_v41  ;;  %v4800_v48 = vsel %vm11876_vm9, %v4522_v34, %v4799_v29  ;;  %v4530_v49 = vor.u32 %v4528_v36, %v4527_v35  ;;  %v4532_v53 = vrot.slane %v4527_v35, 4  ;;  %v13811_v29 = vrot.slane %v12212_v14, 5 }
 0x233   : > { %4801 = vst [vmem:[#allocation2 + $0x60] sm:$0xf] %v4800_v48  ;;  %v4548_v56 = vsel %vm11883_vm10, %v4540_v40, %v4547_v42  ;;  %v4811_v58 = vsel %vm11780_vm4, %v4549_v44, %v4810_v22  ;;  %v12235_v31 = vrot.slane %v7227_v13, 4  ;;  %v12237_v22 = vld [vmem:[#allocation2 + $0x30] sm:$0xe] }
 0x234   : > { %4809 = vst.msk [vmem:[#allocation2 + $0x70] sm:$0xf] %vm4740_vm0, %v4548_v56  ;;  %4812 = vst [vmem:[#allocation2 + $0x74] sm:$0x1] %v4811_v58  ;;  %v4531_v62 = vsel %vm11883_vm10, %v4523_v47, %v4530_v49  ;;  %v4804_v63 = vsel %vm11780_vm4, %v4532_v53, %v4803_v38  ;;  %v12243_v44 = vld [vmem:[#allocation2 + $0x38] sm:$0x1] }
 0x235   : > { %4802 = vst.msk [vmem:[#allocation2 + $0x64] sm:$0xf] %vm4740_vm0, %v4531_v62  ;;  %4805 = vst [vmem:[#allocation2 + $0x68] sm:$0x1] %v4804_v63  ;;  %v12245_v56 = vld [vmem:[#allocation2 + $0x30] sm:$0xe] }
 0x236   : > { %13841 = vst [vmem:[#allocation6_spill] sm:$0xff] %v12237_v22  ;;  %13842 = vst [vmem:[#allocation7_spill] sm:$0xff] %v12243_v44  ;;  %v13810_v63 = vrot.slane %v12231_v17, 5 }
 0x237   : > { %13843 = vst [vmem:[#allocation8_spill] sm:$0xff] %v12245_v56 }
 0x239   : > { %v5598_v52 = vld [vmem:[#allocation2 + $0x6c] sm:$0xe] }
 0x23a   : > { %v6639_v28 = vld [vmem:[#allocation2 + $0x6c] sm:$0xe]  ;;  %v9783_v39 = vrot.slane %v5598_v52, 9  ;;  %v5595_v8 = vld [vmem:[#allocation2 + $0x60] sm:$0xe] }
 0x23b   : > { %v10464_v19 = vld [vmem:[#allocation2 + $0x6c] sm:$0xff]   ;;  %v5600_v34 = vld [vmem:[#allocation2 + $0x74] sm:$0x1]  ;;  %v9846_v58 = vrot.slane %v6639_v28, 9 }
 0x23c   : > { %v5599_v26 = vld [vmem:[#allocation2 + $0x70] sm:$0xf]  ;;  %6021 = vrot.lane.b32.xlu0 %v10464_v19, %s10542_s14  ;;  %v6641_v40 = vld [vmem:[#allocation2 + $0x74] sm:$0x1]  ;;  %v5596_v42 = vld [vmem:[#allocation2 + $0x64] sm:$0xf] }
 0x23d   : > { %v5732_v35 = vrot.slane %v5599_v26, 5  ;;  %v6640_v36 = vld [vmem:[#allocation2 + $0x70] sm:$0xf]  ;;  %v5735_v47 = vrot.slane %v5600_v34, 5  ;;  %v5597_v48 = vld [vmem:[#allocation2 + $0x68] sm:$0x1] }
 0x23e   : > { %v6769_v41 = vrot.slane %v6640_v36, 5  ;;  %v5725_v49 = vrot.slane %v5596_v42, 5  ;;  %v10489_v53 = vld [vmem:[#allocation2 + $0x6c] sm:$0xff]   ;;  %v6772_v62 = vrot.slane %v6641_v40, 5  ;;  %v12258_v19 = vld [vmem:[#allocation2 + $0x38] sm:$0x1] }
 0x23f   : > { %v5734_v46 = vrot.slane %v5732_v35, 4  ;;  %v5733_v10 = vsel %vm10611_vm2, %v9783_v39, %v5732_v35  ;;  %5019 = vst.msk [vmem:[#allocation4 + $0x48] sm:$0xff] %vm5009_vm6, %v10489_v53  ;;  %13845 = vst [vmem:[#allocation10_spill] sm:$0xff] %v12258_v19  ;;  %v5728_v36 = vrot.slane %v5597_v48, 5  ;;  %v5053_v40 = vld [vmem:[#allocation2 + $0x6c] sm:$0xf] }
 0x240   : > { %v6771_v61 = vrot.slane %v6769_v41, 4  ;;  %v5727_v13 = vrot.slane %v5725_v49, 4  ;;  %v6770_v34 = vsel %vm10611_vm2, %v9846_v58, %v6769_v41  ;;  %v12266_v42 = vld [vmem:[#allocation2 + $0x3c] sm:$0xf]  ;;  %v12274_v53 = vrot.slane %v13811_v29, 4 }
 0x241   : > { %v5736_v11 = vsel %vm10611_vm2, %v5734_v46, %v5735_v47  ;;  %v12254_v52 = vpop.permute.xlu1 %7051  ;;  %v12270_v47 = vrot.slane %v13812_v25, 4  ;;  %v12277_v58 = vld [vmem:[#allocation2 + $0x40] sm:$0xf]  ;;  %v9782_v48 = vrot.slane %v5595_v8, 9  ;;  %v5291_v55 = vshrl.u32 %v5053_v40, 16 }
 0x242   : > { %13844 = vst [vmem:[#allocation9_spill] sm:$0xff] %v12254_v52  ;;  %v9799_v26 = vcombine.low %v5733_v10, %v5736_v11  ;;  %v6773_v35 = vsel %vm10611_vm2, %v6771_v61, %v6772_v62  ;;  %v12264_v39 = vpop.permute.xlu0 %6009  ;;  %v5729_v61 = vsel %vm10611_vm2, %v5727_v13, %v5728_v36  ;;  %v10491_v62 = vld [vmem:[#allocation2 + $0x60] sm:$0xff]   ;;  %v12284_v10 = vrot.slane %v13810_v63, 4  ;;  %v12296_v28 = vld [vmem:[#allocation2 + $0x74] sm:$0x1] }
 0x243   : > { %13846 = vst [vmem:[#allocation11_spill] sm:$0xff] %v12264_v39  ;;  %v9862_v46 = vcombine.low %v6770_v34, %v6773_v35  ;;  %v5054_v35 = vld [vmem:[#allocation2 + $0x70] sm:$0xf]  ;;  %v5726_v13 = vsel %vm10611_vm2, %v9782_v48, %v5725_v49  ;;  %v5294_v11 = vshll.u32 %v5053_v40, 16  ;;  %5018 = vst.msk [vmem:[#allocation4 + $0x40] sm:$0xff] %vm5009_vm6, %v10491_v62 }
 0x244   : > { %5845 = vrot.lane.b32.xlu1 %v9799_v26, %s10541_s13  ;;  %13847 = vst [vmem:[#allocation12_spill] sm:$0xff] %v12284_v10  ;;  %v9798_v26 = vcombine.low %v5726_v13, %v5729_v61  ;;  %v6094_v21 = vld [vmem:[#allocation2 + $0x6c] sm:$0xf]  ;;  %v6095_v49 = vld [vmem:[#allocation2 + $0x70] sm:$0xf]  ;;  %v5300_v40 = vshll.u32 %v5054_v35, 16 }
 0x245   : > { %6887 = vrot.lane.b32.xlu0 %v9862_v46, %s10546_s29  ;;  %v5509_v34 = vpop.permute.xlu1 %5508  ;;  %v12305_v29 = vld [vmem:[#allocation2 + $0x60] sm:$0xf]  ;;  %v12309_v13 = vrot.slane %v5291_v55, 4  ;;  %v12314_v63 = vrot.slane %v5294_v11, 5  ;;  %v12321_v55 = vsel %vm10611_vm2, %v12217_v15, %v6730_v16  ;;  %v6314_v25 = vshll.u32 %v6094_v21, 16 }
 0x246   : > { %5556 = vst.msk [vmem:[#allocation4 + $0x8] sm:$0xff] %vm5554_vm14, %v5509_v34  ;;  %v12294_v36 = vpop.permute.xlu0 %6550  ;;  %v10163_v38 = vpop.f32.mrb[20].mxu0  ;;  %v5051_v46 = vld [vmem:[#allocation2 + $0x64] sm:$0xf]  ;;  %v12324_v41 = vrot.slane %v5300_v40, 5  ;;  %v6324_v19 = vshrl.u32 %v6095_v49, 16 }
 0x247   : > { %5877 = vst.msk [vmem:[#allocation4 + $0x8] sm:$0xff] %vm5875_vm8, %v12239_v33  ;;  %v4031_v34 = vadd.f32 %v12088_v3, %v10163_v38  ;;  %v4022_v27 = vpop.f32.mrb[21].mxu0  ;;  %v5304_v33 = vshrl.u32 %v5054_v35, 16  ;;  %v5267_v37 = vshrl.u32 %v12305_v29, 16  ;;  %v4817_v52 = vld [vmem:[#allocation2 + $0x80] sm:$0x1] }
 0x248   : > { %v4023_v62 = vadd.f32 %v12088_v3, %v4022_v27  ;;  %v10164_v23 = vpop.f32.mrb[22].mxu0 }
 0x249   : > { %5843 = vrot.lane.b32.xlu0 %v9798_v26, %s10541_s13  ;;  %v6008_v61 = vpop.permute.xlu1 %6007  ;;  %v4107_v57 = vmul.f32 0.2, %v4031_v34  ;;  %v4034_v38 = vadd.f32 %v12088_v3, %v10164_v23  ;;  %v4025_v5 = vpop.f32.mrb[23].mxu0  ;;  %v6311_v26 = vshrl.u32 %v6094_v21, 16 }
 0x24a   : > { %6055 = vst.msk [vmem:[#allocation4 + $0x8] sm:$0xff] %vm6053_vm7, %v6008_v61  ;;  %v7050_v48 = vpop.permute.xlu0 %7049  ;;  %v4105_v27 = vmul.f32 0.2, %v4023_v62  ;;  %v4026_v35 = vadd.f32 %v12088_v3, %v4025_v5  ;;  %v6320_v61 = vshll.u32 %v6095_v49, 16  ;;  %v12329_v3 = vrot.slane %v5304_v33, 4 }
 0x24b   : > { %v4143_v23 = vmax.f32 %v4031_v34, %v4107_v57  ;;  %v4108_v8 = vmul.f32 0.2, %v4034_v38  ;;  %v12332_v57 = vrot.slane %v6311_v26, 4  ;;  %v12334_v34 = vrot.slane %v6314_v25, 5  ;;  %v4820_v26 = vld [vmem:[#allocation2 + $0x84] sm:$0xf] }
 0x24c   : > { %v4141_v11 = vmax.f32 %v4023_v62, %v4105_v27  ;;  %v4106_v56 = vmul.f32 0.2, %v4026_v35  ;;  %v5276_v62 = vshll.u32 %v5051_v46, 16  ;;  %v12344_v33 = vrot.slane %v5267_v37, 4 }
 0x24d   : > { %v10062_v10 = vpack.c.bf16 %v4143_v23, %v4143_v23  ;;  %v4144_v44 = vmax.f32 %v4034_v38, %v4108_v8  ;;  %v12338_v8 = vrot.slane %v6320_v61, 5 }
 0x24e   : > { %v5507_v15 = vpop.permute.xlu0 %5506  ;;  %v10060_v5 = vpack.c.bf16 %v4141_v11, %v4141_v11  ;;  %v4142_v21 = vmax.f32 %v4026_v35, %v4106_v56  ;;  %v12342_v56 = vrot.slane %v6324_v19, 4  ;;  %v5280_v11 = vshrl.u32 %v5051_v46, 16 }
 0x24f   : > { %5555 = vst.msk [vmem:[#allocation4] sm:$0xff] %vm5554_vm14, %v5507_v15  ;;  %v4568_v40 = vshrl.u32 %v10062_v10, 16  ;;  %v10063_v49 = vpack.c.bf16 %v4144_v44, %v4144_v44  ;;  %v4571_v25 = vshll.u32 %v10062_v10, 16  ;;  %v12346_v44 = vpop.permute.xlu1 %5833  ;;  %v4813_v15 = vld [vmem:[#allocation2 + $0x78] sm:$0xf]  ;;  %v12353_v16 = vrot.slane %v5276_v62, 5 }
 0x250   : > { %5876 = vst.msk [vmem:[#allocation4] sm:$0xff] %vm5875_vm8, %v12233_v30  ;;  %v4551_v38 = vshrl.u32 %v10060_v5, 16  ;;  %v10061_v27 = vpack.c.bf16 %v4142_v21, %v4142_v21  ;;  %v4554_v61 = vshll.u32 %v10060_v5, 16  ;;  %v4208_v5 = vld [vmem:[#allocation2 + $0xc0] sm:$0x1] }
 0x251   : > { %6054 = vst.msk [vmem:[#allocation4] sm:$0xff] %vm6053_vm7, %v12184_v59  ;;  %v4570_v35 = vrot.slane %v4568_v40, 7  ;;  %v4576_v23 = vshrl.u32 %v10063_v49, 16  ;;  %v5270_v59 = vshll.u32 %v12305_v29, 16  ;;  %v4579_v10 = vshll.u32 %v10063_v49, 16 }
 0x252   : > { %6599 = vst.msk [vmem:[#allocation4] sm:$0xff] %vm6598_vm3, %v12294_v36  ;;  %v4553_v30 = vrot.slane %v4551_v38, 7  ;;  %v4559_v21 = vshrl.u32 %v10061_v27, 16  ;;  %v4824_v40 = vld [vmem:[#allocation2 + $0x8c] sm:$0x1]  ;;  %v4562_v38 = vshll.u32 %v10061_v27, 16 }
 0x253   : > { %6920 = vst.msk [vmem:[#allocation4] sm:$0xff] %vm6919_vm11, %v12207_v12  ;;  %v4573_v19 = vor.u32 %v4571_v25, %v4570_v35  ;;  %v4578_v37 = vrot.slane %v4576_v23, 7  ;;  %v4574_v46 = vrot.slane %v4570_v35, 4  ;;  %v5282_v12 = vrot.slane %v5280_v11, 4  ;;  %v4267_v25 = vld [vmem:[#allocation2 + $0xd4] sm:$0x1]  ;;  %v12366_v11 = vpop.permute.xlu0 %7917 }
 0x254   : > { %7098 = vst.msk [vmem:[#allocation4] sm:$0xff] %vm7097_vm12, %v7050_v48  ;;  %v4556_v22 = vor.u32 %v4554_v61, %v4553_v30  ;;  %v4561_v36 = vrot.slane %v4559_v21, 7  ;;  %v4557_v49 = vrot.slane %v4553_v30, 4  ;;  %v6096_v35 = vld [vmem:[#allocation2 + $0x74] sm:$0x1]  ;;  %v12364_v21 = vpop.permute.xlu1 %6873  ;;  %v4209_v30 = vsel %vm11780_vm4, 0, %v4208_v5 }
 0x255   : > { %v4821_v17 = vsel %vm11876_vm9, %v4573_v19, %v4820_v26  ;;  %v4581_v29 = vor.u32 %v4579_v10, %v4578_v37  ;;  %v4583_v39 = vrot.slane %v4578_v37, 4  ;;  %v4264_v61 = vld [vmem:[#allocation2 + $0xc8] sm:$0x1]  ;;  %4210 = vst [vmem:[#allocation2 + $0xc0] sm:$0x1] %v4209_v30  ;;  %v4268_v19 = vsel %vm11796_vm15, 0, %v4267_v25 }
 0x256   : > { %4822 = vst [vmem:[#allocation2 + $0x84] sm:$0xf] %v4821_v17  ;;  %v4814_v62 = vsel %vm11876_vm9, %v4556_v22, %v4813_v15  ;;  %v4564_v23 = vor.u32 %v4562_v38, %v4561_v36  ;;  %v4566_v48 = vrot.slane %v4561_v36, 4  ;;  %v5272_v17 = vrot.slane %v5270_v59, 5  ;;  %v12379_v59 = vld [vmem:[#allocation2 + $0x3c] sm:$0xf] }
 0x257   : > { %4815 = vst [vmem:[#allocation2 + $0x78] sm:$0xf] %v4814_v62  ;;  %v4582_v27 = vsel %vm11883_vm10, %v4574_v46, %v4581_v29  ;;  %v4825_v26 = vsel %vm11780_vm4, %v4583_v39, %v4824_v40  ;;  %v5307_v39 = vor.u32 %v12329_v3, %v12324_v41  ;;  %v6327_v37 = vor.u32 %v12342_v56, %v12338_v8  ;;  %v5052_v40 = vld [vmem:[#allocation2 + $0x68] sm:$0x1] }
 0x258   : > { %4823 = vst.msk [vmem:[#allocation2 + $0x88] sm:$0xf] %vm4740_vm0, %v4582_v27  ;;  %4826 = vst [vmem:[#allocation2 + $0x8c] sm:$0x1] %v4825_v26  ;;  %v4565_v22 = vsel %vm11883_vm10, %v4557_v49, %v4564_v23  ;;  %v4818_v15 = vsel %vm11780_vm4, %v4566_v48, %v4817_v52  ;;  %v6330_v10 = vshll.u32 %v6096_v35, 16  ;;  %v4265_v52 = vsel %vm11796_vm15, 0, %v4264_v61  ;;  %v12418_v30 = vpop.permute.xlu1 %7596 }
 0x259   : > { %4816 = vst.msk [vmem:[#allocation2 + $0x7c] sm:$0xf] %vm4740_vm0, %v4565_v22  ;;  %4819 = vst [vmem:[#allocation2 + $0x80] sm:$0x1] %v4818_v15  ;;  %v13848_v3 = vrot.slane %v12248_v6, 5  ;;  %v6317_v36 = vor.u32 %v12334_v34, %v12332_v57  ;;  %v5283_v38 = vor.u32 %v5282_v12, %v12353_v16  ;;  %v13849_v5 = vshrl.u32 %v12266_v42, 16 }
 0x25a   : > { %4269 = vst [vmem:[#allocation2 + $0xd4] sm:$0x1] %v4268_v19  ;;  %4266 = vst [vmem:[#allocation2 + $0xc8] sm:$0x1] %v4265_v52  ;;  %v13850_v56 = vshll.u32 %v12266_v42, 16  ;;  %v5273_v1 = vor.u32 %v5272_v17, %v12344_v33  ;;  %v13851_v49 = vshll.u32 %v12277_v58, 16  ;;  %v13853_v12 = vor.u32 %v12314_v63, %v12309_v13 }
 0x25b   : > { %v12388_v46 = vrot.slane %v13848_v3, 4  ;;  %v12395_v29 = vrot.slane %v13849_v5, 4  ;;  %v13852_v23 = vshrl.u32 %v12277_v58, 16  ;;  %v6215_v34 = vshrl.u32 %v12379_v59, 16  ;;  %v12416_v33 = vld [vmem:[#allocation2 + $0x40] sm:$0xf]  ;;  %v12420_v58 = vpop.permute.xlu0 %7915 }
 0x25c   : > { %v12399_v25 = vrot.slane %v13850_v56, 5  ;;  %v12404_v62 = vrot.slane %v13851_v49, 5  ;;  %v5298_v48 = vrot.slane %v13853_v12, 4  ;;  %v5308_v35 = vrot.slane %v5307_v39, 4 }
 0x25d   : > { %v12408_v57 = vrot.slane %v13852_v23, 4  ;;  %v13854_v42 = vshll.u32 %v12296_v28, 16  ;;  %v5286_v27 = vshll.u32 %v5052_v40, 16  ;;  %v6328_v26 = vrot.slane %v6327_v37, 4 }
 0x25e   : > { %v6332_v17 = vrot.slane %v6330_v10, 5  ;;  %v6318_v22 = vrot.slane %v6317_v36, 4  ;;  %v5284_v15 = vrot.slane %v5283_v38, 4  ;;  %v13855_v19 = vrot.slane %v12176_v45, 5  ;;  %v5604_v36 = vld [vmem:[#allocation2 + $0x84] sm:$0xe] }
 0x25f   : > { %v5312_v61 = vrot.slane %v13854_v42, 5  ;;  %v13856_v63 = vrot.slane %v12193_v2, 9  ;;  %v7233_v28 = vsel %vm10649_vm5, %v12235_v31, %v12220_v51  ;;  %v10467_v39 = vld [vmem:[#allocation2 + $0x84] sm:$0xff]   ;;  %v5274_v37 = vrot.slane %v5273_v1, 4  ;;  %v6642_v12 = vld [vmem:[#allocation2 + $0x78] sm:$0xe] }
 0x260   : > { %v13857_v40 = vrot.slane %v12201_v9, 5  ;;  %v13858_v45 = vrot.slane %v12199_v7, 9  ;;  %v10468_v52 = vld [vmem:[#allocation2 + $0x84] sm:$0xff]   ;;  %v5288_v38 = vrot.slane %v5286_v27, 5  ;;  %v7223_v51 = vsel %vm10649_vm5, %v12228_v50, %v12186_v60  ;;  %7067 = vrot.lane.b32.xlu1 %v10467_v39, %s10547_s30 }
 0x261   : > { %v12428_v13 = vsel %vm10611_vm2, %v13856_v63, %v13855_v19  ;;  %v5313_v3 = vsel %vm10649_vm5, %v5308_v35, %v5312_v61  ;;  %v13859_v31 = vrot.slane %v12212_v14, 5  ;;  %v13860_v9 = vrot.slane %v12205_v18, 9  ;;  %v5605_v56 = vld [vmem:[#allocation2 + $0x88] sm:$0xf]  ;;  %6025 = vrot.lane.b32.xlu0 %v10468_v52, %s10542_s14  ;;  %v5606_v14 = vld [vmem:[#allocation2 + $0x8c] sm:$0x1] }
 0x262   : > { %v9856_v10 = vcombine.low %v12428_v13, %v12321_v55  ;;  %v12442_v2 = vsel %vm10611_vm2, %v13858_v45, %v13857_v40  ;;  %v6333_v5 = vsel %vm10649_vm5, %v6328_v26, %v6332_v17  ;;  %v12461_v1 = vcombine.low %v7223_v51, %v7233_v28  ;;  %v10495_v61 = vld [vmem:[#allocation2 + $0x84] sm:$0xff]   ;;  %v6644_v28 = vld [vmem:[#allocation2 + $0x80] sm:$0x1] }
 0x263   : > { %v12456_v7 = vsel %vm10611_vm2, %v13860_v9, %v13859_v31  ;;  %v6224_v60 = vshll.u32 %v12416_v33, 16  ;;  %v5303_v18 = vsel %vm10649_vm5, %v5298_v48, %v12324_v41  ;;  %v5746_v50 = vrot.slane %v5605_v56, 5  ;;  %v12481_v48 = vpop.permute.xlu0 %5831  ;;  %v7686_v40 = vld [vmem:[#allocation2 + $0x84] sm:$0xe]  ;;  %5021 = vst.msk [vmem:[#allocation4 + $0x58] sm:$0xff] %vm5009_vm6, %v10495_v61 }
 0x264   : > { %v5289_v23 = vsel %vm10649_vm5, %v5284_v15, %v5288_v38  ;;  %v13861_v35 = vrot.slane %v12203_v4, 5  ;;  %v9767_v27 = vcombine.low %v5303_v18, %v5313_v3  ;;  %v6323_v26 = vsel %vm10649_vm5, %v6318_v22, %v12338_v8  ;;  %v5513_v41 = vpop.permute.xlu1 %5512  ;;  %v6643_v15 = vld [vmem:[#allocation2 + $0x7c] sm:$0xf]  ;;  %v7687_v52 = vld [vmem:[#allocation2 + $0x88] sm:$0xf] }
 0x265   : > { %v9785_v17 = vrot.slane %v5604_v36, 9  ;;  %v5749_v19 = vrot.slane %v5606_v14, 5  ;;  %vm7642_vm15 = vcmask 523712   ;;  %v9830_v63 = vcombine.low %v6323_v26, %v6333_v5  ;;  %5558 = vst.msk [vmem:[#allocation4 + $0x18] sm:$0xff] %vm5554_vm14, %v5513_v41  ;;  %v10469_v8 = vld [vmem:[#allocation2 + $0x78] sm:$0xff]  }
 0x266   : > { %v12476_v42 = vsel %vm10611_vm2, %v12270_v47, %v13861_v35  ;;  %v5748_v4 = vrot.slane %v5746_v50, 4  ;;  %v5279_v47 = vsel %vm10649_vm5, %v5274_v37, %v12353_v16  ;;  %v6776_v39 = vrot.slane %v6643_v15, 5  ;;  %5524 = vrot.lane.b32.xlu1 %v9767_v27, %s10539_s11  ;;  %5879 = vst.msk [vmem:[#allocation4 + $0x18] sm:$0xff] %vm5875_vm8, %v12346_v44  ;;  %v7688_v3 = vld [vmem:[#allocation2 + $0x8c] sm:$0x1]  ;;  %v10470_v38 = vld [vmem:[#allocation2 + $0x78] sm:$0xff]  }
 0x267   : > { %v12491_v22 = vcombine.low %v5279_v47, %v5289_v23  ;;  %v9847_v45 = vrot.slane %v6642_v12, 9  ;;  %v13862_v37 = vrot.slane %v12222_v20, 5  ;;  %6566 = vrot.lane.b32.xlu0 %v9830_v63, %s10544_s16  ;;  %v5747_v44 = vsel %vm10611_vm2, %v9785_v17, %v5746_v50  ;;  %v6645_v5 = vld [vmem:[#allocation2 + $0x84] sm:$0xe]  ;;  %v6646_v56 = vld [vmem:[#allocation2 + $0x88] sm:$0xf] }
 0x268   : > { %v5750_v51 = vsel %vm10611_vm2, %v5748_v4, %v5749_v19  ;;  %v6778_v31 = vrot.slane %v6776_v39, 4  ;;  %v7820_v9 = vrot.slane %v7687_v52, 5  ;;  %v6779_v18 = vrot.slane %v6644_v28, 5  ;;  %v6012_v23 = vpop.permute.xlu1 %6011  ;;  %v6647_v12 = vld [vmem:[#allocation2 + $0x8c] sm:$0x1] }
 0x269   : > { %v12500_v36 = vsel %vm10611_vm2, %v12274_v53, %v13862_v37  ;;  %v9911_v20 = vrot.slane %v7686_v40, 9  ;;  %v7823_v14 = vrot.slane %v7688_v3, 5  ;;  %v6783_v53 = vrot.slane %v6646_v56, 5  ;;  %6057 = vst.msk [vmem:[#allocation4 + $0x18] sm:$0xff] %vm6053_vm7, %v6012_v23  ;;  %v7683_v26 = vld [vmem:[#allocation2 + $0x78] sm:$0xe] }
 0x26a   : > { %v9801_v35 = vcombine.low %v5747_v44, %v5750_v51  ;;  %v6777_v61 = vsel %vm10611_vm2, %v9847_v45, %v6776_v39  ;;  %v7822_v27 = vrot.slane %v7820_v9, 4  ;;  %v9848_v50 = vrot.slane %v6645_v5, 9  ;;  %v7684_v41 = vld [vmem:[#allocation2 + $0x7c] sm:$0xf]  ;;  %6023 = vrot.lane.b32.xlu1 %v10469_v8, %s10542_s14  ;;  %v12511_v17 = vpop.permute.xlu0 %6554  ;;  %v7685_v47 = vld [vmem:[#allocation2 + $0x80] sm:$0x1] }
 0x26b   : > { %v6780_v19 = vsel %vm10611_vm2, %v6778_v31, %v6779_v18  ;;  %v7821_v15 = vsel %vm10611_vm2, %v9911_v20, %v7820_v9  ;;  %v6785_v63 = vrot.slane %v6783_v53, 4  ;;  %v6786_v4 = vrot.slane %v6647_v12, 5  ;;  %v5601_v28 = vld [vmem:[#allocation2 + $0x78] sm:$0xe]  ;;  %v10167_v39 = vpop.f32.mrb[24].mxu0  ;;  %7065 = vrot.lane.b32.xlu0 %v10470_v38, %s10547_s30 }
 0x26c   : > { %v7824_v40 = vsel %vm10611_vm2, %v7822_v27, %v7823_v14  ;;  %v9910_v45 = vrot.slane %v7683_v26, 9  ;;  %v7813_v8 = vrot.slane %v7684_v41, 5  ;;  %v7816_v52 = vrot.slane %v7685_v47, 5  ;;  %v5602_v3 = vld [vmem:[#allocation2 + $0x7c] sm:$0xf]  ;;  %v4038_v51 = vpop.f32.mrb[25].mxu0 }
 0x26d   : > { %v12523_v37 = vld [vmem:[%s13796_s2] ss:$0 sm:$0xff]  ;;  %v12528_v31 = vsel %vm10611_vm2, %v6785_v63, %v6786_v4  ;;  %v9784_v38 = vrot.slane %v5601_v28, 9  ;;  %v5739_v9 = vrot.slane %v5602_v3, 5  ;;  %v10168_v56 = vpop.f32.mrb[26].mxu0  ;;  %v9863_v18 = vcombine.low %v6777_v61, %v6780_v19 }
 0x26e   : > { %v4047_v44 = vadd.f32 %v12523_v37, %v10167_v39  ;;  %v4039_v5 = vadd.f32 %v12523_v37, %v4038_v51  ;;  %v6784_v20 = vsel %vm10611_vm2, %v9848_v50, %v6783_v53  ;;  %v7815_v14 = vrot.slane %v7813_v8, 4  ;;  %v5603_v23 = vld [vmem:[#allocation2 + $0x80] sm:$0x1]  ;;  %v7141_v12 = vld [vmem:[#allocation2 + $0x84] sm:$0xf]  ;;  %v4041_v41 = vpop.f32.mrb[27].mxu0  ;;  %5849 = vrot.lane.b32.xlu1 %v9801_v35, %s10541_s13  ;;  %v7595_v4 = vpop.permute.xlu0 %7594 }
 0x26f   : > { %v4050_v26 = vadd.f32 %v12523_v37, %v10168_v56  ;;  %v9927_v63 = vcombine.low %v7821_v15, %v7824_v40  ;;  %v5741_v47 = vrot.slane %v5739_v9, 4  ;;  %v4042_v39 = vadd.f32 %v12523_v37, %v4041_v41  ;;  %5522 = vrot.lane.b32.xlu0 %v12491_v22, %s10539_s11  ;;  %7643 = vst.msk [vmem:[#allocation4] sm:$0xff] %vm7642_vm15, %v7595_v4  ;;  %v7142_v15 = vld [vmem:[#allocation2 + $0x88] sm:$0xf] }
 0x270   : > { %v4111_v27 = vmul.f32 0.2, %v4047_v44  ;;  %v4109_v28 = vmul.f32 0.2, %v4039_v5  ;;  %v9864_v53 = vcombine.low %v6784_v20, %v12528_v31  ;;  %v12542_v61 = vsel %vm10611_vm2, %v9910_v45, %v7813_v8  ;;  %7964 = vst.msk [vmem:[#allocation4] sm:$0xff] %vm7963_vm13, %v12420_v58 }
 0x271   : > { %v4112_v19 = vmul.f32 0.2, %v4050_v26  ;;  %v5742_v35 = vrot.slane %v5603_v23, 5  ;;  %v7379_v40 = vshrl.u32 %v7141_v12, 16  ;;  %v4110_v51 = vmul.f32 0.2, %v4042_v39 }
 0x272   : > { %v4147_v50 = vmax.f32 %v4047_v44, %v4111_v27  ;;  %v4145_v3 = vmax.f32 %v4039_v5, %v4109_v28  ;;  %v12548_v22 = vsel %vm10611_vm2, %v7815_v14, %v7816_v52  ;;  %v7382_v56 = vshll.u32 %v7141_v12, 16  ;;  %6889 = vrot.lane.b32.xlu1 %v9863_v18, %s10546_s29  ;;  %v6553_v45 = vpop.permute.xlu1 %6552 }
 0x273   : > { %v4148_v20 = vmax.f32 %v4050_v26, %v4112_v19  ;;  %v12553_v8 = vsel %vm10611_vm2, %v5741_v47, %v5742_v35  ;;  %v12555_v58 = vrot.slane %v7379_v40, 4  ;;  %v4146_v23 = vmax.f32 %v4042_v39, %v4110_v51  ;;  %7933 = vrot.lane.b32.xlu0 %v9927_v63, %s10548_s9  ;;  %6600 = vst.msk [vmem:[#allocation4 + $0x8] sm:$0xff] %vm6598_vm3, %v6553_v45  ;;  %v4834_v26 = vld [vmem:[#allocation2 + $0x9c] sm:$0xf]  ;;  %v13863_v47 = vld [vmem:[#allocation9_spill] sm:$0xff] }
 0x274   : > { %v10066_v31 = vpack.c.bf16 %v4147_v50, %v4147_v50  ;;  %v10064_v44 = vpack.c.bf16 %v4145_v3, %v4145_v3  ;;  %v12559_v52 = vrot.slane %v7382_v56, 5  ;;  %v7388_v5 = vshll.u32 %v7142_v15, 16  ;;  %6921 = vst.msk [vmem:[#allocation4 + $0x8] sm:$0xff] %vm6919_vm11, %v12364_v21  ;;  %v4827_v21 = vld [vmem:[#allocation2 + $0x90] sm:$0xf] }
 0x275   : > { %v10067_v12 = vpack.c.bf16 %v4148_v20, %v4148_v20  ;;  %v12565_v18 = vsel %vm10611_vm2, %v9784_v38, %v5739_v9  ;;  %v7392_v27 = vshrl.u32 %v7142_v15, 16  ;;  %v10065_v4 = vpack.c.bf16 %v4146_v23, %v4146_v23  ;;  %7099 = vst.msk [vmem:[#allocation4 + $0x8] sm:$0xff] %vm7097_vm12, %v13863_v47  ;;  %v4838_v15 = vld [vmem:[#allocation2 + $0xa4] sm:$0x1]  ;;  %v7143_v20 = vld [vmem:[#allocation2 + $0x8c] sm:$0x1] }
 0x276   : > { %v4602_v14 = vshrl.u32 %v10066_v31, 16  ;;  %v4585_v41 = vshrl.u32 %v10064_v44, 16  ;;  %v9926_v63 = vcombine.low %v12542_v61, %v12548_v22  ;;  %v9800_v28 = vcombine.low %v12565_v18, %v12553_v8  ;;  %7644 = vst.msk [vmem:[#allocation4 + $0x8] sm:$0xff] %vm7642_vm15, %v12418_v30  ;;  %v4831_v30 = vld [vmem:[#allocation2 + $0x98] sm:$0x1] }
 0x277   : > { %v4605_v50 = vshll.u32 %v10066_v31, 16  ;;  %v4610_v19 = vshrl.u32 %v10067_v12, 16  ;;  %v12575_v38 = vrot.slane %v7388_v5, 5  ;;  %v4588_v35 = vshll.u32 %v10064_v44, 16  ;;  %6891 = vrot.lane.b32.xlu0 %v9864_v53, %s10546_s29  ;;  %7965 = vst.msk [vmem:[#allocation4 + $0x8] sm:$0xff] %vm7963_vm13, %v12366_v11  ;;  %v5511_v61 = vpop.permute.xlu1 %5510  ;;  %v7980_v3 = vld [vmem:[#allocation4] sm:$0xff] }
 0x278   : > { %v4604_v39 = vrot.slane %v4602_v14, 7  ;;  %v4587_v9 = vrot.slane %v4585_v41, 7  ;;  %v4593_v40 = vshrl.u32 %v10065_v4, 16  ;;  %v7385_v51 = vor.u32 %v12559_v52, %v12555_v58  ;;  %5557 = vst.msk [vmem:[#allocation4 + $0x10] sm:$0xff] %vm5554_vm14, %v5511_v61  ;;  %10187 = vmatprep.mubr.msk.bf16.mxu0 %vm8039_vm1, %v7980_v3  ;;  %v6100_v11 = vld [vmem:[#allocation2 + $0x84] sm:$0xf] }
 0x279   : > { %v4612_v56 = vrot.slane %v4610_v19, 7  ;;  %v4613_v31 = vshll.u32 %v10067_v12, 16  ;;  %v7394_v45 = vrot.slane %v7392_v27, 4  ;;  %v4596_v5 = vshll.u32 %v10065_v4, 16  ;;  %5878 = vst.msk [vmem:[#allocation4 + $0x10] sm:$0xff] %vm5875_vm8, %v12481_v48  ;;  %v13864_v12 = vld [vmem:[#allocation11_spill] sm:$0xff] }
 0x27a   : > { %v4607_v22 = vor.u32 %v4605_v50, %v4604_v39  ;;  %v4608_v44 = vrot.slane %v4604_v39, 4  ;;  %v4590_v53 = vor.u32 %v4588_v35, %v4587_v9  ;;  %v4595_v23 = vrot.slane %v4593_v40, 7  ;;  %6056 = vst.msk [vmem:[#allocation4 + $0x10] sm:$0xff] %vm6053_vm7, %v13864_v12  ;;  %v6101_v47 = vld [vmem:[#allocation2 + $0x88] sm:$0xf] }
 0x27b   : > { %v4615_v52 = vor.u32 %v4613_v31, %v4612_v56  ;;  %v4617_v14 = vrot.slane %v4612_v56, 4  ;;  %v7395_v41 = vor.u32 %v7394_v45, %v12575_v38  ;;  %v6102_v27 = vld [vmem:[#allocation2 + $0x8c] sm:$0x1]  ;;  %v4591_v39 = vrot.slane %v4587_v9, 4  ;;  %7931 = vrot.lane.b32.xlu0 %v9926_v63, %s10548_s9  ;;  %6601 = vst.msk [vmem:[#allocation4 + $0x10] sm:$0xff] %vm6598_vm3, %v12511_v17 }
 0x27c   : > { %v4835_v58 = vsel %vm11876_vm9, %v4607_v22, %v4834_v26  ;;  %v4828_v4 = vsel %vm11876_vm9, %v4590_v53, %v4827_v21  ;;  %v4598_v50 = vor.u32 %v4596_v5, %v4595_v23  ;;  %v4600_v48 = vrot.slane %v4595_v23, 4  ;;  %v5059_v26 = vld [vmem:[#allocation2 + $0x84] sm:$0xf]  ;;  %v5060_v3 = vld [vmem:[#allocation2 + $0x88] sm:$0xf] }
 0x27d   : > { %4836 = vst [vmem:[#allocation2 + $0x9c] sm:$0xf] %v4835_v58  ;;  %4829 = vst [vmem:[#allocation2 + $0x90] sm:$0xf] %v4828_v4  ;;  %v4616_v19 = vsel %vm11883_vm10, %v4608_v44, %v4615_v52  ;;  %v4839_v35 = vsel %vm11780_vm4, %v4617_v14, %v4838_v15  ;;  %v7398_v40 = vshll.u32 %v7143_v20, 16  ;;  %v6359_v9 = vshrl.u32 %v6100_v11, 16  ;;  %v6557_v45 = vpop.permute.xlu1 %6556 }
 0x27e   : > { %4837 = vst.msk [vmem:[#allocation2 + $0xa0] sm:$0xf] %vm4740_vm0, %v4616_v19  ;;  %4840 = vst [vmem:[#allocation2 + $0xa4] sm:$0x1] %v4839_v35  ;;  %v4599_v21 = vsel %vm11883_vm10, %v4591_v39, %v4598_v50  ;;  %v4832_v63 = vsel %vm11780_vm4, %v4600_v48, %v4831_v30  ;;  %v7396_v17 = vrot.slane %v7395_v41, 4  ;;  %v6362_v61 = vshll.u32 %v6100_v11, 16 }
 0x27f   : > { %4830 = vst.msk [vmem:[#allocation2 + $0x94] sm:$0xf] %vm4740_vm0, %v4599_v21  ;;  %4833 = vst [vmem:[#allocation2 + $0x98] sm:$0x1] %v4832_v63  ;;  %v6361_v22 = vrot.slane %v6359_v9, 4  ;;  %v6368_v56 = vshll.u32 %v6101_v47, 16  ;;  %5847 = vrot.lane.b32.xlu0 %v9800_v28, %s10541_s13 }
 0x280   : > { %v6372_v15 = vshrl.u32 %v6101_v47, 16  ;;  %v6378_v31 = vshll.u32 %v6102_v27, 16  ;;  %v7981_v20 = vld [vmem:[#allocation4 + $0x8] sm:$0xff]  ;;  %v7386_v44 = vrot.slane %v7385_v51, 4  ;;  %v6364_v53 = vrot.slane %v6362_v61, 5  ;;  %6602 = vst.msk [vmem:[#allocation4 + $0x18] sm:$0xff] %vm6598_vm3, %v6557_v45 }
 0x281   : > { %10188 = vmatmul.mubr.msk.bf16.vlgmr.msra.gmra.mrb[36].mxu0 %vm8039_vm1, %v7981_v20  ;;  %v5061_v30 = vld [vmem:[#allocation2 + $0x8c] sm:$0x1]  ;;  %v5339_v23 = vshrl.u32 %v5059_v26, 16  ;;  %v5342_v5 = vshll.u32 %v5059_v26, 16  ;;  %v7400_v11 = vrot.slane %v7398_v40, 5  ;;  %v6370_v58 = vrot.slane %v6368_v56, 5 }
 0x282   : > { %v6374_v52 = vrot.slane %v6372_v15, 4  ;;  %v6380_v14 = vrot.slane %v6378_v31, 5  ;;  %v6365_v12 = vor.u32 %v6364_v53, %v6361_v22  ;;  %v5348_v27 = vshll.u32 %v5060_v3, 16  ;;  %v7138_v8 = vld [vmem:[#allocation2 + $0x78] sm:$0xf]  ;;  %v13865_v61 = vld [vmem:[#allocation5_spill] sm:$0xff] }
 0x283   : > { %v5341_v41 = vrot.slane %v5339_v23, 4  ;;  %v5344_v47 = vrot.slane %v5342_v5, 5  ;;  %v7401_v18 = vsel %vm10649_vm5, %v7396_v17, %v7400_v11  ;;  %v5352_v51 = vshrl.u32 %v5060_v3, 16  ;;  %v7139_v4 = vld [vmem:[#allocation2 + $0x7c] sm:$0xf]  ;;  %v13867_v22 = vld [vmem:[#allocation6_spill] sm:$0xff] }
 0x284   : > { %v6375_v28 = vor.u32 %v6374_v52, %v6370_v58  ;;  %v5358_v39 = vshll.u32 %v5061_v30, 16  ;;  %v6366_v50 = vrot.slane %v6365_v12, 4  ;;  %v5350_v26 = vrot.slane %v5348_v27, 5  ;;  %v7140_v19 = vld [vmem:[#allocation2 + $0x80] sm:$0x1]  ;;  %v13869_v15 = vld [vmem:[#allocation7_spill] sm:$0xff] }
 0x285   : > { %v5345_v48 = vor.u32 %v5344_v47, %v5341_v41  ;;  %v10478_v40 = vld [vmem:[#allocation2 + $0x9c] sm:$0xff]   ;;  %v7391_v9 = vsel %vm10649_vm5, %v7386_v44, %v12575_v38  ;;  %v6097_v63 = vld [vmem:[#allocation2 + $0x78] sm:$0xf]  ;;  %v13866_v17 = vrot.slane %v13865_v61, 5  ;;  %v13868_v3 = vrot.slane %v13867_v22, 9 }
 0x286   : > { %v6376_v21 = vrot.slane %v6375_v28, 4  ;;  %v13870_v31 = vrot.slane %v13869_v15, 5  ;;  %v13871_v20 = vld [vmem:[#allocation12_spill] sm:$0xff]  ;;  %v9895_v30 = vcombine.low %v7391_v9, %v7401_v18  ;;  %v6371_v38 = vsel %vm10649_vm5, %v6366_v50, %v6370_v58  ;;  %7071 = vrot.lane.b32.xlu1 %v10478_v40, %s10547_s30  ;;  %v6098_v28 = vld [vmem:[#allocation2 + $0x7c] sm:$0xf] }
 0x287   : > { %v12625_v56 = vsel %vm10611_vm2, %v13868_v3, %v13866_v17  ;;  %v10479_v53 = vld [vmem:[#allocation2 + $0x9c] sm:$0xff]   ;;  %v5346_v44 = vrot.slane %v5345_v48, 4  ;;  %v5354_v23 = vrot.slane %v5352_v51, 4  ;;  %v5360_v11 = vrot.slane %v5358_v39, 5 }
 0x288   : > { %v12632_v45 = vsel %vm10611_vm2, %v13871_v20, %v13870_v31  ;;  %v6381_v5 = vsel %vm10649_vm5, %v6376_v21, %v6380_v14  ;;  %v7355_v52 = vshrl.u32 %v7138_v8, 16  ;;  %v7358_v12 = vshll.u32 %v7138_v8, 16  ;;  %6029 = vrot.lane.b32.xlu0 %v10479_v53, %s10542_s14  ;;  %v6099_v40 = vld [vmem:[#allocation2 + $0x80] sm:$0x1]  ;;  %v7692_v21 = vld [vmem:[#allocation2 + $0x9c] sm:$0xe] }
 0x289   : > { %v9832_v41 = vcombine.low %v6371_v38, %v6381_v5  ;;  %v5351_v47 = vsel %vm10649_vm5, %v5346_v44, %v5350_v26  ;;  %v5355_v27 = vor.u32 %v5354_v23, %v5350_v26  ;;  %v7364_v18 = vshll.u32 %v7139_v4, 16  ;;  %v7693_v15 = vld [vmem:[#allocation2 + $0xa0] sm:$0xf]  ;;  %v10507_v26 = vld [vmem:[#allocation2 + $0x30] sm:$0xff]   ;;  %v7694_v53 = vld [vmem:[#allocation2 + $0xa4] sm:$0x1] }
 0x28a   : > { %v7357_v58 = vrot.slane %v7355_v52, 4  ;;  %v7360_v50 = vrot.slane %v7358_v12, 5  ;;  %v7368_v51 = vshrl.u32 %v7139_v4, 16  ;;  %v7374_v48 = vshll.u32 %v7140_v19, 16  ;;  %7612 = vrot.lane.b32.xlu1 %v9895_v30, %s10549_s10  ;;  %v10508_v38 = vld [vmem:[#allocation2 + $0x3c] sm:$0xff]   ;;  %5014 = vst.msk [vmem:[#allocation4 + $0x20] sm:$0xff] %vm5009_vm6, %v10507_v26 }
 0x28b   : > { %v5356_v9 = vrot.slane %v5355_v27, 4  ;;  %v7366_v61 = vrot.slane %v7364_v18, 5  ;;  %v6335_v14 = vshrl.u32 %v6097_v63, 16  ;;  %v6338_v39 = vshll.u32 %v6097_v63, 16  ;;  %v5056_v5 = vld [vmem:[#allocation2 + $0x78] sm:$0xf] }
 0x28c   : > { %v7361_v8 = vor.u32 %v7360_v50, %v7357_v58  ;;  %v7370_v17 = vrot.slane %v7368_v51, 4  ;;  %v7376_v22 = vrot.slane %v7374_v48, 5  ;;  %v6344_v3 = vshll.u32 %v6098_v28, 16  ;;  %6570 = vrot.lane.b32.xlu0 %v9832_v41, %s10544_s16  ;;  %v10480_v52 = vld [vmem:[#allocation2 + $0x90] sm:$0xff]   ;;  %5015 = vst.msk [vmem:[#allocation4 + $0x28] sm:$0xff] %vm5009_vm6, %v10508_v38 }
 0x28d   : > { %v5361_v4 = vsel %vm10649_vm5, %v5356_v9, %v5360_v11  ;;  %v6337_v19 = vrot.slane %v6335_v14, 4  ;;  %v6340_v31 = vrot.slane %v6338_v39, 5  ;;  %v6348_v20 = vshrl.u32 %v6098_v28, 16  ;;  %v5057_v38 = vld [vmem:[#allocation2 + $0x7c] sm:$0xf] }
 0x28e   : > { %v9769_v63 = vcombine.low %v5351_v47, %v5361_v4  ;;  %v7362_v44 = vrot.slane %v7361_v8, 4  ;;  %v7371_v23 = vor.u32 %v7370_v17, %v7366_v61  ;;  %v6346_v30 = vrot.slane %v6344_v3, 5  ;;  %v10171_v50 = vpop.f32.mrb[28].mxu0 }
 0x28f   : > { %v6341_v12 = vor.u32 %v6340_v31, %v6337_v19  ;;  %v6350_v27 = vrot.slane %v6348_v20, 4  ;;  %v6354_v18 = vshll.u32 %v6099_v40, 16  ;;  %v9913_v41 = vrot.slane %v7692_v21, 9  ;;  %v4054_v39 = vpop.f32.mrb[29].mxu0  ;;  %v10481_v21 = vld [vmem:[#allocation2 + $0x90] sm:$0xff]  }
 0x290   : > { %5528 = vrot.lane.b32.xlu1 %v9769_v63, %s10539_s11  ;;  %v7367_v11 = vsel %vm10649_vm5, %v7362_v44, %v7366_v61  ;;  %v7372_v28 = vrot.slane %v7371_v23, 4  ;;  %v7834_v47 = vrot.slane %v7693_v15, 5  ;;  %v7837_v58 = vrot.slane %v7694_v53, 5  ;;  %7069 = vrot.lane.b32.xlu0 %v10480_v52, %s10547_s30  ;;  %v10172_v15 = vpop.f32.mrb[30].mxu0 }
 0x291   : > { %v6342_v51 = vrot.slane %v6341_v12, 4  ;;  %v6351_v48 = vor.u32 %v6350_v27, %v6346_v30  ;;  %v6356_v9 = vrot.slane %v6354_v18, 5  ;;  %v5315_v14 = vshrl.u32 %v5056_v5, 16  ;;  %v4057_v53 = vpop.f32.mrb[31].mxu0  ;;  %v5058_v12 = vld [vmem:[#allocation2 + $0x80] sm:$0x1] }
 0x292   : > { %v4063_v40 = vadd.f32 %v12523_v37, %v10171_v50  ;;  %v7377_v8 = vsel %vm10649_vm5, %v7372_v28, %v7376_v22  ;;  %v7835_v61 = vsel %vm10611_vm2, %v9913_v41, %v7834_v47  ;;  %v7836_v17 = vrot.slane %v7834_v47, 4 }
 0x293   : > { %v4055_v3 = vadd.f32 %v12523_v37, %v4054_v39  ;;  %v9894_v26 = vcombine.low %v7367_v11, %v7377_v8  ;;  %v6347_v4 = vsel %vm10649_vm5, %v6342_v51, %v6346_v30  ;;  %v6352_v19 = vrot.slane %v6351_v48, 4 }
 0x294   : > { %v4115_v31 = vmul.f32 0.2, %v4063_v40  ;;  %v4066_v20 = vadd.f32 %v12523_v37, %v10172_v15  ;;  %6027 = vrot.lane.b32.xlu1 %v10481_v21, %s10542_s14  ;;  %v7838_v22 = vsel %vm10611_vm2, %v7836_v17, %v7837_v58  ;;  %v5317_v63 = vrot.slane %v5315_v14, 4 }
 0x295   : > { %v4113_v44 = vmul.f32 0.2, %v4055_v3  ;;  %v4058_v23 = vadd.f32 %v12523_v37, %v4057_v53  ;;  %7610 = vrot.lane.b32.xlu0 %v9894_v26, %s10549_s10  ;;  %v6357_v30 = vsel %vm10649_vm5, %v6352_v19, %v6356_v9  ;;  %v9929_v52 = vcombine.low %v7835_v61, %v7838_v22  ;;  %v4841_v53 = vld [vmem:[#allocation2 + $0xa8] sm:$0xf] }
 0x296   : > { %v4151_v27 = vmax.f32 %v4063_v40, %v4115_v31  ;;  %v4116_v18 = vmul.f32 0.2, %v4066_v20  ;;  %v9831_v41 = vcombine.low %v6347_v4, %v6357_v30  ;;  %v5318_v11 = vshll.u32 %v5056_v5, 16 }
 0x297   : > { %v4149_v28 = vmax.f32 %v4055_v3, %v4113_v44  ;;  %v4114_v47 = vmul.f32 0.2, %v4058_v23  ;;  %v5324_v50 = vshll.u32 %v5057_v38, 16  ;;  %v5328_v58 = vshrl.u32 %v5057_v38, 16  ;;  %v4848_v3 = vld [vmem:[#allocation2 + $0xb4] sm:$0xf] }
 0x298   : > { %v10070_v51 = vpack.c.bf16 %v4151_v27, %v4151_v27  ;;  %v4152_v48 = vmax.f32 %v4066_v20, %v4116_v18  ;;  %6568 = vrot.lane.b32.xlu1 %v9831_v41, %s10544_s16  ;;  %v5320_v14 = vrot.slane %v5318_v11, 5  ;;  %v5334_v39 = vshll.u32 %v5058_v12, 16  ;;  %v6651_v18 = vld [vmem:[#allocation2 + $0x9c] sm:$0xe] }
 0x299   : > { %v10068_v21 = vpack.c.bf16 %v4149_v28, %v4149_v28  ;;  %v4150_v8 = vmax.f32 %v4058_v23, %v4114_v47  ;;  %7937 = vrot.lane.b32.xlu0 %v9929_v52, %s10548_s9  ;;  %v5326_v9 = vrot.slane %v5324_v50, 5  ;;  %v5330_v61 = vrot.slane %v5328_v58, 4  ;;  %v4852_v23 = vld [vmem:[#allocation2 + $0xbc] sm:$0x1]  ;;  %v6652_v50 = vld [vmem:[#allocation2 + $0xa0] sm:$0xf] }
 0x29a   : > { %v4636_v40 = vshrl.u32 %v10070_v51, 16  ;;  %v4639_v17 = vshll.u32 %v10070_v51, 16  ;;  %v10071_v15 = vpack.c.bf16 %v4152_v48, %v4152_v48  ;;  %v5321_v5 = vor.u32 %v5320_v14, %v5317_v63  ;;  %v4845_v63 = vld [vmem:[#allocation2 + $0xb0] sm:$0x1]  ;;  %v6653_v58 = vld [vmem:[#allocation2 + $0xa4] sm:$0x1] }
 0x29b   : > { %v4619_v26 = vshrl.u32 %v10068_v21, 16  ;;  %v4622_v4 = vshll.u32 %v10068_v21, 16  ;;  %v10069_v19 = vpack.c.bf16 %v4150_v8, %v4150_v8  ;;  %v5331_v31 = vor.u32 %v5330_v61, %v5326_v9  ;;  %v5610_v8 = vld [vmem:[#allocation2 + $0x9c] sm:$0xe] }
 0x29c   : > { %v4638_v20 = vrot.slane %v4636_v40, 7  ;;  %v4644_v22 = vshrl.u32 %v10071_v15, 16  ;;  %v4647_v38 = vshll.u32 %v10071_v15, 16  ;;  %v5322_v44 = vrot.slane %v5321_v5, 4 }
 0x29d   : > { %v4621_v30 = vrot.slane %v4619_v26, 7  ;;  %v4627_v12 = vshrl.u32 %v10069_v19, 16  ;;  %v4630_v52 = vshll.u32 %v10069_v19, 16  ;;  %v5332_v27 = vrot.slane %v5331_v31, 4  ;;  %v5612_v26 = vld [vmem:[#allocation2 + $0xa4] sm:$0x1] }
 0x29e   : > { %v4641_v41 = vor.u32 %v4639_v17, %v4638_v20  ;;  %v4642_v11 = vrot.slane %v4638_v20, 4  ;;  %v4646_v28 = vrot.slane %v4644_v22, 7  ;;  %v5327_v47 = vsel %vm10649_vm5, %v5322_v44, %v5326_v9  ;;  %v5611_v17 = vld [vmem:[#allocation2 + $0xa0] sm:$0xf]  ;;  %v7689_v20 = vld [vmem:[#allocation2 + $0x90] sm:$0xe] }
 0x29f   : > { %v4624_v51 = vor.u32 %v4622_v4, %v4621_v30  ;;  %v4625_v48 = vrot.slane %v4621_v30, 4  ;;  %v4629_v14 = vrot.slane %v4627_v12, 7  ;;  %v5336_v21 = vrot.slane %v5334_v39, 5  ;;  %v7690_v39 = vld [vmem:[#allocation2 + $0x94] sm:$0xf] }
 0x2a0   : > { %v4849_v61 = vsel %vm11876_vm9, %v4641_v41, %v4848_v3  ;;  %v4649_v40 = vor.u32 %v4647_v38, %v4646_v28  ;;  %v4651_v15 = vrot.slane %v4646_v28, 4  ;;  %v9850_v5 = vrot.slane %v6651_v18, 9  ;;  %v7691_v30 = vld [vmem:[#allocation2 + $0x98] sm:$0x1]  ;;  %v6648_v12 = vld [vmem:[#allocation2 + $0x90] sm:$0xe] }
 0x2a1   : > { %4850 = vst [vmem:[#allocation2 + $0xb4] sm:$0xf] %v4849_v61  ;;  %v4842_v19 = vsel %vm11876_vm9, %v4624_v51, %v4841_v53  ;;  %v4632_v9 = vor.u32 %v4630_v52, %v4629_v14  ;;  %v4634_v31 = vrot.slane %v4629_v14, 4  ;;  %v5337_v4 = vsel %vm10649_vm5, %v5332_v27, %v5336_v21  ;;  %v6649_v18 = vld [vmem:[#allocation2 + $0x94] sm:$0xf] }
 0x2a2   : > { %4843 = vst [vmem:[#allocation2 + $0xa8] sm:$0xf] %v4842_v19  ;;  %v4650_v3 = vsel %vm11883_vm10, %v4642_v11, %v4649_v40  ;;  %v4853_v22 = vsel %vm11780_vm4, %v4651_v15, %v4852_v23  ;;  %v9768_v38 = vcombine.low %v5327_v47, %v5337_v4  ;;  %v6797_v44 = vrot.slane %v6652_v50, 5  ;;  %v6650_v41 = vld [vmem:[#allocation2 + $0x98] sm:$0x1] }
 0x2a3   : > { %4851 = vst.msk [vmem:[#allocation2 + $0xb8] sm:$0xf] %vm4740_vm0, %v4650_v3  ;;  %4854 = vst [vmem:[#allocation2 + $0xbc] sm:$0x1] %v4853_v22  ;;  %v4633_v53 = vsel %vm11883_vm10, %v4625_v48, %v4632_v9  ;;  %v4846_v52 = vsel %vm11780_vm4, %v4634_v31, %v4845_v63  ;;  %v6800_v27 = vrot.slane %v6653_v58, 5  ;;  %v6228_v11 = vshrl.u32 %v12416_v33, 16 }
 0x2a4   : > { %4844 = vst.msk [vmem:[#allocation2 + $0xac] sm:$0xf] %vm4740_vm0, %v4633_v53  ;;  %4847 = vst [vmem:[#allocation2 + $0xb0] sm:$0x1] %v4846_v52  ;;  %5526 = vrot.lane.b32.xlu1 %v9768_v38, %s10539_s11  ;;  %v6798_v23 = vsel %vm10611_vm2, %v9850_v5, %v6797_v44  ;;  %v6799_v28 = vrot.slane %v6797_v44, 4  ;;  %v9787_v47 = vrot.slane %v5610_v8, 9 }
 0x2a5   : > { %v5760_v50 = vrot.slane %v5611_v17, 5  ;;  %v5607_v51 = vld [vmem:[#allocation2 + $0x90] sm:$0xe]  ;;  %v5608_v48 = vld [vmem:[#allocation2 + $0x94] sm:$0xf]  ;;  %v5763_v14 = vrot.slane %v5612_v26, 5 }
 0x2a6   : > { %v9912_v63 = vrot.slane %v7689_v20, 9  ;;  %v7827_v58 = vrot.slane %v7690_v39, 5  ;;  %v7830_v21 = vrot.slane %v7691_v30, 5  ;;  %v5609_v61 = vld [vmem:[#allocation2 + $0x98] sm:$0x1]  ;;  %v6801_v40 = vsel %vm10611_vm2, %v6799_v28, %v6800_v27 }
 0x2a7   : > { %v5762_v15 = vrot.slane %v5760_v50, 4  ;;  %v9849_v19 = vrot.slane %v6648_v12, 9  ;;  %v6790_v9 = vrot.slane %v6649_v18, 5  ;;  %v7147_v31 = vld [vmem:[#allocation2 + $0x9c] sm:$0xf]  ;;  %v9866_v4 = vcombine.low %v6798_v23, %v6801_v40 }
 0x2a8   : > { %v5761_v5 = vsel %vm10611_vm2, %v9787_v47, %v5760_v50  ;;  %v7828_v8 = vsel %vm10611_vm2, %v9912_v63, %v7827_v58  ;;  %v7829_v17 = vrot.slane %v7827_v58, 4  ;;  %v7148_v26 = vld [vmem:[#allocation2 + $0xa0] sm:$0xf]  ;;  %v7149_v20 = vld [vmem:[#allocation2 + $0xa4] sm:$0x1]  ;;  %v6793_v38 = vrot.slane %v6650_v41, 5 }
 0x2a9   : > { %v5764_v39 = vsel %vm10611_vm2, %v5762_v15, %v5763_v14  ;;  %v6791_v3 = vsel %vm10611_vm2, %v9849_v19, %v6790_v9  ;;  %v6792_v22 = vrot.slane %v6790_v9, 4  ;;  %v6106_v44 = vld [vmem:[#allocation2 + $0x9c] sm:$0xf]  ;;  %6895 = vrot.lane.b32.xlu0 %v9866_v4, %s10546_s29  ;;  %v9786_v53 = vrot.slane %v5607_v51, 9  ;;  %v6107_v47 = vld [vmem:[#allocation2 + $0xa0] sm:$0xf] }
 0x2aa   : > { %v9803_v30 = vcombine.low %v5761_v5, %v5764_v39  ;;  %v7831_v12 = vsel %vm10611_vm2, %v7829_v17, %v7830_v21  ;;  %v5753_v52 = vrot.slane %v5608_v48, 5  ;;  %v5756_v23 = vrot.slane %v5609_v61, 5  ;;  %v6108_v58 = vld [vmem:[#allocation2 + $0xa4] sm:$0x1]  ;;  %v5065_v4 = vld [vmem:[#allocation2 + $0x9c] sm:$0xf] }
 0x2ab   : > { %v9928_v27 = vcombine.low %v7828_v8, %v7831_v12  ;;  %v6794_v18 = vsel %vm10611_vm2, %v6792_v22, %v6793_v38  ;;  %v7427_v28 = vshrl.u32 %v7147_v31, 16  ;;  %v7430_v63 = vshll.u32 %v7147_v31, 16  ;;  %v10482_v31 = vld [vmem:[#allocation2 + $0xb4] sm:$0xff]   ;;  %v5038_v33 = vld [vmem:[#allocation2 + $0x30] sm:$0xf] }
 0x2ac   : > { %5853 = vrot.lane.b32.xlu1 %v9803_v30, %s10541_s13  ;;  %v9865_v50 = vcombine.low %v6791_v3, %v6794_v18  ;;  %v5754_v41 = vsel %vm10611_vm2, %v9786_v53, %v5753_v52  ;;  %v5755_v14 = vrot.slane %v5753_v52, 4  ;;  %v7436_v21 = vshll.u32 %v7148_v26, 16  ;;  %v10509_v3 = vld [vmem:[#allocation2 + $0x48] sm:$0xff]   ;;  %v10510_v30 = vld [vmem:[#allocation2 + $0x54] sm:$0xff]  }
 0x2ad   : > { %v7429_v40 = vrot.slane %v7427_v28, 4  ;;  %v7440_v51 = vshrl.u32 %v7148_v26, 16  ;;  %v7446_v48 = vshll.u32 %v7149_v20, 16  ;;  %7935 = vrot.lane.b32.xlu0 %v9928_v27, %s10548_s9  ;;  %v7432_v15 = vrot.slane %v7430_v63, 5  ;;  %v5066_v27 = vld [vmem:[#allocation2 + $0xa0] sm:$0xf] }
 0x2ae   : > { %v5757_v61 = vsel %vm10611_vm2, %v5755_v14, %v5756_v23  ;;  %v6407_v19 = vshrl.u32 %v6106_v44, 16  ;;  %v6410_v9 = vshll.u32 %v6106_v44, 16  ;;  %v7438_v8 = vrot.slane %v7436_v21, 5  ;;  %v10497_v44 = vld [vmem:[#allocation2 + $0x78] sm:$0xff]   ;;  %5016 = vst.msk [vmem:[#allocation4 + $0x30] sm:$0xff] %vm5009_vm6, %v10509_v3  ;;  %5017 = vst.msk [vmem:[#allocation4 + $0x38] sm:$0xff] %vm5009_vm6, %v10510_v30 }
 0x2af   : > { %v9802_v5 = vcombine.low %v5754_v41, %v5757_v61  ;;  %v7442_v17 = vrot.slane %v7440_v51, 4  ;;  %v7448_v39 = vrot.slane %v7446_v48, 5  ;;  %v7433_v22 = vor.u32 %v7432_v15, %v7429_v40  ;;  %v10483_v23 = vld [vmem:[#allocation2 + $0xb4] sm:$0xff]   ;;  %v5067_v14 = vld [vmem:[#allocation2 + $0xa4] sm:$0x1]  ;;  %5020 = vst.msk [vmem:[#allocation4 + $0x50] sm:$0xff] %vm5009_vm6, %v10497_v44 }
 0x2b0   : > { %6893 = vrot.lane.b32.xlu1 %v9865_v50, %s10546_s29  ;;  %v6409_v26 = vrot.slane %v6407_v19, 4  ;;  %v6412_v20 = vrot.slane %v6410_v9, 5  ;;  %v6416_v38 = vshll.u32 %v6107_v47, 16  ;;  %v6420_v53 = vshrl.u32 %v6107_v47, 16 }
 0x2b1   : > { %v7443_v12 = vor.u32 %v7442_v17, %v7438_v8  ;;  %v6426_v52 = vshll.u32 %v6108_v58, 16  ;;  %v5387_v18 = vshrl.u32 %v5065_v4, 16  ;;  %5851 = vrot.lane.b32.xlu0 %v9802_v5, %s10541_s13  ;;  %v7434_v28 = vrot.slane %v7433_v22, 4  ;;  %v10175_v19 = vpop.f32.mrb[32].mxu0 }
 0x2b2   : > { %v6413_v41 = vor.u32 %v6412_v20, %v6409_v26  ;;  %v6418_v50 = vrot.slane %v6416_v38, 5  ;;  %v5390_v63 = vshll.u32 %v5065_v4, 16  ;;  %v6422_v21 = vrot.slane %v6420_v53, 4  ;;  %v4070_v22 = vpop.f32.mrb[33].mxu0 }
 0x2b3   : > { %v7444_v40 = vrot.slane %v7443_v12, 4  ;;  %v6428_v51 = vrot.slane %v6426_v52, 5  ;;  %v5389_v47 = vrot.slane %v5387_v18, 4  ;;  %v7439_v58 = vsel %vm10649_vm5, %v7434_v28, %v7438_v8  ;;  %v10176_v38 = vpop.f32.mrb[34].mxu0 }
 0x2b4   : > { %7075 = vrot.lane.b32.xlu1 %v10482_v31, %s10547_s30  ;;  %v6414_v48 = vrot.slane %v6413_v41, 4  ;;  %v5392_v61 = vrot.slane %v5390_v63, 5  ;;  %v5396_v15 = vshll.u32 %v5066_v27, 16  ;;  %v6423_v4 = vor.u32 %v6422_v21, %v6418_v50  ;;  %v4073_v18 = vpop.f32.mrb[35].mxu0  ;;  %v7145_v63 = vld [vmem:[#allocation2 + $0x94] sm:$0xf] }
 0x2b5   : > { %v7449_v9 = vsel %vm10649_vm5, %v7444_v40, %v7448_v39  ;;  %v5400_v5 = vshrl.u32 %v5066_v27, 16  ;;  %v5406_v17 = vshll.u32 %v5067_v14, 16  ;;  %6033 = vrot.lane.b32.xlu0 %v10483_v23, %s10542_s14  ;;  %v4079_v3 = vadd.f32 %v12523_v37, %v10175_v19  ;;  %v7144_v39 = vld [vmem:[#allocation2 + $0x90] sm:$0xf] }
 0x2b6   : > { %v9897_v26 = vcombine.low %v7439_v58, %v7449_v9  ;;  %v6419_v31 = vsel %vm10649_vm5, %v6414_v48, %v6418_v50  ;;  %v5393_v8 = vor.u32 %v5392_v61, %v5389_v47  ;;  %v4071_v20 = vadd.f32 %v12523_v37, %v4070_v22 }
 0x2b7   : > { %v6424_v30 = vrot.slane %v6423_v4, 4  ;;  %v5398_v12 = vrot.slane %v5396_v15, 5  ;;  %v5402_v53 = vrot.slane %v5400_v5, 4  ;;  %v4119_v52 = vmul.f32 0.2, %v4079_v3 }
 0x2b8   : > { %v4082_v27 = vadd.f32 %v12523_v37, %v10176_v38  ;;  %7616 = vrot.lane.b32.xlu1 %v9897_v26, %s10549_s10  ;;  %v5394_v44 = vrot.slane %v5393_v8, 4  ;;  %v5408_v23 = vrot.slane %v5406_v17, 5  ;;  %v4117_v28 = vmul.f32 0.2, %v4071_v20 }
 0x2b9   : > { %v4074_v41 = vadd.f32 %v12523_v37, %v4073_v18  ;;  %v6429_v50 = vsel %vm10649_vm5, %v6424_v30, %v6428_v51  ;;  %v5403_v14 = vor.u32 %v5402_v53, %v5398_v12  ;;  %v4155_v40 = vmax.f32 %v4079_v3, %v4119_v52  ;;  %v4862_v18 = vld [vmem:[#allocation2 + $0xcc] sm:$0xf] }
 0x2ba   : > { %v4120_v21 = vmul.f32 0.2, %v4082_v27  ;;  %v9834_v47 = vcombine.low %v6419_v31, %v6429_v50  ;;  %v5399_v58 = vsel %vm10649_vm5, %v5394_v44, %v5398_v12  ;;  %v4153_v48 = vmax.f32 %v4071_v20, %v4117_v28  ;;  %v10484_v20 = vld [vmem:[#allocation2 + $0xa8] sm:$0xff]  }
 0x2bb   : > { %v4118_v61 = vmul.f32 0.2, %v4074_v41  ;;  %v5404_v15 = vrot.slane %v5403_v14, 4  ;;  %v7403_v19 = vshrl.u32 %v7144_v39, 16  ;;  %v10074_v9 = vpack.c.bf16 %v4155_v40, %v4155_v40 }
 0x2bc   : > { %v4156_v4 = vmax.f32 %v4082_v27, %v4120_v21  ;;  %6574 = vrot.lane.b32.xlu0 %v9834_v47, %s10544_s16  ;;  %v7406_v37 = vshll.u32 %v7144_v39, 16  ;;  %v7412_v5 = vshll.u32 %v7145_v63, 16  ;;  %v10072_v17 = vpack.c.bf16 %v4153_v48, %v4153_v48  ;;  %v4866_v48 = vld [vmem:[#allocation2 + $0xd4] sm:$0x1] }
 0x2bd   : > { %v4154_v51 = vmax.f32 %v4074_v41, %v4118_v61  ;;  %v5409_v3 = vsel %vm10649_vm5, %v5404_v15, %v5408_v23  ;;  %v7405_v22 = vrot.slane %v7403_v19, 4  ;;  %v4670_v26 = vshrl.u32 %v10074_v9, 16  ;;  %v4855_v41 = vld [vmem:[#allocation2 + $0xc0] sm:$0xf]  ;;  %v10485_v61 = vld [vmem:[#allocation2 + $0xa8] sm:$0xff]  }
 0x2be   : > { %v4673_v31 = vshll.u32 %v10074_v9, 16  ;;  %v10075_v8 = vpack.c.bf16 %v4156_v4, %v4156_v4  ;;  %v9771_v38 = vcombine.low %v5399_v58, %v5409_v3  ;;  %v4653_v30 = vshrl.u32 %v10072_v17, 16 }
 0x2bf   : > { %v4656_v12 = vshll.u32 %v10072_v17, 16  ;;  %v10073_v53 = vpack.c.bf16 %v4154_v51, %v4154_v51  ;;  %v7408_v52 = vrot.slane %v7406_v37, 5  ;;  %v4672_v27 = vrot.slane %v4670_v26, 7  ;;  %v7146_v37 = vld [vmem:[#allocation2 + $0x98] sm:$0x1] }
 0x2c0   : > { %v4678_v44 = vshrl.u32 %v10075_v8, 16  ;;  %v4681_v39 = vshll.u32 %v10075_v8, 16  ;;  %5532 = vrot.lane.b32.xlu1 %v9771_v38, %s10539_s11  ;;  %7073 = vrot.lane.b32.xlu0 %v10484_v20, %s10547_s30  ;;  %v12740_v28 = vrot.slane %v7412_v5, 5  ;;  %v4655_v23 = vrot.slane %v4653_v30, 7  ;;  %v4859_v26 = vld [vmem:[#allocation2 + $0xc8] sm:$0x1] }
 0x2c1   : > { %v4661_v50 = vshrl.u32 %v10073_v53, 16  ;;  %v4664_v14 = vshll.u32 %v10073_v53, 16  ;;  %v7409_v40 = vor.u32 %v7408_v52, %v7405_v22  ;;  %v4675_v21 = vor.u32 %v4673_v31, %v4672_v27  ;;  %v6103_v31 = vld [vmem:[#allocation2 + $0x90] sm:$0xf]  ;;  %v6104_v30 = vld [vmem:[#allocation2 + $0x94] sm:$0xf] }
 0x2c2   : > { %v4676_v47 = vrot.slane %v4672_v27, 4  ;;  %v4680_v58 = vrot.slane %v4678_v44, 7  ;;  %v7416_v15 = vshrl.u32 %v7145_v63, 16  ;;  %v4658_v19 = vor.u32 %v4656_v12, %v4655_v23  ;;  %v7698_v44 = vld [vmem:[#allocation2 + $0xb4] sm:$0xe] }
 0x2c3   : > { %v4659_v9 = vrot.slane %v4655_v23, 4  ;;  %v4663_v4 = vrot.slane %v4661_v50, 7  ;;  %v7410_v17 = vrot.slane %v7409_v40, 4  ;;  %v4863_v5 = vsel %vm11876_vm9, %v4675_v21, %v4862_v18  ;;  %v6105_v18 = vld [vmem:[#allocation2 + $0x98] sm:$0x1] }
 0x2c4   : > { %v4683_v51 = vor.u32 %v4681_v39, %v4680_v58  ;;  %v4685_v3 = vrot.slane %v4680_v58, 4  ;;  %6031 = vrot.lane.b32.xlu1 %v10485_v61, %s10542_s14  ;;  %v7418_v22 = vrot.slane %v7416_v15, 4  ;;  %4864 = vst [vmem:[#allocation2 + $0xcc] sm:$0xf] %v4863_v5  ;;  %v4856_v8 = vsel %vm11876_vm9, %v4658_v19, %v4855_v41  ;;  %v10501_v39 = vld [vmem:[#allocation2 + $0x9c] sm:$0xff]   ;;  %v12770_v5 = vpop.permute.xlu0 %6021 }
 0x2c5   : > { %v4666_v63 = vor.u32 %v4664_v14, %v4663_v4  ;;  %v4668_v38 = vrot.slane %v4663_v4, 4  ;;  %v7415_v20 = vsel %vm10649_vm5, %v7410_v17, %v12740_v28  ;;  %v13872_v12 = vmov 0   ;;  %4857 = vst [vmem:[#allocation2 + $0xc0] sm:$0xf] %v4856_v8  ;;  %v7699_v40 = vld [vmem:[#allocation2 + $0xb8] sm:$0xf] }
 0x2c6   : > { %4878 = vst.msk [vmem:[#allocation2 + $0xcc] sm:$0xf] %vm4740_vm0, %v13872_v12  ;;  %v4684_v53 = vsel %vm11883_vm10, %v4676_v47, %v4683_v51  ;;  %v4867_v52 = vsel %vm11780_vm4, %v4685_v3, %v4866_v48  ;;  %v7419_v24 = vor.u32 %v7418_v22, %v12740_v28  ;;  %v7422_v27 = vshll.u32 %v7146_v37, 16  ;;  %v7700_v58 = vld [vmem:[#allocation2 + $0xbc] sm:$0x1] }
 0x2c7   : > { %4865 = vst.msk [vmem:[#allocation2 + $0xd0] sm:$0xf] %vm4740_vm0, %v4684_v53  ;;  %4868 = vst [vmem:[#allocation2 + $0xd4] sm:$0x1] %v4867_v52  ;;  %v4667_v23 = vsel %vm11883_vm10, %v4659_v9, %v4666_v63  ;;  %v4860_v41 = vsel %vm11780_vm4, %v4668_v38, %v4859_v26  ;;  %v6383_v50 = vshrl.u32 %v6103_v31, 16  ;;  %v6386_v14 = vshll.u32 %v6103_v31, 16 }
 0x2c8   : > { %4879 = vst.msk [vmem:[#allocation2 + $0xd0] sm:$0xf] %vm4740_vm0, %v13872_v12  ;;  %vm13873_vm9 = vcmask 57344   ;;  %4858 = vst.msk [vmem:[#allocation2 + $0xc4] sm:$0xf] %vm4740_vm0, %v4667_v23  ;;  %v7420_v28 = vrot.slane %v7419_v24, 4 }
 0x2c9   : > { %4880 = vst.msk [vmem:[#allocation2 + $0xd4] sm:$0x1] %vm13873_vm9, %v13872_v12  ;;  %4861 = vst [vmem:[#allocation2 + $0xc8] sm:$0x1] %v4860_v41  ;;  %v7424_v21 = vrot.slane %v7422_v27, 5  ;;  %v6392_v47 = vshll.u32 %v6104_v30, 16 }
 0x2ca   : > { %v6396_v32 = vshrl.u32 %v6104_v30, 16  ;;  %5023 = vst.msk [vmem:[#allocation4 + $0x68] sm:$0xff] %vm5009_vm6, %v10501_v39  ;;  %v6385_v54 = vrot.slane %v6383_v50, 4  ;;  %v6388_v48 = vrot.slane %v6386_v14, 5  ;;  %v6402_v61 = vshll.u32 %v6105_v18, 16 }
 0x2cb   : > { %v9915_v15 = vrot.slane %v7698_v44, 9  ;;  %v5062_v19 = vld [vmem:[#allocation2 + $0x90] sm:$0xf]  ;;  %v7425_v9 = vsel %vm10649_vm5, %v7420_v28, %v7424_v21  ;;  %v6394_v4 = vrot.slane %v6392_v47, 5  ;;  %v7848_v17 = vrot.slane %v7699_v40, 5  ;;  %v12777_v21 = vpop.permute.xlu0 %6887 }
 0x2cc   : > { %v6398_v37 = vrot.slane %v6396_v32, 4  ;;  %v5063_v51 = vld [vmem:[#allocation2 + $0x94] sm:$0xf]  ;;  %v9896_v3 = vcombine.low %v7415_v20, %v7425_v9  ;;  %v6389_v26 = vor.u32 %v6388_v48, %v6385_v54  ;;  %v6404_v22 = vrot.slane %v6402_v61, 5  ;;  %v5064_v8 = vld [vmem:[#allocation2 + $0x98] sm:$0x1] }
 0x2cd   : > { %v7851_v31 = vrot.slane %v7700_v58, 5  ;;  %v6657_v63 = vld [vmem:[#allocation2 + $0xb4] sm:$0xe]  ;;  %v7849_v30 = vsel %vm10611_vm2, %v9915_v15, %v7848_v17  ;;  %v7850_v12 = vrot.slane %v7848_v17, 4  ;;  %v5363_v53 = vshrl.u32 %v5062_v19, 16 }
 0x2ce   : > { %v6399_v38 = vor.u32 %v6398_v37, %v6394_v4  ;;  %v6658_v52 = vld [vmem:[#allocation2 + $0xb8] sm:$0xf]  ;;  %v6659_v24 = vld [vmem:[#allocation2 + $0xbc] sm:$0x1]  ;;  %7614 = vrot.lane.b32.xlu0 %v9896_v3, %s10549_s10  ;;  %v6390_v27 = vrot.slane %v6389_v26, 4  ;;  %v5366_v18 = vshll.u32 %v5062_v19, 16 }
 0x2cf   : > { %v5372_v44 = vshll.u32 %v5063_v51, 16  ;;  %v5376_v39 = vshrl.u32 %v5063_v51, 16  ;;  %v5616_v20 = vld [vmem:[#allocation2 + $0xb4] sm:$0xe]  ;;  %v5617_v23 = vld [vmem:[#allocation2 + $0xb8] sm:$0xf]  ;;  %v7852_v14 = vsel %vm10611_vm2, %v7850_v12, %v7851_v31 }
 0x2d0   : > { %v5618_v41 = vld [vmem:[#allocation2 + $0xbc] sm:$0x1]  ;;  %v6400_v50 = vrot.slane %v6399_v38, 4  ;;  %v5365_v40 = vrot.slane %v5363_v53, 4  ;;  %v5382_v28 = vshll.u32 %v5064_v8, 16  ;;  %v6395_v32 = vsel %vm10649_vm5, %v6390_v27, %v6394_v4  ;;  %v10503_v27 = vld [vmem:[#allocation2 + $0x90] sm:$0xff]  }
 0x2d1   : > { %v7695_v47 = vld [vmem:[#allocation2 + $0xa8] sm:$0xe]  ;;  %v9931_v58 = vcombine.low %v7849_v30, %v7852_v14  ;;  %v5368_v54 = vrot.slane %v5366_v18, 5  ;;  %v5374_v48 = vrot.slane %v5372_v44, 5  ;;  %v7696_v61 = vld [vmem:[#allocation2 + $0xac] sm:$0xf]  ;;  %v12787_v44 = vpop.permute.xlu1 %5845 }
 0x2d2   : > { %v6405_v15 = vsel %vm10649_vm5, %v6400_v50, %v6404_v22  ;;  %v5378_v19 = vrot.slane %v5376_v39, 4  ;;  %v5384_v9 = vrot.slane %v5382_v28, 5  ;;  %v9852_v37 = vrot.slane %v6657_v63, 9  ;;  %v7697_v17 = vld [vmem:[#allocation2 + $0xb0] sm:$0x1]  ;;  %5022 = vst.msk [vmem:[#allocation4 + $0x60] sm:$0xff] %vm5009_vm6, %v10503_v27 }
 0x2d3   : > { %v6654_v51 = vld [vmem:[#allocation2 + $0xa8] sm:$0xe]  ;;  %v9833_v3 = vcombine.low %v6395_v32, %v6405_v15  ;;  %7941 = vrot.lane.b32.xlu0 %v9931_v58, %s10548_s9  ;;  %v5369_v26 = vor.u32 %v5368_v54, %v5365_v40  ;;  %v6811_v31 = vrot.slane %v6658_v52, 5  ;;  %v6814_v8 = vrot.slane %v6659_v24, 5  ;;  %v6655_v53 = vld [vmem:[#allocation2 + $0xac] sm:$0xf] }
 0x2d4   : > { %v5379_v38 = vor.u32 %v5378_v19, %v5374_v48  ;;  %v9789_v4 = vrot.slane %v5616_v20, 9  ;;  %v5774_v30 = vrot.slane %v5617_v23, 5  ;;  %v5777_v12 = vrot.slane %v5618_v41, 5  ;;  %v6656_v50 = vld [vmem:[#allocation2 + $0xb0] sm:$0x1]  ;;  %v12791_v23 = vpop.permute.xlu0 %5843 }
 0x2d5   : > { %6572 = vrot.lane.b32.xlu1 %v9833_v3, %s10544_s16  ;;  %v5370_v22 = vrot.slane %v5369_v26, 4  ;;  %v6812_v63 = vsel %vm10611_vm2, %v9852_v37, %v6811_v31  ;;  %v6813_v18 = vrot.slane %v6811_v31, 4  ;;  %v9914_v39 = vrot.slane %v7695_v47, 9  ;;  %v5613_v41 = vld [vmem:[#allocation2 + $0xa8] sm:$0xe] }
 0x2d6   : > { %v5380_v14 = vrot.slane %v5379_v38, 4  ;;  %v5775_v52 = vsel %vm10611_vm2, %v9789_v4, %v5774_v30  ;;  %v5776_v24 = vrot.slane %v5774_v30, 4  ;;  %v7841_v20 = vrot.slane %v7696_v61, 5  ;;  %v5614_v58 = vld [vmem:[#allocation2 + $0xac] sm:$0xf] }
 0x2d7   : > { %v5375_v40 = vsel %vm10649_vm5, %v5370_v22, %v5374_v48  ;;  %v6815_v28 = vsel %vm10611_vm2, %v6813_v18, %v6814_v8  ;;  %v7844_v32 = vrot.slane %v7697_v17, 5  ;;  %v9851_v47 = vrot.slane %v6654_v51, 9  ;;  %v5615_v54 = vld [vmem:[#allocation2 + $0xb0] sm:$0x1]  ;;  %v7153_v3 = vld [vmem:[#allocation2 + $0xb4] sm:$0xf]  ;;  %v12804_v8 = vpop.permute.xlu1 %7067 }
 0x2d8   : > { %v5385_v15 = vsel %vm10649_vm5, %v5380_v14, %v5384_v9  ;;  %v9868_v19 = vcombine.low %v6812_v63, %v6815_v28  ;;  %v5778_v61 = vsel %vm10611_vm2, %v5776_v24, %v5777_v12  ;;  %v7842_v37 = vsel %vm10611_vm2, %v9914_v39, %v7841_v20  ;;  %v7154_v30 = vld [vmem:[#allocation2 + $0xb8] sm:$0xf]  ;;  %v12807_v27 = vpop.permute.xlu0 %6025  ;;  %v7155_v63 = vld [vmem:[#allocation2 + $0xbc] sm:$0x1]  ;;  %v6112_v24 = vld [vmem:[#allocation2 + $0xb4] sm:$0xf] }
 0x2d9   : > { %v9770_v26 = vcombine.low %v5375_v40, %v5385_v15  ;;  %v9805_v48 = vcombine.low %v5775_v52, %v5778_v61  ;;  %v7843_v31 = vrot.slane %v7841_v20, 4  ;;  %v6804_v38 = vrot.slane %v6655_v53, 5  ;;  %v6114_v61 = vld [vmem:[#allocation2 + $0xbc] sm:$0x1]  ;;  %v7161_v35 = vld [vmem:[#allocation2 + $0xd4] sm:$0x1] }
 0x2da   : > { %6899 = vrot.lane.b32.xlu0 %v9868_v19, %s10546_s29  ;;  %v6807_v17 = vrot.slane %v6656_v50, 5  ;;  %v9788_v51 = vrot.slane %v5613_v41, 9  ;;  %v5767_v4 = vrot.slane %v5614_v58, 5  ;;  %v5770_v9 = vrot.slane %v5615_v54, 5 }
 0x2db   : > { %5530 = vrot.lane.b32.xlu1 %v9770_v26, %s10539_s11  ;;  %v7845_v12 = vsel %vm10611_vm2, %v7843_v31, %v7844_v32  ;;  %v6805_v22 = vsel %vm10611_vm2, %v9851_v47, %v6804_v38  ;;  %v6806_v53 = vrot.slane %v6804_v38, 4  ;;  %v7475_v18 = vshrl.u32 %v7153_v3, 16  ;;  %v6113_v32 = vld [vmem:[#allocation2 + $0xb8] sm:$0xf]  ;;  %v5525_v58 = vpop.permute.xlu1 %5524 }
 0x2dc   : > { %v9930_v39 = vcombine.low %v7842_v37, %v7845_v12  ;;  %v5768_v50 = vsel %vm10611_vm2, %v9788_v51, %v5767_v4  ;;  %v5769_v14 = vrot.slane %v5767_v4, 4  ;;  %v7478_v52 = vshll.u32 %v7153_v3, 16  ;;  %5564 = vst.msk [vmem:[#allocation4 + $0x48] sm:$0xff] %vm5554_vm14, %v5525_v58  ;;  %v12822_v37 = vpop.permute.xlu0 %6566 }
 0x2dd   : > { %v6808_v20 = vsel %vm10611_vm2, %v6806_v53, %v6807_v17  ;;  %v7477_v41 = vrot.slane %v7475_v18, 4  ;;  %v7484_v40 = vshll.u32 %v7154_v30, 16  ;;  %v7488_v28 = vshrl.u32 %v7154_v30, 16  ;;  %v5071_v17 = vld [vmem:[#allocation2 + $0xb4] sm:$0xf]  ;;  %5885 = vst.msk [vmem:[#allocation4 + $0x48] sm:$0xff] %vm5875_vm8, %v12787_v44 }
 0x2de   : > { %7939 = vrot.lane.b32.xlu0 %v9930_v39, %s10548_s9  ;;  %v9867_v47 = vcombine.low %v6805_v22, %v6808_v20  ;;  %v5771_v54 = vsel %vm10611_vm2, %v5769_v14, %v5770_v9  ;;  %v7480_v15 = vrot.slane %v7478_v52, 5  ;;  %v7494_v19 = vshll.u32 %v7155_v63, 16  ;;  %v5072_v18 = vld [vmem:[#allocation2 + $0xb8] sm:$0xf] }
 0x2df   : > { %5857 = vrot.lane.b32.xlu1 %v9805_v48, %s10541_s13  ;;  %v9804_v3 = vcombine.low %v5768_v50, %v5771_v54  ;;  %v7486_v26 = vrot.slane %v7484_v40, 5  ;;  %v7490_v31 = vrot.slane %v7488_v28, 4  ;;  %v6455_v38 = vshrl.u32 %v6112_v24, 16  ;;  %v6024_v39 = vpop.permute.xlu1 %6023  ;;  %v5073_v40 = vld [vmem:[#allocation2 + $0xbc] sm:$0x1] }
 0x2e0   : > { %v7481_v51 = vor.u32 %v7480_v15, %v7477_v41  ;;  %v7496_v4 = vrot.slane %v7494_v19, 5  ;;  %v6458_v9 = vshll.u32 %v6112_v24, 16  ;;  %v6464_v30 = vshll.u32 %v6113_v32, 16  ;;  %6063 = vst.msk [vmem:[#allocation4 + $0x48] sm:$0xff] %vm6053_vm7, %v6024_v39  ;;  %v7066_v20 = vpop.permute.xlu0 %7065  ;;  %v7150_v19 = vld [vmem:[#allocation2 + $0xa8] sm:$0xf] }
 0x2e1   : > { %v7491_v12 = vor.u32 %v7490_v31, %v7486_v26  ;;  %v6457_v22 = vrot.slane %v6455_v38, 4  ;;  %v6468_v53 = vshrl.u32 %v6113_v32, 16  ;;  %v6474_v63 = vshll.u32 %v6114_v61, 16 }
 0x2e2   : > { %5855 = vrot.lane.b32.xlu0 %v9804_v3, %s10541_s13  ;;  %v7482_v48 = vrot.slane %v7481_v51, 4  ;;  %v6460_v50 = vrot.slane %v6458_v9, 5  ;;  %v6466_v14 = vrot.slane %v6464_v30, 5  ;;  %v5435_v52 = vshrl.u32 %v5071_v17, 16  ;;  %v7151_v51 = vld [vmem:[#allocation2 + $0xac] sm:$0xf] }
 0x2e3   : > { %6897 = vrot.lane.b32.xlu1 %v9867_v47, %s10546_s29  ;;  %v7492_v44 = vrot.slane %v7491_v12, 4  ;;  %v6470_v24 = vrot.slane %v6468_v53, 4  ;;  %v6476_v41 = vrot.slane %v6474_v63, 5  ;;  %v5438_v28 = vshll.u32 %v5071_v17, 16  ;;  %v10505_v17 = vld [vmem:[#allocation2 + $0xb4] sm:$0xff]  }
 0x2e4   : > { %v7487_v32 = vsel %vm10649_vm5, %v7482_v48, %v7486_v26  ;;  %v6461_v58 = vor.u32 %v6460_v50, %v6457_v22  ;;  %v5437_v54 = vrot.slane %v5435_v52, 4  ;;  %v5444_v15 = vshll.u32 %v5072_v18, 16  ;;  %v5523_v53 = vpop.permute.xlu0 %5522  ;;  %v7152_v22 = vld [vmem:[#allocation2 + $0xb0] sm:$0x1]  ;;  %v7701_v52 = vld [vmem:[#allocation2 + $0xc0] sm:$0xe] }
 0x2e5   : > { %v7497_v61 = vsel %vm10649_vm5, %v7492_v44, %v7496_v4  ;;  %v6471_v3 = vor.u32 %v6470_v24, %v6466_v14  ;;  %v5440_v31 = vrot.slane %v5438_v28, 5  ;;  %v5448_v38 = vshrl.u32 %v5072_v18, 16  ;;  %5563 = vst.msk [vmem:[#allocation4 + $0x40] sm:$0xff] %vm5554_vm14, %v5523_v53  ;;  %v7702_v44 = vld [vmem:[#allocation2 + $0xc4] sm:$0xf] }
 0x2e6   : > { %v9899_v47 = vcombine.low %v7487_v32, %v7497_v61  ;;  %v6462_v9 = vrot.slane %v6461_v58, 4  ;;  %v5446_v30 = vrot.slane %v5444_v15, 5  ;;  %v5454_v12 = vshll.u32 %v5073_v40, 16  ;;  %v6109_v24 = vld [vmem:[#allocation2 + $0xa8] sm:$0xf]  ;;  %5884 = vst.msk [vmem:[#allocation4 + $0x40] sm:$0xff] %vm5875_vm8, %v12791_v23 }
 0x2e7   : > { %v6472_v63 = vrot.slane %v6471_v3, 4  ;;  %v5441_v39 = vor.u32 %v5440_v31, %v5437_v54  ;;  %v5450_v26 = vrot.slane %v5448_v38, 4  ;;  %v7451_v48 = vshrl.u32 %v7150_v19, 16  ;;  %v13874_v40 = vld [vmem:[#allocation10_spill] sm:$0xff]  ;;  %5025 = vst.msk [vmem:[#allocation4 + $0x78] sm:$0xff] %vm5009_vm6, %v10505_v17 }
 0x2e8   : > { %7620 = vrot.lane.b32.xlu1 %v9899_v47, %s10549_s10  ;;  %v6467_v4 = vsel %vm10649_vm5, %v6462_v9, %v6466_v14  ;;  %v7454_v18 = vshll.u32 %v7150_v19, 16  ;;  %v7460_v50 = vshll.u32 %v7151_v51, 16  ;;  %v13875_v28 = vrot.slane %v13874_v40, 5  ;;  %v7703_v19 = vld [vmem:[#allocation2 + $0xc8] sm:$0x1]  ;;  %6062 = vst.msk [vmem:[#allocation4 + $0x40] sm:$0xff] %vm6053_vm7, %v12770_v5 }
 0x2e9   : > { %v6477_v14 = vsel %vm10649_vm5, %v6472_v63, %v6476_v41  ;;  %v5442_v58 = vrot.slane %v5441_v39, 4  ;;  %v5451_v54 = vor.u32 %v5450_v26, %v5446_v30  ;;  %v7453_v15 = vrot.slane %v7451_v48, 4  ;;  %6607 = vst.msk [vmem:[#allocation4 + $0x40] sm:$0xff] %vm6598_vm3, %v12822_v37  ;;  %v6110_v63 = vld [vmem:[#allocation2 + $0xac] sm:$0xf] }
 0x2ea   : > { %v12845_v32 = vsel %vm10611_vm2, %v12388_v46, %v13875_v28  ;;  %v9836_v23 = vcombine.low %v6467_v4, %v6477_v14  ;;  %v7456_v61 = vrot.slane %v7454_v18, 5  ;;  %v7462_v3 = vrot.slane %v7460_v50, 5  ;;  %v12854_v46 = vpop.permute.xlu0 %7933  ;;  %6928 = vst.msk [vmem:[#allocation4 + $0x40] sm:$0xff] %vm6919_vm11, %v12777_v21  ;;  %v10486_v4 = vld [vmem:[#allocation2 + $0xc0] sm:$0xff]  }
 0x2eb   : > { %v7464_v31 = vshrl.u32 %v7151_v51, 16  ;;  %v5447_v38 = vsel %vm10649_vm5, %v5442_v58, %v5446_v30  ;;  %v5452_v41 = vrot.slane %v5451_v54, 4  ;;  %v5456_v47 = vrot.slane %v5454_v12, 5  ;;  %7106 = vst.msk [vmem:[#allocation4 + $0x40] sm:$0xff] %vm7097_vm12, %v7066_v20  ;;  %v6111_v30 = vld [vmem:[#allocation2 + $0xb0] sm:$0x1] }
 0x2ec   : > { %v9916_v9 = vrot.slane %v7701_v52, 9  ;;  %6578 = vrot.lane.b32.xlu0 %v9836_v23, %s10544_s16  ;;  %v7457_v5 = vor.u32 %v7456_v61, %v7453_v15  ;;  %v7470_v17 = vshll.u32 %v7152_v22, 16  ;;  %v7855_v51 = vrot.slane %v7702_v44, 5  ;;  %v7156_v22 = vld [vmem:[#allocation2 + $0xc0] sm:$0xf] }
 0x2ed   : > { %v7466_v53 = vrot.slane %v7464_v31, 4  ;;  %v5457_v37 = vsel %vm10649_vm5, %v5452_v41, %v5456_v47  ;;  %v7858_v39 = vrot.slane %v7703_v19, 5  ;;  %v6431_v26 = vshrl.u32 %v6109_v24, 16  ;;  %v7157_v61 = vld [vmem:[#allocation2 + $0xc4] sm:$0xf] }
 0x2ee   : > { %v6434_v12 = vshll.u32 %v6109_v24, 16  ;;  %v9773_v48 = vcombine.low %v5447_v38, %v5457_v37  ;;  %v7458_v18 = vrot.slane %v7457_v5, 4  ;;  %v12866_v50 = vsel %vm10611_vm2, %v9916_v9, %v7855_v51  ;;  %v12868_v52 = vpop.permute.xlu0 %6891  ;;  %v7158_v31 = vld [vmem:[#allocation2 + $0xc8] sm:$0x1]  ;;  %v10487_v41 = vld [vmem:[#allocation2 + $0xc0] sm:$0xff]  }
 0x2ef   : > { %v7467_v21 = vor.u32 %v7466_v53, %v7462_v3  ;;  %v7857_v44 = vrot.slane %v7855_v51, 4  ;;  %v6433_v20 = vrot.slane %v6431_v26, 4  ;;  %v6440_v28 = vshll.u32 %v6110_v63, 16  ;;  %v5069_v26 = vld [vmem:[#allocation2 + $0xac] sm:$0xf] }
 0x2f0   : > { %v6436_v40 = vrot.slane %v6434_v12, 5  ;;  %5536 = vrot.lane.b32.xlu1 %v9773_v48, %s10539_s11  ;;  %7077 = vrot.lane.b32.xlu0 %v10486_v4, %s10547_s30  ;;  %v7472_v14 = vrot.slane %v7470_v17, 5  ;;  %v6444_v58 = vshrl.u32 %v6110_v63, 16  ;;  %v6450_v54 = vshll.u32 %v6111_v30, 16  ;;  %v5068_v17 = vld [vmem:[#allocation2 + $0xa8] sm:$0xf]  ;;  %v12881_v12 = vpop.permute.xlu1 %5849 }
 0x2f1   : > { %v7468_v24 = vrot.slane %v7467_v21, 4  ;;  %v7859_v15 = vsel %vm10611_vm2, %v7857_v44, %v7858_v39  ;;  %v6442_v23 = vrot.slane %v6440_v28, 5  ;;  %v7499_v38 = vshrl.u32 %v7156_v22, 16  ;;  %v10506_v48 = vld [vmem:[#allocation2 + $0xa8] sm:$0xff]  }
 0x2f2   : > { %v6437_v19 = vor.u32 %v6436_v40, %v6433_v20  ;;  %v7463_v47 = vsel %vm10649_vm5, %v7458_v18, %v7462_v3  ;;  %v9932_v5 = vcombine.low %v12866_v50, %v7859_v15  ;;  %v6446_v53 = vrot.slane %v6444_v58, 4  ;;  %v12879_v51 = vpop.permute.xlu0 %7931  ;;  %v10488_v3 = vld [vmem:[#allocation2 + $0xcc] sm:$0xff]   ;;  %5024 = vst.msk [vmem:[#allocation4 + $0x70] sm:$0xff] %vm5009_vm6, %v10506_v48 }
 0x2f3   : > { %v7473_v9 = vsel %vm10649_vm5, %v7468_v24, %v7472_v14  ;;  %v7501_v39 = vrot.slane %v7499_v38, 4  ;;  %v7502_v30 = vshll.u32 %v7156_v22, 16  ;;  %v7508_v18 = vshll.u32 %v7157_v61, 16  ;;  %v5070_v15 = vld [vmem:[#allocation2 + $0xb0] sm:$0x1] }
 0x2f4   : > { %v9898_v63 = vcombine.low %v7463_v47, %v7473_v9  ;;  %v6438_v37 = vrot.slane %v6437_v19, 4  ;;  %6035 = vrot.lane.b32.xlu1 %v10487_v41, %s10542_s14  ;;  %v6447_v4 = vor.u32 %v6446_v53, %v6442_v23  ;;  %v7512_v21 = vshrl.u32 %v7157_v61, 16 }
 0x2f5   : > { %v7518_v44 = vshll.u32 %v7158_v31, 16  ;;  %v6452_v50 = vrot.slane %v6450_v54, 5  ;;  %v7504_v20 = vrot.slane %v7502_v30, 5  ;;  %v5411_v40 = vshrl.u32 %v5068_v17, 16  ;;  %v6660_v31 = vld [vmem:[#allocation2 + $0xc0] sm:$0xe] }
 0x2f6   : > { %7618 = vrot.lane.b32.xlu0 %v9898_v63, %s10549_s10  ;;  %v5414_v28 = vshll.u32 %v5068_v17, 16  ;;  %v6443_v22 = vsel %vm10649_vm5, %v6438_v37, %v6442_v23  ;;  %v6448_v24 = vrot.slane %v6447_v4, 4  ;;  %v7510_v14 = vrot.slane %v7508_v18, 5  ;;  %v6661_v17 = vld [vmem:[#allocation2 + $0xc4] sm:$0xf]  ;;  %v12891_v23 = vpop.permute.xlu0 %5847  ;;  %v12894_v18 = vpop.permute.xlu1 %6889 }
 0x2f7   : > { %v7514_v58 = vrot.slane %v7512_v21, 4  ;;  %v7505_v19 = vor.u32 %v7504_v20, %v7501_v39  ;;  %v5413_v38 = vrot.slane %v5411_v40, 4  ;;  %v5420_v61 = vshll.u32 %v5069_v26, 16  ;;  %v7704_v63 = vld [vmem:[#allocation2 + $0xcc] sm:$0xe] }
 0x2f8   : > { %v5416_v41 = vrot.slane %v5414_v28, 5  ;;  %7079 = vrot.lane.b32.xlu1 %v10488_v3, %s10547_s30  ;;  %v6453_v54 = vsel %vm10649_vm5, %v6448_v24, %v6452_v50  ;;  %v7520_v9 = vrot.slane %v7518_v44, 5  ;;  %v5424_v53 = vshrl.u32 %v5069_v26, 16  ;;  %v7705_v4 = vld [vmem:[#allocation2 + $0xd0] sm:$0xf] }
 0x2f9   : > { %v7515_v47 = vor.u32 %v7514_v58, %v7510_v14  ;;  %v7506_v37 = vrot.slane %v7505_v19, 4  ;;  %v5422_v30 = vrot.slane %v5420_v61, 5  ;;  %v5430_v48 = vshll.u32 %v5070_v15, 16  ;;  %v6662_v50 = vld [vmem:[#allocation2 + $0xc8] sm:$0x1] }
 0x2fa   : > { %7943 = vrot.lane.b32.xlu0 %v9932_v5, %s10548_s9  ;;  %v5417_v39 = vor.u32 %v5416_v41, %v5413_v38  ;;  %v9835_v3 = vcombine.low %v6443_v22, %v6453_v54  ;;  %v5426_v20 = vrot.slane %v5424_v53, 4  ;;  %v9853_v40 = vrot.slane %v6660_v31, 9  ;;  %v7706_v24 = vld [vmem:[#allocation2 + $0xd4] sm:$0x1]  ;;  %v6115_v58 = vld [vmem:[#allocation2 + $0xc0] sm:$0xf] }
 0x2fb   : > { %v7516_v21 = vrot.slane %v7515_v47, 4  ;;  %v7511_v26 = vsel %vm10649_vm5, %v7506_v37, %v7510_v14  ;;  %v6818_v28 = vrot.slane %v6661_v17, 5  ;;  %v9917_v19 = vrot.slane %v7704_v63, 9  ;;  %v6116_v41 = vld [vmem:[#allocation2 + $0xc4] sm:$0xf]  ;;  %v12905_v47 = vpop.permute.xlu1 %7071  ;;  %v12911_v63 = vpop.permute.xlu0 %6029 }
 0x2fc   : > { %v5418_v44 = vrot.slane %v5417_v39, 4  ;;  %6576 = vrot.lane.b32.xlu1 %v9835_v3, %s10544_s16  ;;  %v5427_v22 = vor.u32 %v5426_v20, %v5422_v30  ;;  %v7862_v38 = vrot.slane %v7705_v4, 5  ;;  %v6821_v54 = vrot.slane %v6662_v50, 5  ;;  %v6117_v39 = vld [vmem:[#allocation2 + $0xc8] sm:$0x1] }
 0x2fd   : > { %v7521_v15 = vsel %vm10649_vm5, %v7516_v21, %v7520_v9  ;;  %v6820_v31 = vrot.slane %v6818_v28, 4  ;;  %v5432_v37 = vrot.slane %v5430_v48, 5  ;;  %v6819_v9 = vsel %vm10611_vm2, %v9853_v40, %v6818_v28  ;;  %v7159_v50 = vld [vmem:[#allocation2 + $0xcc] sm:$0xf]  ;;  %v7160_v40 = vld [vmem:[#allocation2 + $0xd0] sm:$0xf] }
 0x2fe   : > { %v9900_v61 = vcombine.low %v7511_v26, %v7521_v15  ;;  %v5423_v53 = vsel %vm10649_vm5, %v5418_v44, %v5422_v30  ;;  %v5428_v17 = vrot.slane %v5427_v22, 4  ;;  %v12916_v4 = vsel %vm10611_vm2, %v9917_v19, %v7862_v38 }
 0x2ff   : > { %v6479_v3 = vshrl.u32 %v6115_v58, 16  ;;  %v6482_v21 = vshll.u32 %v6115_v58, 16  ;;  %v6488_v20 = vshll.u32 %v6116_v41, 16  ;;  %v7864_v48 = vrot.slane %v7862_v38, 4  ;;  %v12922_v19 = vpop.permute.xlu1 %7612  ;;  %v12926_v49 = vpop.permute.xlu0 %6570 }
 0x300   : > { %7622 = vrot.lane.b32.xlu0 %v9900_v61, %s10549_s10  ;;  %v5433_v30 = vsel %vm10649_vm5, %v5428_v17, %v5432_v37  ;;  %v7865_v26 = vrot.slane %v7706_v24, 5  ;;  %v6492_v44 = vshrl.u32 %v6116_v41, 16  ;;  %v6822_v15 = vsel %vm10611_vm2, %v6820_v31, %v6821_v54 }
 0x301   : > { %v9772_v28 = vcombine.low %v5423_v53, %v5433_v30  ;;  %v6481_v22 = vrot.slane %v6479_v3, 4  ;;  %v6484_v61 = vrot.slane %v6482_v21, 5  ;;  %v12924_v16 = vrot.slane %v6488_v20, 5  ;;  %v10490_v3 = vld [vmem:[#allocation2 + $0x30] sm:$0xff]  }
 0x302   : > { %v6494_v58 = vrot.slane %v6492_v44, 4  ;;  %v6498_v14 = vshll.u32 %v6117_v39, 16  ;;  %v7523_v5 = vshrl.u32 %v7159_v50, 16  ;;  %v7526_v38 = vshll.u32 %v7159_v50, 16  ;;  %v7125_v50 = vld [vmem:[#allocation2 + $0x44] sm:$0x1] }
 0x303   : > { %5534 = vrot.lane.b32.xlu1 %v9772_v28, %s10539_s11  ;;  %v6485_v24 = vor.u32 %v6484_v61, %v6481_v22  ;;  %v7532_v41 = vshll.u32 %v7160_v40, 16  ;;  %v7536_v31 = vshrl.u32 %v7160_v40, 16  ;;  %v7866_v54 = vsel %vm10611_vm2, %v7864_v48, %v7865_v26  ;;  %v5529_v44 = vpop.permute.xlu1 %5528  ;;  %v12943_v48 = vpop.permute.xlu0 %7069 }
 0x304   : > { %6875 = vrot.lane.b32.xlu0 %v9856_v10, %s10546_s29  ;;  %v6495_v53 = vor.u32 %v6494_v58, %v12924_v16  ;;  %v7525_v17 = vrot.slane %v7523_v5, 4  ;;  %v7542_v37 = vshll.u32 %v7161_v35, 16  ;;  %v9869_v39 = vcombine.low %v6819_v9, %v6822_v15  ;;  %5566 = vst.msk [vmem:[#allocation4 + $0x58] sm:$0xff] %vm5554_vm14, %v5529_v44  ;;  %v13879_v58 = vld [vmem:[#allocation8_spill] sm:$0xff] }
 0x305   : > { %v7528_v21 = vrot.slane %v7526_v38, 5  ;;  %v12936_v20 = vrot.slane %v7532_v41, 5  ;;  %v7538_v30 = vrot.slane %v7536_v31, 4  ;;  %v6486_v55 = vrot.slane %v6485_v24, 4  ;;  %5887 = vst.msk [vmem:[#allocation4 + $0x58] sm:$0xff] %vm5875_vm8, %v12881_v12 }
 0x306   : > { %v6496_v13 = vrot.slane %v6495_v53, 4  ;;  %v6500_v10 = vrot.slane %v6498_v14, 5  ;;  %v12940_v40 = vrot.slane %v6224_v60, 5  ;;  %v9933_v35 = vcombine.low %v12916_v4, %v7866_v54  ;;  %v12956_v60 = vld [vmem:[%s13799_s5] sm:$0x3] }
 0x307   : > { %6901 = vrot.lane.b32.xlu1 %v9869_v39, %s10546_s29  ;;  %v7529_v5 = vor.u32 %v7528_v21, %v7525_v17  ;;  %v7539_v9 = vor.u32 %v7538_v30, %v12936_v20  ;;  %v6230_v14 = vrot.slane %v6228_v11, 4  ;;  %v7544_v26 = vrot.slane %v7542_v37, 5  ;;  %v6084_v31 = vld [vmem:[#allocation2 + $0x44] sm:$0x1]  ;;  %v5039_v37 = vld [vmem:[#allocation2 + $0x34] sm:$0xf] }
 0x308   : > { %7053 = vrot.lane.b32.xlu0 %v10490_v3, %s10547_s30  ;;  %v9857_v28 = vcombine.low %v12625_v56, %v12632_v45  ;;  %v6217_v4 = vrot.slane %v6215_v34, 4  ;;  %v13876_v15 = vshll.u32 %v12379_v59, 16  ;;  %vm13877_vm10 = vcmask 1041408   ;;  %v6028_v34 = vpop.permute.xlu1 %6027  ;;  %v12984_v39 = vld [vmem:[#allocation2 + $0x40] sm:$0xf]  ;;  %v7611_v3 = vpop.permute.xlu0 %7610 }
 0x309   : > { %10362 = vmatprep.subr.msk.bf16.mxu1 %vm13877_vm10, %v12956_v60  ;;  %v7530_v11 = vrot.slane %v7529_v5, 4  ;;  %v7540_v12 = vrot.slane %v7539_v9, 4  ;;  %v13878_v61 = vrot.slane %v12248_v6, 5  ;;  %v13880_v24 = vrot.slane %v13879_v58, 9  ;;  %6065 = vst.msk [vmem:[#allocation4 + $0x58] sm:$0xff] %vm6053_vm7, %v6028_v34  ;;  %vm13885_vm0 = vmmov %vm13877_vm10 }
 0x30a   : > { %v6220_v22 = vrot.slane %v13876_v15, 5  ;;  %v7254_v41 = vshll.u32 %v7125_v50, 16  ;;  %v6491_v59 = vsel %vm10649_vm5, %v6486_v55, %v12924_v16  ;;  %v6501_v54 = vsel %vm10649_vm5, %v6496_v13, %v6500_v10  ;;  %7651 = vst.msk [vmem:[#allocation4 + $0x40] sm:$0xff] %vm7642_vm15, %v7611_v3  ;;  %v5041_v9 = vld [vmem:[#allocation2 + $0x3c] sm:$0xf] }
 0x30b   : > { %v12972_v38 = vsel %vm10611_vm2, %v13880_v24, %v13878_v61  ;;  %v13881_v6 = vor.u32 %v12399_v25, %v12395_v29  ;;  %7945 = vrot.lane.b32.xlu1 %v9933_v35, %s10548_s9  ;;  %v13882_v16 = vor.u32 %v12408_v57, %v12404_v62  ;;  %v6231_v30 = vor.u32 %v6230_v14, %v12940_v40  ;;  %v5042_v25 = vld [vmem:[#allocation2 + $0x40] sm:$0xf]  ;;  %v7127_v61 = vld [vmem:[#allocation2 + $0x4c] sm:$0xf]  ;;  %v5040_v24 = vld [vmem:[#allocation2 + $0x38] sm:$0x1] }
 0x30c   : > { %v9794_v53 = vcombine.low %v12972_v38, %v12845_v32  ;;  %7598 = vrot.lane.b32.xlu0 %v12461_v1, %s10549_s10  ;;  %v5171_v44 = vshrl.u32 %v5038_v33, 16  ;;  %v5174_v29 = vshll.u32 %v5038_v33, 16  ;;  %v7535_v55 = vsel %vm10649_vm5, %v7530_v11, %v12936_v20  ;;  %7972 = vst.msk [vmem:[#allocation4 + $0x40] sm:$0xff] %vm7963_vm13, %v12879_v51  ;;  %v6569_v14 = vpop.permute.xlu1 %6568  ;;  %v13068_v32 = vpop.permute.xlu0 %7937  ;;  %v6086_v38 = vld [vmem:[#allocation2 + $0x4c] sm:$0xf] }
 0x30d   : > { %v7242_v17 = vrot.slane %v13881_v6, 4  ;;  %v7252_v21 = vrot.slane %v13882_v16, 4  ;;  %v7545_v13 = vsel %vm10649_vm5, %v7540_v12, %v7544_v26  ;;  %v6221_v10 = vor.u32 %v6220_v22, %v6217_v4  ;;  %6608 = vst.msk [vmem:[#allocation4 + $0x48] sm:$0xff] %vm6598_vm3, %v6569_v14  ;;  %v7126_v6 = vld [vmem:[#allocation2 + $0x48] sm:$0xf] }
 0x30e   : > { %v6234_v1 = vshll.u32 %v6084_v31, 16  ;;  %v9837_v57 = vcombine.low %v6491_v59, %v6501_v54  ;;  %v5180_v50 = vshll.u32 %v5039_v37, 16  ;;  %v5184_v35 = vshrl.u32 %v5039_v37, 16  ;;  %6929 = vst.msk [vmem:[#allocation4 + $0x48] sm:$0xff] %vm6919_vm11, %v12894_v18  ;;  %v6627_v18 = vld [vmem:[#allocation2 + $0x3c] sm:$0xe] }
 0x30f   : > { %v6741_v5 = vrot.slane %v12984_v39, 5  ;;  %v7247_v15 = vsel %vm10649_vm5, %v7242_v17, %v12404_v62  ;;  %v7256_v20 = vrot.slane %v7254_v41, 5  ;;  %v5204_v33 = vshll.u32 %v5042_v25, 16  ;;  %v6629_v41 = vld [vmem:[#allocation2 + $0x44] sm:$0x1]  ;;  %7107 = vst.msk [vmem:[#allocation4 + $0x48] sm:$0xff] %vm7097_vm12, %v12804_v8 }
 0x310   : > { %v5208_v11 = vshrl.u32 %v5042_v25, 16  ;;  %6580 = vrot.lane.b32.xlu1 %v9837_v57, %s10544_s16  ;;  %v13883_v51 = vcombine.low %v12442_v2, %v12476_v42  ;;  %v9901_v26 = vcombine.low %v7535_v55, %v7545_v13  ;;  %v6232_v4 = vrot.slane %v6231_v30, 4  ;;  %7652 = vst.msk [vmem:[#allocation4 + $0x48] sm:$0xff] %vm7642_vm15, %v12922_v19  ;;  %v13037_v13 = vld [vmem:[#allocation2 + $0x40] sm:$0xf] }
 0x311   : > { %v5173_v22 = vrot.slane %v5171_v44, 4  ;;  %v5176_v12 = vrot.slane %v5174_v29, 5  ;;  %v7257_v62 = vsel %vm10649_vm5, %v7252_v21, %v7256_v20  ;;  %v6222_v58 = vrot.slane %v6221_v10, 4  ;;  %7973 = vst.msk [vmem:[#allocation4 + $0x48] sm:$0xff] %vm7963_vm13, %v12854_v46  ;;  %v13051_v20 = vld [vmem:[#allocation2 + $0x4c] sm:$0xf] }
 0x312   : > { %7919 = vrot.lane.b32.xlu0 %v13883_v51, %s10548_s9  ;;  %v5195_v31 = vshrl.u32 %v5041_v9, 16  ;;  %v5198_v34 = vshll.u32 %v5041_v9, 16  ;;  %v6236_v2 = vrot.slane %v6234_v1, 5  ;;  %v13018_v42 = vrot.slane %v5180_v50, 5  ;;  %v5043_v50 = vld [vmem:[#allocation2 + $0x44] sm:$0x1] }
 0x313   : > { %v5186_v59 = vrot.slane %v5184_v35, 4  ;;  %v6743_v54 = vrot.slane %v6741_v5, 4  ;;  %v13024_v17 = vrot.slane %v5204_v33, 5  ;;  %v5210_v37 = vrot.slane %v5208_v11, 4  ;;  %v7988_v29 = vld [vmem:[#allocation4 + $0x40] sm:$0xff] }
 0x314   : > { %v7268_v3 = vshll.u32 %v7127_v61, 16  ;;  %v7272_v16 = vshrl.u32 %v7127_v61, 16  ;;  %7624 = vrot.lane.b32.xlu1 %v9901_v26, %s10549_s10  ;;  %v13884_v8 = vcombine.low %v12456_v7, %v12500_v36  ;;  %v13033_v21 = vcombine.low %v7247_v15, %v7257_v62  ;;  %10203 = vmatprep.mubr.msk.bf16.mxu1 %vm8039_vm1, %v7988_v29 }
 0x315   : > { %v6237_v19 = vsel %vm10649_vm5, %v6232_v4, %v6236_v2  ;;  %v5177_v30 = vor.u32 %v5176_v12, %v5173_v22  ;;  %v6744_v44 = vrot.slane %v6629_v41, 5  ;;  %v5197_v25 = vrot.slane %v5195_v31, 4  ;;  %v6085_v4 = vld [vmem:[#allocation2 + $0x48] sm:$0xf]  ;;  %v10493_v22 = vld [vmem:[#allocation2 + $0x3c] sm:$0xff]  }
 0x316   : > { %7921 = vrot.lane.b32.xlu0 %v13884_v8, %s10548_s9  ;;  %v5200_v55 = vrot.slane %v5198_v34, 5  ;;  %v7259_v46 = vshrl.u32 %v7126_v6, 16  ;;  %v7262_v10 = vshll.u32 %v7126_v6, 16  ;;  %v6227_v7 = vsel %vm10649_vm5, %v6222_v58, %v12940_v40  ;;  %v10492_v40 = vld [vmem:[#allocation2 + $0x3c] sm:$0xff]   ;;  %v7128_v58 = vld [vmem:[#allocation2 + $0x50] sm:$0x1] }
 0x317   : > { %v5187_v36 = vor.u32 %v5186_v59, %v13018_v42  ;;  %v5190_v1 = vshll.u32 %v5040_v24, 16  ;;  %v9842_v57 = vrot.slane %v6627_v18, 9  ;;  %v13046_v35 = vsel %vm10611_vm2, %v6743_v54, %v6744_v44  ;;  %v5527_v24 = vpop.permute.xlu1 %5526  ;;  %v5588_v34 = vld [vmem:[#allocation2 + $0x44] sm:$0x1]  ;;  %v7673_v44 = vld [vmem:[#allocation2 + $0x50] sm:$0x1] }
 0x318   : > { %v5211_v9 = vor.u32 %v5210_v37, %v13024_v17  ;;  %v13049_v14 = vrot.slane %v7268_v3, 5  ;;  %v7274_v15 = vrot.slane %v7272_v16, 4  ;;  %6877 = vrot.lane.b32.xlu1 %v9857_v28, %s10546_s29  ;;  %v9826_v33 = vcombine.low %v6227_v7, %v6237_v19  ;;  %v5586_v28 = vld [vmem:[#allocation2 + $0x3c] sm:$0xe]  ;;  %v7989_v41 = vld [vmem:[#allocation4 + $0x48] sm:$0xff]  ;;  %5565 = vst.msk [vmem:[#allocation4 + $0x50] sm:$0xff] %vm5554_vm14, %v5527_v24 }
 0x319   : > { %v5178_v11 = vrot.slane %v5177_v30, 4  ;;  %v13065_v51 = vsel %vm10611_vm2, %v9842_v57, %v6741_v5  ;;  %v5704_v26 = vrot.slane %v13037_v13, 5  ;;  %v5201_v56 = vor.u32 %v5200_v55, %v5197_v25  ;;  %10204 = vmatmul.mubr.msk.bf16.vlgmr.msra.gmra.mrb[0].mxu1 %vm8039_vm1, %v7989_v41  ;;  %5886 = vst.msk [vmem:[#allocation4 + $0x50] sm:$0xff] %vm5875_vm8, %v12891_v23  ;;  %v7671_v55 = vld [vmem:[#allocation2 + $0x48] sm:$0xe] }
 0x31a   : > { %5835 = vrot.lane.b32.xlu0 %v9794_v53, %s10541_s13  ;;  %v5214_v45 = vshll.u32 %v5043_v50, 16  ;;  %v7261_v12 = vrot.slane %v7259_v46, 4  ;;  %v7264_v61 = vrot.slane %v7262_v10, 5  ;;  %v5188_v53 = vrot.slane %v5187_v36, 4  ;;  %6064 = vst.msk [vmem:[#allocation4 + $0x50] sm:$0xff] %vm6053_vm7, %v12807_v27 }
 0x31b   : > { %v5192_v62 = vrot.slane %v5190_v1, 5  ;;  %v9858_v39 = vcombine.low %v13065_v51, %v13046_v35  ;;  %v7785_v5 = vrot.slane %v13051_v20, 5  ;;  %v5212_v31 = vrot.slane %v5211_v9, 4  ;;  %6609 = vst.msk [vmem:[#allocation4 + $0x50] sm:$0xff] %vm6598_vm3, %v12926_v49  ;;  %v6087_v7 = vld [vmem:[#allocation2 + $0x50] sm:$0x1]  ;;  %v13095_v27 = vpop.permute.xlu0 %6895 }
 0x31c   : > { %v7275_v2 = vor.u32 %v7274_v15, %v13049_v14  ;;  %v6239_v59 = vshrl.u32 %v6085_v4, 16  ;;  %v6242_v54 = vshll.u32 %v6085_v4, 16  ;;  %7055 = vrot.lane.b32.xlu1 %v10492_v40, %s10547_s30  ;;  %v5183_v6 = vsel %vm10649_vm5, %v5178_v11, %v13018_v42  ;;  %6930 = vst.msk [vmem:[#allocation4 + $0x50] sm:$0xff] %vm6919_vm11, %v12868_v52  ;;  %v7675_v11 = vld [vmem:[#allocation2 + $0x58] sm:$0xf] }
 0x31d   : > { %v5706_v18 = vrot.slane %v5704_v26, 4  ;;  %v6248_v37 = vshll.u32 %v6086_v38, 16  ;;  %v6252_v3 = vshrl.u32 %v6086_v38, 16  ;;  %v5202_v16 = vrot.slane %v5201_v56, 4  ;;  %7108 = vst.msk [vmem:[#allocation4 + $0x50] sm:$0xff] %vm7097_vm12, %v12943_v48 }
 0x31e   : > { %6013 = vrot.lane.b32.xlu0 %v10493_v22, %s10542_s14  ;;  %v5216_v8 = vrot.slane %v5214_v45, 5  ;;  %v7265_v19 = vor.u32 %v7264_v61, %v7261_v12  ;;  %v7278_v30 = vshll.u32 %v7128_v58, 16  ;;  %v5193_v29 = vsel %vm10649_vm5, %v5188_v53, %v5192_v62  ;;  %v13115_v4 = vpop.permute.xlu1 %5853  ;;  %v7674_v53 = vld [vmem:[#allocation2 + $0x54] sm:$0xe]  ;;  %v7676_v62 = vld [vmem:[#allocation2 + $0x5c] sm:$0x1] }
 0x31f   : > { %v9779_v42 = vrot.slane %v5586_v28, 9  ;;  %v5707_v25 = vrot.slane %v5588_v34, 5  ;;  %v7787_v46 = vrot.slane %v7785_v5, 4  ;;  %v7276_v10 = vrot.slane %v7275_v2, 4  ;;  %v7130_v28 = vld [vmem:[#allocation2 + $0x58] sm:$0xf] }
 0x320   : > { %v5217_v23 = vsel %vm10649_vm5, %v5212_v31, %v5216_v8  ;;  %v6241_v36 = vrot.slane %v6239_v59, 4  ;;  %v6244_v1 = vrot.slane %v6242_v54, 5  ;;  %7600 = vrot.lane.b32.xlu1 %v13033_v21, %s10549_s10  ;;  %v7788_v57 = vrot.slane %v7673_v44, 5  ;;  %v6630_v24 = vld [vmem:[#allocation2 + $0x48] sm:$0xe]  ;;  %v13141_v31 = vpop.permute.xlu0 %7935 }
 0x321   : > { %v13104_v49 = vsel %vm10611_vm2, %v5706_v18, %v5707_v25  ;;  %v13106_v50 = vrot.slane %v6248_v37, 5  ;;  %v6254_v9 = vrot.slane %v6252_v3, 4  ;;  %v9762_v15 = vcombine.low %v5183_v6, %v5193_v29  ;;  %v7129_v34 = vld [vmem:[#allocation2 + $0x54] sm:$0xf]  ;;  %v6632_v51 = vld [vmem:[#allocation2 + $0x50] sm:$0x1] }
 0x322   : > { %6558 = vrot.lane.b32.xlu0 %v9826_v33, %s10544_s16  ;;  %v5207_v52 = vsel %vm10649_vm5, %v5202_v16, %v13024_v17  ;;  %v7266_v40 = vrot.slane %v7265_v19, 4  ;;  %v7280_v21 = vrot.slane %v7278_v30, 5  ;;  %v13113_v33 = vld [vmem:[#allocation2 + $0x4c] sm:$0xf]  ;;  %v5705_v22 = vsel %vm10611_vm2, %v9779_v42, %v5704_v26  ;;  %v13148_v2 = vpop.permute.xlu1 %6893  ;;  %v6088_v8 = vld [vmem:[#allocation2 + $0x54] sm:$0xf] }
 0x323   : > { %v9906_v56 = vrot.slane %v7671_v55, 9  ;;  %v13123_v48 = vsel %vm10611_vm2, %v7787_v46, %v7788_v57  ;;  %v6258_v45 = vshll.u32 %v6087_v7, 16  ;;  %v9763_v17 = vcombine.low %v5207_v52, %v5217_v23  ;;  %v10494_v6 = vld [vmem:[#allocation2 + $0x48] sm:$0xff]   ;;  %v6089_v29 = vld [vmem:[#allocation2 + $0x58] sm:$0xf] }
 0x324   : > { %v9795_v12 = vcombine.low %v5705_v22, %v13104_v49  ;;  %v7281_v61 = vsel %vm10649_vm5, %v7276_v10, %v7280_v21  ;;  %v6245_v38 = vor.u32 %v6244_v1, %v6241_v36  ;;  %5514 = vrot.lane.b32.xlu1 %v9762_v15, %s10539_s11  ;;  %v6255_v26 = vor.u32 %v6254_v9, %v13106_v50  ;;  %v13156_v9 = vpop.permute.xlu0 %5851  ;;  %v5045_v22 = vld [vmem:[#allocation2 + $0x4c] sm:$0xf] }
 0x325   : > { %v13137_v13 = vsel %vm10611_vm2, %v9906_v56, %v7785_v5  ;;  %v7792_v58 = vrot.slane %v7675_v11, 5  ;;  %v6748_v41 = vrot.slane %v13113_v33, 5  ;;  %v7271_v35 = vsel %vm10649_vm5, %v7266_v40, %v13049_v14  ;;  %v5590_v5 = vld [vmem:[#allocation2 + $0x4c] sm:$0xf] }
 0x326   : > { %6879 = vrot.lane.b32.xlu0 %v9858_v39, %s10546_s29  ;;  %v9922_v20 = vcombine.low %v13137_v13, %v13123_v48  ;;  %v5589_v39 = vld [vmem:[#allocation2 + $0x48] sm:$0xe]  ;;  %v7292_v59 = vshll.u32 %v7130_v28, 16  ;;  %v7296_v54 = vshrl.u32 %v7130_v28, 16  ;;  %v9890_v18 = vcombine.low %v7271_v35, %v7281_v61  ;;  %v13154_v1 = vpop.permute.xlu1 %7075  ;;  %v7131_v61 = vld [vmem:[#allocation2 + $0x5c] sm:$0x1] }
 0x327   : > { %v6260_v37 = vrot.slane %v6258_v45, 5  ;;  %v9907_v3 = vrot.slane %v7674_v53, 9  ;;  %v7795_v16 = vrot.slane %v7676_v62, 5  ;;  %v6246_v19 = vrot.slane %v6245_v38, 4  ;;  %v10496_v38 = vld [vmem:[#allocation2 + $0x48] sm:$0xff]  }
 0x328   : > { %v9843_v30 = vrot.slane %v6630_v24, 9  ;;  %v7283_v44 = vshrl.u32 %v7129_v34, 16  ;;  %v7286_v14 = vshll.u32 %v7129_v34, 16  ;;  %5516 = vrot.lane.b32.xlu1 %v9763_v17, %s10539_s11  ;;  %v6256_v42 = vrot.slane %v6255_v26, 4  ;;  %v6090_v24 = vld [vmem:[#allocation2 + $0x5c] sm:$0x1] }
 0x329   : > { %v7794_v25 = vrot.slane %v7792_v58, 4  ;;  %v6750_v55 = vrot.slane %v6748_v41, 4  ;;  %v5711_v46 = vrot.slane %v5590_v5, 5  ;;  %v13152_v23 = vrot.slane %v7292_v59, 5  ;;  %v5046_v48 = vld [vmem:[#allocation2 + $0x50] sm:$0x1] }
 0x32a   : > { %7057 = vrot.lane.b32.xlu0 %v10494_v6, %s10547_s30  ;;  %v7298_v10 = vrot.slane %v7296_v54, 4  ;;  %v6263_v7 = vshrl.u32 %v6088_v8, 16  ;;  %v6266_v36 = vshll.u32 %v6088_v8, 16  ;;  %v6751_v49 = vrot.slane %v6632_v51, 5  ;;  %v13180_v6 = vpop.permute.xlu1 %7616 }
 0x32b   : > { %v9780_v57 = vrot.slane %v5589_v39, 9  ;;  %v6272_v15 = vshll.u32 %v6089_v29, 16  ;;  %v6276_v52 = vshrl.u32 %v6089_v29, 16  ;;  %v6251_v40 = vsel %vm10649_vm5, %v6246_v19, %v13106_v50  ;;  %v5591_v50 = vld [vmem:[#allocation2 + $0x50] sm:$0x1] }
 0x32c   : > { %v7793_v21 = vsel %vm10611_vm2, %v9907_v3, %v7792_v58  ;;  %v7285_v11 = vrot.slane %v7283_v44, 4  ;;  %v7288_v33 = vrot.slane %v7286_v14, 5  ;;  %5837 = vrot.lane.b32.xlu1 %v9795_v12, %s10541_s13  ;;  %v6261_v56 = vsel %vm10649_vm5, %v6256_v42, %v6260_v37  ;;  %v5044_v58 = vld [vmem:[#allocation2 + $0x48] sm:$0xf]  ;;  %v13187_v3 = vpop.permute.xlu0 %6033  ;;  %v5048_v19 = vld [vmem:[#allocation2 + $0x58] sm:$0xf] }
 0x32d   : > { %v7796_v45 = vsel %vm10611_vm2, %v7794_v25, %v7795_v16  ;;  %v13171_v28 = vsel %vm10611_vm2, %v9843_v30, %v6748_v41  ;;  %v5713_v17 = vrot.slane %v5711_v46, 4  ;;  %v6752_v53 = vsel %vm10611_vm2, %v6750_v55, %v6751_v49  ;;  %v5047_v42 = vld [vmem:[#allocation2 + $0x54] sm:$0xf] }
 0x32e   : > { %7602 = vrot.lane.b32.xlu0 %v9890_v18, %s10549_s10  ;;  %v7299_v12 = vor.u32 %v7298_v10, %v13152_v23  ;;  %v6265_v62 = vrot.slane %v6263_v7, 4  ;;  %v6268_v26 = vrot.slane %v6266_v36, 5  ;;  %v13176_v34 = vrot.slane %v6272_v15, 5  ;;  %v13195_v7 = vld [vmem:[#allocation2 + $0x58] sm:$0xf] }
 0x32f   : > { %v6278_v35 = vrot.slane %v6276_v52, 4  ;;  %v5228_v51 = vshll.u32 %v5045_v22, 16  ;;  %v5232_v39 = vshrl.u32 %v5045_v22, 16  ;;  %v5712_v41 = vsel %vm10611_vm2, %v9780_v57, %v5711_v46 }
 0x330   : > { %v5714_v5 = vrot.slane %v5591_v50, 5  ;;  %v7289_v59 = vor.u32 %v7288_v33, %v7285_v11  ;;  %v7302_v54 = vshll.u32 %v7131_v61, 16  ;;  %6015 = vrot.lane.b32.xlu1 %v10496_v38, %s10542_s14  ;;  %v9827_v18 = vcombine.low %v6251_v40, %v6261_v56  ;;  %v13203_v38 = vpop.permute.xlu0 %6574 }
 0x331   : > { %v9923_v37 = vcombine.low %v7793_v21, %v7796_v45  ;;  %v5219_v16 = vshrl.u32 %v5044_v58, 16  ;;  %v5222_v8 = vshll.u32 %v5044_v58, 16  ;;  %v9859_v30 = vcombine.low %v13171_v28, %v6752_v53  ;;  %v7133_v21 = vld [vmem:[#allocation2 + $0x64] sm:$0xf]  ;;  %v7132_v53 = vld [vmem:[#allocation2 + $0x60] sm:$0xf] }
 0x332   : > { %7923 = vrot.lane.b32.xlu0 %v9922_v20, %s10548_s9  ;;  %v7300_v44 = vrot.slane %v7299_v12, 4  ;;  %v6269_v14 = vor.u32 %v6268_v26, %v6265_v62  ;;  %v6282_v29 = vshll.u32 %v6090_v24, 16  ;;  %v5715_v25 = vsel %vm10611_vm2, %v5713_v17, %v5714_v5  ;;  %v5533_v45 = vpop.permute.xlu1 %5532  ;;  %v6635_v5 = vld [vmem:[#allocation2 + $0x5c] sm:$0x1] }
 0x333   : > { %v6279_v55 = vor.u32 %v6278_v35, %v13176_v34  ;;  %v13193_v13 = vrot.slane %v5228_v51, 5  ;;  %v5234_v20 = vrot.slane %v5232_v39, 4  ;;  %v7290_v46 = vrot.slane %v7289_v59, 4  ;;  %5568 = vst.msk [vmem:[#allocation4 + $0x68] sm:$0xff] %vm5554_vm14, %v5533_v45  ;;  %v5049_v59 = vld [vmem:[#allocation2 + $0x5c] sm:$0x1] }
 0x334   : > { %v7304_v10 = vrot.slane %v7302_v54, 5  ;;  %v5252_v36 = vshll.u32 %v5048_v19, 16  ;;  %v5256_v49 = vshrl.u32 %v5048_v19, 16  ;;  %6560 = vrot.lane.b32.xlu1 %v9827_v18, %s10544_s16  ;;  %v5221_v57 = vrot.slane %v5219_v16, 4  ;;  %5889 = vst.msk [vmem:[#allocation4 + $0x68] sm:$0xff] %vm5875_vm8, %v13115_v4  ;;  %v10498_v4 = vld [vmem:[#allocation2 + $0x54] sm:$0xff]  }
 0x335   : > { %v5224_v15 = vrot.slane %v5222_v8, 5  ;;  %v5243_v52 = vshrl.u32 %v5047_v42, 16  ;;  %v5246_v40 = vshll.u32 %v5047_v42, 16  ;;  %v9796_v11 = vcombine.low %v5712_v41, %v5715_v25  ;;  %v10499_v16 = vld [vmem:[#allocation2 + $0x54] sm:$0xff]  }
 0x336   : > { %7925 = vrot.lane.b32.xlu0 %v9923_v37, %s10548_s9  ;;  %v7305_v33 = vsel %vm10649_vm5, %v7300_v44, %v7304_v10  ;;  %v6270_v22 = vrot.slane %v6269_v14, 4  ;;  %v6284_v56 = vrot.slane %v6282_v29, 5  ;;  %v6280_v28 = vrot.slane %v6279_v55, 4  ;;  %v6032_v37 = vpop.permute.xlu1 %6031  ;;  %v13222_v42 = vld [vmem:[#allocation2 + $0x58] sm:$0xf]  ;;  %v13228_v10 = vpop.permute.xlu0 %7073 }
 0x337   : > { %v5235_v50 = vor.u32 %v5234_v20, %v13193_v13  ;;  %v5238_v17 = vshll.u32 %v5046_v48, 16  ;;  %v6755_v61 = vrot.slane %v13195_v7, 5  ;;  %v13206_v12 = vrot.slane %v5252_v36, 5  ;;  %6067 = vst.msk [vmem:[#allocation4 + $0x68] sm:$0xff] %vm6053_vm7, %v6032_v37  ;;  %v6092_v7 = vld [vmem:[#allocation2 + $0x64] sm:$0xf] }
 0x338   : > { %v5258_v62 = vrot.slane %v5256_v49, 4  ;;  %v7316_v26 = vshll.u32 %v7133_v21, 16  ;;  %v7320_v58 = vshrl.u32 %v7133_v21, 16  ;;  %6881 = vrot.lane.b32.xlu1 %v9859_v30, %s10546_s29  ;;  %v7295_v24 = vsel %vm10649_vm5, %v7290_v46, %v13152_v23  ;;  %v6633_v23 = vld [vmem:[#allocation2 + $0x54] sm:$0xe] }
 0x339   : > { %v5225_v35 = vor.u32 %v5224_v15, %v5221_v57  ;;  %v5245_v51 = vrot.slane %v5243_v52, 4  ;;  %v5248_v39 = vrot.slane %v5246_v40, 5  ;;  %v9891_v41 = vcombine.low %v7295_v24, %v7305_v33  ;;  %v7134_v33 = vld [vmem:[#allocation2 + $0x68] sm:$0x1] }
 0x33a   : > { %5839 = vrot.lane.b32.xlu0 %v9796_v11, %s10541_s13  ;;  %v7307_v54 = vshrl.u32 %v7132_v53, 16  ;;  %v7310_v18 = vshll.u32 %v7132_v53, 16  ;;  %v6275_v8 = vsel %vm10649_vm5, %v6270_v22, %v13176_v34  ;;  %v6285_v19 = vsel %vm10649_vm5, %v6280_v28, %v6284_v56  ;;  %v6091_v22 = vld [vmem:[#allocation2 + $0x60] sm:$0xf]  ;;  %v13238_v28 = vld [vmem:[#allocation2 + $0x64] sm:$0xf] }
 0x33b   : > { %v5236_v30 = vrot.slane %v5235_v50, 4  ;;  %v6757_v44 = vrot.slane %v6755_v61, 4  ;;  %v5240_v14 = vrot.slane %v5238_v17, 5  ;;  %v5259_v29 = vor.u32 %v5258_v62, %v13206_v12 }
 0x33c   : > { %v13224_v25 = vrot.slane %v7316_v26, 5  ;;  %v7322_v55 = vrot.slane %v7320_v58, 4  ;;  %7059 = vrot.lane.b32.xlu1 %v10498_v4, %s10547_s30  ;;  %v5226_v34 = vrot.slane %v5225_v35, 4  ;;  %v6758_v48 = vrot.slane %v6635_v5, 5  ;;  %v5594_v58 = vld [vmem:[#allocation2 + $0x5c] sm:$0x1] }
 0x33d   : > { %v5249_v20 = vor.u32 %v5248_v39, %v5245_v51  ;;  %v5262_v46 = vshll.u32 %v5049_v59, 16  ;;  %v9844_v36 = vrot.slane %v6633_v23, 9  ;;  %v7309_v49 = vrot.slane %v7307_v54, 4 }
 0x33e   : > { %6017 = vrot.lane.b32.xlu0 %v10499_v16, %s10542_s14  ;;  %v7312_v57 = vrot.slane %v7310_v18, 5  ;;  %v8790_v15 = vsel %vm13885_vm0, %v12956_v60, 0  ;;  %v9828_v52 = vcombine.low %v6275_v8, %v6285_v19  ;;  %v5241_v40 = vsel %vm10649_vm5, %v5236_v30, %v5240_v14  ;;  %v5592_v8 = vld [vmem:[#allocation2 + $0x54] sm:$0xe] }
 0x33f   : > { %v6759_v21 = vsel %vm10611_vm2, %v6757_v44, %v6758_v48  ;;  %v5718_v11 = vrot.slane %v13222_v42, 5  ;;  %10220 = vmatpush3.bf16.msra.mxu1 %v8790_v15  ;;  %v5260_v56 = vrot.slane %v5259_v29, 4  ;;  %v7323_v45 = vor.u32 %v7322_v55, %v13224_v25  ;;  %v7679_v44 = vld [vmem:[#allocation2 + $0x68] sm:$0x1]  ;;  %v10500_v55 = vld [vmem:[#allocation2 + $0x60] sm:$0xff]  }
 0x340   : > { %v6296_v50 = vshll.u32 %v6092_v7, 16  ;;  %v6300_v17 = vshrl.u32 %v6092_v7, 16  ;;  %7604 = vrot.lane.b32.xlu1 %v9891_v41, %s10549_s10  ;;  %v5231_v60 = vsel %vm10649_vm5, %v5226_v34, %v13193_v13  ;;  %v6756_v53 = vsel %vm10611_vm2, %v9844_v36, %v6755_v61  ;;  %v7615_v41 = vpop.permute.xlu0 %7614  ;;  %v6093_v48 = vld [vmem:[#allocation2 + $0x68] sm:$0x1]  ;;  %v7677_v7 = vld [vmem:[#allocation2 + $0x60] sm:$0xe] }
 0x341   : > { %v5250_v62 = vrot.slane %v5249_v20, 4  ;;  %v5264_v26 = vrot.slane %v5262_v46, 5  ;;  %v7313_v24 = vor.u32 %v7312_v57, %v7309_v49  ;;  %v7326_v35 = vshll.u32 %v7134_v33, 16  ;;  %7653 = vst.msk [vmem:[#allocation4 + $0x50] sm:$0xff] %vm7642_vm15, %v7615_v41  ;;  %v13269_v15 = vld [vmem:[#allocation2 + $0x64] sm:$0xf] }
 0x342   : > { %6562 = vrot.lane.b32.xlu0 %v9828_v52, %s10544_s16  ;;  %v6287_v51 = vshrl.u32 %v6091_v22, 16  ;;  %v6290_v39 = vshll.u32 %v6091_v22, 16  ;;  %v9764_v5 = vcombine.low %v5231_v60, %v5241_v40  ;;  %v9860_v59 = vcombine.low %v6756_v53, %v6759_v21  ;;  %7974 = vst.msk [vmem:[#allocation4 + $0x50] sm:$0xff] %vm7963_vm13, %v13141_v31  ;;  %v7136_v52 = vld [vmem:[#allocation2 + $0x70] sm:$0xf] }
 0x343   : > { %v5720_v54 = vrot.slane %v5718_v11, 4  ;;  %v7799_v18 = vrot.slane %v13238_v28, 5  ;;  %v5265_v37 = vsel %vm10649_vm5, %v5260_v56, %v5264_v26  ;;  %v7324_v13 = vrot.slane %v7323_v45, 4 }
 0x344   : > { %v13251_v61 = vrot.slane %v6296_v50, 5  ;;  %v6302_v4 = vrot.slane %v6300_v17, 4  ;;  %5518 = vrot.lane.b32.xlu1 %v9764_v5, %s10539_s11  ;;  %v5255_v16 = vsel %vm10649_vm5, %v5250_v62, %v13206_v12  ;;  %v5721_v19 = vrot.slane %v5594_v58, 5  ;;  %v7135_v17 = vld [vmem:[#allocation2 + $0x6c] sm:$0xf] }
 0x345   : > { %v7314_v30 = vrot.slane %v7313_v24, 4  ;;  %v7328_v23 = vrot.slane %v7326_v35, 5  ;;  %v6289_v14 = vrot.slane %v6287_v51, 4  ;;  %v6292_v29 = vrot.slane %v6290_v39, 5  ;;  %v13264_v36 = vpop.permute.xlu0 %7941  ;;  %v10502_v51 = vld [vmem:[#allocation2 + $0x60] sm:$0xff]  }
 0x346   : > { %6883 = vrot.lane.b32.xlu0 %v9860_v59, %s10546_s29  ;;  %v9765_v42 = vcombine.low %v5255_v16, %v5265_v37  ;;  %v7801_v34 = vrot.slane %v7799_v18, 4  ;;  %v9781_v20 = vrot.slane %v5592_v8, 9  ;;  %v5722_v46 = vsel %vm10611_vm2, %v5720_v54, %v5721_v19  ;;  %v6638_v59 = vld [vmem:[#allocation2 + $0x68] sm:$0x1] }
 0x347   : > { %v7329_v12 = vsel %vm10649_vm5, %v7324_v13, %v7328_v23  ;;  %v6303_v31 = vor.u32 %v6302_v4, %v13251_v61  ;;  %v7802_v49 = vrot.slane %v7679_v44, 5  ;;  %v6573_v57 = vpop.permute.xlu1 %6572  ;;  %v7319_v21 = vsel %vm10649_vm5, %v7314_v30, %v13224_v25  ;;  %v7137_v30 = vld [vmem:[#allocation2 + $0x74] sm:$0x1] }
 0x348   : > { %5520 = vrot.lane.b32.xlu1 %v9765_v42, %s10539_s11  ;;  %v5719_v40 = vsel %vm10611_vm2, %v9781_v20, %v5718_v11  ;;  %6610 = vst.msk [vmem:[#allocation4 + $0x58] sm:$0xff] %vm6598_vm3, %v6573_v57  ;;  %v6293_v33 = vor.u32 %v6292_v29, %v6289_v14  ;;  %v6306_v22 = vshll.u32 %v6093_v48, 16  ;;  %v9892_v45 = vcombine.low %v7319_v21, %v7329_v12  ;;  %v7681_v14 = vld [vmem:[#allocation2 + $0x70] sm:$0xf]  ;;  %v7680_v21 = vld [vmem:[#allocation2 + $0x6c] sm:$0xe] }
 0x349   : > { %v9797_v56 = vcombine.low %v5719_v40, %v5722_v46  ;;  %v9908_v28 = vrot.slane %v7677_v7, 9  ;;  %v7803_v50 = vsel %vm10611_vm2, %v7801_v34, %v7802_v49  ;;  %6931 = vst.msk [vmem:[#allocation4 + $0x58] sm:$0xff] %vm6919_vm11, %v13148_v2  ;;  %v6304_v11 = vrot.slane %v6303_v31, 4  ;;  %v7990_v60 = vld [vmem:[#allocation4 + $0x50] sm:$0xff]  ;;  %v10504_v31 = vld [vmem:[#allocation2 + $0x6c] sm:$0xff]  }
 0x34a   : > { %7061 = vrot.lane.b32.xlu0 %v10500_v55, %s10547_s30  ;;  %7109 = vst.msk [vmem:[#allocation4 + $0x58] sm:$0xff] %vm7097_vm12, %v12905_v47  ;;  %v6762_v25 = vrot.slane %v13269_v15, 5  ;;  %v7340_v53 = vshll.u32 %v7136_v52, 16  ;;  %v7344_v62 = vshrl.u32 %v7136_v52, 16  ;;  %v6294_v47 = vrot.slane %v6293_v33, 4  ;;  %10207 = vmatprep.mubr.msk.bf16.mxu1 %vm8039_vm1, %v7990_v60 }
 0x34b   : > { %v7800_v26 = vsel %vm10611_vm2, %v9908_v28, %v7799_v18  ;;  %7654 = vst.msk [vmem:[#allocation4 + $0x58] sm:$0xff] %vm7642_vm15, %v13180_v6  ;;  %v6308_v2 = vrot.slane %v6306_v22, 5  ;;  %v7331_v24 = vshrl.u32 %v7135_v17, 16  ;;  %v7334_v35 = vshll.u32 %v7135_v17, 16  ;;  %v6636_v18 = vld [vmem:[#allocation2 + $0x60] sm:$0xe] }
 0x34c   : > { %5841 = vrot.lane.b32.xlu1 %v9797_v56, %s10541_s13  ;;  %7975 = vst.msk [vmem:[#allocation4 + $0x58] sm:$0xff] %vm7963_vm13, %v13068_v32  ;;  %v13292_v58 = vpop.permute.xlu0 %6899  ;;  %v9924_v39 = vcombine.low %v7800_v26, %v7803_v50  ;;  %v6764_v6 = vrot.slane %v6762_v25, 4  ;;  %v7342_v41 = vrot.slane %v7340_v53, 5  ;;  %v7346_v32 = vrot.slane %v7344_v62, 4  ;;  %v7682_v49 = vld [vmem:[#allocation2 + $0x74] sm:$0x1] }
 0x34d   : > { %v5531_v5 = vpop.permute.xlu1 %5530  ;;  %v6309_v54 = vsel %vm10649_vm5, %v6304_v11, %v6308_v2  ;;  %v6299_v37 = vsel %vm10649_vm5, %v6294_v47, %v13251_v61  ;;  %v6765_v13 = vrot.slane %v6638_v59, 5  ;;  %v7333_v4 = vrot.slane %v7331_v24, 4 }
 0x34e   : > { %7606 = vrot.lane.b32.xlu0 %v9892_v45, %s10549_s10  ;;  %5567 = vst.msk [vmem:[#allocation4 + $0x60] sm:$0xff] %vm5554_vm14, %v5531_v5  ;;  %v7336_v16 = vrot.slane %v7334_v35, 5  ;;  %v9829_v8 = vcombine.low %v6299_v37, %v6309_v54  ;;  %v7347_v44 = vor.u32 %v7346_v32, %v7342_v41  ;;  %v7806_v48 = vrot.slane %v7681_v14, 5  ;;  %v9958_v32 = vld [vmem:[%s10618_s8 + $0x20] sm:$0x1] }
 0x34f   : > { %5888 = vst.msk [vmem:[#allocation4 + $0x60] sm:$0xff] %vm5875_vm8, %v13156_v9  ;;  %v9845_v9 = vrot.slane %v6636_v18, 9  ;;  %v6766_v23 = vsel %vm10611_vm2, %v6764_v6, %v6765_v13  ;;  %v7809_v56 = vrot.slane %v7682_v49, 5  ;;  %v9909_v50 = vrot.slane %v7680_v21, 9  ;;  %v9959_v18 = vld [vmem:[%s10618_s8 + $0x24] sm:$0xf] }
 0x350   : > { %6019 = vrot.lane.b32.xlu1 %v10502_v51, %s10542_s14  ;;  %6066 = vst.msk [vmem:[#allocation4 + $0x60] sm:$0xff] %vm6053_vm7, %v12911_v63  ;;  %v7940_v61 = vpop.permute.xlu0 %7939  ;;  %v7337_v29 = vor.u32 %v7336_v16, %v7333_v4  ;;  %v7348_v34 = vrot.slane %v7347_v44, 4  ;;  %v7808_v52 = vrot.slane %v7806_v48, 4  ;;  %v9956_v51 = vld [vmem:[%s10618_s8 + $0x18] sm:$0xf] }
 0x351   : > { %6611 = vst.msk [vmem:[#allocation4 + $0x60] sm:$0xff] %vm6598_vm3, %v13203_v38  ;;  %v5858_v19 = vpop.permute.xlu1 %5857  ;;  %v6763_v38 = vsel %vm10611_vm2, %v9845_v9, %v6762_v25  ;;  %v7807_v11 = vsel %vm10611_vm2, %v9909_v50, %v7806_v48  ;;  %v8302_v54 = vshrl.u32 %v9956_v51, 16  ;;  %v9960_v37 = vld [vmem:[%s10618_s8 + $0x28] sm:$0xf]  ;;  %v9963_v13 = vld [vmem:[%s10618_s8 + $0x34] sm:$0xf] }
 0x352   : > { %7927 = vrot.lane.b32.xlu0 %v9924_v39, %s10548_s9  ;;  %6932 = vst.msk [vmem:[#allocation4 + $0x60] sm:$0xff] %vm6919_vm11, %v13095_v27  ;;  %v7350_v27 = vshll.u32 %v7137_v30, 16  ;;  %v9861_v42 = vcombine.low %v6763_v38, %v6766_v23  ;;  %v7338_v12 = vrot.slane %v7337_v29, 4  ;;  %v7810_v17 = vsel %vm10611_vm2, %v7808_v52, %v7809_v56  ;;  %v9957_v39 = vld [vmem:[%s10618_s8 + $0x1c] sm:$0xf] }
 0x353   : > { %7110 = vst.msk [vmem:[#allocation4 + $0x60] sm:$0xff] %vm7097_vm12, %v13228_v10  ;;  %v7991_v63 = vld [vmem:[#allocation4 + $0x58] sm:$0xff]  ;;  %v9925_v25 = vcombine.low %v7807_v11, %v7810_v17  ;;  %v8311_v6 = vshll.u32 %v9957_v39, 16  ;;  %v9965_v4 = vld [vmem:[%s10618_s8 + $0x3c] sm:$0xf]  ;;  %v8335_v14 = vshll.u32 %v9960_v37, 16 }
 0x354   : > { %6564 = vrot.lane.b32.xlu1 %v9829_v8, %s10544_s16  ;;  %10208 = vmatmul.mubr.msk.bf16.gmra.mrb[4].mxu1 %vm8039_vm1, %v7991_v63  ;;  %v13320_v20 = vpop.f32.mrb[36].mxu0  ;;  %v5856_v46 = vpop.permute.xlu0 %5855  ;;  %v7352_v10 = vrot.slane %v7350_v27, 5  ;;  %v7343_v33 = vsel %vm10649_vm5, %v7338_v12, %v7342_v41  ;;  %v8315_v41 = vshrl.u32 %v9957_v39, 16  ;;  %v8329_v63 = vshll.u32 %v9959_v18, 16  ;;  %v9961_v52 = vld [vmem:[%s10618_s8 + $0x2c] sm:$0x1] }
 0x355   : > { %v6898_v55 = vpop.permute.xlu1 %6897  ;;  %v13322_v7 = vpop.f32.mrb[37].mxu0  ;;  %v13368_v9 = vrot.slane %v8311_v6, 5  ;;  %v8339_v38 = vshrl.u32 %v9960_v37, 16  ;;  %v8377_v48 = vshll.u32 %v9965_v4, 16  ;;  %v9969_v39 = vld [vmem:[%s10618_s8 + $0x4c] sm:$0xf] }
 0x356   : > { %v13324_v57 = vpop.f32.mrb[38].mxu0  ;;  %v7353_v15 = vsel %vm10649_vm5, %v7348_v34, %v7352_v10  ;;  %v8317_v23 = vrot.slane %v8315_v41, 4  ;;  %v8321_v34 = vshll.u32 %v9958_v32, 16  ;;  %vm13886_vm2 = vcmask 31744   ;;  %s10039_s16 = sshll.u32 %s13906_s24, 8 }
 0x357   : > { %v13328_v40 = vpop.f32.mrb[39].mxu0  ;;  %v9893_v45 = vcombine.low %v7343_v33, %v7353_v15  ;;  %v8331_v33 = vrot.slane %v8329_v63, 5  ;;  %v8341_v56 = vrot.slane %v8339_v38, 4  ;;  %vm13887_vm4 = vmmov %vm13886_vm2 }
 0x358   : > { %6885 = vrot.lane.b32.xlu1 %v9861_v42, %s10546_s29  ;;  %v8359_v42 = vshll.u32 %v9963_v13, 16  ;;  %vm13888_vm9 = vmmov %vm13886_vm2 }
 0x359   : > { %vm13889_vm10 = vmmov %vm13886_vm2 }
 0x35a   : > { %v7621_v22 = vpop.permute.xlu1 %7620  ;;  %v13384_v17 = vrot.slane %v8359_v42, 5  ;;  %vm13890_vm0 = vmmov %vm13886_vm2 }
 0x35c   : > { %7063 = vrot.lane.b32.xlu1 %v10504_v31, %s10547_s30  ;;  %v8318_v31 = vor.u32 %v8317_v23, %v13368_v9 }
 0x35e   : > { %v6579_v28 = vpop.permute.xlu0 %6578 }
 0x360   : > { %7608 = vrot.lane.b32.xlu1 %v9893_v45, %s10549_s10  ;;  %v9964_v45 = vld [vmem:[%s10618_s8 + $0x38] sm:$0x1] }
 0x361   : > { %v8369_v32 = vshll.u32 %v9964_v45, 16 }
 0x362   : > { %v5537_v60 = vpop.permute.xlu1 %5536  ;;  %v7078_v53 = vpop.permute.xlu0 %7077 }
 0x363   : > { %5570 = vst.msk [vmem:[#allocation4 + $0x78] sm:$0xff] %vm5554_vm14, %v5537_v60 }
 0x364   : > { %7929 = vrot.lane.b32.xlu1 %v9925_v25, %s10548_s9  ;;  %5891 = vst.msk [vmem:[#allocation4 + $0x78] sm:$0xff] %vm5875_vm8, %v5858_v19  ;;  %v8304_v19 = vrot.slane %v8302_v54, 4  ;;  %v9967_v25 = vld [vmem:[%s10618_s8 + $0x44] sm:$0x1]  ;;  %s13664_s9 = scalar_lea.vmem %s13801_s7, %s10039_s16 }
 0x366   : > { %v6036_v62 = vpop.permute.xlu1 %6035 }
 0x367   : > { %6069 = vst.msk [vmem:[#allocation4 + $0x78] sm:$0xff] %vm6053_vm7, %v6036_v62  ;;  %v9968_v62 = vld [vmem:[%s10618_s8 + $0x48] sm:$0xf] }
 0x368   : > { %v7619_v26 = vpop.permute.xlu0 %7618 }
 0x369   : > { %7655 = vst.msk [vmem:[#allocation4 + $0x60] sm:$0xff] %vm7642_vm15, %v7619_v26 }
 0x36a   : > { %7976 = vst.msk [vmem:[#allocation4 + $0x60] sm:$0xff] %vm7963_vm13, %v7940_v61  ;;  %v13344_v0 = vpop.permute.xlu1 %7079  ;;  %v9966_v61 = vld [vmem:[%s10618_s8 + $0x40] sm:$0xf] }
 0x36b   : > { %v8383_v49 = vshll.u32 %v9966_v61, 16  ;;  %v8387_v15 = vshrl.u32 %v9966_v61, 16  ;;  %v8411_v61 = vshrl.u32 %v9969_v39, 16 }
 0x36c   : > { %v7944_v47 = vpop.permute.xlu0 %7943 }
 0x36e   : > { %v6577_v2 = vpop.permute.xlu1 %6576 }
 0x36f   : > { %6612 = vst.msk [vmem:[#allocation4 + $0x68] sm:$0xff] %vm6598_vm3, %v6577_v2  ;;  %v8323_v2 = vrot.slane %v8321_v34, 5 }
 0x370   : > { %6933 = vst.msk [vmem:[#allocation4 + $0x68] sm:$0xff] %vm6919_vm11, %v6898_v55  ;;  %v8363_v55 = vshrl.u32 %v9963_v13, 16  ;;  %v8398_v13 = vshrl.u32 %v9968_v62, 16 }
 0x371   : > { %v7992_v24 = vld [vmem:[#allocation4 + $0x60] sm:$0xff]  ;;  %7111 = vst.msk [vmem:[#allocation4 + $0x68] sm:$0xff] %vm7097_vm12, %v13154_v1  ;;  %v8305_v1 = vshll.u32 %v9956_v51, 16  ;;  %v8389_v51 = vrot.slane %v8387_v15, 4 }
 0x372   : > { %v7623_v35 = vpop.permute.xlu0 %7622  ;;  %10211 = vmatprep.mubr.msk.bf16.mxu1 %vm8039_vm1, %v7992_v24  ;;  %7656 = vst.msk [vmem:[#allocation4 + $0x68] sm:$0xff] %vm7642_vm15, %v7621_v22  ;;  %v13381_v22 = vrot.slane %v8335_v14, 5  ;;  %v8365_v11 = vrot.slane %v8363_v55, 4  ;;  %v8345_v24 = vshll.u32 %v9961_v52, 16  ;;  %v9971_v14 = vld [vmem:[%s10618_s8 + $0x54] sm:$0xf] }
 0x373   : > { %7977 = vst.msk [vmem:[#allocation4 + $0x68] sm:$0xff] %vm7963_vm13, %v13264_v36  ;;  %v9962_v36 = vld [vmem:[%s10618_s8 + $0x30] sm:$0xf]  ;;  %v8307_v30 = vrot.slane %v8305_v1, 5  ;;  %v9972_v55 = vld [vmem:[%s10618_s8 + $0x58] sm:$0xf] }
 0x374   : > { %v8350_v29 = vshrl.u32 %v9962_v36, 16  ;;  %v8353_v27 = vshll.u32 %v9962_v36, 16  ;;  %v8342_v1 = vor.u32 %v8341_v56, %v13381_v22  ;;  %v8366_v41 = vor.u32 %v8365_v11, %v13384_v17 }
 0x375   : > { %v5535_v5 = vpop.permute.xlu1 %5534  ;;  %v8308_v10 = vor.u32 %v8307_v30, %v8304_v19  ;;  %v8413_v52 = vrot.slane %v8411_v61, 4  ;;  %v8435_v56 = vshrl.u32 %v9972_v55, 16 }
 0x376   : > { %v6876_v59 = vpop.permute.xlu0 %6875  ;;  %5569 = vst.msk [vmem:[#allocation4 + $0x70] sm:$0xff] %vm5554_vm14, %v5535_v5  ;;  %v8355_v50 = vrot.slane %v8353_v27, 5  ;;  %v8343_v63 = vrot.slane %v8342_v1, 4  ;;  %v8371_v27 = vrot.slane %v8369_v32, 5  ;;  %v9977_v32 = vld [vmem:[%s10618_s8 + $0x6c] sm:$0xf] }
 0x377   : > { %6922 = vst.msk [vmem:[#allocation4 + $0x10] sm:$0xff] %vm6919_vm11, %v6876_v59  ;;  %v8309_v5 = vrot.slane %v8308_v10, 4  ;;  %v8319_v59 = vrot.slane %v8318_v31, 4 }
 0x378   : > { %5890 = vst.msk [vmem:[#allocation4 + $0x70] sm:$0xff] %vm5875_vm8, %v5856_v46 }
 0x379   : > { %6068 = vst.msk [vmem:[#allocation4 + $0x70] sm:$0xff] %vm6053_vm7, %v13187_v3  ;;  %v6902_v16 = vpop.permute.xlu1 %6901  ;;  %v8326_v3 = vshrl.u32 %v9959_v18, 16  ;;  %v8393_v18 = vshll.u32 %v9967_v25, 16  ;;  %v9974_v25 = vld [vmem:[%s10618_s8 + $0x60] sm:$0xf] }
 0x37a   : > { %6613 = vst.msk [vmem:[#allocation4 + $0x70] sm:$0xff] %vm6598_vm3, %v6579_v28  ;;  %v7054_v8 = vpop.permute.xlu0 %7053  ;;  %v7993_v44 = vld [vmem:[#allocation4 + $0x68] sm:$0xff]  ;;  %v8352_v28 = vrot.slane %v8350_v29, 4  ;;  %v8367_v29 = vrot.slane %v8366_v41, 4  ;;  %v8446_v1 = vshrl.u32 %v9974_v25, 16 }
 0x37b   : > { %6934 = vst.msk [vmem:[#allocation4 + $0x70] sm:$0xff] %vm6919_vm11, %v13292_v58  ;;  %10212 = vmatmul.mubr.msk.bf16.gmra.mrb[8].mxu1 %vm8039_vm1, %v7993_v44  ;;  %v8374_v58 = vshrl.u32 %v9965_v4, 16  ;;  %v8328_v21 = vrot.slane %v8326_v3, 4  ;;  %v8401_v4 = vshll.u32 %v9968_v62, 16  ;;  %v8324_v44 = vsel %vm10649_vm5, %v8319_v59, %v8323_v2 }
 0x37c   : > { %7100 = vst.msk [vmem:[#allocation4 + $0x10] sm:$0xff] %vm7097_vm12, %v7054_v8  ;;  %7112 = vst.msk [vmem:[#allocation4 + $0x70] sm:$0xff] %vm7097_vm12, %v7078_v53  ;;  %v8379_v53 = vrot.slane %v8377_v48, 5  ;;  %v8356_v6 = vor.u32 %v8355_v50, %v8352_v28  ;;  %v8407_v8 = vshll.u32 %v9969_v39, 16  ;;  %v8395_v42 = vrot.slane %v8393_v18, 5 }
 0x37d   : > { %7657 = vst.msk [vmem:[#allocation4 + $0x70] sm:$0xff] %vm7642_vm15, %v7623_v35  ;;  %v7946_v46 = vpop.permute.xlu1 %7945  ;;  %v8376_v60 = vrot.slane %v8374_v58, 4  ;;  %v13388_v35 = vrot.slane %v8383_v49, 5  ;;  %v8332_v54 = vor.u32 %v8331_v33, %v8328_v21  ;;  %v9970_v58 = vld [vmem:[%s10618_s8 + $0x50] sm:$0x1]  ;;  %v8400_v48 = vrot.slane %v8398_v13, 4 }
 0x37e   : > { %7978 = vst.msk [vmem:[#allocation4 + $0x70] sm:$0xff] %vm7963_vm13, %v7944_v47  ;;  %v7599_v12 = vpop.permute.xlu0 %7598  ;;  %v8357_v38 = vrot.slane %v8356_v6, 4  ;;  %v13412_v10 = vrot.slane %v8407_v8, 5  ;;  %v8422_v21 = vshrl.u32 %v9971_v14, 16  ;;  %v8431_v33 = vshll.u32 %v9972_v55, 16 }
 0x37f   : > { %7645 = vst.msk [vmem:[#allocation4 + $0x10] sm:$0xff] %vm7642_vm15, %v7599_v12  ;;  %v8380_v36 = vor.u32 %v8379_v53, %v8376_v60  ;;  %v8390_v23 = vor.u32 %v8389_v51, %v13388_v35  ;;  %v8333_v3 = vrot.slane %v8332_v54, 4  ;;  %v8403_v12 = vrot.slane %v8401_v4, 5  ;;  %v9978_v4 = vld [vmem:[%s10618_s8 + $0x70] sm:$0xf] }
 0x380   : > { %v8362_v11 = vsel %vm10649_vm5, %v8357_v38, %v13384_v17  ;;  %v8372_v60 = vsel %vm10649_vm5, %v8367_v29, %v8371_v27  ;;  %v9973_v17 = vld [vmem:[%s10618_s8 + $0x5c] sm:$0x1]  ;;  %v8424_v51 = vrot.slane %v8422_v21, 4  ;;  %v8437_v54 = vrot.slane %v8435_v56, 4  ;;  %v9976_v21 = vld [vmem:[%s10618_s8 + $0x68] sm:$0x1] }
 0x381   : > { %v8381_v34 = vrot.slane %v8380_v36, 4  ;;  %v8391_v15 = vrot.slane %v8390_v23, 4  ;;  %v8338_v28 = vsel %vm10649_vm5, %v8333_v3, %v13381_v22  ;;  %v8404_v62 = vor.u32 %v8403_v12, %v8400_v48  ;;  %v9981_v29 = vld [vmem:[%s10618_s8 + $0x7c] sm:$0xf] }
 0x382   : > { %v6581_v26 = vpop.permute.xlu1 %6580  ;;  %v8449_v6 = vshll.u32 %v9974_v25, 16  ;;  %v10007_v18 = vcombine.low %v8362_v11, %v8372_v60  ;;  %v8470_v27 = vshrl.u32 %v9977_v32, 16  ;;  %v8479_v55 = vshll.u32 %v9978_v4, 16  ;;  %v9983_v11 = vld [vmem:[%s10618_s8 + $0x84] sm:$0xf] }
 0x383   : > { %6614 = vst.msk [vmem:[#allocation4 + $0x78] sm:$0xff] %vm6598_vm3, %v6581_v26  ;;  %v8386_v53 = vsel %vm10649_vm5, %v8381_v34, %v13388_v35  ;;  %v8417_v26 = vshll.u32 %v9970_v58, 16  ;;  %v8396_v2 = vsel %vm10649_vm5, %v8391_v15, %v8395_v42  ;;  %v13440_v35 = vrot.slane %v8431_v33, 5 }
 0x384   : > { %v7920_v47 = vpop.permute.xlu0 %7919  ;;  %6935 = vst.msk [vmem:[#allocation4 + $0x78] sm:$0xff] %vm6919_vm11, %v6902_v16  ;;  %v8347_v16 = vrot.slane %v8345_v24, 5  ;;  %v8414_v24 = vor.u32 %v8413_v52, %v13412_v10  ;;  %v8451_v38 = vrot.slane %v8449_v6, 5  ;;  %v8473_v42 = vshll.u32 %v9977_v32, 16 }
 0x385   : > { %7966 = vst.msk [vmem:[#allocation4 + $0x10] sm:$0xff] %vm7963_vm13, %v7920_v47  ;;  %v7994_v37 = vld [vmem:[#allocation4 + $0x70] sm:$0xff]  ;;  %v8419_v61 = vrot.slane %v8417_v26, 5  ;;  %v8483_v34 = vshrl.u32 %v9978_v4, 16  ;;  %v8507_v33 = vshrl.u32 %v9981_v29, 16  ;;  %v13476_v60 = vrot.slane %v8479_v55, 5 }
 0x386   : > { %7113 = vst.msk [vmem:[#allocation4 + $0x78] sm:$0xff] %vm7097_vm12, %v13344_v0  ;;  %v7625_v19 = vpop.permute.xlu1 %7624  ;;  %10215 = vmatprep.mubr.msk.bf16.mxu1 %vm8039_vm1, %v7994_v37  ;;  %v8314_v0 = vsel %vm10649_vm5, %v8309_v5, %v13368_v9  ;;  %v8348_v50 = vsel %vm10649_vm5, %v8343_v63, %v8347_v16  ;;  %v9975_v5 = vld [vmem:[%s10618_s8 + $0x64] sm:$0xf]  ;;  %v13445_v37 = vrot.slane %v8404_v62, 4  ;;  %v13448_v16 = vcombine.low %v8386_v53, %v8396_v2  ;;  %v9984_v62 = vld [vmem:[%s10618_s8 + $0x88] sm:$0xf] }
 0x387   : > { %7658 = vst.msk [vmem:[#allocation4 + $0x78] sm:$0xff] %vm7642_vm15, %v7625_v19  ;;  %v10005_v45 = vcombine.low %v8314_v0, %v8324_v44  ;;  %v10006_v41 = vcombine.low %v8338_v28, %v8348_v50  ;;  %v8455_v36 = vshll.u32 %v9975_v5, 16  ;;  %v8459_v13 = vshrl.u32 %v9975_v5, 16  ;;  %v9980_v44 = vld [vmem:[%s10618_s8 + $0x78] sm:$0xf] }
 0x388   : > { %v13399_v30 = vpop.permute.xlu0 %7921  ;;  %7979 = vst.msk [vmem:[#allocation4 + $0x78] sm:$0xff] %vm7963_vm13, %v7946_v46  ;;  %v8425_v46 = vshll.u32 %v9971_v14, 16  ;;  %v8415_v23 = vrot.slane %v8414_v24, 4  ;;  %v8441_v0 = vshll.u32 %v9973_v17, 16  ;;  %v8438_v63 = vor.u32 %v8437_v54, %v13440_v35  ;;  %v9979_v2 = vld [vmem:[%s10618_s8 + $0x74] sm:$0x1] }
 0x389   : > { %v8448_v14 = vrot.slane %v8446_v1, 4  ;;  %v13456_v58 = vrot.slane %v8455_v36, 5  ;;  %v8461_v48 = vrot.slane %v8459_v13, 4  ;;  %v8494_v12 = vshrl.u32 %v9980_v44, 16 }
 0x38a   : > { %v6878_v9 = vpop.permute.xlu1 %6877  ;;  %v8427_v39 = vrot.slane %v8425_v46, 5  ;;  %v8410_v52 = vsel %vm10649_vm5, %v13445_v37, %v13412_v10  ;;  %v8503_v46 = vshll.u32 %v9981_v29, 16  ;;  %v13470_v28 = vrot.slane %v8441_v0, 5  ;;  %v9987_v29 = vld [vmem:[%s10618_s8 + $0x94] sm:$0xf] }
 0x38b   : > { %6923 = vst.msk [vmem:[#allocation4 + $0x18] sm:$0xff] %vm6919_vm11, %v6878_v9  ;;  %v8497_v9 = vshll.u32 %v9980_v44, 16  ;;  %v8452_v50 = vor.u32 %v8451_v38, %v8448_v14  ;;  %v8472_v10 = vrot.slane %v8470_v27, 4  ;;  %v8475_v25 = vrot.slane %v8473_v42, 5  ;;  %v9985_v27 = vld [vmem:[%s10618_s8 + $0x8c] sm:$0x1] }
 0x38c   : > { %v13414_v31 = vpop.permute.xlu0 %5835  ;;  %v7982_v49 = vld [vmem:[#allocation4 + $0x10] sm:$0xff]  ;;  %v8428_v3 = vor.u32 %v8427_v39, %v8424_v51  ;;  %v8485_v53 = vrot.slane %v8483_v34, 4  ;;  %v8462_v26 = vor.u32 %v8461_v48, %v13456_v58  ;;  %v8496_v24 = vrot.slane %v8494_v12, 4 }
 0x38d   : > { %10191 = vmatprep.mubr.msk.bf16.mxu0 %vm8039_vm1, %v7982_v49  ;;  %v13485_v39 = vrot.slane %v8503_v46, 5  ;;  %v8509_v5 = vrot.slane %v8507_v33, 4  ;;  %v8521_v54 = vshll.u32 %v9983_v11, 16  ;;  %v8527_v32 = vshll.u32 %v9984_v62, 16 }
 0x38e   : > { %v7056_v47 = vpop.permute.xlu1 %7055  ;;  %v13466_v56 = vrot.slane %v8428_v3, 4  ;;  %v8453_v37 = vrot.slane %v8452_v50, 4  ;;  %v8476_v36 = vor.u32 %v8475_v25, %v8472_v10  ;;  %v8486_v13 = vor.u32 %v8485_v53, %v13476_v60 }
 0x38f   : > { %7101 = vst.msk [vmem:[#allocation4 + $0x18] sm:$0xff] %vm7097_vm12, %v7056_v47  ;;  %v7995_v59 = vld [vmem:[#allocation4 + $0x78] sm:$0xff]  ;;  %v8465_v47 = vshll.u32 %v9976_v21, 16  ;;  %v8489_v4 = vshll.u32 %v9979_v2, 16  ;;  %v8510_v3 = vor.u32 %v8509_v5, %v13485_v39  ;;  %v8523_v38 = vrot.slane %v8521_v54, 5 }
 0x390   : > { %v13432_v22 = vpop.permute.xlu0 %6013  ;;  %10216 = vmatmul.mubr.msk.bf16.gmra.mrb[12].mxu1 %vm8039_vm1, %v7995_v59  ;;  %v8518_v59 = vshrl.u32 %v9983_v11, 16  ;;  %v8434_v6 = vsel %vm10649_vm5, %v13466_v56, %v13440_v35  ;;  %v13507_v42 = vrot.slane %v8527_v32, 5  ;;  %v8458_v12 = vsel %vm10649_vm5, %v8453_v37, %v13456_v58  ;;  %v9989_v58 = vld [vmem:[%s10618_s8 + $0x9c] sm:$0xf]  ;;  %v9990_v2 = vld [vmem:[%s10618_s8 + $0xa0] sm:$0xf] }
 0x391   : > { %10221 = vmatprep.mubr.msk.bf16.mxu1 %vm13886_vm2, %v10005_v45  ;;  %v13468_v45 = vrot.slane %v8438_v63, 4  ;;  %v8551_v21 = vshll.u32 %v9987_v29, 16  ;;  %v8555_v46 = vshrl.u32 %v9987_v29, 16  ;;  %v8537_v50 = vshll.u32 %v9985_v27, 16  ;;  %v9988_v32 = vld [vmem:[%s10618_s8 + $0x98] sm:$0x1]  ;;  %vm13891_vm2 = vmmov %vm13890_vm0 }
 0x392   : > { %v7601_v8 = vpop.permute.xlu1 %7600  ;;  %v8520_v14 = vrot.slane %v8518_v59, 4  ;;  %v8569_v5 = vshll.u32 %v9989_v58, 16  ;;  %v9993_v59 = vld [vmem:[%s10618_s8 + $0xac] sm:$0xf]  ;;  %v9991_v27 = vld [vmem:[%s10618_s8 + $0xa4] sm:$0x1] }
 0x393   : > { %7646 = vst.msk [vmem:[#allocation4 + $0x18] sm:$0xff] %vm7642_vm15, %v7601_v8  ;;  %v9986_v8 = vld [vmem:[%s10618_s8 + $0x90] sm:$0xf]  ;;  %v8444_v35 = vsel %vm10649_vm5, %v13468_v45, %v13470_v28 }
 0x394   : > { %v6559_v19 = vpop.permute.xlu0 %6558  ;;  %7967 = vst.msk [vmem:[#allocation4 + $0x18] sm:$0xff] %vm7963_vm13, %v13399_v30  ;;  %v8420_v30 = vsel %vm10649_vm5, %v8415_v23, %v8419_v61  ;;  %v8467_v23 = vrot.slane %v8465_v47, 5  ;;  %v8542_v34 = vshrl.u32 %v9986_v8, 16  ;;  %v8545_v48 = vshll.u32 %v9986_v8, 16 }
 0x395   : > { %v10009_v1 = vcombine.low %v8410_v52, %v8420_v30  ;;  %v8524_v28 = vor.u32 %v8523_v38, %v8520_v14  ;;  %v10010_v53 = vcombine.low %v8434_v6, %v8444_v35  ;;  %v8599_v35 = vshll.u32 %v9993_v59, 16 }
 0x396   : > { %v5515_v49 = vpop.permute.xlu1 %5514  ;;  %v8544_v10 = vrot.slane %v8542_v34, 4  ;;  %v8547_v25 = vrot.slane %v8545_v48, 5 }
 0x397   : > { %5559 = vst.msk [vmem:[#allocation4 + $0x20] sm:$0xff] %vm5554_vm14, %v5515_v49  ;;  %v8487_v49 = vrot.slane %v8486_v13, 4  ;;  %v8525_v6 = vrot.slane %v8524_v28, 4  ;;  %v8579_v13 = vshrl.u32 %v9990_v2, 16 }
 0x398   : > { %v6880_v15 = vpop.permute.xlu0 %6879  ;;  %5880 = vst.msk [vmem:[#allocation4 + $0x20] sm:$0xff] %vm5875_vm8, %v13414_v31  ;;  %10222 = vmatmul.mubr.msk.bf16.vlgmr.msra.gmra.mrb[16].mxu1 %vm13887_vm4, %v10006_v41  ;;  %v8499_v31 = vrot.slane %v8497_v9, 5  ;;  %v9982_v41 = vld [vmem:[%s10618_s8 + $0x80] sm:$0x1]  ;;  %v8477_v9 = vrot.slane %v8476_v36, 4  ;;  %v8548_v37 = vor.u32 %v8547_v25, %v8544_v10  ;;  %v8575_v36 = vshll.u32 %v9990_v2, 16  ;;  %vm13892_vm4 = vmmov %vm13890_vm0 }
 0x399   : > { %6058 = vst.msk [vmem:[#allocation4 + $0x20] sm:$0xff] %vm6053_vm7, %v13432_v22  ;;  %10225 = vmatprep.mubr.msk.bf16.mxu1 %vm13888_vm9, %v10007_v18  ;;  %v8531_v18 = vshrl.u32 %v9984_v62, 16  ;;  %v8513_v63 = vshll.u32 %v9982_v41, 16  ;;  %v8539_v41 = vrot.slane %v8537_v50, 5  ;;  %v8530_v29 = vsel %vm10649_vm5, %v8525_v6, %v13507_v42  ;;  %vm13893_vm9 = vmmov %vm13890_vm0 }
 0x39a   : > { %6603 = vst.msk [vmem:[#allocation4 + $0x20] sm:$0xff] %vm6598_vm3, %v6559_v19  ;;  %v5517_v17 = vpop.permute.xlu1 %5516  ;;  %v8463_v19 = vrot.slane %v8462_v26, 4  ;;  %v8500_v61 = vor.u32 %v8499_v31, %v8496_v24  ;;  %v8482_v26 = vsel %vm10649_vm5, %v8477_v9, %v13476_v60  ;;  %v9992_v24 = vld [vmem:[%s10618_s8 + $0xa8] sm:$0xf]  ;;  %v13528_v31 = vrot.slane %v8551_v21, 5 }
 0x39b   : > { %6924 = vst.msk [vmem:[#allocation4 + $0x20] sm:$0xff] %vm6919_vm11, %v6880_v15  ;;  %v7983_v22 = vld [vmem:[#allocation4 + $0x18] sm:$0xff]  ;;  %v8533_v55 = vrot.slane %v8531_v18, 4  ;;  %v8491_v15 = vrot.slane %v8489_v4, 5  ;;  %v8515_v45 = vrot.slane %v8513_v63, 5  ;;  %v8590_v4 = vshrl.u32 %v9992_v24, 16 }
 0x39c   : > { %v7058_v51 = vpop.permute.xlu0 %7057  ;;  %5560 = vst.msk [vmem:[#allocation4 + $0x28] sm:$0xff] %vm5554_vm14, %v5517_v17  ;;  %10192 = vmatmul.mubr.msk.bf16.gmra.mrb[40].mxu0 %vm8039_vm1, %v7983_v22  ;;  %v8468_v52 = vsel %vm10649_vm5, %v8463_v19, %v8467_v23  ;;  %v8501_v30 = vrot.slane %v8500_v61, 4  ;;  %v8557_v17 = vrot.slane %v8555_v46, 4  ;;  %v8593_v8 = vshll.u32 %v9992_v24, 16  ;;  %v9994_v9 = vld [vmem:[%s10618_s8 + $0xb0] sm:$0x1] }
 0x39d   : > { %7102 = vst.msk [vmem:[#allocation4 + $0x20] sm:$0xff] %vm7097_vm12, %v7058_v51  ;;  %v8534_v11 = vor.u32 %v8533_v55, %v13507_v42  ;;  %v10011_v62 = vcombine.low %v8458_v12, %v8468_v52  ;;  %v8492_v47 = vsel %vm10649_vm5, %v8487_v49, %v8491_v15  ;;  %v8566_v51 = vshrl.u32 %v9989_v58, 16  ;;  %v9998_v58 = vld [vmem:[%s10618_s8 + $0xc0] sm:$0xf] }
 0x39e   : > { %v5838_v0 = vpop.permute.xlu1 %5837  ;;  %v8603_v19 = vshrl.u32 %v9993_v59, 16  ;;  %v8561_v23 = vshll.u32 %v9988_v32, 16  ;;  %v10012_v14 = vcombine.low %v8482_v26, %v8492_v47  ;;  %v8549_v34 = vrot.slane %v8548_v37, 4 }
 0x39f   : > { %5881 = vst.msk [vmem:[#allocation4 + $0x28] sm:$0xff] %vm5875_vm8, %v5838_v0  ;;  %v8535_v18 = vrot.slane %v8534_v11, 4  ;;  %v8568_v61 = vrot.slane %v8566_v51, 4  ;;  %v8571_v0 = vrot.slane %v8569_v5, 5  ;;  %v13553_v48 = vrot.slane %v8575_v36, 5 }
 0x3a0   : > { %v7603_v44 = vpop.permute.xlu0 %7602  ;;  %10226 = vmatmul.mubr.msk.bf16.gmra.mrb[20].mxu1 %vm13889_vm10, %v13448_v16  ;;  %v8511_v16 = vrot.slane %v8510_v3, 4  ;;  %v8581_v12 = vrot.slane %v8579_v13, 4  ;;  %v8592_v49 = vrot.slane %v8590_v4, 4  ;;  %v8595_v15 = vrot.slane %v8593_v8, 5  ;;  %vm13894_vm10 = vmmov %vm13890_vm0 }
 0x3a1   : > { %7647 = vst.msk [vmem:[#allocation4 + $0x20] sm:$0xff] %vm7642_vm15, %v7603_v44  ;;  %10229 = vmatprep.mubr.msk.bf16.mxu1 %vm13890_vm0, %v10009_v1  ;;  %v8506_v1 = vsel %vm10649_vm5, %v8501_v30, %v13485_v39  ;;  %v8558_v39 = vor.u32 %v8557_v17, %v13528_v31  ;;  %v8540_v55 = vsel %vm10649_vm5, %v8535_v18, %v8539_v41  ;;  %v13556_v52 = vrot.slane %v8599_v35, 5  ;;  %v9995_v30 = vld [vmem:[%s10618_s8 + $0xb4] sm:$0xf] }
 0x3a2   : > { %v6016_v33 = vpop.permute.xlu1 %6015  ;;  %v8516_v60 = vsel %vm10649_vm5, %v8511_v16, %v8515_v45  ;;  %v8605_v42 = vrot.slane %v8603_v19, 4  ;;  %v8563_v46 = vrot.slane %v8561_v23, 5  ;;  %v9996_v16 = vld [vmem:[%s10618_s8 + $0xb8] sm:$0xf]  ;;  %v10014_v50 = vcombine.low %v8530_v29, %v8540_v55  ;;  %v10001_v23 = vld [vmem:[%s10618_s8 + $0xcc] sm:$0xf] }
 0x3a3   : > { %6059 = vst.msk [vmem:[#allocation4 + $0x28] sm:$0xff] %vm6053_vm7, %v6016_v33  ;;  %v10013_v38 = vcombine.low %v8506_v1, %v8516_v60  ;;  %v8559_v21 = vrot.slane %v8558_v39, 4  ;;  %v8572_v33 = vor.u32 %v8571_v0, %v8568_v61  ;;  %v8582_v11 = vor.u32 %v8581_v12, %v13553_v48  ;;  %v9997_v39 = vld [vmem:[%s10618_s8 + $0xbc] sm:$0x1]  ;;  %v10002_v29 = vld [vmem:[%s10618_s8 + $0xd0] sm:$0xf] }
 0x3a4   : > { %v7924_v56 = vpop.permute.xlu0 %7923  ;;  %v8609_v10 = vshll.u32 %v9994_v9, 16  ;;  %v8614_v25 = vshrl.u32 %v9995_v30, 16  ;;  %v8596_v26 = vor.u32 %v8595_v15, %v8592_v49  ;;  %v8606_v47 = vor.u32 %v8605_v42, %v13556_v52 }
 0x3a5   : > { %7968 = vst.msk [vmem:[#allocation4 + $0x20] sm:$0xff] %vm7963_vm13, %v7924_v56  ;;  %v8585_v56 = vshll.u32 %v9991_v27, 16  ;;  %v8623_v2 = vshll.u32 %v9996_v16, 16  ;;  %v8627_v24 = vshrl.u32 %v9996_v16, 16  ;;  %v8554_v17 = vsel %vm10649_vm5, %v8549_v34, %v13528_v31  ;;  %v10000_v34 = vld [vmem:[%s10618_s8 + $0xc8] sm:$0x1] }
 0x3a6   : > { %v6561_v54 = vpop.permute.xlu1 %6560  ;;  %v8564_v51 = vsel %vm10649_vm5, %v8559_v21, %v8563_v46  ;;  %v8573_v5 = vrot.slane %v8572_v33, 4  ;;  %v8638_v60 = vshrl.u32 %v9998_v58, 16  ;;  %v8641_v6 = vshll.u32 %v9998_v58, 16 }
 0x3a7   : > { %6604 = vst.msk [vmem:[#allocation4 + $0x28] sm:$0xff] %vm6598_vm3, %v6561_v54  ;;  %v8587_v59 = vrot.slane %v8585_v56, 5  ;;  %v8583_v18 = vrot.slane %v8582_v11, 4  ;;  %v8611_v37 = vrot.slane %v8609_v10, 5  ;;  %v8616_v36 = vrot.slane %v8614_v25, 4 }
 0x3a8   : > { %v13531_v22 = vpop.permute.xlu0 %7925  ;;  %10230 = vmatmul.mubr.msk.bf16.gmra.mrb[24].mxu1 %vm13891_vm2, %v10010_v53  ;;  %v8617_v53 = vshll.u32 %v9995_v30, 16  ;;  %v8597_v13 = vrot.slane %v8596_v26, 4  ;;  %v8607_v4 = vrot.slane %v8606_v47, 4  ;;  %v13575_v8 = vrot.slane %v8623_v2, 5  ;;  %vm13895_vm2 = vmmov %vm13890_vm0 }
 0x3a9   : > { %10233 = vmatprep.mubr.msk.bf16.mxu1 %vm13892_vm4, %v10011_v62  ;;  %v9999_v62 = vld [vmem:[%s10618_s8 + $0xc4] sm:$0xf]  ;;  %v8629_v35 = vrot.slane %v8627_v24, 4  ;;  %v10015_v19 = vcombine.low %v8554_v17, %v8564_v51  ;;  %v8588_v27 = vsel %vm10649_vm5, %v8583_v18, %v8587_v59  ;;  %v8662_v15 = vshrl.u32 %v10001_v23, 16  ;;  %v10003_v51 = vld [vmem:[%s10618_s8 + $0xd4] sm:$0x1]  ;;  %vm13897_vm4 = vmmov %vm13890_vm0 }
 0x3aa   : > { %v6882_v44 = vpop.permute.xlu1 %6881  ;;  %v8647_v41 = vshll.u32 %v9999_v62, 16  ;;  %v8651_v32 = vshrl.u32 %v9999_v62, 16  ;;  %v8619_v31 = vrot.slane %v8617_v53, 5  ;;  %v8602_v12 = vsel %vm10649_vm5, %v8597_v13, %v13556_v52 }
 0x3ab   : > { %6925 = vst.msk [vmem:[#allocation4 + $0x28] sm:$0xff] %vm6919_vm11, %v6882_v44  ;;  %v8640_v44 = vrot.slane %v8638_v60, 4  ;;  %v8612_v9 = vsel %vm10649_vm5, %v8607_v4, %v8611_v37  ;;  %v8630_v49 = vor.u32 %v8629_v35, %v13575_v8  ;;  %v8665_v42 = vshll.u32 %v10001_v23, 16 }
 0x3ac   : > { %v13543_v3 = vpop.permute.xlu0 %5839  ;;  %v7984_v63 = vld [vmem:[#allocation4 + $0x20] sm:$0xff]  ;;  %v8620_v55 = vor.u32 %v8619_v31, %v8616_v36  ;;  %v8671_v30 = vshll.u32 %v10002_v29, 16  ;;  %v8657_v56 = vshll.u32 %v10000_v34, 16  ;;  %v8664_v10 = vrot.slane %v8662_v15, 4 }
 0x3ad   : > { %10195 = vmatprep.mubr.msk.bf16.mxu0 %vm8039_vm1, %v7984_v63  ;;  %v8643_v63 = vrot.slane %v8641_v6, 5  ;;  %v8631_v58 = vrot.slane %v8630_v49, 4  ;;  %v8667_v25 = vrot.slane %v8665_v42, 5  ;;  %v8681_v60 = vshll.u32 %v10003_v51, 16 }
 0x3ae   : > { %v7060_v45 = vpop.permute.xlu1 %7059  ;;  %v8673_v53 = vrot.slane %v8671_v30, 5  ;;  %v8659_v17 = vrot.slane %v8657_v56, 5 }
 0x3af   : > { %7103 = vst.msk [vmem:[#allocation4 + $0x28] sm:$0xff] %vm7097_vm12, %v7060_v45  ;;  %v8644_v33 = vor.u32 %v8643_v63, %v8640_v44  ;;  %v8683_v4 = vrot.slane %v8681_v60, 5 }
 0x3b0   : > { %v6018_v28 = vpop.permute.xlu0 %6017  ;;  %10234 = vmatmul.mubr.msk.bf16.gmra.mrb[28].mxu1 %vm13893_vm9, %v10012_v14  ;;  %v13579_v14 = vrot.slane %v8647_v41, 5  ;;  %vm13899_vm9 = vmmov %vm13890_vm0 }
 0x3b1   : > { %10237 = vmatprep.mubr.msk.bf16.mxu1 %vm13894_vm10, %v10013_v38  ;;  %v8653_v38 = vrot.slane %v8651_v32, 4  ;;  %v8645_v2 = vrot.slane %v8644_v33, 4 }
 0x3b2   : > { %v7605_v54 = vpop.permute.xlu1 %7604 }
 0x3b3   : > { %7648 = vst.msk [vmem:[#allocation4 + $0x28] sm:$0xff] %vm7642_vm15, %v7605_v54  ;;  %v8654_v52 = vor.u32 %v8653_v38, %v13579_v14  ;;  %v8668_v54 = vor.u32 %v8667_v25, %v8664_v10  ;;  %v8650_v32 = vsel %vm10649_vm5, %v8645_v2, %v13579_v14  ;;  %v13640_v14 = vld [vmem:[%s13798_s4] ss:$0 sm:$0xff] }
 0x3b4   : > { %v6563_v1 = vpop.permute.xlu0 %6562  ;;  %7969 = vst.msk [vmem:[#allocation4 + $0x28] sm:$0xff] %vm7963_vm13, %v13531_v22  ;;  %v8578_v22 = vsel %vm10649_vm5, %v8573_v5, %v13553_v48  ;;  %v8633_v48 = vshll.u32 %v9997_v39, 16  ;;  %v8138_v38 = vadd.f32 %v13324_v57, %v13640_v14 }
 0x3b5   : > { %v10016_v45 = vcombine.low %v8578_v22, %v8588_v27  ;;  %v8655_v24 = vrot.slane %v8654_v52, 4  ;;  %v8669_v31 = vrot.slane %v8668_v54, 4  ;;  %v13649_v22 = vld [vmem:[%s13800_s6] ss:$0 sm:$0xff]  ;;  %v8135_v27 = vadd.f32 %v13320_v20, %v13640_v14 }
 0x3b6   : > { %v5519_v61 = vpop.permute.xlu1 %5518  ;;  %v8635_v11 = vrot.slane %v8633_v48, 5  ;;  %v10270_v49 = vadd.f32 %v13649_v22, %v8138_v38 }
 0x3b7   : > { %5561 = vst.msk [vmem:[#allocation4 + $0x30] sm:$0xff] %vm5554_vm14, %v5519_v61  ;;  %v8660_v18 = vsel %vm10649_vm5, %v8655_v24, %v8659_v17  ;;  %v8674_v35 = vsel %vm10649_vm5, %v8669_v31, %v8673_v53 }
 0x3b8   : > { %v6884_v0 = vpop.permute.xlu0 %6883  ;;  %5882 = vst.msk [vmem:[#allocation4 + $0x30] sm:$0xff] %vm5875_vm8, %v13543_v3  ;;  %10238 = vmatmul.mubr.msk.bf16.gmra.mrb[0].mxu1 %vm13890_vm0, %v10014_v50  ;;  %v8675_v3 = vshrl.u32 %v10002_v29, 16  ;;  %v8621_v50 = vrot.slane %v8620_v55, 4  ;;  %v8636_v59 = vsel %vm10649_vm5, %v8631_v58, %v8635_v11  ;;  %v10019_v36 = vcombine.low %v8650_v32, %v8660_v18 }
 0x3b9   : > { %6060 = vst.msk [vmem:[#allocation4 + $0x30] sm:$0xff] %vm6053_vm7, %v6018_v28  ;;  %10241 = vmatprep.mubr.msk.bf16.mxu1 %vm13895_vm2, %v10015_v19  ;;  %v10017_v28 = vcombine.low %v8602_v12, %v8612_v9  ;;  %v8130_v29 = vadd.f32 %v13640_v14, %v13328_v40  ;;  %v8127_v55 = vadd.f32 %v13640_v14, %v13322_v7 }
 0x3ba   : > { %6605 = vst.msk [vmem:[#allocation4 + $0x30] sm:$0xff] %vm6598_vm3, %v6563_v1  ;;  %v5521_v21 = vpop.permute.xlu1 %5520  ;;  %v8677_v62 = vrot.slane %v8675_v3, 4  ;;  %v8626_v5 = vsel %vm10649_vm5, %v8621_v50, %v13575_v8 }
 0x3bb   : > { %6926 = vst.msk [vmem:[#allocation4 + $0x30] sm:$0xff] %vm6919_vm11, %v6884_v0  ;;  %v7985_v16 = vld [vmem:[#allocation4 + $0x28] sm:$0xff]  ;;  %v10018_v37 = vcombine.low %v8626_v5, %v8636_v59  ;;  %v10273_v40 = vadd.f32 %v13649_v22, %v8130_v29 }
 0x3bc   : > { %v7062_v46 = vpop.permute.xlu0 %7061  ;;  %5562 = vst.msk [vmem:[#allocation4 + $0x38] sm:$0xff] %vm5554_vm14, %v5521_v21  ;;  %10196 = vmatmul.mubr.msk.bf16.gmra.mrb[44].mxu0 %vm8039_vm1, %v7985_v16  ;;  %vm13896_vm14 = vmmov %vm13890_vm0  ;;  %v8678_v1 = vor.u32 %v8677_v62, %v8673_v53 }
 0x3bd   : > { %7104 = vst.msk [vmem:[#allocation4 + $0x30] sm:$0xff] %vm7097_vm12, %v7062_v46 }
 0x3be   : > { %v5842_v26 = vpop.permute.xlu1 %5841  ;;  %v8679_v13 = vrot.slane %v8678_v1, 4 }
 0x3bf   : > { %5883 = vst.msk [vmem:[#allocation4 + $0x38] sm:$0xff] %vm5875_vm8, %v5842_v26  ;;  %vm13898_vm8 = vmmov %vm13890_vm0 }
 0x3c0   : > { %v7607_v47 = vpop.permute.xlu0 %7606  ;;  %10242 = vmatmul.mubr.msk.bf16.gmra.mrb[4].mxu1 %vm13896_vm14, %v10016_v45  ;;  %v8684_v19 = vsel %vm10649_vm5, %v8679_v13, %v8683_v4 }
 0x3c1   : > { %7649 = vst.msk [vmem:[#allocation4 + $0x30] sm:$0xff] %vm7642_vm15, %v7607_v47  ;;  %10245 = vmatprep.mubr.msk.bf16.mxu1 %vm13897_vm4, %v10017_v28  ;;  %v10020_v61 = vcombine.low %v8674_v35, %v8684_v19 }
 0x3c2   : > { %v6020_v6 = vpop.permute.xlu1 %6019 }
 0x3c3   : > { %6061 = vst.msk [vmem:[#allocation4 + $0x38] sm:$0xff] %vm6053_vm7, %v6020_v6  ;;  %vm13900_vm7 = vmmov %vm13890_vm0 }
 0x3c4   : > { %v7928_v41 = vpop.permute.xlu0 %7927 }
 0x3c5   : > { %7970 = vst.msk [vmem:[#allocation4 + $0x30] sm:$0xff] %vm7963_vm13, %v7928_v41 }
 0x3c6   : > { %v6565_v8 = vpop.permute.xlu1 %6564 }
 0x3c7   : > { %6606 = vst.msk [vmem:[#allocation4 + $0x38] sm:$0xff] %vm6598_vm3, %v6565_v8 }
 0x3c8   : > { %10246 = vmatmul.mubr.msk.bf16.gmra.mrb[8].mxu1 %vm13898_vm8, %v10018_v37 }
 0x3c9   : > { %10249 = vmatprep.mubr.msk.bf16.mxu1 %vm13899_vm9, %v10019_v36 }
 0x3ca   : > { %v6886_v39 = vpop.permute.xlu1 %6885 }
 0x3cb   : > { %6927 = vst.msk [vmem:[#allocation4 + $0x38] sm:$0xff] %vm6919_vm11, %v6886_v39 }
 0x3cc   : > { %v7986_v23 = vld [vmem:[#allocation4 + $0x30] sm:$0xff] }
 0x3cd   : > { %10199 = vmatprep.mubr.msk.bf16.mxu0 %vm8039_vm1, %v7986_v23 }
 0x3ce   : > { %v7064_v0 = vpop.permute.xlu1 %7063 }
 0x3cf   : > { %7105 = vst.msk [vmem:[#allocation4 + $0x38] sm:$0xff] %vm7097_vm12, %v7064_v0 }
 0x3d0   : > { %10250 = vmatmul.mubr.msk.bf16.gmra.mrb[12].mxu1 %vm13900_vm7, %v10020_v61 }
 0x3d2   : > { %v7609_v44 = vpop.permute.xlu1 %7608 }
 0x3d3   : > { %7650 = vst.msk [vmem:[#allocation4 + $0x38] sm:$0xff] %vm7642_vm15, %v7609_v44 }
 0x3d6   : > { %v7930_v63 = vpop.permute.xlu1 %7929 }
 0x3d7   : > { %7971 = vst.msk [vmem:[#allocation4 + $0x38] sm:$0xff] %vm7963_vm13, %v7930_v63  ;;  %v13699_v63 = vadd.f32 %v13649_v22, %v13640_v14 }
 0x3de   : > { %v7987_v43 = vld [vmem:[#allocation4 + $0x38] sm:$0xff] }
 0x3df   : > { %10200 = vmatmul.mubr.msk.bf16.gmra.mrb[48].mxu0 %vm8039_vm1, %v7987_v43 }
 0x46b   : > { %v10223_v34 = vpop.f32.mrb[16].mxu1 }
 0x46c   : > { %v10264_v12 = vadd.f32 %v10223_v34, %v8135_v27  ;;  %v8826_v9 = vpop.f32.mrb[17].mxu1 }
 0x46d   : > { %v10267_v57 = vadd.f32 %v8826_v9, %v8127_v55  ;;  %v10224_v48 = vpop.f32.mrb[18].mxu1 }
 0x46e   : > { %v10265_v15 = vadd.f32 %v10264_v12, %v13649_v22  ;;  %v10271_v42 = vadd.f32 %v10270_v49, %v10224_v48  ;;  %v8829_v30 = vpop.f32.mrb[19].mxu1 }
 0x46f   : > { %v10268_v3 = vadd.f32 %v10267_v57, %v13649_v22  ;;  %v10274_v20 = vadd.f32 %v10273_v40, %v8829_v30  ;;  %v10193_v21 = vpop.f32.mrb[40].mxu0 }
 0x470   : > { %v8987_v46 = vmul.f32 0.2, %v10265_v15  ;;  %v8988_v7 = vmul.f32 0.2, %v10271_v42  ;;  %v8151_v33 = vadd.f32 %v10193_v21, %v13640_v14  ;;  %v8142_v52 = vpop.f32.mrb[41].mxu0 }
 0x471   : > { %v8985_v56 = vmul.f32 0.2, %v10268_v3  ;;  %v8986_v16 = vmul.f32 0.2, %v10274_v20  ;;  %v8143_v45 = vadd.f32 %v13640_v14, %v8142_v52  ;;  %v10194_v28 = vpop.f32.mrb[42].mxu0 }
 0x472   : > { %v9019_v50 = vmax.f32 %v10265_v15, %v8987_v46  ;;  %v9020_v58 = vmax.f32 %v10271_v42, %v8988_v7  ;;  %v8154_v11 = vadd.f32 %v10194_v28, %v13640_v14  ;;  %v8145_v10 = vpop.f32.mrb[43].mxu0  ;;  %v10276_v25 = vadd.f32 %v13649_v22, %v8151_v33 }
 0x473   : > { %v9017_v53 = vmax.f32 %v10268_v3, %v8985_v56  ;;  %v9018_v62 = vmax.f32 %v10274_v20, %v8986_v16  ;;  %v8146_v26 = vadd.f32 %v13640_v14, %v8145_v10  ;;  %v10227_v47 = vpop.f32.mrb[20].mxu1  ;;  %v10279_v2 = vadd.f32 %v13649_v22, %v8143_v45 }
 0x474   : > { %9051 = vst.msk [vmem:[%s13664_s9 + $0x10] sm:$0xff] %vm5009_vm6, %v9019_v50  ;;  %9052 = vst.msk [vmem:[%s13664_s9 + $0x18] sm:$0xff] %vm5009_vm6, %v9020_v58  ;;  %v10277_v24 = vadd.f32 %v10276_v25, %v10227_v47  ;;  %v8842_v17 = vpop.f32.mrb[21].mxu1  ;;  %v10282_v51 = vadd.f32 %v13649_v22, %v8154_v11 }
 0x475   : > { %9049 = vst.msk [vmem:[%s13664_s9] sm:$0xff] %vm5009_vm6, %v9017_v53  ;;  %9050 = vst.msk [vmem:[%s13664_s9 + $0x8] sm:$0xff] %vm5009_vm6, %v9018_v62  ;;  %v10280_v5 = vadd.f32 %v10279_v2, %v8842_v17  ;;  %v10228_v59 = vpop.f32.mrb[22].mxu1  ;;  %v10285_v54 = vadd.f32 %v13649_v22, %v8146_v26 }
 0x476   : > { %v8991_v1 = vmul.f32 0.2, %v10277_v24  ;;  %v10283_v60 = vadd.f32 %v10282_v51, %v10228_v59  ;;  %v8845_v6 = vpop.f32.mrb[23].mxu1 }
 0x477   : > { %v8989_v41 = vmul.f32 0.2, %v10280_v5  ;;  %v10286_v32 = vadd.f32 %v10285_v54, %v8845_v6 }
 0x478   : > { %v9023_v18 = vmax.f32 %v10277_v24, %v8991_v1  ;;  %v8992_v37 = vmul.f32 0.2, %v10283_v60 }
 0x479   : > { %v9021_v36 = vmax.f32 %v10280_v5, %v8989_v41  ;;  %v8990_v31 = vmul.f32 0.2, %v10286_v32 }
 0x47a   : > { %9055 = vst.msk [vmem:[%s13664_s9 + $0x30] sm:$0xff] %vm5009_vm6, %v9023_v18  ;;  %v9024_v13 = vmax.f32 %v10283_v60, %v8992_v37 }
 0x47b   : > { %9053 = vst.msk [vmem:[%s13664_s9 + $0x20] sm:$0xff] %vm5009_vm6, %v9021_v36  ;;  %v9022_v4 = vmax.f32 %v10286_v32, %v8990_v31  ;;  %v10231_v8 = vpop.f32.mrb[24].mxu1 }
 0x47c   : > { %9056 = vst.msk [vmem:[%s13664_s9 + $0x38] sm:$0xff] %vm5009_vm6, %v9024_v13  ;;  %v8858_v35 = vpop.f32.mrb[25].mxu1 }
 0x47d   : > { %9054 = vst.msk [vmem:[%s13664_s9 + $0x28] sm:$0xff] %vm5009_vm6, %v9022_v4  ;;  %v10232_v19 = vpop.f32.mrb[26].mxu1 }
 0x47e   : > { %v8861_v39 = vpop.f32.mrb[27].mxu1 }
 0x483   : > { %v13689_v23 = vpop.f32.mrb[28].mxu1 }
 0x484   : > { %v13691_v61 = vpop.f32.mrb[29].mxu1 }
 0x485   : > { %v13693_v0 = vpop.f32.mrb[30].mxu1 }
 0x486   : > { %v13695_v44 = vpop.f32.mrb[31].mxu1 }
 0x48b   : > { %v10239_v43 = vpop.f32.mrb[0].mxu1 }
 0x48c   : > { %v10312_v38 = vadd.f32 %v13699_v63, %v10239_v43  ;;  %v8890_v29 = vpop.f32.mrb[1].mxu1 }
 0x48d   : > { %v10314_v27 = vadd.f32 %v13699_v63, %v8890_v29  ;;  %v10240_v55 = vpop.f32.mrb[2].mxu1 }
 0x48e   : > { %v9003_v34 = vmul.f32 0.2, %v10312_v38  ;;  %v10316_v12 = vadd.f32 %v13699_v63, %v10240_v55  ;;  %v8893_v9 = vpop.f32.mrb[3].mxu1 }
 0x48f   : > { %v9001_v49 = vmul.f32 0.2, %v10314_v27  ;;  %v10318_v57 = vadd.f32 %v13699_v63, %v8893_v9  ;;  %v10197_v48 = vpop.f32.mrb[44].mxu0 }
 0x490   : > { %v9035_v40 = vmax.f32 %v10312_v38, %v9003_v34  ;;  %v9004_v15 = vmul.f32 0.2, %v10316_v12  ;;  %v8167_v42 = vadd.f32 %v10197_v48, %v13640_v14  ;;  %v8158_v30 = vpop.f32.mrb[45].mxu0 }
 0x491   : > { %v9033_v3 = vmax.f32 %v10314_v27, %v9001_v49  ;;  %v9002_v20 = vmul.f32 0.2, %v10318_v57  ;;  %v8159_v21 = vadd.f32 %v13640_v14, %v8158_v30  ;;  %v10198_v46 = vpop.f32.mrb[46].mxu0 }
 0x492   : > { %9067 = vst.msk [vmem:[%s13664_s9 + $0x90] sm:$0xff] %vm5009_vm6, %v9035_v40  ;;  %v9036_v7 = vmax.f32 %v10316_v12, %v9004_v15  ;;  %v10288_v33 = vadd.f32 %v13649_v22, %v8167_v42  ;;  %v8170_v52 = vadd.f32 %v10198_v46, %v13640_v14  ;;  %v8161_v56 = vpop.f32.mrb[47].mxu0 }
 0x493   : > { %9065 = vst.msk [vmem:[%s13664_s9 + $0x80] sm:$0xff] %vm5009_vm6, %v9033_v3  ;;  %v9034_v16 = vmax.f32 %v10318_v57, %v9002_v20  ;;  %v10291_v45 = vadd.f32 %v13649_v22, %v8159_v21  ;;  %v8162_v28 = vadd.f32 %v13640_v14, %v8161_v56  ;;  %v10243_v50 = vpop.f32.mrb[4].mxu1 }
 0x494   : > { %9068 = vst.msk [vmem:[%s13664_s9 + $0x98] sm:$0xff] %vm5009_vm6, %v9036_v7  ;;  %v10289_v58 = vadd.f32 %v10288_v33, %v10231_v8  ;;  %v10294_v11 = vadd.f32 %v13649_v22, %v8170_v52  ;;  %v10320_v10 = vadd.f32 %v13699_v63, %v10243_v50  ;;  %v8906_v25 = vpop.f32.mrb[5].mxu1 }
 0x495   : > { %9066 = vst.msk [vmem:[%s13664_s9 + $0x88] sm:$0xff] %vm5009_vm6, %v9034_v16  ;;  %v10292_v53 = vadd.f32 %v10291_v45, %v8858_v35  ;;  %v10297_v62 = vadd.f32 %v13649_v22, %v8162_v28  ;;  %v10322_v26 = vadd.f32 %v13699_v63, %v8906_v25  ;;  %v10244_v47 = vpop.f32.mrb[6].mxu1 }
 0x496   : > { %v8995_v2 = vmul.f32 0.2, %v10289_v58  ;;  %v10295_v24 = vadd.f32 %v10294_v11, %v10232_v19  ;;  %v9007_v17 = vmul.f32 0.2, %v10320_v10  ;;  %v10324_v51 = vadd.f32 %v13699_v63, %v10244_v47  ;;  %v8909_v5 = vpop.f32.mrb[7].mxu1 }
 0x497   : > { %v8993_v59 = vmul.f32 0.2, %v10292_v53  ;;  %v10298_v54 = vadd.f32 %v10297_v62, %v8861_v39  ;;  %v9005_v1 = vmul.f32 0.2, %v10322_v26  ;;  %v10326_v60 = vadd.f32 %v13699_v63, %v8909_v5 }
 0x498   : > { %v9027_v6 = vmax.f32 %v10289_v58, %v8995_v2  ;;  %v8996_v41 = vmul.f32 0.2, %v10295_v24  ;;  %v9039_v32 = vmax.f32 %v10320_v10, %v9007_v17  ;;  %v9008_v18 = vmul.f32 0.2, %v10324_v51 }
 0x499   : > { %v9025_v37 = vmax.f32 %v10292_v53, %v8993_v59  ;;  %v8994_v36 = vmul.f32 0.2, %v10298_v54  ;;  %v9037_v31 = vmax.f32 %v10322_v26, %v9005_v1  ;;  %v9006_v13 = vmul.f32 0.2, %v10326_v60 }
 0x49a   : > { %9059 = vst.msk [vmem:[%s13664_s9 + $0x50] sm:$0xff] %vm5009_vm6, %v9027_v6  ;;  %v9028_v4 = vmax.f32 %v10295_v24, %v8996_v41  ;;  %9071 = vst.msk [vmem:[%s13664_s9 + $0xb0] sm:$0xff] %vm5009_vm6, %v9039_v32  ;;  %v9040_v8 = vmax.f32 %v10324_v51, %v9008_v18 }
 0x49b   : > { %9057 = vst.msk [vmem:[%s13664_s9 + $0x40] sm:$0xff] %vm5009_vm6, %v9025_v37  ;;  %v9026_v35 = vmax.f32 %v10298_v54, %v8994_v36  ;;  %9069 = vst.msk [vmem:[%s13664_s9 + $0xa0] sm:$0xff] %vm5009_vm6, %v9037_v31  ;;  %v9038_v19 = vmax.f32 %v10326_v60, %v9006_v13  ;;  %v10247_v39 = vpop.f32.mrb[8].mxu1 }
 0x49c   : > { %9060 = vst.msk [vmem:[%s13664_s9 + $0x58] sm:$0xff] %vm5009_vm6, %v9028_v4  ;;  %9072 = vst.msk [vmem:[%s13664_s9 + $0xb8] sm:$0xff] %vm5009_vm6, %v9040_v8  ;;  %v10328_v43 = vadd.f32 %v13699_v63, %v10247_v39  ;;  %v8922_v38 = vpop.f32.mrb[9].mxu1 }
 0x49d   : > { %9058 = vst.msk [vmem:[%s13664_s9 + $0x48] sm:$0xff] %vm5009_vm6, %v9026_v35  ;;  %9070 = vst.msk [vmem:[%s13664_s9 + $0xa8] sm:$0xff] %vm5009_vm6, %v9038_v19  ;;  %v10330_v29 = vadd.f32 %v13699_v63, %v8922_v38  ;;  %v10248_v27 = vpop.f32.mrb[10].mxu1 }
 0x49e   : > { %v9011_v55 = vmul.f32 0.2, %v10328_v43  ;;  %v10332_v34 = vadd.f32 %v13699_v63, %v10248_v27  ;;  %v8925_v12 = vpop.f32.mrb[11].mxu1 }
 0x49f   : > { %v9009_v9 = vmul.f32 0.2, %v10330_v29  ;;  %v10334_v49 = vadd.f32 %v13699_v63, %v8925_v12 }
 0x4a0   : > { %v9043_v57 = vmax.f32 %v10328_v43, %v9011_v55  ;;  %v9012_v48 = vmul.f32 0.2, %v10332_v34 }
 0x4a1   : > { %v9041_v40 = vmax.f32 %v10330_v29, %v9009_v9  ;;  %v9010_v15 = vmul.f32 0.2, %v10334_v49 }
 0x4a2   : > { %9075 = vst.msk [vmem:[%s13664_s9 + $0xd0] sm:$0xff] %vm5009_vm6, %v9043_v57  ;;  %v9044_v42 = vmax.f32 %v10332_v34, %v9012_v48 }
 0x4a3   : > { %9073 = vst.msk [vmem:[%s13664_s9 + $0xc0] sm:$0xff] %vm5009_vm6, %v9041_v40  ;;  %v9042_v30 = vmax.f32 %v10334_v49, %v9010_v15  ;;  %v10251_v3 = vpop.f32.mrb[12].mxu1 }
 0x4a4   : > { %9076 = vst.msk [vmem:[%s13664_s9 + $0xd8] sm:$0xff] %vm5009_vm6, %v9044_v42  ;;  %v10336_v20 = vadd.f32 %v13699_v63, %v10251_v3  ;;  %v8938_v21 = vpop.f32.mrb[13].mxu1 }
 0x4a5   : > { %9074 = vst.msk [vmem:[%s13664_s9 + $0xc8] sm:$0xff] %vm5009_vm6, %v9042_v30  ;;  %v10338_v46 = vadd.f32 %v13699_v63, %v8938_v21  ;;  %v10252_v7 = vpop.f32.mrb[14].mxu1 }
 0x4a6   : > { %v9015_v33 = vmul.f32 0.2, %v10336_v20  ;;  %v10340_v52 = vadd.f32 %v13699_v63, %v10252_v7  ;;  %v8941_v56 = vpop.f32.mrb[15].mxu1 }
 0x4a7   : > { %v9013_v16 = vmul.f32 0.2, %v10338_v46  ;;  %v10342_v45 = vadd.f32 %v13699_v63, %v8941_v56 }
 0x4a8   : > { %v9047_v28 = vmax.f32 %v10336_v20, %v9015_v33  ;;  %v9016_v50 = vmul.f32 0.2, %v10340_v52 }
 0x4a9   : > { %v9045_v58 = vmax.f32 %v10338_v46, %v9013_v16  ;;  %v9014_v11 = vmul.f32 0.2, %v10342_v45 }
 0x4aa   : > { %9079 = vst.msk [vmem:[%s13664_s9 + $0xf0] sm:$0xff] %vm5009_vm6, %v9047_v28  ;;  %v9048_v10 = vmax.f32 %v10340_v52, %v9016_v50 }
 0x4ab   : > { %9077 = vst.msk [vmem:[%s13664_s9 + $0xe0] sm:$0xff] %vm5009_vm6, %v9045_v58  ;;  %v9046_v25 = vmax.f32 %v10342_v45, %v9014_v11 }
 0x4ac   : > { %9080 = vst.msk [vmem:[%s13664_s9 + $0xf8] sm:$0xff] %vm5009_vm6, %v9048_v10 }
 0x4ad   : > { %9078 = vst.msk [vmem:[%s13664_s9 + $0xe8] sm:$0xff] %vm5009_vm6, %v9046_v25 }
 0x4b2   : > { %v10201_v53 = vpop.f32.mrb[48].mxu0 }
 0x4b3   : > { %v8183_v62 = vadd.f32 %v10201_v53, %v13640_v14  ;;  %v8174_v26 = vpop.f32.mrb[49].mxu0 }
 0x4b4   : > { %v8175_v63 = vadd.f32 %v13640_v14, %v8174_v26  ;;  %v10202_v47 = vpop.f32.mrb[50].mxu0 }
 0x4b5   : > { %v10300_v2 = vadd.f32 %v13649_v22, %v8183_v62  ;;  %v8186_v24 = vadd.f32 %v10202_v47, %v13640_v14  ;;  %v8177_v17 = vpop.f32.mrb[51].mxu0 }
 0x4b6   : > { %v10303_v51 = vadd.f32 %v13649_v22, %v8175_v63  ;;  %v8178_v5 = vadd.f32 %v13640_v14, %v8177_v17 }
 0x4b7   : > { %v10301_v59 = vadd.f32 %v10300_v2, %v13689_v23  ;;  %v10306_v54 = vadd.f32 %v13649_v22, %v8186_v24 }
 0x4b8   : > { %v10304_v1 = vadd.f32 %v10303_v51, %v13691_v61  ;;  %v10309_v60 = vadd.f32 %v13649_v22, %v8178_v5 }
 0x4b9   : > { %v8999_v6 = vmul.f32 0.2, %v10301_v59  ;;  %v10307_v41 = vadd.f32 %v10306_v54, %v13693_v0 }
 0x4ba   : > { %v8997_v32 = vmul.f32 0.2, %v10304_v1  ;;  %v10310_v18 = vadd.f32 %v10309_v60, %v13695_v44 }
 0x4bb   : > { %v9031_v37 = vmax.f32 %v10301_v59, %v8999_v6  ;;  %v9000_v36 = vmul.f32 0.2, %v10307_v41 }
 0x4bc   : > { %v9029_v31 = vmax.f32 %v10304_v1, %v8997_v32  ;;  %v8998_v14 = vmul.f32 0.2, %v10310_v18 }
 0x4bd   : > { %9063 = vst.msk [vmem:[%s13664_s9 + $0x70] sm:$0xff] %vm5009_vm6, %v9031_v37  ;;  %v9032_v23 = vmax.f32 %v10307_v41, %v9000_v36 }
 0x4be   : > { %9061 = vst.msk [vmem:[%s13664_s9 + $0x60] sm:$0xff] %vm5009_vm6, %v9029_v31  ;;  %v9030_v13 = vmax.f32 %v10310_v18, %v8998_v14 }
 0x4bf   : > { %9064 = vst.msk [vmem:[%s13664_s9 + $0x78] sm:$0xff] %vm5009_vm6, %v9032_v23 }
 0x4c0   : > { %9062 = vst.msk [vmem:[%s13664_s9 + $0x68] sm:$0xff] %vm5009_vm6, %v9030_v13 }
 0x4c1 PF: > { %s17_s26 = sadd.s32 1, %s10535_s26   ;;  %s13901_s24 = smov %s10531_s25 }
 0x4c2   : > { %p14_p5 = scmp.ge.s32.totalorder %s17_s26, 4   ;;  %s13902_s25 = smov %s13904_s27 }
 0x4c4   :  { %16 = sbr.rel (!%p14_p5) target bundleno = 2 (0x2), region = 88 }

</bundles_post_ra>
